<compile_context>
chip_gen: v7x
topology: tpu7x:2x2x1
jax: 0.10.0
libtpu: 0.0.40
codegen_flags: <defaults>
</compile_context>

<pallas_src>
import math
import functools

import jax
import jax.numpy as jnp
from jax.experimental import pallas as pl
from jax.experimental.pallas import tpu as pltpu

EPS_LN = 1e-5      # nn.LayerNorm default eps
EPS_NORM = 1e-12   # F.normalize default eps
NEG_BIG = -1e30    # finite key-mask bias (avoids -inf NaN on degenerate rows)


# ----------------------------- kernel ---------------------------------------

def _layernorm(x, gamma, beta):
    mean = jnp.mean(x, axis=-1, keepdims=True)
    var = jnp.mean(jnp.square(x - mean), axis=-1, keepdims=True)  # biased (PyTorch)
    return (x - mean) * jax.lax.rsqrt(var + EPS_LN) * gamma + beta


def encoder_kernel(x_ref, bias_ref, maskf_ref,
                   wqkv_ref, bqkv_ref, wo_ref, bo_ref,
                   ln1g_ref, ln1b_ref, ln2g_ref, ln2b_ref,
                   w1_ref, b1_ref, w2_ref, b2_ref,
                   wfc_ref, bfc_ref,
                   out_ref,
                   x_scr,
                   *, num_heads, weights_resident):
    layer = pl.program_id(1)
    n_layers = pl.num_programs(1)
    bt, t, d = x_ref.shape
    n = bt * t                      # MXU M dimension: all sequences in the block
    hd = d // num_heads
    scale = 1.0 / math.sqrt(hd)
    cdt = jnp.bfloat16              # MXU operand dtype (f32 accumulation)

    # Weight indexing: full [L,...] stack resident in VMEM -> dynamic [layer];
    # streamed one-layer-per-step -> [0].
    li = layer if weights_resident else 0

    # load the residual stream once per batch block (layer axis is the inner grid dim)
    @pl.when(layer == 0)
    def _load_x():
        x_scr[...] = x_ref[...].reshape(n, d).astype(jnp.float32)

    x = x_scr[...]                                            # (n, d) f32

    # ---- multi-head self-attention sub-block (pre-LN), residual ----
    h = _layernorm(x, ln1g_ref[li], ln1b_ref[li])
    qkv = (jnp.dot(h.astype(cdt), wqkv_ref[li],
                   preferred_element_type=jnp.float32) + bqkv_ref[li])  # (n, 3d) f32
    q = (qkv[:, 0 * d:1 * d] * scale).astype(cdt)             # fold 1/sqrt(hd) into q
    k = qkv[:, 1 * d:2 * d].astype(cdt)
    v = qkv[:, 2 * d:3 * d].astype(cdt)
    bias = bias_ref[...][:, None, :]                          # (bt, 1, t) additive key mask

    # TODO(synk): a fully head-batched 4-D einsum ('bqhd,bkhd->bhqk') would remove the
    #             H-way lane slice/concat, but Mosaic dot_general with two batch dims
    #             is not a safe lowering target; every matmul below is still batched
    #             over the bt sequences via 3-D einsums.
    head_outs = []
    for hh in range(num_heads):
        sl = slice(hh * hd, (hh + 1) * hd)
        qh = q[:, sl].reshape(bt, t, hd)
        kh = k[:, sl].reshape(bt, t, hd)
        vh = v[:, sl].reshape(bt, t, hd)
        s = jnp.einsum("bqd,bkd->bqk", qh, kh,
                       preferred_element_type=jnp.float32) + bias      # (bt, t, t)
        s = s - jnp.max(s, axis=-1, keepdims=True)
        p = jnp.exp(s)
        # approx (EUP) reciprocal is fine inside the softmax (per-layer hot path)
        p = p * pl.reciprocal(jnp.sum(p, axis=-1, keepdims=True), approx=True)
        oh = jnp.einsum("bqk,bkd->bqd", p.astype(cdt), vh,
                        preferred_element_type=jnp.float32)            # (bt, t, hd)
        head_outs.append(oh.reshape(n, hd))
    attn = jnp.concatenate(head_outs, axis=-1)                         # (n, d)

    x = x + jnp.dot(attn.astype(cdt), wo_ref[li],
                    preferred_element_type=jnp.float32) + bo_ref[li]

    # ---- feed-forward sub-block (pre-LN), residual ----
    h2 = _layernorm(x, ln2g_ref[li], ln2b_ref[li])
    ff = jnp.dot(h2.astype(cdt), w1_ref[li],
                 preferred_element_type=jnp.float32) + b1_ref[li]
    ff = jnp.maximum(ff, 0.0)
    ff = jnp.dot(ff.astype(cdt), w2_ref[li],
                 preferred_element_type=jnp.float32) + b2_ref[li]
    x = x + ff
    x_scr[...] = x                                            # carry to next layer step

    # ---- epilogue on the last layer: masked mean-pool + fc + L2 normalize ----
    @pl.when(layer == n_layers - 1)
    def _epilogue():
        mf = maskf_ref[...]                                   # (bt, t)
        x3 = x.reshape(bt, t, d)
        # masked mean-pool on the MXU (batched (bt,1,t) x (bt,t,d) matmul)
        pooled = jnp.einsum("bqt,btd->bqd", mf[:, None, :], x3,
                            preferred_element_type=jnp.float32)[:, 0, :]  # (bt, d)
        count = jnp.maximum(jnp.sum(mf, axis=1, keepdims=True), 1.0)
        pooled = pooled / count                               # exact divide (epilogue-only)
        out = (jnp.dot(pooled.astype(cdt), wfc_ref[...],
                       preferred_element_type=jnp.float32) + bfc_ref[...])
        norm = jnp.sqrt(jnp.sum(out * out, axis=-1, keepdims=True))
        out = out / jnp.maximum(norm, EPS_NORM)               # exact divide (unit-norm output)
        out_ref[...] = out.astype(out_ref.dtype)


# ----------------------------- wrapper ---------------------------------------

PARAM_ORDER = ("wqkv", "bqkv", "wo", "bo",
               "ln1g", "ln1b", "ln2g", "ln2b",
               "w1", "b1", "w2", "b2")


def transformer_text_encoder(captions, params, *, num_heads, block_b=None):
    emb, pe = params["emb"], params["pe"]
    B, T = captions.shape
    D = emb.shape[1]
    L = params["wqkv"].shape[0]

    # glue: embedding gather (padding row is zero) + positional encoding + masks
    # TODO(synk): the embedding gather stays in XLA; a blocked Pallas gather is not
    #             worthwhile at these sizes.
    x = (emb[captions] + pe[:T][None, :, :]).astype(jnp.float32)        # (B, T, D)
    valid = captions != 0
    mask_f = valid.astype(jnp.float32)                                  # (B, T)
    mask_bias = jnp.where(valid, 0.0, NEG_BIG).astype(jnp.float32)      # (B, T)

    # ---- VMEM budget, weight residency, block_b selection -------------------
    try:
        vmem_cap = int(pltpu.get_tpu_info().vmem_capacity_bytes)
    except Exception:
        vmem_cap = 64 * 1024 * 1024          # conservative (v7x per-TC physical)
    vmem_limit = min(int(vmem_cap * 0.8), 100 * 1024 * 1024)

    weight_bytes = sum(int(params[k].size) * int(params[k].dtype.itemsize)
                       for k in PARAM_ORDER)
    weight_bytes += int(params["wfc"].size) * int(params["wfc"].dtype.itemsize)
    weight_bytes += int(params["bfc"].size) * int(params["bfc"].dtype.itemsize)
    # Pallas double-buffers every input block: only keep the whole stack resident if
    # 2x of it stays under ~half the VMEM budget (leaving room for activations).
    weights_resident = 2 * weight_bytes <= vmem_limit // 2
    # TODO(synk): for D >~ 768 on v7x, additionally chunk w1/w2 streaming along the
    #             4*D hidden dim instead of shrinking block_b.
    # TODO(synk): on v7x, fp8 weight storage (+ per-channel scales) would halve the
    #             weight DMA / VMEM residency again.
    # TODO(synk): on v7x, x / mask_f could move to memory_space=pl.ANY with a manual
    #             DMA at layer==0 to free their double-buffered VMEM copies.

    if block_b is None:
        resident_w = 2 * weight_bytes if weights_resident else 2 * (weight_bytes // max(L, 1))
        act_bytes_per_row = 14 * D * 4       # x scratch + x block + qkv + ffn hidden + temps (f32)
        avail = max(vmem_limit - resident_w - (8 << 20), act_bytes_per_row * T)
        max_rows = min(512, avail // act_bytes_per_row)   # ~weight-stream break-even (v6e)
        cap_b = max(1, B // 2)               # keep >=2 parallel blocks for dual-TC (v7x)
        block_b = 1
        for c in range(1, B + 1):
            if B % c == 0 and c <= cap_b and c * T <= max_rows:
                block_b = c
    assert B % block_b == 0, "block_b must divide the batch size"
    n_b = B // block_b

    kernel = functools.partial(encoder_kernel, num_heads=num_heads,
                               weights_resident=weights_resident)

    if weights_resident:
        # constant block index -> Pallas fetches each weight from HBM exactly once
        def wspec(arr):
            s = arr.shape
            return pl.BlockSpec(s, lambda b, l: (0,) * len(s))
    else:
        # stream one layer's slab per grid step
        def wspec(arr):
            s = arr.shape
            return pl.BlockSpec((1,) + s[1:], lambda b, l: (l,) + (0,) * (len(s) - 1))

    in_specs = [
        pl.BlockSpec((block_b, T, D), lambda b, l: (b, 0, 0)),   # x (fetched once per b)
        pl.BlockSpec((block_b, T),    lambda b, l: (b, 0)),      # additive key-mask bias
        pl.BlockSpec((block_b, T),    lambda b, l: (b, 0)),      # float mask (pooling)
    ] + [wspec(params[k]) for k in PARAM_ORDER] + [
        pl.BlockSpec((D, D), lambda b, l: (0, 0)),               # wfc (constant block)
        pl.BlockSpec((1, D), lambda b, l: (0, 0)),               # bfc
    ]

    out = pl.pallas_call(
        kernel,
        out_shape=jax.ShapeDtypeStruct((B, D), jnp.float32),
        grid=(n_b, L),
        in_specs=in_specs,
        out_specs=pl.BlockSpec((block_b, D), lambda b, l: (b, 0)),
        scratch_shapes=[
            pltpu.VMEM((block_b * T, D), jnp.float32),   # residual stream carried across layers
        ],
        compiler_params=pltpu.CompilerParams(
            dimension_semantics=("parallel", "arbitrary"),
            vmem_limit_bytes=int(vmem_limit)),
    )(x, mask_bias, mask_f, *(params[k] for k in PARAM_ORDER),
      params["wfc"], params["bfc"])
    return out


# ----------------------------- params / reference ----------------------------

def make_params(key, vocab_size, embed_dim, num_layers, max_len):
    D, L = embed_dim, num_layers
    ks = jax.random.split(key, 8)

    def nrm(k, shape, s=0.02, dtype=jnp.float32):
        return (s * jax.random.normal(k, shape)).astype(dtype)

    emb = nrm(ks[0], (vocab_size, D), 1.0)
    emb = emb.at[0].set(0.0)  # padding_idx = 0

    position = jnp.arange(max_len, dtype=jnp.float32)[:, None]
    div_term = jnp.exp(jnp.arange(0, D, 2, dtype=jnp.float32)
                       * (-math.log(10000.0) / D))
    pe = jnp.zeros((max_len, D), jnp.float32)
    pe = pe.at[:, 0::2].set(jnp.sin(position * div_term))
    pe = pe.at[:, 1::2].set(jnp.cos(position * div_term))

    W = jnp.bfloat16   # matmul weights stored bf16: halves HBM/VMEM traffic
    params = {
        "emb": emb, "pe": pe,
        "wqkv": nrm(ks[1], (L, D, 3 * D), dtype=W), "bqkv": nrm(ks[2], (L, 1, 3 * D)),
        "wo":   nrm(ks[3], (L, D, D), dtype=W),     "bo":   nrm(ks[4], (L, 1, D)),
        "ln1g": jnp.ones((L, 1, D), jnp.float32),
        "ln1b": jnp.zeros((L, 1, D), jnp.float32),
        "ln2g": jnp.ones((L, 1, D), jnp.float32),
        "ln2b": jnp.zeros((L, 1, D), jnp.float32),
        "w1":   nrm(ks[5], (L, D, 4 * D), dtype=W), "b1": jnp.zeros((L, 1, 4 * D), jnp.float32),
        "w2":   nrm(ks[6], (L, 4 * D, D), dtype=W), "b2": jnp.zeros((L, 1, D), jnp.float32),
        "wfc":  nrm(ks[7], (D, D), dtype=W),        "bfc": jnp.zeros((1, D), jnp.float32),
    }
    return params


def ref_forward(captions, params, num_heads):
    """Pure-JAX reference mirroring the PyTorch forward (eval mode) with the same
    bf16-operand / f32-accumulation matmul precision as the kernel."""
    emb, pe = params["emb"], params["pe"]
    B, T = captions.shape
    D = emb.shape[1]
    L = params["wqkv"].shape[0]
    hd = D // num_heads
    bf16 = jnp.bfloat16

    def mm(a, w):
        return jnp.dot(a.astype(bf16), w.astype(bf16),
                       preferred_element_type=jnp.float32)

    def ln(x, g, b):
        m = x.mean(-1, keepdims=True)
        v = ((x - m) ** 2).mean(-1, keepdims=True)
        return (x - m) * jax.lax.rsqrt(v + EPS_LN) * g + b

    x = emb[captions] + pe[:T][None]
    key_mask = captions != 0                                    # (B, T)
    for l in range(L):
        h = ln(x, params["ln1g"][l, 0], params["ln1b"][l, 0])
        qkv = mm(h, params["wqkv"][l]) + params["bqkv"][l, 0]
        q, k, v = qkv[..., :D], qkv[..., D:2 * D], qkv[..., 2 * D:]
        q = q * (1.0 / math.sqrt(hd))
        q = q.reshape(B, T, num_heads, hd).transpose(0, 2, 1, 3)
        k = k.reshape(B, T, num_heads, hd).transpose(0, 2, 1, 3)
        v = v.reshape(B, T, num_heads, hd).transpose(0, 2, 1, 3)
        scores = jnp.einsum("bhqd,bhkd->bhqk", q.astype(bf16), k.astype(bf16),
                            preferred_element_type=jnp.float32)
        scores = jnp.where(key_mask[:, None, None, :], scores, -jnp.inf)
        w = jax.nn.softmax(scores, axis=-1)
        a = jnp.einsum("bhqk,bhkd->bhqd", w.astype(bf16), v.astype(bf16),
                       preferred_element_type=jnp.float32)
        a = a.transpose(0, 2, 1, 3).reshape(B, T, D)
        x = x + (mm(a, params["wo"][l]) + params["bo"][l, 0])
        h2 = ln(x, params["ln2g"][l, 0], params["ln2b"][l, 0])
        ff = jnp.maximum(mm(h2, params["w1"][l]) + params["b1"][l, 0], 0.0)
        x = x + (mm(ff, params["w2"][l]) + params["b2"][l, 0])
    mf = key_mask.astype(jnp.float32)
    pooled = (x * mf[..., None]).sum(1) / jnp.maximum(mf.sum(1, keepdims=True), 1.0)
    out = mm(pooled, params["wfc"]) + params["bfc"][0]
    nrm = jnp.sqrt((out * out).sum(1, keepdims=True))
    return out / jnp.maximum(nrm, EPS_NORM)


# ----------------------------- main -------------------------------------------

if __name__ == "__main__":
    VOCAB, D, HEADS, LAYERS, MAXLEN = 50, 64, 4, 2, 100
    B, T = 32, 8

    key = jax.random.PRNGKey(0)
    k_tok, k_par, k_len = jax.random.split(key, 3)
    params = make_params(k_par, VOCAB, D, LAYERS, MAXLEN)

    captions = jax.random.randint(k_tok, (B, T), 1, VOCAB, dtype=jnp.int32)
    # introduce tail padding (token id 0); every sequence keeps >= 3 valid tokens
    lengths = jax.random.randint(k_len, (B,), 3, T + 1)
    captions = jnp.where(jnp.arange(T)[None, :] < lengths[:, None], captions, 0)

    out = transformer_text_encoder(captions, params, num_heads=HEADS)
    out = jax.block_until_ready(out)

    ref = ref_forward(captions, params, HEADS)
    assert out.shape == (B, D)
    err = float(jnp.max(jnp.abs(out - ref)))
    # tolerance covers bf16 MXU operands + approx (EUP) softmax reciprocals
    assert jnp.allclose(out, ref, rtol=1e-2, atol=1e-2), f"max abs err {err}"

    print("KERNEL_OK")
</pallas_src>

<mosaic_0001>
module attributes {stable_mosaic.version = 11 : i64} {
  func.func @encoder_kernel(%arg0: i32, %arg1: i32, %arg2: memref<16x8x64xf32, #tpu.memory_space<vmem>>, %arg3: memref<16x8xf32, #tpu.memory_space<vmem>>, %arg4: memref<16x8xf32, #tpu.memory_space<vmem>>, %arg5: memref<2x64x192xbf16, #tpu.memory_space<vmem>>, %arg6: memref<2x1x192xf32, #tpu.memory_space<vmem>>, %arg7: memref<2x64x64xbf16, #tpu.memory_space<vmem>>, %arg8: memref<2x1x64xf32, #tpu.memory_space<vmem>>, %arg9: memref<2x1x64xf32, #tpu.memory_space<vmem>>, %arg10: memref<2x1x64xf32, #tpu.memory_space<vmem>>, %arg11: memref<2x1x64xf32, #tpu.memory_space<vmem>>, %arg12: memref<2x1x64xf32, #tpu.memory_space<vmem>>, %arg13: memref<2x64x256xbf16, #tpu.memory_space<vmem>>, %arg14: memref<2x1x256xf32, #tpu.memory_space<vmem>>, %arg15: memref<2x256x64xbf16, #tpu.memory_space<vmem>>, %arg16: memref<2x1x64xf32, #tpu.memory_space<vmem>>, %arg17: memref<64x64xbf16, #tpu.memory_space<vmem>>, %arg18: memref<1x64xf32, #tpu.memory_space<vmem>>, %arg19: memref<16x64xf32, #tpu.memory_space<vmem>>, %arg20: memref<128x64xf32, #tpu.memory_space<vmem>>) attributes {dimension_semantics = [#tpu.dimension_semantics<parallel>, #tpu.dimension_semantics<arbitrary>], iteration_bounds = array<i64: 2, 2>, scalar_prefetch = 0 : i64, scratch_operands = 1 : i64, tpu.core_type = #tpu.core_type<tc>, window_params = [{transform_indices = @transform_0, window_bounds = array<i64: 16, 8, 64>}, {transform_indices = @transform_1, window_bounds = array<i64: 16, 8>}, {transform_indices = @transform_2, window_bounds = array<i64: 16, 8>}, {pipeline_mode = #tpu.pipeline_mode<synchronous>, transform_indices = @transform_3, window_bounds = array<i64: 2, 64, 192>}, {pipeline_mode = #tpu.pipeline_mode<synchronous>, transform_indices = @transform_4, window_bounds = array<i64: 2, 1, 192>}, {pipeline_mode = #tpu.pipeline_mode<synchronous>, transform_indices = @transform_5, window_bounds = array<i64: 2, 64, 64>}, {pipeline_mode = #tpu.pipeline_mode<synchronous>, transform_indices = @transform_6, window_bounds = array<i64: 2, 1, 64>}, {pipeline_mode = #tpu.pipeline_mode<synchronous>, transform_indices = @transform_7, window_bounds = array<i64: 2, 1, 64>}, {pipeline_mode = #tpu.pipeline_mode<synchronous>, transform_indices = @transform_8, window_bounds = array<i64: 2, 1, 64>}, {pipeline_mode = #tpu.pipeline_mode<synchronous>, transform_indices = @transform_9, window_bounds = array<i64: 2, 1, 64>}, {pipeline_mode = #tpu.pipeline_mode<synchronous>, transform_indices = @transform_10, window_bounds = array<i64: 2, 1, 64>}, {pipeline_mode = #tpu.pipeline_mode<synchronous>, transform_indices = @transform_11, window_bounds = array<i64: 2, 64, 256>}, {pipeline_mode = #tpu.pipeline_mode<synchronous>, transform_indices = @transform_12, window_bounds = array<i64: 2, 1, 256>}, {pipeline_mode = #tpu.pipeline_mode<synchronous>, transform_indices = @transform_13, window_bounds = array<i64: 2, 256, 64>}, {pipeline_mode = #tpu.pipeline_mode<synchronous>, transform_indices = @transform_14, window_bounds = array<i64: 2, 1, 64>}, {pipeline_mode = #tpu.pipeline_mode<synchronous>, transform_indices = @transform_15, window_bounds = array<i64: 64, 64>}, {pipeline_mode = #tpu.pipeline_mode<synchronous>, transform_indices = @transform_16, window_bounds = array<i64: 1, 64>}, {transform_indices = @transform_17, window_bounds = array<i64: 16, 64>}]} {
    %c0_i32 = arith.constant 0 : i32
    %0 = arith.cmpi eq, %arg1, %c0_i32 : i32
    %1 = arith.extui %0 : i1 to i32
    %c0_i32_0 = arith.constant 0 : i32
    %2 = arith.cmpi ne, %1, %c0_i32_0 : i32
    scf.if %2 {
      %c0_62 = arith.constant 0 : index
      %c0_63 = arith.constant 0 : index
      %c0_64 = arith.constant 0 : index
      %207 = vector.load %arg2[%c0_62, %c0_63, %c0_64] : memref<16x8x64xf32, #tpu.memory_space<vmem>>, vector<16x8x64xf32>
      %208 = vector.shape_cast %207 : vector<16x8x64xf32> to vector<128x64xf32>
      %c0_65 = arith.constant 0 : index
      %c0_66 = arith.constant 0 : index
      %209 = vector.load %arg20[%c0_65, %c0_66] : memref<128x64xf32, #tpu.memory_space<vmem>>, vector<128x64xf32>
      tpu.vector_store %arg20[%c0_65, %c0_66], %208 {strides = array<i32>} : memref<128x64xf32, #tpu.memory_space<vmem>>, vector<128x64xf32>,
    } else {
    }
    %c0 = arith.constant 0 : index
    %c0_1 = arith.constant 0 : index
    %3 = vector.load %arg20[%c0, %c0_1] : memref<128x64xf32, #tpu.memory_space<vmem>>, vector<128x64xf32>
    %4 = arith.index_cast %arg1 : i32 to index
    %c0_2 = arith.constant 0 : index
    %c0_3 = arith.constant 0 : index
    %5 = vector.load %arg9[%4, %c0_2, %c0_3] : memref<2x1x64xf32, #tpu.memory_space<vmem>>, vector<1x1x64xf32>
    %6 = vector.shape_cast %5 : vector<1x1x64xf32> to vector<1x64xf32>
    %7 = arith.index_cast %arg1 : i32 to index
    %c0_4 = arith.constant 0 : index
    %c0_5 = arith.constant 0 : index
    %8 = vector.load %arg10[%7, %c0_4, %c0_5] : memref<2x1x64xf32, #tpu.memory_space<vmem>>, vector<1x1x64xf32>
    %9 = vector.shape_cast %8 : vector<1x1x64xf32> to vector<1x64xf32>
    %cst = arith.constant dense<0.000000e+00> : vector<128xf32>
    %10 = vector.multi_reduction <add>, %3, %cst [1] : vector<128x64xf32> to vector<128xf32>
    %11 = vector.shape_cast %10 : vector<128xf32> to vector<128x1xf32>
    %cst_6 = arith.constant 6.400000e+01 : f32
    %12 = vector.broadcast %cst_6 : f32 to vector<128x1xf32>
    %13 = arith.divf %11, %12 : vector<128x1xf32>
    %14 = vector.broadcast %13 : vector<128x1xf32> to vector<128x64xf32>
    %15 = arith.subf %3, %14 : vector<128x64xf32>
    %16 = arith.mulf %15, %15 : vector<128x64xf32>
    %cst_7 = arith.constant dense<0.000000e+00> : vector<128xf32>
    %17 = vector.multi_reduction <add>, %16, %cst_7 [1] : vector<128x64xf32> to vector<128xf32>
    %18 = vector.shape_cast %17 : vector<128xf32> to vector<128x1xf32>
    %cst_8 = arith.constant 6.400000e+01 : f32
    %19 = vector.broadcast %cst_8 : f32 to vector<128x1xf32>
    %20 = arith.divf %18, %19 : vector<128x1xf32>
    %21 = vector.broadcast %13 : vector<128x1xf32> to vector<128x64xf32>
    %22 = arith.subf %3, %21 : vector<128x64xf32>
    %cst_9 = arith.constant 9.99999974E-6 : f32
    %23 = vector.broadcast %cst_9 : f32 to vector<128x1xf32>
    %24 = arith.addf %20, %23 : vector<128x1xf32>
    %25 = math.rsqrt %24 : vector<128x1xf32>
    %26 = vector.broadcast %25 : vector<128x1xf32> to vector<128x64xf32>
    %27 = arith.mulf %22, %26 : vector<128x64xf32>
    %28 = vector.broadcast %6 : vector<1x64xf32> to vector<128x64xf32>
    %29 = arith.mulf %27, %28 : vector<128x64xf32>
    %30 = vector.broadcast %9 : vector<1x64xf32> to vector<128x64xf32>
    %31 = arith.addf %29, %30 : vector<128x64xf32>
    %32 = arith.truncf %31 : vector<128x64xf32> to vector<128x64xbf16>
    %33 = arith.index_cast %arg1 : i32 to index
    %c0_10 = arith.constant 0 : index
    %c0_11 = arith.constant 0 : index
    %34 = vector.load %arg5[%33, %c0_10, %c0_11] : memref<2x64x192xbf16, #tpu.memory_space<vmem>>, vector<1x64x192xbf16>
    %35 = vector.shape_cast %34 : vector<1x64x192xbf16> to vector<64x192xbf16>
    %cst_12 = arith.constant dense<0.000000e+00> : vector<128x192xf32>
    %36 = tpu.matmul %32, %35, %cst_12 {dimension_numbers = #tpu.dot_dimension_numbers<[1], [0], [0], [1], [0, 0, 1, 1], [], []>} : vector<128x64xbf16>, vector<64x192xbf16>, vector<128x192xf32> -> vector<128x192xf32>
    %37 = arith.index_cast %arg1 : i32 to index
    %c0_13 = arith.constant 0 : index
    %c0_14 = arith.constant 0 : index
    %38 = vector.load %arg6[%37, %c0_13, %c0_14] : memref<2x1x192xf32, #tpu.memory_space<vmem>>, vector<1x1x192xf32>
    %39 = vector.shape_cast %38 : vector<1x1x192xf32> to vector<1x192xf32>
    %40 = vector.broadcast %39 : vector<1x192xf32> to vector<128x192xf32>
    %41 = arith.addf %36, %40 : vector<128x192xf32>
    %42 = vector.extract_strided_slice %41 {offsets = [0, 0], sizes = [128, 64], strides = [1, 1]} : vector<128x192xf32> to vector<128x64xf32>
    %cst_15 = arith.constant 2.500000e-01 : f32
    %43 = vector.broadcast %cst_15 : f32 to vector<128x64xf32>
    %44 = arith.mulf %42, %43 : vector<128x64xf32>
    %45 = arith.truncf %44 : vector<128x64xf32> to vector<128x64xbf16>
    %46 = vector.extract_strided_slice %41 {offsets = [0, 64], sizes = [128, 64], strides = [1, 1]} : vector<128x192xf32> to vector<128x64xf32>
    %47 = arith.truncf %46 : vector<128x64xf32> to vector<128x64xbf16>
    %48 = vector.extract_strided_slice %41 {offsets = [0, 128], sizes = [128, 64], strides = [1, 1]} : vector<128x192xf32> to vector<128x64xf32>
    %49 = arith.truncf %48 : vector<128x64xf32> to vector<128x64xbf16>
    %c0_16 = arith.constant 0 : index
    %c0_17 = arith.constant 0 : index
    %50 = vector.load %arg3[%c0_16, %c0_17] : memref<16x8xf32, #tpu.memory_space<vmem>>, vector<16x8xf32>
    %51 = vector.shape_cast %50 : vector<16x8xf32> to vector<16x1x8xf32>
    %52 = vector.extract_strided_slice %45 {offsets = [0, 0], sizes = [128, 16], strides = [1, 1]} : vector<128x64xbf16> to vector<128x16xbf16>
    %53 = vector.shape_cast %52 : vector<128x16xbf16> to vector<16x8x16xbf16>
    %54 = vector.extract_strided_slice %47 {offsets = [0, 0], sizes = [128, 16], strides = [1, 1]} : vector<128x64xbf16> to vector<128x16xbf16>
    %55 = vector.shape_cast %54 : vector<128x16xbf16> to vector<16x8x16xbf16>
    %56 = vector.extract_strided_slice %49 {offsets = [0, 0], sizes = [128, 16], strides = [1, 1]} : vector<128x64xbf16> to vector<128x16xbf16>
    %57 = vector.shape_cast %56 : vector<128x16xbf16> to vector<16x8x16xbf16>
    "tpu.trace_start"() <{level = 10 : i32, message = "bqd,bkd->bqk"}> : () -> ()
    %cst_18 = arith.constant dense<0.000000e+00> : vector<16x8x8xf32>
    %58 = tpu.matmul %53, %55, %cst_18 {dimension_numbers = #tpu.dot_dimension_numbers<[2], [2], [1], [1], [0, 0, 0, 1, 1, 1], [0], [0]>} : vector<16x8x16xbf16>, vector<16x8x16xbf16>, vector<16x8x8xf32> -> vector<16x8x8xf32>
    "tpu.trace_stop"() : () -> ()
    %59 = vector.broadcast %51 : vector<16x1x8xf32> to vector<16x8x8xf32>
    %60 = arith.addf %58, %59 : vector<16x8x8xf32>
    %cst_19 = arith.constant dense<0xFF800000> : vector<16x8xf32>
    %61 = vector.multi_reduction <maximumf>, %60, %cst_19 [2] : vector<16x8x8xf32> to vector<16x8xf32>
    %62 = vector.shape_cast %61 : vector<16x8xf32> to vector<16x8x1xf32>
    %63 = vector.broadcast %62 : vector<16x8x1xf32> to vector<16x8x8xf32>
    %64 = arith.subf %60, %63 : vector<16x8x8xf32>
    %65 = math.exp %64 : vector<16x8x8xf32>
    %cst_20 = arith.constant dense<0.000000e+00> : vector<16x8xf32>
    %66 = vector.multi_reduction <add>, %65, %cst_20 [2] : vector<16x8x8xf32> to vector<16x8xf32>
    %67 = vector.shape_cast %66 : vector<16x8xf32> to vector<16x8x1xf32>
    %68 = tpu.reciprocal %67 {approx = true} : vector<16x8x1xf32> -> vector<16x8x1xf32>
    %69 = vector.broadcast %68 : vector<16x8x1xf32> to vector<16x8x8xf32>
    %70 = arith.mulf %65, %69 : vector<16x8x8xf32>
    %71 = arith.truncf %70 : vector<16x8x8xf32> to vector<16x8x8xbf16>
    "tpu.trace_start"() <{level = 10 : i32, message = "bqk,bkd->bqd"}> : () -> ()
    %cst_21 = arith.constant dense<0.000000e+00> : vector<16x8x16xf32>
    %72 = tpu.matmul %71, %57, %cst_21 {dimension_numbers = #tpu.dot_dimension_numbers<[2], [1], [1], [2], [0, 0, 0, 1, 1, 2], [0], [0]>} : vector<16x8x8xbf16>, vector<16x8x16xbf16>, vector<16x8x16xf32> -> vector<16x8x16xf32>
    "tpu.trace_stop"() : () -> ()
    %73 = vector.shape_cast %72 : vector<16x8x16xf32> to vector<128x16xf32>
    %74 = vector.extract_strided_slice %45 {offsets = [0, 16], sizes = [128, 16], strides = [1, 1]} : vector<128x64xbf16> to vector<128x16xbf16>
    %75 = vector.shape_cast %74 : vector<128x16xbf16> to vector<16x8x16xbf16>
    %76 = vector.extract_strided_slice %47 {offsets = [0, 16], sizes = [128, 16], strides = [1, 1]} : vector<128x64xbf16> to vector<128x16xbf16>
    %77 = vector.shape_cast %76 : vector<128x16xbf16> to vector<16x8x16xbf16>
    %78 = vector.extract_strided_slice %49 {offsets = [0, 16], sizes = [128, 16], strides = [1, 1]} : vector<128x64xbf16> to vector<128x16xbf16>
    %79 = vector.shape_cast %78 : vector<128x16xbf16> to vector<16x8x16xbf16>
    "tpu.trace_start"() <{level = 10 : i32, message = "bqd,bkd->bqk"}> : () -> ()
    %cst_22 = arith.constant dense<0.000000e+00> : vector<16x8x8xf32>
    %80 = tpu.matmul %75, %77, %cst_22 {dimension_numbers = #tpu.dot_dimension_numbers<[2], [2], [1], [1], [0, 0, 0, 1, 1, 1], [0], [0]>} : vector<16x8x16xbf16>, vector<16x8x16xbf16>, vector<16x8x8xf32> -> vector<16x8x8xf32>
    "tpu.trace_stop"() : () -> ()
    %81 = vector.broadcast %51 : vector<16x1x8xf32> to vector<16x8x8xf32>
    %82 = arith.addf %80, %81 : vector<16x8x8xf32>
    %cst_23 = arith.constant dense<0xFF800000> : vector<16x8xf32>
    %83 = vector.multi_reduction <maximumf>, %82, %cst_23 [2] : vector<16x8x8xf32> to vector<16x8xf32>
    %84 = vector.shape_cast %83 : vector<16x8xf32> to vector<16x8x1xf32>
    %85 = vector.broadcast %84 : vector<16x8x1xf32> to vector<16x8x8xf32>
    %86 = arith.subf %82, %85 : vector<16x8x8xf32>
    %87 = math.exp %86 : vector<16x8x8xf32>
    %cst_24 = arith.constant dense<0.000000e+00> : vector<16x8xf32>
    %88 = vector.multi_reduction <add>, %87, %cst_24 [2] : vector<16x8x8xf32> to vector<16x8xf32>
    %89 = vector.shape_cast %88 : vector<16x8xf32> to vector<16x8x1xf32>
    %90 = tpu.reciprocal %89 {approx = true} : vector<16x8x1xf32> -> vector<16x8x1xf32>
    %91 = vector.broadcast %90 : vector<16x8x1xf32> to vector<16x8x8xf32>
    %92 = arith.mulf %87, %91 : vector<16x8x8xf32>
    %93 = arith.truncf %92 : vector<16x8x8xf32> to vector<16x8x8xbf16>
    "tpu.trace_start"() <{level = 10 : i32, message = "bqk,bkd->bqd"}> : () -> ()
    %cst_25 = arith.constant dense<0.000000e+00> : vector<16x8x16xf32>
    %94 = tpu.matmul %93, %79, %cst_25 {dimension_numbers = #tpu.dot_dimension_numbers<[2], [1], [1], [2], [0, 0, 0, 1, 1, 2], [0], [0]>} : vector<16x8x8xbf16>, vector<16x8x16xbf16>, vector<16x8x16xf32> -> vector<16x8x16xf32>
    "tpu.trace_stop"() : () -> ()
    %95 = vector.shape_cast %94 : vector<16x8x16xf32> to vector<128x16xf32>
    %96 = vector.extract_strided_slice %45 {offsets = [0, 32], sizes = [128, 16], strides = [1, 1]} : vector<128x64xbf16> to vector<128x16xbf16>
    %97 = vector.shape_cast %96 : vector<128x16xbf16> to vector<16x8x16xbf16>
    %98 = vector.extract_strided_slice %47 {offsets = [0, 32], sizes = [128, 16], strides = [1, 1]} : vector<128x64xbf16> to vector<128x16xbf16>
    %99 = vector.shape_cast %98 : vector<128x16xbf16> to vector<16x8x16xbf16>
    %100 = vector.extract_strided_slice %49 {offsets = [0, 32], sizes = [128, 16], strides = [1, 1]} : vector<128x64xbf16> to vector<128x16xbf16>
    %101 = vector.shape_cast %100 : vector<128x16xbf16> to vector<16x8x16xbf16>
    "tpu.trace_start"() <{level = 10 : i32, message = "bqd,bkd->bqk"}> : () -> ()
    %cst_26 = arith.constant dense<0.000000e+00> : vector<16x8x8xf32>
    %102 = tpu.matmul %97, %99, %cst_26 {dimension_numbers = #tpu.dot_dimension_numbers<[2], [2], [1], [1], [0, 0, 0, 1, 1, 1], [0], [0]>} : vector<16x8x16xbf16>, vector<16x8x16xbf16>, vector<16x8x8xf32> -> vector<16x8x8xf32>
    "tpu.trace_stop"() : () -> ()
    %103 = vector.broadcast %51 : vector<16x1x8xf32> to vector<16x8x8xf32>
    %104 = arith.addf %102, %103 : vector<16x8x8xf32>
    %cst_27 = arith.constant dense<0xFF800000> : vector<16x8xf32>
    %105 = vector.multi_reduction <maximumf>, %104, %cst_27 [2] : vector<16x8x8xf32> to vector<16x8xf32>
    %106 = vector.shape_cast %105 : vector<16x8xf32> to vector<16x8x1xf32>
    %107 = vector.broadcast %106 : vector<16x8x1xf32> to vector<16x8x8xf32>
    %108 = arith.subf %104, %107 : vector<16x8x8xf32>
    %109 = math.exp %108 : vector<16x8x8xf32>
    %cst_28 = arith.constant dense<0.000000e+00> : vector<16x8xf32>
    %110 = vector.multi_reduction <add>, %109, %cst_28 [2] : vector<16x8x8xf32> to vector<16x8xf32>
    %111 = vector.shape_cast %110 : vector<16x8xf32> to vector<16x8x1xf32>
    %112 = tpu.reciprocal %111 {approx = true} : vector<16x8x1xf32> -> vector<16x8x1xf32>
    %113 = vector.broadcast %112 : vector<16x8x1xf32> to vector<16x8x8xf32>
    %114 = arith.mulf %109, %113 : vector<16x8x8xf32>
    %115 = arith.truncf %114 : vector<16x8x8xf32> to vector<16x8x8xbf16>
    "tpu.trace_start"() <{level = 10 : i32, message = "bqk,bkd->bqd"}> : () -> ()
    %cst_29 = arith.constant dense<0.000000e+00> : vector<16x8x16xf32>
    %116 = tpu.matmul %115, %101, %cst_29 {dimension_numbers = #tpu.dot_dimension_numbers<[2], [1], [1], [2], [0, 0, 0, 1, 1, 2], [0], [0]>} : vector<16x8x8xbf16>, vector<16x8x16xbf16>, vector<16x8x16xf32> -> vector<16x8x16xf32>
    "tpu.trace_stop"() : () -> ()
    %117 = vector.shape_cast %116 : vector<16x8x16xf32> to vector<128x16xf32>
    %118 = vector.extract_strided_slice %45 {offsets = [0, 48], sizes = [128, 16], strides = [1, 1]} : vector<128x64xbf16> to vector<128x16xbf16>
    %119 = vector.shape_cast %118 : vector<128x16xbf16> to vector<16x8x16xbf16>
    %120 = vector.extract_strided_slice %47 {offsets = [0, 48], sizes = [128, 16], strides = [1, 1]} : vector<128x64xbf16> to vector<128x16xbf16>
    %121 = vector.shape_cast %120 : vector<128x16xbf16> to vector<16x8x16xbf16>
    %122 = vector.extract_strided_slice %49 {offsets = [0, 48], sizes = [128, 16], strides = [1, 1]} : vector<128x64xbf16> to vector<128x16xbf16>
    %123 = vector.shape_cast %122 : vector<128x16xbf16> to vector<16x8x16xbf16>
    "tpu.trace_start"() <{level = 10 : i32, message = "bqd,bkd->bqk"}> : () -> ()
    %cst_30 = arith.constant dense<0.000000e+00> : vector<16x8x8xf32>
    %124 = tpu.matmul %119, %121, %cst_30 {dimension_numbers = #tpu.dot_dimension_numbers<[2], [2], [1], [1], [0, 0, 0, 1, 1, 1], [0], [0]>} : vector<16x8x16xbf16>, vector<16x8x16xbf16>, vector<16x8x8xf32> -> vector<16x8x8xf32>
    "tpu.trace_stop"() : () -> ()
    %125 = vector.broadcast %51 : vector<16x1x8xf32> to vector<16x8x8xf32>
    %126 = arith.addf %124, %125 : vector<16x8x8xf32>
    %cst_31 = arith.constant dense<0xFF800000> : vector<16x8xf32>
    %127 = vector.multi_reduction <maximumf>, %126, %cst_31 [2] : vector<16x8x8xf32> to vector<16x8xf32>
    %128 = vector.shape_cast %127 : vector<16x8xf32> to vector<16x8x1xf32>
    %129 = vector.broadcast %128 : vector<16x8x1xf32> to vector<16x8x8xf32>
    %130 = arith.subf %126, %129 : vector<16x8x8xf32>
    %131 = math.exp %130 : vector<16x8x8xf32>
    %cst_32 = arith.constant dense<0.000000e+00> : vector<16x8xf32>
    %132 = vector.multi_reduction <add>, %131, %cst_32 [2] : vector<16x8x8xf32> to vector<16x8xf32>
    %133 = vector.shape_cast %132 : vector<16x8xf32> to vector<16x8x1xf32>
    %134 = tpu.reciprocal %133 {approx = true} : vector<16x8x1xf32> -> vector<16x8x1xf32>
    %135 = vector.broadcast %134 : vector<16x8x1xf32> to vector<16x8x8xf32>
    %136 = arith.mulf %131, %135 : vector<16x8x8xf32>
    %137 = arith.truncf %136 : vector<16x8x8xf32> to vector<16x8x8xbf16>
    "tpu.trace_start"() <{level = 10 : i32, message = "bqk,bkd->bqd"}> : () -> ()
    %cst_33 = arith.constant dense<0.000000e+00> : vector<16x8x16xf32>
    %138 = tpu.matmul %137, %123, %cst_33 {dimension_numbers = #tpu.dot_dimension_numbers<[2], [1], [1], [2], [0, 0, 0, 1, 1, 2], [0], [0]>} : vector<16x8x8xbf16>, vector<16x8x16xbf16>, vector<16x8x16xf32> -> vector<16x8x16xf32>
    "tpu.trace_stop"() : () -> ()
    %139 = vector.shape_cast %138 : vector<16x8x16xf32> to vector<128x16xf32>
    %140 = tpu.concatenate %73, %95, %117, %139 in 1 : vector<128x16xf32>, vector<128x16xf32>, vector<128x16xf32>, vector<128x16xf32> -> vector<128x64xf32>
    %141 = arith.truncf %140 : vector<128x64xf32> to vector<128x64xbf16>
    %142 = arith.index_cast %arg1 : i32 to index
    %c0_34 = arith.constant 0 : index
    %c0_35 = arith.constant 0 : index
    %143 = vector.load %arg7[%142, %c0_34, %c0_35] : memref<2x64x64xbf16, #tpu.memory_space<vmem>>, vector<1x64x64xbf16>
    %144 = vector.shape_cast %143 : vector<1x64x64xbf16> to vector<64x64xbf16>
    %cst_36 = arith.constant dense<0.000000e+00> : vector<128x64xf32>
    %145 = tpu.matmul %141, %144, %cst_36 {dimension_numbers = #tpu.dot_dimension_numbers<[1], [0], [0], [1], [0, 0, 1, 1], [], []>} : vector<128x64xbf16>, vector<64x64xbf16>, vector<128x64xf32> -> vector<128x64xf32>
    %146 = arith.addf %3, %145 : vector<128x64xf32>
    %147 = arith.index_cast %arg1 : i32 to index
    %c0_37 = arith.constant 0 : index
    %c0_38 = arith.constant 0 : index
    %148 = vector.load %arg8[%147, %c0_37, %c0_38] : memref<2x1x64xf32, #tpu.memory_space<vmem>>, vector<1x1x64xf32>
    %149 = vector.shape_cast %148 : vector<1x1x64xf32> to vector<1x64xf32>
    %150 = vector.broadcast %149 : vector<1x64xf32> to vector<128x64xf32>
    %151 = arith.addf %146, %150 : vector<128x64xf32>
    %152 = arith.index_cast %arg1 : i32 to index
    %c0_39 = arith.constant 0 : index
    %c0_40 = arith.constant 0 : index
    %153 = vector.load %arg11[%152, %c0_39, %c0_40] : memref<2x1x64xf32, #tpu.memory_space<vmem>>, vector<1x1x64xf32>
    %154 = vector.shape_cast %153 : vector<1x1x64xf32> to vector<1x64xf32>
    %155 = arith.index_cast %arg1 : i32 to index
    %c0_41 = arith.constant 0 : index
    %c0_42 = arith.constant 0 : index
    %156 = vector.load %arg12[%155, %c0_41, %c0_42] : memref<2x1x64xf32, #tpu.memory_space<vmem>>, vector<1x1x64xf32>
    %157 = vector.shape_cast %156 : vector<1x1x64xf32> to vector<1x64xf32>
    %cst_43 = arith.constant dense<0.000000e+00> : vector<128xf32>
    %158 = vector.multi_reduction <add>, %151, %cst_43 [1] : vector<128x64xf32> to vector<128xf32>
    %159 = vector.shape_cast %158 : vector<128xf32> to vector<128x1xf32>
    %cst_44 = arith.constant 6.400000e+01 : f32
    %160 = vector.broadcast %cst_44 : f32 to vector<128x1xf32>
    %161 = arith.divf %159, %160 : vector<128x1xf32>
    %162 = vector.broadcast %161 : vector<128x1xf32> to vector<128x64xf32>
    %163 = arith.subf %151, %162 : vector<128x64xf32>
    %164 = arith.mulf %163, %163 : vector<128x64xf32>
    %cst_45 = arith.constant dense<0.000000e+00> : vector<128xf32>
    %165 = vector.multi_reduction <add>, %164, %cst_45 [1] : vector<128x64xf32> to vector<128xf32>
    %166 = vector.shape_cast %165 : vector<128xf32> to vector<128x1xf32>
    %cst_46 = arith.constant 6.400000e+01 : f32
    %167 = vector.broadcast %cst_46 : f32 to vector<128x1xf32>
    %168 = arith.divf %166, %167 : vector<128x1xf32>
    %169 = vector.broadcast %161 : vector<128x1xf32> to vector<128x64xf32>
    %170 = arith.subf %151, %169 : vector<128x64xf32>
    %cst_47 = arith.constant 9.99999974E-6 : f32
    %171 = vector.broadcast %cst_47 : f32 to vector<128x1xf32>
    %172 = arith.addf %168, %171 : vector<128x1xf32>
    %173 = math.rsqrt %172 : vector<128x1xf32>
    %174 = vector.broadcast %173 : vector<128x1xf32> to vector<128x64xf32>
    %175 = arith.mulf %170, %174 : vector<128x64xf32>
    %176 = vector.broadcast %154 : vector<1x64xf32> to vector<128x64xf32>
    %177 = arith.mulf %175, %176 : vector<128x64xf32>
    %178 = vector.broadcast %157 : vector<1x64xf32> to vector<128x64xf32>
    %179 = arith.addf %177, %178 : vector<128x64xf32>
    %180 = arith.truncf %179 : vector<128x64xf32> to vector<128x64xbf16>
    %181 = arith.index_cast %arg1 : i32 to index
    %c0_48 = arith.constant 0 : index
    %c0_49 = arith.constant 0 : index
    %182 = vector.load %arg13[%181, %c0_48, %c0_49] : memref<2x64x256xbf16, #tpu.memory_space<vmem>>, vector<1x64x256xbf16>
    %183 = vector.shape_cast %182 : vector<1x64x256xbf16> to vector<64x256xbf16>
    %cst_50 = arith.constant dense<0.000000e+00> : vector<128x256xf32>
    %184 = tpu.matmul %180, %183, %cst_50 {dimension_numbers = #tpu.dot_dimension_numbers<[1], [0], [0], [1], [0, 0, 1, 1], [], []>} : vector<128x64xbf16>, vector<64x256xbf16>, vector<128x256xf32> -> vector<128x256xf32>
    %185 = arith.index_cast %arg1 : i32 to index
    %c0_51 = arith.constant 0 : index
    %c0_52 = arith.constant 0 : index
    %186 = vector.load %arg14[%185, %c0_51, %c0_52] : memref<2x1x256xf32, #tpu.memory_space<vmem>>, vector<1x1x256xf32>
    %187 = vector.shape_cast %186 : vector<1x1x256xf32> to vector<1x256xf32>
    %188 = vector.broadcast %187 : vector<1x256xf32> to vector<128x256xf32>
    %189 = arith.addf %184, %188 : vector<128x256xf32>
    %cst_53 = arith.constant 0.000000e+00 : f32
    %190 = vector.broadcast %cst_53 : f32 to vector<128x256xf32>
    %191 = arith.maximumf %189, %190 : vector<128x256xf32>
    %192 = arith.truncf %191 : vector<128x256xf32> to vector<128x256xbf16>
    %193 = arith.index_cast %arg1 : i32 to index
    %c0_54 = arith.constant 0 : index
    %c0_55 = arith.constant 0 : index
    %194 = vector.load %arg15[%193, %c0_54, %c0_55] : memref<2x256x64xbf16, #tpu.memory_space<vmem>>, vector<1x256x64xbf16>
    %195 = vector.shape_cast %194 : vector<1x256x64xbf16> to vector<256x64xbf16>
    %cst_56 = arith.constant dense<0.000000e+00> : vector<128x64xf32>
    %196 = tpu.matmul %192, %195, %cst_56 {dimension_numbers = #tpu.dot_dimension_numbers<[1], [0], [0], [1], [0, 0, 1, 1], [], []>} : vector<128x256xbf16>, vector<256x64xbf16>, vector<128x64xf32> -> vector<128x64xf32>
    %197 = arith.index_cast %arg1 : i32 to index
    %c0_57 = arith.constant 0 : index
    %c0_58 = arith.constant 0 : index
    %198 = vector.load %arg16[%197, %c0_57, %c0_58] : memref<2x1x64xf32, #tpu.memory_space<vmem>>, vector<1x1x64xf32>
    %199 = vector.shape_cast %198 : vector<1x1x64xf32> to vector<1x64xf32>
    %200 = vector.broadcast %199 : vector<1x64xf32> to vector<128x64xf32>
    %201 = arith.addf %196, %200 : vector<128x64xf32>
    %202 = arith.addf %151, %201 : vector<128x64xf32>
    %c0_59 = arith.constant 0 : index
    %c0_60 = arith.constant 0 : index
    %203 = vector.load %arg20[%c0_59, %c0_60] : memref<128x64xf32, #tpu.memory_space<vmem>>, vector<128x64xf32>
    tpu.vector_store %arg20[%c0_59, %c0_60], %202 {strides = array<i32>} : memref<128x64xf32, #tpu.memory_space<vmem>>, vector<128x64xf32>,
    %c1_i32 = arith.constant 1 : i32
    %204 = arith.cmpi eq, %arg1, %c1_i32 : i32
    %205 = arith.extui %204 : i1 to i32
    %c0_i32_61 = arith.constant 0 : i32
    %206 = arith.cmpi ne, %205, %c0_i32_61 : i32
    scf.if %206 {
      %c0_62 = arith.constant 0 : index
      %c0_63 = arith.constant 0 : index
      %207 = vector.load %arg4[%c0_62, %c0_63] : memref<16x8xf32, #tpu.memory_space<vmem>>, vector<16x8xf32>
      %208 = vector.shape_cast %202 : vector<128x64xf32> to vector<16x8x64xf32>
      %209 = vector.shape_cast %207 : vector<16x8xf32> to vector<16x1x8xf32>
      "tpu.trace_start"() <{level = 10 : i32, message = "bqt,btd->bqd"}> : () -> ()
      %cst_64 = arith.constant dense<0.000000e+00> : vector<16x1x64xf32>
      %210 = tpu.matmul %209, %208, %cst_64 {dimension_numbers = #tpu.dot_dimension_numbers<[2], [1], [1], [2], [0, 0, 0, 1, 1, 2], [0], [0]>} : vector<16x1x8xf32>, vector<16x8x64xf32>, vector<16x1x64xf32> -> vector<16x1x64xf32>
      "tpu.trace_stop"() : () -> ()
      %211 = vector.shape_cast %210 : vector<16x1x64xf32> to vector<16x64xf32>
      %cst_65 = arith.constant dense<0.000000e+00> : vector<16xf32>
      %212 = vector.multi_reduction <add>, %207, %cst_65 [1] : vector<16x8xf32> to vector<16xf32>
      %213 = vector.shape_cast %212 : vector<16xf32> to vector<16x1xf32>
      %cst_66 = arith.constant 1.000000e+00 : f32
      %214 = vector.broadcast %cst_66 : f32 to vector<16x1xf32>
      %215 = arith.maximumf %213, %214 : vector<16x1xf32>
      %216 = vector.broadcast %215 : vector<16x1xf32> to vector<16x64xf32>
      %217 = arith.divf %211, %216 : vector<16x64xf32>
      %218 = arith.truncf %217 : vector<16x64xf32> to vector<16x64xbf16>
      %c0_67 = arith.constant 0 : index
      %c0_68 = arith.constant 0 : index
      %219 = vector.load %arg17[%c0_67, %c0_68] : memref<64x64xbf16, #tpu.memory_space<vmem>>, vector<64x64xbf16>
      %cst_69 = arith.constant dense<0.000000e+00> : vector<16x64xf32>
      %220 = tpu.matmul %218, %219, %cst_69 {dimension_numbers = #tpu.dot_dimension_numbers<[1], [0], [0], [1], [0, 0, 1, 1], [], []>} : vector<16x64xbf16>, vector<64x64xbf16>, vector<16x64xf32> -> vector<16x64xf32>
      %c0_70 = arith.constant 0 : index
      %c0_71 = arith.constant 0 : index
      %221 = vector.load %arg18[%c0_70, %c0_71] : memref<1x64xf32, #tpu.memory_space<vmem>>, vector<1x64xf32>
      %222 = vector.broadcast %221 : vector<1x64xf32> to vector<16x64xf32>
      %223 = arith.addf %220, %222 : vector<16x64xf32>
      %224 = arith.mulf %223, %223 : vector<16x64xf32>
      %cst_72 = arith.constant dense<0.000000e+00> : vector<16xf32>
      %225 = vector.multi_reduction <add>, %224, %cst_72 [1] : vector<16x64xf32> to vector<16xf32>
      %226 = vector.shape_cast %225 : vector<16xf32> to vector<16x1xf32>
      %227 = math.sqrt %226 : vector<16x1xf32>
      %cst_73 = arith.constant 9.99999996E-13 : f32
      %228 = vector.broadcast %cst_73 : f32 to vector<16x1xf32>
      %229 = arith.maximumf %227, %228 : vector<16x1xf32>
      %230 = vector.broadcast %229 : vector<16x1xf32> to vector<16x64xf32>
      %231 = arith.divf %223, %230 : vector<16x64xf32>
      %c0_74 = arith.constant 0 : index
      %c0_75 = arith.constant 0 : index
      %232 = vector.load %arg19[%c0_74, %c0_75] : memref<16x64xf32, #tpu.memory_space<vmem>>, vector<16x64xf32>
      tpu.vector_store %arg19[%c0_74, %c0_75], %231 {strides = array<i32>} : memref<16x64xf32, #tpu.memory_space<vmem>>, vector<16x64xf32>,
    } else {
    }
    return
  }
  func.func @transform_0(%arg0: i32, %arg1: i32) -> (i32, i32, i32) {
    %c0_i32 = arith.constant 0 : i32
    %c0_i32_0 = arith.constant 0 : i32
    %c0_i32_1 = arith.constant 0 : i32
    return %arg0, %c0_i32, %c0_i32_0 : i32, i32, i32
  }
  func.func @transform_1(%arg0: i32, %arg1: i32) -> (i32, i32) {
    %c0_i32 = arith.constant 0 : i32
    %c0_i32_0 = arith.constant 0 : i32
    return %arg0, %c0_i32 : i32, i32
  }
  func.func @transform_2(%arg0: i32, %arg1: i32) -> (i32, i32) {
    %c0_i32 = arith.constant 0 : i32
    %c0_i32_0 = arith.constant 0 : i32
    return %arg0, %c0_i32 : i32, i32
  }
  func.func @transform_3(%arg0: i32, %arg1: i32) -> (i32, i32, i32) {
    %c0_i32 = arith.constant 0 : i32
    %c0_i32_0 = arith.constant 0 : i32
    %c0_i32_1 = arith.constant 0 : i32
    %c0_i32_2 = arith.constant 0 : i32
    return %c0_i32, %c0_i32_0, %c0_i32_1 : i32, i32, i32
  }
  func.func @transform_4(%arg0: i32, %arg1: i32) -> (i32, i32, i32) {
    %c0_i32 = arith.constant 0 : i32
    %c0_i32_0 = arith.constant 0 : i32
    %c0_i32_1 = arith.constant 0 : i32
    %c0_i32_2 = arith.constant 0 : i32
    return %c0_i32, %c0_i32_0, %c0_i32_1 : i32, i32, i32
  }
  func.func @transform_5(%arg0: i32, %arg1: i32) -> (i32, i32, i32) {
    %c0_i32 = arith.constant 0 : i32
    %c0_i32_0 = arith.constant 0 : i32
    %c0_i32_1 = arith.constant 0 : i32
    %c0_i32_2 = arith.constant 0 : i32
    return %c0_i32, %c0_i32_0, %c0_i32_1 : i32, i32, i32
  }
  func.func @transform_6(%arg0: i32, %arg1: i32) -> (i32, i32, i32) {
    %c0_i32 = arith.constant 0 : i32
    %c0_i32_0 = arith.constant 0 : i32
    %c0_i32_1 = arith.constant 0 : i32
    %c0_i32_2 = arith.constant 0 : i32
    return %c0_i32, %c0_i32_0, %c0_i32_1 : i32, i32, i32
  }
  func.func @transform_7(%arg0: i32, %arg1: i32) -> (i32, i32, i32) {
    %c0_i32 = arith.constant 0 : i32
    %c0_i32_0 = arith.constant 0 : i32
    %c0_i32_1 = arith.constant 0 : i32
    %c0_i32_2 = arith.constant 0 : i32
    return %c0_i32, %c0_i32_0, %c0_i32_1 : i32, i32, i32
  }
  func.func @transform_8(%arg0: i32, %arg1: i32) -> (i32, i32, i32) {
    %c0_i32 = arith.constant 0 : i32
    %c0_i32_0 = arith.constant 0 : i32
    %c0_i32_1 = arith.constant 0 : i32
    %c0_i32_2 = arith.constant 0 : i32
    return %c0_i32, %c0_i32_0, %c0_i32_1 : i32, i32, i32
  }
  func.func @transform_9(%arg0: i32, %arg1: i32) -> (i32, i32, i32) {
    %c0_i32 = arith.constant 0 : i32
    %c0_i32_0 = arith.constant 0 : i32
    %c0_i32_1 = arith.constant 0 : i32
    %c0_i32_2 = arith.constant 0 : i32
    return %c0_i32, %c0_i32_0, %c0_i32_1 : i32, i32, i32
  }
  func.func @transform_10(%arg0: i32, %arg1: i32) -> (i32, i32, i32) {
    %c0_i32 = arith.constant 0 : i32
    %c0_i32_0 = arith.constant 0 : i32
    %c0_i32_1 = arith.constant 0 : i32
    %c0_i32_2 = arith.constant 0 : i32
    return %c0_i32, %c0_i32_0, %c0_i32_1 : i32, i32, i32
  }
  func.func @transform_11(%arg0: i32, %arg1: i32) -> (i32, i32, i32) {
    %c0_i32 = arith.constant 0 : i32
    %c0_i32_0 = arith.constant 0 : i32
    %c0_i32_1 = arith.constant 0 : i32
    %c0_i32_2 = arith.constant 0 : i32
    return %c0_i32, %c0_i32_0, %c0_i32_1 : i32, i32, i32
  }
  func.func @transform_12(%arg0: i32, %arg1: i32) -> (i32, i32, i32) {
    %c0_i32 = arith.constant 0 : i32
    %c0_i32_0 = arith.constant 0 : i32
    %c0_i32_1 = arith.constant 0 : i32
    %c0_i32_2 = arith.constant 0 : i32
    return %c0_i32, %c0_i32_0, %c0_i32_1 : i32, i32, i32
  }
  func.func @transform_13(%arg0: i32, %arg1: i32) -> (i32, i32, i32) {
    %c0_i32 = arith.constant 0 : i32
    %c0_i32_0 = arith.constant 0 : i32
    %c0_i32_1 = arith.constant 0 : i32
    %c0_i32_2 = arith.constant 0 : i32
    return %c0_i32, %c0_i32_0, %c0_i32_1 : i32, i32, i32
  }
  func.func @transform_14(%arg0: i32, %arg1: i32) -> (i32, i32, i32) {
    %c0_i32 = arith.constant 0 : i32
    %c0_i32_0 = arith.constant 0 : i32
    %c0_i32_1 = arith.constant 0 : i32
    %c0_i32_2 = arith.constant 0 : i32
    return %c0_i32, %c0_i32_0, %c0_i32_1 : i32, i32, i32
  }
  func.func @transform_15(%arg0: i32, %arg1: i32) -> (i32, i32) {
    %c0_i32 = arith.constant 0 : i32
    %c0_i32_0 = arith.constant 0 : i32
    %c0_i32_1 = arith.constant 0 : i32
    return %c0_i32, %c0_i32_0 : i32, i32
  }
  func.func @transform_16(%arg0: i32, %arg1: i32) -> (i32, i32) {
    %c0_i32 = arith.constant 0 : i32
    %c0_i32_0 = arith.constant 0 : i32
    %c0_i32_1 = arith.constant 0 : i32
    return %c0_i32, %c0_i32_0 : i32, i32
  }
  func.func @transform_17(%arg0: i32, %arg1: i32) -> (i32, i32) {
    %c0_i32 = arith.constant 0 : i32
    %c0_i32_0 = arith.constant 0 : i32
    return %arg0, %c0_i32 : i32, i32
  }
}

</mosaic_0001>

<bundles_post_ra>
// kernel: tpu_custom_call.1
= control target key start
LH: loop header
LB: loop body
LE: loop exit
PB: predicated region body
PF: predicated region fallthrough
CT: control target
= control target key end

     0   :  { %s18111_s0 = inlined_call_operand.vmem [shape: f32[32,8,64], index: 0, kind: input, shape index: {}]   ;;  %s18112_s1 = inlined_call_operand.vmem [shape: f32[32,8], index: 1, kind: input, shape index: {}]   ;;  %s18113_s2 = inlined_call_operand.vmem [shape: f32[32,8], index: 2, kind: input, shape index: {}]   ;;  %s18114_s3 = inlined_call_operand.vmem [shape: bf16[2,64,192], index: 3, kind: input, shape index: {}]   ;;  %s18115_s4 = inlined_call_operand.hbm [shape: f32[2,1,192], index: 4, kind: input, shape index: {}]   ;;  %s18116_s5 = inlined_call_operand.hbm [shape: bf16[2,64,64], index: 5, kind: input, shape index: {}]   ;;  %s18117_s6 = inlined_call_operand.hbm [shape: f32[2,1,64], index: 6, kind: input, shape index: {}]   ;;  %s18118_s7 = inlined_call_operand.hbm [shape: f32[2,1,64], index: 7, kind: input, shape index: {}]   ;;  %s18119_s8 = inlined_call_operand.hbm [shape: f32[2,1,64], index: 8, kind: input, shape index: {}]   ;;  %s18120_s9 = inlined_call_operand.hbm [shape: f32[2,1,64], index: 9, kind: input, shape index: {}]   ;;  %s18121_s10 = inlined_call_operand.hbm [shape: f32[2,1,64], index: 10, kind: input, shape index: {}]   ;;  %s18122_s11 = inlined_call_operand.hbm [shape: bf16[2,64,256], index: 11, kind: input, shape index: {}]   ;;  %s18123_s12 = inlined_call_operand.hbm [shape: f32[2,1,256], index: 12, kind: input, shape index: {}]   ;;  %s18124_s13 = inlined_call_operand.vmem [shape: bf16[2,256,64], index: 13, kind: input, shape index: {}]   ;;  %s18125_s14 = inlined_call_operand.vmem [shape: f32[2,1,64], index: 14, kind: input, shape index: {}]   ;;  %s18126_s15 = inlined_call_operand.hbm [shape: bf16[64,64], index: 15, kind: input, shape index: {}]   ;;  %s18127_s16 = inlined_call_operand.vmem [shape: f32[1,64], index: 16, kind: input, shape index: {}]   ;;  %s18128_s17 = inlined_call_operand.hbm [shape: f32[32,64], index: 17, kind: output, shape index: {}]  }
   0x1   :  { %18258 = sst [smem:[#allocation115_spill]] %s18111_s0 }
   0x2   :  { %18259 = sst [smem:[#allocation116_spill]] %s18112_s1 }
   0x3   :  { %18260 = sst [smem:[#allocation117_spill]] %s18114_s3 }
   0x4   :  { %18261 = sst [smem:[#allocation118_spill]] %s18124_s13 }
   0x5   :  { %18262 = sst [smem:[#allocation119_spill]] %s18125_s14 }
   0x6   :  { %18263 = sst [smem:[#allocation120_spill]] %s18127_s16 }
   0x7   :  { %18264 = sst [smem:[#allocation121_spill]] %s18128_s17 }
   0x8   :  { %22 = vsyncpa [#allocation4], 0 }
   0x9   :  { %23 = vsyncpa [#allocation7], 0 }
   0xa   :  { %24 = vsyncpa [#allocation10], 0 }
   0xb   :  { %25 = vsyncpa [#allocation13], 0 }
   0xc   :  { %26 = vsyncpa [#allocation16], 0 }
   0xd   :  { %27 = vsyncpa [#allocation19], 0 }
   0xe   :  { %28 = vsyncpa [#allocation5], 0 }
   0xf   :  { %30 = vsyncpa [#allocation5 + $0x1], 0  ;;  %s14459_s24 = smov 0   ;;  %s14461_s25 = smov 0  }
  0x10   :  { %s14463_s26 = smov 0   ;;  %s14465_s27 = smov 0  }
  0x11   :  { %s14467_s28 = smov 0   ;;  %s14469_s29 = smov 0  }
  0x12   :  { %s14471_s0 = smov 0   ;;  %s14473_s30 = smov 0  }
  0x13 LB: > { %18265 = sst [smem:[#allocation28_spill]] %s14305_s24  ;;  %s11575_s18 = sadd.s32 4294967295, %s14333_s30   ;;  %s14333_s30 = sphi %s14473_s30, %s36_s30   ;;  %s14329_s0 = sphi %s14471_s0, %s18555_s0   ;;  %s14325_s29 = sphi %s14469_s29, %s18554_s29   ;;  %s14321_s28 = sphi %s14467_s28, %s18553_s28   ;;  %s14317_s27 = sphi %s14465_s27, %s18552_s27   ;;  %s14313_s26 = sphi %s14463_s26, %s18551_s26   ;;  %s14309_s25 = sphi %s14461_s25, %s18557_s25   ;;  %s14305_s24 = sphi %s14459_s24, %s18556_s24  }
  0x14   : > { %18266 = sst [smem:[#allocation29_spill]] %s14313_s26  ;;  %s11576_s19 = sadd.s32 4294967294, %s14333_s30  }
  0x15   : > { %18267 = sst [smem:[#allocation30_spill]] %s14317_s27  ;;  %s45_s1 = sadd.s32 1, %s14325_s29 }
  0x16   : > { %18268 = sst [smem:[#allocation31_spill]] %s14325_s29  ;;  %s48_s20 = sadd.s32 1, %s14329_s0 }
  0x17   : > { %18269 = sst [smem:[#allocation32_spill]] %s14329_s0  ;;  %p46_p0 = scmp.ge.s32.totalorder %s45_s1, 2 }
  0x18   : > { %18270 = sst [smem:[#allocation33_spill]] %s14333_s30  ;;  %s427_s21 = sadd.s32 1, %s14313_s26 }
  0x19   : > { %p437_p1 = scmp.ne.s32.totalorder %s14313_s26, %s14309_s25  ;;  %p438_p2 = scmp.eq.s32.totalorder %s11575_s18, 3 }
  0x1a   : > { %s18559_s1 = smov (%p46_p0, %s45_s1), 0  ;;  %s18561_s20 = smov (!%p46_p0, %s48_s20), %s14329_s0 }
  0x1b   : > { %18271 = sst [smem:[#allocation34_spill]] %s18559_s1  ;;  %p14509_p3 = por %p438_p2, %p437_p1 }
  0x1c   : > { %p443_p4 = scmp.ne.s32.totalorder %s14309_s25, %s14305_s24  ;;  %p50_p5 = scmp.ge.s32.totalorder %s18561_s20, 2 }
  0x1d   : > { %s18272_s22 = scalar_select %p14509_p3, 1, 0 }
  0x1e   : > { %p444_p6 = scmp.eq.s32.totalorder %s11576_s19, 3  ;;  %p11577_p7 = scmp.ge.s32.totalorder %s14333_s30, 1 }
  0x1f   : > { %18273 = sst [smem:[#allocation35_spill]] %s18272_s22  ;;  %p451_p8 = scmp.lt.s32.totalorder %s14333_s30, 5 }
  0x20   : > { %s18563_s20 = smov (%p50_p5, %s18561_s20), 0  ;;  %p14519_p9 = por %p444_p6, %p443_p4 }
  0x21   : > { %18274 = sst [smem:[#allocation36_spill]] %s18563_s20  ;;  %p14523_p10 = pnand %p11577_p7, %p451_p8 }
  0x22   : > { %s18275_s23 = scalar_select %p14519_p9, 1, 0 }
  0x23   : > { %s18277_s29 = scalar_select %p14523_p10, 1, 0 }
  0x24   : > { %18276 = sst [smem:[#allocation37_spill]] %s18275_s23  ;;  %s424_s1 = ssub.s32 %s14329_s0, %s18563_s20 }
  0x25   : > { %p425_p11 = scmp.eq.s32.totalorder %s424_s1, 0  ;;  %p13234_p12 = pneg %p14523_p10 }
  0x26   : > { %p14531_p13 = scmp.eq.s32.totalorder %s11575_s18, 0  ;;  %s14335_s23 = smov [#allocation6]  }
  0x27   : > { %s14536_s24 = scalar_select %p425_p11, %s14313_s26, %s427_s21  }
  0x28   : > { %s18278_s19 = scalar_select %p14531_p13, 1, 0 }
  0x29   : > { %18279 = sst [smem:[#allocation38_spill]] %s14536_s24  ;;  %p14540_p0 = pnand %p14531_p13, %p13234_p12 }
  0x2a   : > { %s479_s17 = sshll.u32 %s14335_s23, 4  ;;  %s13935_s0 = scalar_lea.hbm %s18116_s5, 1024  ;;  %s480_s17 = int_to_ptr.vmem [resolvable:$true] %s479_s17 }
  0x2b   : > { %p13936_p1 = scmp.ne.s32.totalorder %s18116_s5, %s13935_s0  ;;  %p14552_p2 = pneg %p14540_p0 }
  0x2c   : > { %p13942_p6 = scmp.lt.u32.totalorder %s13935_s0, %s18116_s5 }
  0x2d   : > { %p13938_p4 = pnand %p14552_p2, %p13936_p1 }
  0x2f   : > { %p13939_p5 = pneg %p13938_p4 }
  0x31   : > { %p13944_p7 = pnand %p13942_p6, %p13939_p5 }
  0x33   : > { %13947 = shalt.err (!%p13944_p7)
}
  0x34   : > { %s13948_s20 = scalar_lea.vmem %s480_s17, 1024  ;;  %p13956_p9 = scmp.lt.s32.totalorder %s480_s17, %s480_s17 }
  0x35   : > { %p13949_p8 = scmp.ne.s32.totalorder %s480_s17, %s13948_s20  ;;  %p13957_p3 = scmp.lt.s32.totalorder %s13948_s20, %s13948_s20 }
  0x37   : > { %p13951_p11 = pnand %p13949_p8, %p14552_p2  ;;  %p13958_p13 = por %p13957_p3, %p13956_p9 }
  0x39   : > { %p13952_p12 = pneg %p13951_p11 }
  0x3b   : > { %p13959_p10 = pnand %p13958_p13, %p13952_p12 }
  0x3d   : > { %13962 = shalt.err (!%p13959_p10)
}
  0x3e   : > { %s18145_s22 = smov 64   ;;  %s18146_s1 = smov 4  }
  0x3f   : > { %13240 = dma.hbm_to_vmem [thread:$0]  (!%p14540_p0), %s18116_s5, 1024, %s480_s17, [#allocation7], %s18145_s22, %s18145_s22, %s18146_s1  }
  0x40   : > { %s14338_s18 = smov [#allocation9]   ;;  %s14339_s26 = smov [#allocation12]  }
  0x41   : > { %s505_s23 = sshll.u32 %s14338_s18, 4  ;;  %s531_s16 = sshll.u32 %s14339_s26, 4  ;;  %s506_s23 = int_to_ptr.vmem [resolvable:$true] %s505_s23  ;;  %s14571_s16 = int_to_ptr.vmem [resolvable:$true] %s531_s16 }
  0x42   : > { %s13963_s13 = scalar_lea.hbm %s18118_s7, 32 }
  0x43   : > { %p13964_p3 = scmp.ne.s32.totalorder %s18118_s7, %s13963_s13  ;;  %p13970_p13 = scmp.lt.u32.totalorder %s13963_s13, %s18118_s7 }
  0x45   : > { %p13966_p9 = pnand %p13964_p3, %p14552_p2 }
  0x47   : > { %p13967_p10 = pneg %p13966_p9 }
  0x49   : > { %p13972_p1 = pnand %p13970_p13, %p13967_p10 }
  0x4b   : > { %13975 = shalt.err (!%p13972_p1)
}
  0x4c   : > { %s13976_s26 = scalar_lea.vmem %s506_s23, 32  ;;  %p13984_p7 = scmp.lt.s32.totalorder %s506_s23, %s506_s23 }
  0x4d   : > { %p13977_p4 = scmp.ne.s32.totalorder %s506_s23, %s13976_s26  ;;  %p13985_p8 = scmp.lt.s32.totalorder %s13976_s26, %s13976_s26 }
  0x4f   : > { %p13979_p5 = pnand %p13977_p4, %p14552_p2  ;;  %p13986_p11 = por %p13985_p8, %p13984_p7 }
  0x51   : > { %p13980_p6 = pneg %p13979_p5 }
  0x53   : > { %p13987_p12 = pnand %p13986_p11, %p13980_p6 }
  0x55   : > { %13990 = shalt.err (!%p13987_p12)
}
  0x56   : > { %s18147_s3 = smov 16   ;;  %s18149_s14 = smov 1  }
  0x57   : > { %13246 = dma.hbm_to_vmem [thread:$0]  (!%p14540_p0), %s18118_s7, 32, %s506_s23, [#allocation10], %s18147_s3, %s18147_s3, %s18149_s14  }
  0x58   : > { %s13991_s20 = scalar_lea.hbm %s18120_s9, 32 }
  0x59   : > { %p13992_p3 = scmp.ne.s32.totalorder %s18120_s9, %s13991_s20  ;;  %p13998_p13 = scmp.lt.u32.totalorder %s13991_s20, %s18120_s9 }
  0x5b   : > { %p13994_p9 = pnand %p13992_p3, %p14552_p2 }
  0x5d   : > { %p13995_p10 = pneg %p13994_p9 }
  0x5f   : > { %p14000_p1 = pnand %p13998_p13, %p13995_p10 }
  0x61   : > { %14003 = shalt.err (!%p14000_p1)
}
  0x62   : > { %s14004_s23 = scalar_lea.vmem %s14571_s16, 32  ;;  %p14012_p7 = scmp.lt.s32.totalorder %s14571_s16, %s14571_s16 }
  0x63   : > { %p14005_p4 = scmp.ne.s32.totalorder %s14571_s16, %s14004_s23  ;;  %p14013_p8 = scmp.lt.s32.totalorder %s14004_s23, %s14004_s23 }
  0x65   : > { %p14007_p5 = pnand %p14005_p4, %p14552_p2  ;;  %p14014_p11 = por %p14013_p8, %p14012_p7 }
  0x67   : > { %p14008_p6 = pneg %p14007_p5 }
  0x69   : > { %p14015_p12 = pnand %p14014_p11, %p14008_p6 }
  0x6b   : > { %14018 = shalt.err (!%p14015_p12)
}
  0x6c   : > { %13252 = dma.hbm_to_vmem [thread:$0]  (!%p14540_p0), %s18120_s9, 32, %s14571_s16, [#allocation13], %s18147_s3, %s18147_s3, %s18149_s14  }
  0x6d   : > { %s14342_s27 = smov [#allocation15]   ;;  %s14019_s24 = scalar_lea.hbm %s18122_s11, 2048 }
  0x6e   : > { %s557_s0 = sshll.u32 %s14342_s27, 4  ;;  %p14020_p3 = scmp.ne.s32.totalorder %s18122_s11, %s14019_s24  ;;  %s558_s0 = int_to_ptr.vmem [resolvable:$true] %s557_s0 }
  0x6f   : > { %p14026_p13 = scmp.lt.u32.totalorder %s14019_s24, %s18122_s11 }
  0x70   : > { %p14022_p9 = pnand %p14020_p3, %p14552_p2 }
  0x72   : > { %p14023_p10 = pneg %p14022_p9 }
  0x74   : > { %p14028_p1 = pnand %p14026_p13, %p14023_p10 }
  0x76   : > { %14031 = shalt.err (!%p14028_p1)
}
  0x77   : > { %s14032_s16 = scalar_lea.vmem %s558_s0, 2048  ;;  %p14040_p7 = scmp.lt.s32.totalorder %s558_s0, %s558_s0 }
  0x78   : > { %p14033_p4 = scmp.ne.s32.totalorder %s558_s0, %s14032_s16  ;;  %p14041_p8 = scmp.lt.s32.totalorder %s14032_s16, %s14032_s16 }
  0x7a   : > { %p14035_p5 = pnand %p14033_p4, %p14552_p2  ;;  %p14042_p11 = por %p14041_p8, %p14040_p7 }
  0x7c   : > { %p14036_p6 = pneg %p14035_p5 }
  0x7e   : > { %p14043_p12 = pnand %p14042_p11, %p14036_p6 }
  0x80   : > { %14046 = shalt.err (!%p14043_p12)
}
  0x81   : > { %s14343_s22 = smov 128   ;;  %s14344_s13 = smov 8  }
  0x82   : > { %13258 = dma.hbm_to_vmem [thread:$0]  (!%p14540_p0), %s18122_s11, 2048, %s558_s0, [#allocation16], %s14343_s22, %s14343_s22, %s14344_s13  }
  0x83   : > { %s14345_s18 = smov [#allocation3]   ;;  %s14047_s26 = scalar_lea.hbm %s18115_s4, 64 }
  0x84   : > { %s466_s20 = sshll.u32 %s14345_s18, 4  ;;  %p14048_p3 = scmp.ne.s32.totalorder %s18115_s4, %s14047_s26  ;;  %s467_s20 = int_to_ptr.vmem [resolvable:$true] %s466_s20 }
  0x85   : > { %p14054_p13 = scmp.lt.u32.totalorder %s14047_s26, %s18115_s4 }
  0x86   : > { %p14050_p9 = pnand %p14048_p3, %p14552_p2 }
  0x88   : > { %p14051_p10 = pneg %p14050_p9 }
  0x8a   : > { %p14056_p1 = pnand %p14054_p13, %p14051_p10 }
  0x8c   : > { %14059 = shalt.err (!%p14056_p1)
}
  0x8d   : > { %s14060_s0 = scalar_lea.vmem %s467_s20, 64  ;;  %p14068_p7 = scmp.lt.s32.totalorder %s467_s20, %s467_s20 }
  0x8e   : > { %p14061_p4 = scmp.ne.s32.totalorder %s467_s20, %s14060_s0  ;;  %p14069_p8 = scmp.lt.s32.totalorder %s14060_s0, %s14060_s0 }
  0x90   : > { %p14063_p5 = pnand %p14061_p4, %p14552_p2  ;;  %p14070_p11 = por %p14069_p8, %p14068_p7 }
  0x92   : > { %p14064_p6 = pneg %p14063_p5 }
  0x94   : > { %p14071_p12 = pnand %p14070_p11, %p14064_p6 }
  0x96   : > { %14074 = shalt.err (!%p14071_p12)
}
  0x97   : > { %s18151_s22 = smov 32   ;;  %s18152_s13 = smov 2  }
  0x98   : > { %13237 = dma.hbm_to_vmem [thread:$0]  (!%p14540_p0), %s18115_s4, 64, %s467_s20, [#allocation4], %s18151_s22, %s18151_s22, %s18152_s13  }
  0x99   : > { %s14348_s1 = smov [#allocation8]   ;;  %s14349_s18 = smov [#allocation11]  }
  0x9a   : > { %s492_s27 = sshll.u32 %s14348_s1, 4  ;;  %s518_s24 = sshll.u32 %s14349_s18, 4  ;;  %s493_s27 = int_to_ptr.vmem [resolvable:$true] %s492_s27  ;;  %s14659_s24 = int_to_ptr.vmem [resolvable:$true] %s518_s24 }
  0x9b   : > { %s14075_s23 = scalar_lea.hbm %s18117_s6, 32 }
  0x9c   : > { %p14076_p3 = scmp.ne.s32.totalorder %s18117_s6, %s14075_s23  ;;  %p14082_p13 = scmp.lt.u32.totalorder %s14075_s23, %s18117_s6 }
  0x9e   : > { %p14078_p9 = pnand %p14076_p3, %p14552_p2 }
  0xa0   : > { %p14079_p10 = pneg %p14078_p9 }
  0xa2   : > { %p14084_p1 = pnand %p14082_p13, %p14079_p10 }
  0xa4   : > { %14087 = shalt.err (!%p14084_p1)
}
  0xa5   : > { %s14088_s14 = scalar_lea.vmem %s493_s27, 32  ;;  %p14096_p7 = scmp.lt.s32.totalorder %s493_s27, %s493_s27 }
  0xa6   : > { %p14089_p4 = scmp.ne.s32.totalorder %s493_s27, %s14088_s14  ;;  %p14097_p8 = scmp.lt.s32.totalorder %s14088_s14, %s14088_s14 }
  0xa8   : > { %p14091_p5 = pnand %p14089_p4, %p14552_p2  ;;  %p14098_p11 = por %p14097_p8, %p14096_p7 }
  0xaa   : > { %p14092_p6 = pneg %p14091_p5 }
  0xac   : > { %p14099_p12 = pnand %p14098_p11, %p14092_p6 }
  0xae   : > { %14102 = shalt.err (!%p14099_p12)
}
  0xaf   : > { %s18282_s1 = smov 1   ;;  %s18283_s18 = smov 16  }
  0xb0   : > { %13243 = dma.hbm_to_vmem [thread:$0]  (!%p14540_p0), %s18117_s6, 32, %s493_s27, [#allocation7], %s18283_s18, %s18283_s18, %s18282_s1  }
  0xb1   : > { %s14103_s0 = scalar_lea.hbm %s18119_s8, 32 }
  0xb2   : > { %p14104_p3 = scmp.ne.s32.totalorder %s18119_s8, %s14103_s0  ;;  %p14110_p13 = scmp.lt.u32.totalorder %s14103_s0, %s18119_s8 }
  0xb4   : > { %p14106_p9 = pnand %p14104_p3, %p14552_p2 }
  0xb6   : > { %p14107_p10 = pneg %p14106_p9 }
  0xb8   : > { %p14112_p1 = pnand %p14110_p13, %p14107_p10 }
  0xba   : > { %14115 = shalt.err (!%p14112_p1)
}
  0xbb   : > { %s14116_s27 = scalar_lea.vmem %s14659_s24, 32  ;;  %p14124_p7 = scmp.lt.s32.totalorder %s14659_s24, %s14659_s24 }
  0xbc   : > { %p14117_p4 = scmp.ne.s32.totalorder %s14659_s24, %s14116_s27  ;;  %p14125_p8 = scmp.lt.s32.totalorder %s14116_s27, %s14116_s27 }
  0xbe   : > { %p14119_p5 = pnand %p14117_p4, %p14552_p2  ;;  %p14126_p11 = por %p14125_p8, %p14124_p7 }
  0xc0   : > { %p14120_p6 = pneg %p14119_p5 }
  0xc2   : > { %p14127_p12 = pnand %p14126_p11, %p14120_p6 }
  0xc4   : > { %14130 = shalt.err (!%p14127_p12)
}
  0xc5   : > { %13249 = dma.hbm_to_vmem [thread:$0]  (!%p14540_p0), %s18119_s8, 32, %s14659_s24, [#allocation10], %s18283_s18, %s18283_s18, %s18282_s1  }
  0xc6   : > { %s14350_s26 = smov [#allocation14]   ;;  %s14351_s16 = smov [#allocation17]  }
  0xc7   : > { %s544_s23 = sshll.u32 %s14350_s26, 4  ;;  %s570_s0 = sshll.u32 %s14351_s16, 4  ;;  %s545_s23 = int_to_ptr.vmem [resolvable:$true] %s544_s23  ;;  %s14708_s0 = int_to_ptr.vmem [resolvable:$true] %s570_s0 }
  0xc8   : > { %s14131_s14 = scalar_lea.hbm %s18121_s10, 32 }
  0xc9   : > { %p14132_p3 = scmp.ne.s32.totalorder %s18121_s10, %s14131_s14  ;;  %p14138_p13 = scmp.lt.u32.totalorder %s14131_s14, %s18121_s10 }
  0xcb   : > { %p14134_p9 = pnand %p14132_p3, %p14552_p2 }
  0xcd   : > { %p14135_p10 = pneg %p14134_p9 }
  0xcf   : > { %p14140_p1 = pnand %p14138_p13, %p14135_p10 }
  0xd1   : > { %14143 = shalt.err (!%p14140_p1)
}
  0xd2   : > { %s14144_s17 = scalar_lea.vmem %s545_s23, 32  ;;  %p14152_p7 = scmp.lt.s32.totalorder %s545_s23, %s545_s23 }
  0xd3   : > { %p14145_p4 = scmp.ne.s32.totalorder %s545_s23, %s14144_s17  ;;  %p14153_p8 = scmp.lt.s32.totalorder %s14144_s17, %s14144_s17 }
  0xd5   : > { %p14147_p5 = pnand %p14145_p4, %p14552_p2  ;;  %p14154_p11 = por %p14153_p8, %p14152_p7 }
  0xd7   : > { %p14148_p6 = pneg %p14147_p5 }
  0xd9   : > { %p14155_p12 = pnand %p14154_p11, %p14148_p6 }
  0xdb   : > { %14158 = shalt.err (!%p14155_p12)
}
  0xdc   : > { %13255 = dma.hbm_to_vmem [thread:$0]  (!%p14540_p0), %s18121_s10, 32, %s545_s23, [#allocation13], %s18283_s18, %s18283_s18, %s18282_s1  }
  0xdd   : > { %s14159_s20 = scalar_lea.hbm %s18123_s12, 64 }
  0xde   : > { %p14160_p3 = scmp.ne.s32.totalorder %s18123_s12, %s14159_s20  ;;  %p14166_p13 = scmp.lt.u32.totalorder %s14159_s20, %s18123_s12 }
  0xe0   : > { %p14162_p9 = pnand %p14160_p3, %p14552_p2 }
  0xe2   : > { %p14163_p10 = pneg %p14162_p9 }
  0xe4   : > { %p14168_p1 = pnand %p14166_p13, %p14163_p10 }
  0xe6   : > { %14171 = shalt.err (!%p14168_p1)
}
  0xe7   : > { %s14172_s1 = scalar_lea.vmem %s14708_s0, 64  ;;  %p14180_p7 = scmp.lt.s32.totalorder %s14708_s0, %s14708_s0 }
  0xe8   : > { %p14173_p4 = scmp.ne.s32.totalorder %s14708_s0, %s14172_s1  ;;  %p14181_p8 = scmp.lt.s32.totalorder %s14172_s1, %s14172_s1 }
  0xea   : > { %p14175_p5 = pnand %p14173_p4, %p14552_p2  ;;  %p14182_p11 = por %p14181_p8, %p14180_p7 }
  0xec   : > { %p14176_p6 = pneg %p14175_p5 }
  0xee   : > { %p14183_p12 = pnand %p14182_p11, %p14176_p6 }
  0xf0   : > { %14186 = shalt.err (!%p14183_p12)
}
  0xf1   : > { %s18284_s18 = smov 2   ;;  %s18285_s23 = smov 32  }
  0xf2   : > { %13261 = dma.hbm_to_vmem [thread:$0]  (!%p14540_p0), %s18123_s12, 64, %s14708_s0, [#allocation16], %s18285_s23, %s18285_s23, %s18284_s18  }
  0xf3   : > { %s14352_s26 = smov [#allocation18]   ;;  %s14187_s14 = scalar_lea.hbm %s18126_s15, 512 }
  0xf4   : > { %s589_s16 = sshll.u32 %s14352_s26, 4  ;;  %p14188_p3 = scmp.ne.s32.totalorder %s18126_s15, %s14187_s14  ;;  %s590_s16 = int_to_ptr.vmem [resolvable:$true] %s589_s16 }
  0xf5   : > { %p14194_p13 = scmp.lt.u32.totalorder %s14187_s14, %s18126_s15 }
  0xf6   : > { %p14190_p9 = pnand %p14188_p3, %p14552_p2 }
  0xf8   : > { %p14191_p10 = pneg %p14190_p9 }
  0xfa   : > { %p14196_p1 = pnand %p14194_p13, %p14191_p10 }
  0xfc   : > { %14199 = shalt.err (!%p14196_p1)
}
  0xfd   : > { %s14200_s0 = scalar_lea.vmem %s590_s16, 512  ;;  %p14208_p7 = scmp.lt.s32.totalorder %s590_s16, %s590_s16 }
  0xfe   : > { %p14201_p4 = scmp.ne.s32.totalorder %s590_s16, %s14200_s0  ;;  %p14209_p8 = scmp.lt.s32.totalorder %s14200_s0, %s14200_s0 }
 0x100   : > { %p14203_p5 = pnand %p14201_p4, %p14552_p2  ;;  %p14210_p11 = por %p14209_p8, %p14208_p7 }
 0x102   : > { %p14204_p6 = pneg %p14203_p5 }
 0x104   : > { %p14211_p12 = pnand %p14210_p11, %p14204_p6 }
 0x106   : > { %14214 = shalt.err (!%p14211_p12)
}
 0x107   : > { %s18286_s18 = smov 4   ;;  %s18287_s23 = smov 64  }
 0x108   : > { %13264 = dma.hbm_to_vmem [thread:$0]  (!%p14540_p0), %s18126_s15, 512, %s590_s16, [#allocation19], %s18287_s23, %s18287_s23, %s18286_s18  }
 0x109   : > { %p18288_p3 = scmp.ne.s32.totalorder %s18277_s29, 0 }
 0x10b   : > { %635 = sbr.rel (%p18288_p3) target bundleno = 5580 (0x15cc), region = 88 }
 0x112   : > { %p18289_p2 = scmp.ne.s32.totalorder %s18278_s19, 0 }
 0x114   : > { %14276 = dma.done.wait (%p18289_p2), [#allocation4], 64  }
 0x115   : > { %14278 = vsyncadd (%p18289_p2), [#allocation4], 4294967232 }
 0x116   : > { %14280 = dma.done.wait (%p18289_p2), [#allocation7], 1056  }
 0x117   : > { %14282 = vsyncadd (%p18289_p2), [#allocation7], 4294966240 }
 0x118   : > { %14284 = dma.done.wait (%p18289_p2), [#allocation10], 64  }
 0x119   : > { %14286 = vsyncadd (%p18289_p2), [#allocation10], 4294967232 }
 0x11a   : > { %14288 = dma.done.wait (%p18289_p2), [#allocation13], 64  }
 0x11b   : > { %14290 = vsyncadd (%p18289_p2), [#allocation13], 4294967232 }
 0x11c   : > { %14292 = dma.done.wait (%p18289_p2), [#allocation16], 2112  }
 0x11d   : > { %14294 = vsyncadd (%p18289_p2), [#allocation16], 4294965184 }
 0x11e   : > { %14296 = dma.done.wait (%p18289_p2), [#allocation19], 512  }
 0x11f   : > { %14298 = vsyncadd (%p18289_p2), [#allocation19], 4294966784  ;;  %s730_s29 = sand.u32 1, %s14309_s25   ;;  %s11601_s30 = sshll.u32 %s14321_s28, 4 }
 0x120   : > { %s11600_s21 = sshll.u32 %s730_s29, 4  ;;  %p734_p0 = scmp.lt.s32.totalorder %s11601_s30, 31 }
 0x121   : > { %s11603_s26 = sshll.u32 %s14321_s28, 1  ;;  %s18290_s14 = sld [smem:[#allocation115_spill]] }
 0x122   : > { %s18565_s30 = smov (!%p734_p0, %s11601_s30), 31  ;;  %p740_p9 = scmp.lt.s32.totalorder %s11603_s26, 3 }
 0x123   : > { %s11602_s16 = sshll.u32 %s18565_s30, 3  ;;  %s18291_s1 = sld [smem:[#allocation116_spill]] }
 0x124   : > { %s18567_s26 = smov (!%p740_p9, %s11603_s26), 3  ;;  %s14824_s13 = scalar_lea.vmem [#allocation20], %s11600_s21 }
 0x125   : > { %s11604_s19 = sshll.u32 %s18567_s26, 3  ;;  %s18292_s30 = sld [smem:[#allocation30_spill]] }
 0x126   : > { %s14822_s17 = scalar_lea.vmem %s18113_s2, %s11604_s19 }
 0x127   : > { %s14812_s27 = scalar_lea.vmem %s18290_s14, %s11602_s16 }
 0x129   : > { %s14817_s0 = scalar_lea.vmem %s18291_s1, %s11604_s19 }
 0x12b   : > { %p11607_p10 = scmp.ne.s32.totalorder %s18292_s30, 0 }
 0x12c   : > { %v757_v0 = vld [vmem:[%s14812_s27] sm:$0xff] (!%p11607_p10)  ;;  %vm773_vm0 = vcmask (!%p11607_p10), 523264   ;;  %v758_v1 = vld [vmem:[%s14812_s27 + $0x8] sm:$0xff] (!%p11607_p10)  ;;  %v759_v2 = vld [vmem:[%s14812_s27 + $0x10] sm:$0xff] (!%p11607_p10) }
 0x12d   : > { %756 = sbr.rel (%p11607_p10) target bundleno = 309 (0x135), region = 132  ;;  %774 = vst.msk [vmem:[#allocation2] sm:$0xff] (!%p11607_p10), %vm773_vm0, %v757_v0  ;;  %775 = vst.msk [vmem:[#allocation2 + $0x8] sm:$0xff] (!%p11607_p10), %vm773_vm0, %v758_v1  ;;  %v760_v3 = vld [vmem:[%s14812_s27 + $0x18] sm:$0xff] (!%p11607_p10)  ;;  %v761_v4 = vld [vmem:[%s14812_s27 + $0x20] sm:$0xff] (!%p11607_p10) }
 0x12e   : > { %776 = vst.msk [vmem:[#allocation2 + $0x10] sm:$0xff] (!%p11607_p10), %vm773_vm0, %v759_v2  ;;  %v762_v5 = vld [vmem:[%s14812_s27 + $0x28] sm:$0xff] (!%p11607_p10)  ;;  %777 = vst.msk [vmem:[#allocation2 + $0x18] sm:$0xff] (!%p11607_p10), %vm773_vm0, %v760_v3  ;;  %v763_v6 = vld [vmem:[%s14812_s27 + $0x30] sm:$0xff] (!%p11607_p10) }
 0x12f   : > { %778 = vst.msk [vmem:[#allocation2 + $0x20] sm:$0xff] (!%p11607_p10), %vm773_vm0, %v761_v4  ;;  %779 = vst.msk [vmem:[#allocation2 + $0x28] sm:$0xff] (!%p11607_p10), %vm773_vm0, %v762_v5  ;;  %v764_v7 = vld [vmem:[%s14812_s27 + $0x38] sm:$0xff] (!%p11607_p10)  ;;  %v765_v8 = vld [vmem:[%s14812_s27 + $0x40] sm:$0xff] (!%p11607_p10) }
 0x130   : > { %780 = vst.msk [vmem:[#allocation2 + $0x30] sm:$0xff] (!%p11607_p10), %vm773_vm0, %v763_v6  ;;  %781 = vst.msk [vmem:[#allocation2 + $0x38] sm:$0xff] (!%p11607_p10), %vm773_vm0, %v764_v7  ;;  %v766_v9 = vld [vmem:[%s14812_s27 + $0x48] sm:$0xff] (!%p11607_p10)  ;;  %v767_v10 = vld [vmem:[%s14812_s27 + $0x50] sm:$0xff] (!%p11607_p10) }
 0x131   : > { %782 = vst.msk [vmem:[#allocation2 + $0x40] sm:$0xff] (!%p11607_p10), %vm773_vm0, %v765_v8  ;;  %v768_v11 = vld [vmem:[%s14812_s27 + $0x58] sm:$0xff] (!%p11607_p10)  ;;  %783 = vst.msk [vmem:[#allocation2 + $0x48] sm:$0xff] (!%p11607_p10), %vm773_vm0, %v766_v9  ;;  %v769_v12 = vld [vmem:[%s14812_s27 + $0x60] sm:$0xff] (!%p11607_p10) }
 0x132   : > { %784 = vst.msk [vmem:[#allocation2 + $0x50] sm:$0xff] (!%p11607_p10), %vm773_vm0, %v767_v10  ;;  %785 = vst.msk [vmem:[#allocation2 + $0x58] sm:$0xff] (!%p11607_p10), %vm773_vm0, %v768_v11  ;;  %v770_v13 = vld [vmem:[%s14812_s27 + $0x68] sm:$0xff] (!%p11607_p10)  ;;  %v771_v14 = vld [vmem:[%s14812_s27 + $0x70] sm:$0xff] (!%p11607_p10) }
 0x133   : > { %786 = vst.msk [vmem:[#allocation2 + $0x60] sm:$0xff] (!%p11607_p10), %vm773_vm0, %v769_v12  ;;  %787 = vst.msk [vmem:[#allocation2 + $0x68] sm:$0xff] (!%p11607_p10), %vm773_vm0, %v770_v13  ;;  %v772_v15 = vld [vmem:[%s14812_s27 + $0x78] sm:$0xff] (!%p11607_p10) }
 0x134   : > { %788 = vst.msk [vmem:[#allocation2 + $0x70] sm:$0xff] %vm773_vm0, %v771_v14  ;;  %789 = vst.msk [vmem:[#allocation2 + $0x78] sm:$0xff] %vm773_vm0, %v772_v15 }
 0x135 PF: > { %v790_v16 = vld [vmem:[#allocation2] sm:$0xff]  ;;  %vm810_vm1 = vcmask 523264   ;;  %v791_v17 = vld [vmem:[#allocation2 + $0x8] sm:$0xff]  ;;  %s18293_s21 = sld [smem:[#allocation30_spill]]  ;;  %s18294_s20 = sld [smem:[#allocation117_spill]]  ;;  %vm14355_vm2 = vmmov 0  }
 0x136   : > { %v792_v18 = vld [vmem:[#allocation2 + $0x10] sm:$0xff]  ;;  %v811_v19 = vsel %vm810_vm1, %v790_v16, 0.0  ;;  %v793_v21 = vld [vmem:[#allocation2 + $0x18] sm:$0xff]  ;;  %v814_v22 = vsel %vm810_vm1, %v791_v17, 0.0  ;;  %s14356_s18 = smov 64   ;;  %vm1603_vm3 = vcmask 130048  }
 0x137   : > { %v817_v20 = vsel %vm810_vm1, %v792_v18, 0.0  ;;  %812 = vadd.xlane.f32.xlu0 %v811_v19  ;;  %v820_v23 = vsel %vm810_vm1, %v793_v21, 0.0  ;;  %v794_v24 = vld [vmem:[#allocation2 + $0x20] sm:$0xff]  ;;  %v795_v25 = vld [vmem:[#allocation2 + $0x28] sm:$0xff]  ;;  %vm2581_vm4 = vcmask 1043456   ;;  %vm2385_vm5 = vcmask 64512  }
 0x138   : > { %818 = vadd.xlane.f32.xlu1 %v817_v20  ;;  %v823_v26 = vsel %vm810_vm1, %v794_v24, 0.0  ;;  %v826_v27 = vsel %vm810_vm1, %v795_v25, 0.0  ;;  %v14865_v28 = vld [vmem:[#allocation2 + $0x30] sm:$0xff]  ;;  %v14867_v29 = vld [vmem:[#allocation2 + $0x38] sm:$0xff]  ;;  %s14359_s23 = smov 112   ;;  %s14360_s30 = smov 32  }
 0x139   : > { %v829_v30 = vsel %vm810_vm1, %v14865_v28, 0.0  ;;  %v832_v31 = vsel %vm810_vm1, %v14867_v29, 0.0  ;;  %v14873_v32 = vld [vmem:[#allocation2 + $0x40] sm:$0xff]  ;;  %v14875_v33 = vld [vmem:[#allocation2 + $0x48] sm:$0xff]  ;;  %s14362_s16 = smov 16   ;;  %s14363_s3 = smov 80  }
 0x13a   : > { %v835_v34 = vsel %vm810_vm1, %v14873_v32, 0.0  ;;  %v838_v35 = vsel %vm810_vm1, %v14875_v33, 0.0  ;;  %v14881_v36 = vld [vmem:[#allocation2 + $0x50] sm:$0xff]  ;;  %v14883_v37 = vld [vmem:[#allocation2 + $0x58] sm:$0xff]  ;;  %vm8803_vm6 = vcmask 261120   ;;  %vm8820_vm7 = vcmask 392192  }
 0x13b   : > { %815 = vadd.xlane.f32.xlu0 %v814_v22  ;;  %v841_v38 = vsel %vm810_vm1, %v14881_v36, 0.0  ;;  %v844_v39 = vsel %vm810_vm1, %v14883_v37, 0.0  ;;  %v14889_v40 = vld [vmem:[#allocation2 + $0x60] sm:$0xff]  ;;  %v14891_v41 = vld [vmem:[#allocation2 + $0x68] sm:$0xff]  ;;  %v14903_v55 = vld [vmem:[#allocation2 + $0x70] sm:$0xff]  ;;  %s11886_s26 = sshll.u32 %s18293_s21, 6 }
 0x13c   : > { %821 = vadd.xlane.f32.xlu1 %v820_v23  ;;  %v847_v42 = vsel %vm810_vm1, %v14889_v40, 0.0  ;;  %v850_v43 = vsel %vm810_vm1, %v14891_v41, 0.0  ;;  %v853_v59 = vsel %vm810_vm1, %v14903_v55, 0.0  ;;  %v14916_v2 = vld [vmem:[#allocation2 + $0x78] sm:$0xff]  ;;  %s1074_s14 = scalar_lea.vmem %s18294_s20, %s11886_s26  ;;  %s14986_s27 = scalar_lea.vmem [#allocation15], %s11886_s26 }
 0x13d   : > { %v856_v6 = vsel %vm810_vm1, %v14916_v2, 0.0  ;;  %s806_s19 = scalar_lea.vmem [#allocation9], %s18293_s21  ;;  %s808_s22 = scalar_lea.vmem [#allocation11], %s18293_s21 }
 0x13e   : > { %s11612_s24 = sshll.u32 %s18293_s21, 1  ;;  %s14361_s26 = smov 96  }
 0x13f   : > { %824 = vadd.xlane.f32.xlu0 %v823_v26  ;;  %s1084_s1 = scalar_lea.vmem [#allocation3], %s11612_s24  ;;  %s11935_s20 = sshll.u32 %s18293_s21, 5 }
 0x140   : > { %827 = vadd.xlane.f32.xlu1 %v826_v27  ;;  %p11858_p13 = scmp.ne.s32.totalorder %s18293_s21, 1 }
 0x141   : > { %vm14365_vm8 = vmmov (!%p11858_p13), 0   ;;  %vm11215_vm9 = vcmask (!%p11858_p13), 1041409   ;;  %vm11218_vm10 = vcmask (!%p11858_p13), 1042434   ;;  %vm11221_vm11 = vcmask (!%p11858_p13), 1043459  }
 0x142   : > { %vm11224_vm12 = vcmask (!%p11858_p13), 1044484   ;;  %vm11227_vm13 = vcmask (!%p11858_p13), 1045509   ;;  %vm11230_vm14 = vcmask (!%p11858_p13), 1046534   ;;  %vm11233_vm15 = vcmask (!%p11858_p13), 1047559  }
 0x143   : > { %830 = vadd.xlane.f32.xlu0 %v829_v30 }
 0x144   : > { %833 = vadd.xlane.f32.xlu1 %v832_v31 }
 0x147   : > { %836 = vadd.xlane.f32.xlu0 %v835_v34 }
 0x148   : > { %839 = vadd.xlane.f32.xlu1 %v838_v35 }
 0x14b   : > { %842 = vadd.xlane.f32.xlu0 %v841_v38 }
 0x14c   : > { %845 = vadd.xlane.f32.xlu1 %v844_v39 }
 0x14f   : > { %848 = vadd.xlane.f32.xlu0 %v847_v42 }
 0x150   : > { %851 = vadd.xlane.f32.xlu1 %v850_v43 }
 0x1c4   : > { %v813_v44 = vpop.xlane.xlu0 %812 }
 0x1c5   : > { %v819_v45 = vpop.xlane.xlu1 %818  ;;  %v860_v46 = vmul.f32 0.015625, %v813_v44 }
 0x1c6   : > { %v862_v47 = vmul.f32 0.015625, %v819_v45 }
 0x1c7   : > { %v14897_v48 = vsub.f32 %v790_v16, %v860_v46 }
 0x1c8   : > { %v816_v49 = vpop.xlane.xlu0 %815  ;;  %v14899_v52 = vsub.f32 %v792_v18, %v862_v47 }
 0x1c9   : > { %v822_v50 = vpop.xlane.xlu1 %821  ;;  %v861_v51 = vmul.f32 0.015625, %v816_v49  ;;  %v892_v53 = vmul.f32 %v14897_v48, %v14897_v48 }
 0x1ca   : > { %v863_v54 = vmul.f32 0.015625, %v822_v50  ;;  %v894_v1 = vmul.f32 %v14899_v52, %v14899_v52 }
 0x1cb   : > { %v14905_v56 = vsub.f32 %v791_v17, %v861_v51  ;;  %v908_v57 = vsel %vm810_vm1, %v892_v53, 0.0 }
 0x1cc   : > { %909 = vadd.xlane.f32.xlu0 %v908_v57  ;;  %v14908_v58 = vsub.f32 %v793_v21, %v863_v54  ;;  %v825_v60 = vpop.xlane.xlu0 %824  ;;  %v914_v10 = vsel %vm810_vm1, %v894_v1, 0.0  ;;  %v13516_v1 = vld [vmem:[%s1074_s14 + $0x34] ss:$8 sps:$4 sm:$0xff]  }
 0x1cd   : > { %v828_v61 = vpop.xlane.xlu1 %827  ;;  %v893_v62 = vmul.f32 %v14905_v56, %v14905_v56  ;;  %v864_v63 = vmul.f32 0.015625, %v825_v60  ;;  %v13510_v60 = vld [vmem:[%s1074_s14 + $0x14] ss:$8 sps:$4 sm:$0xff]  }
 0x1ce   : > { %v865_v0 = vmul.f32 0.015625, %v828_v61  ;;  %v895_v9 = vmul.f32 %v14908_v58, %v14908_v58 }
 0x1cf   : > { %v911_v3 = vsel %vm810_vm1, %v893_v62, 0.0  ;;  %v14919_v4 = vsub.f32 %v794_v24, %v864_v63  ;;  %v13512_v62 = vld [vmem:[%s1074_s14 + $0x10] ss:$8 sps:$4 sm:$0xff]   ;;  %v13513_v63 = vld [vmem:[%s1074_s14 + $0x24] ss:$8 sps:$4 sm:$0xff]  }
 0x1d0   : > { %854 = vadd.xlane.f32.xlu0 %v853_v59  ;;  %912 = vadd.xlane.f32.xlu1 %v911_v3  ;;  %v14921_v5 = vsub.f32 %v795_v25, %v865_v0  ;;  %v831_v7 = vpop.xlane.xlu0 %830  ;;  %v917_v16 = vsel %vm810_vm1, %v895_v9, 0.0  ;;  %v13509_v59 = vld [vmem:[%s1074_s14] ss:$8 sps:$4 sm:$0xff]   ;;  %v13518_v3 = vld [vmem:[%s1074_s14 + $0x30] ss:$8 sps:$4 sm:$0xff]  }
 0x1d1   : > { %v834_v8 = vpop.xlane.xlu1 %833  ;;  %v866_v11 = vmul.f32 0.015625, %v831_v7  ;;  %v896_v13 = vmul.f32 %v14919_v4, %v14919_v4  ;;  %v13515_v0 = vld [vmem:[%s1074_s14 + $0x20] ss:$8 sps:$4 sm:$0xff]  }
 0x1d2   : > { %v867_v12 = vmul.f32 0.015625, %v834_v8  ;;  %v897_v19 = vmul.f32 %v14921_v5, %v14921_v5 }
 0x1d3   : > { %v14931_v14 = vsub.f32 %v14865_v28, %v866_v11  ;;  %v920_v20 = vsel %vm810_vm1, %v896_v13, 0.0 }
 0x1d4   : > { %915 = vadd.xlane.f32.xlu0 %v914_v10  ;;  %857 = vadd.xlane.f32.xlu1 %v856_v6  ;;  %v14934_v15 = vsub.f32 %v14867_v29, %v867_v12  ;;  %v837_v17 = vpop.xlane.xlu0 %836  ;;  %v923_v26 = vsel %vm810_vm1, %v897_v19, 0.0  ;;  %v18154_v6 = vmov 0  }
 0x1d5   : > { %v840_v18 = vpop.xlane.xlu1 %839  ;;  %v868_v21 = vmul.f32 0.015625, %v837_v17  ;;  %v898_v23 = vmul.f32 %v14931_v14, %v14931_v14  ;;  %1193 = vmatprep.mubr.bf16.mxu0 %v18154_v6 }
 0x1d6   : > { %v869_v22 = vmul.f32 0.015625, %v840_v18  ;;  %v899_v29 = vmul.f32 %v14934_v15, %v14934_v15 }
 0x1d7   : > { %v14943_v24 = vsub.f32 %v14873_v32, %v868_v21  ;;  %v926_v30 = vsel %vm810_vm1, %v898_v23, 0.0 }
 0x1d8   : > { %918 = vadd.xlane.f32.xlu1 %v917_v16  ;;  %921 = vadd.xlane.f32.xlu0 %v920_v20  ;;  %v14946_v25 = vsub.f32 %v14875_v33, %v869_v22  ;;  %v843_v27 = vpop.xlane.xlu0 %842  ;;  %v929_v38 = vsel %vm810_vm1, %v899_v29, 0.0 }
 0x1d9   : > { %v846_v28 = vpop.xlane.xlu1 %845  ;;  %v870_v31 = vmul.f32 0.015625, %v843_v27  ;;  %v900_v32 = vmul.f32 %v14943_v24, %v14943_v24 }
 0x1da   : > { %v871_v34 = vmul.f32 0.015625, %v846_v28  ;;  %v901_v43 = vmul.f32 %v14946_v25, %v14946_v25 }
 0x1db   : > { %v14955_v35 = vsub.f32 %v14881_v36, %v870_v31  ;;  %v932_v44 = vsel %vm810_vm1, %v900_v32, 0.0 }
 0x1dc   : > { %924 = vadd.xlane.f32.xlu1 %v923_v26  ;;  %927 = vadd.xlane.f32.xlu0 %v926_v30  ;;  %v14958_v33 = vsub.f32 %v14883_v37, %v871_v34  ;;  %v849_v39 = vpop.xlane.xlu0 %848  ;;  %v935_v37 = vsel %vm810_vm1, %v901_v43, 0.0 }
 0x1dd   : > { %v852_v42 = vpop.xlane.xlu1 %851  ;;  %v872_v45 = vmul.f32 0.015625, %v849_v39  ;;  %v902_v36 = vmul.f32 %v14955_v35, %v14955_v35 }
 0x1de   : > { %v873_v46 = vmul.f32 0.015625, %v852_v42  ;;  %v903_v51 = vmul.f32 %v14958_v33, %v14958_v33 }
 0x1df   : > { %v14967_v47 = vsub.f32 %v14889_v40, %v872_v45  ;;  %v938_v50 = vsel %vm810_vm1, %v902_v36, 0.0  ;;  %v13507_v40 = vld [vmem:[%s1074_s14 + $0x4] ss:$8 sps:$4 sm:$0xff]   ;;  %v15004_v45 = vld [vmem:[%s806_s19] ss:$0 sm:$0xff]  ;;  %s8847_s14 = scalar_lea.vmem [#allocation6], %s11935_s20 }
 0x1e0   : > { %930 = vadd.xlane.f32.xlu1 %v929_v38  ;;  %933 = vadd.xlane.f32.xlu0 %v932_v44  ;;  %v14971_v49 = vsub.f32 %v14891_v41, %v873_v46  ;;  %v941_v54 = vsel %vm810_vm1, %v903_v51, 0.0  ;;  %s9017_s19 = scalar_lea.vmem [#allocation8], %s18293_s21 }
 0x1e1   : > { %v904_v53 = vmul.f32 %v14967_v47, %v14967_v47  ;;  %1161 = vmatprep.subr.bf16.mxu0 %v13507_v40 }
 0x1e2   : > { %v905_v57 = vmul.f32 %v14971_v49, %v14971_v49  ;;  %1162 = vmatpush1.bf16.msra.mxu0 %v13509_v59 }
 0x1e3   : > { %v944_v41 = vsel %vm810_vm1, %v904_v53, 0.0  ;;  %1163 = vmatprep.subr.bf16.mxu0 %v13510_v60 }
 0x1e4   : > { %936 = vadd.xlane.f32.xlu1 %v935_v37  ;;  %939 = vadd.xlane.f32.xlu0 %v938_v50  ;;  %v947_v61 = vsel %vm810_vm1, %v905_v57, 0.0 }
 0x1e6   : > { %1164 = vmatpush1.bf16.msra.mxu0 %v13512_v62 }
 0x1e7   : > { %1165 = vmatprep.subr.bf16.mxu0 %v13513_v63 }
 0x1e8   : > { %942 = vadd.xlane.f32.xlu1 %v941_v54  ;;  %945 = vadd.xlane.f32.xlu0 %v944_v41  ;;  %v15009_v54 = vld [vmem:[%s808_s22] ss:$0 sm:$0xff] }
 0x1ea   : > { %1166 = vmatpush1.bf16.msra.mxu0 %v13515_v0 }
 0x1eb   : > { %1167 = vmatprep.subr.bf16.mxu0 %v13516_v1 }
 0x1ec   : > { %948 = vadd.xlane.f32.xlu1 %v947_v61 }
 0x1ee   : > { %1168 = vmatpush1.bf16.msra.mxu0 %v13518_v3 }
 0x259   : > { %v910_v7 = vpop.xlane.xlu0 %909 }
 0x25a   : > { %v956_v8 = vmul.f32 0.015625, %v910_v7 }
 0x25c   : > { %v972_v9 = vadd.f32 1e-05, %v956_v8 }
 0x25d   : > { %v913_v10 = vpop.xlane.xlu1 %912  ;;  %v855_v11 = vpop.xlane.xlu0 %854 }
 0x25e   : > { %13553 = vrsqrt.f32 %v972_v9  ;;  %v957_v12 = vmul.f32 0.015625, %v913_v10  ;;  %v874_v13 = vmul.f32 0.015625, %v855_v11 }
 0x260   : > { %v973_v16 = vadd.f32 1e-05, %v957_v12  ;;  %v14991_v17 = vsub.f32 %v14903_v55, %v874_v13 }
 0x261   : > { %v858_v18 = vpop.xlane.xlu1 %857  ;;  %v916_v19 = vpop.xlane.xlu0 %915 }
 0x262   : > { %13555 = vrsqrt.f32 %v973_v16  ;;  %v875_v20 = vmul.f32 0.015625, %v858_v18  ;;  %v958_v21 = vmul.f32 0.015625, %v916_v19  ;;  %v906_v22 = vmul.f32 %v14991_v17, %v14991_v17 }
 0x264   : > { %v14996_v23 = vsub.f32 %v14916_v2, %v875_v20  ;;  %v974_v26 = vadd.f32 1e-05, %v958_v21  ;;  %v950_v27 = vsel %vm810_vm1, %v906_v22, 0.0 }
 0x265   : > { %v919_v28 = vpop.xlane.xlu1 %918  ;;  %951 = vadd.xlane.f32.xlu0 %v950_v27  ;;  %v922_v29 = vpop.xlane.xlu0 %921 }
 0x266   : > { %13557 = vrsqrt.f32 %v974_v26  ;;  %v959_v55 = vmul.f32 0.015625, %v919_v28  ;;  %v960_v30 = vmul.f32 0.015625, %v922_v29  ;;  %v907_v31 = vmul.f32 %v14996_v23, %v14996_v23 }
 0x268   : > { %v13554_v34 = vpop.eup %13553  ;;  %v975_v32 = vadd.f32 1e-05, %v959_v55  ;;  %v976_v38 = vadd.f32 1e-05, %v960_v30  ;;  %v953_v39 = vsel %vm810_vm1, %v907_v31, 0.0 }
 0x269   : > { %954 = vadd.xlane.f32.xlu1 %v953_v39  ;;  %v925_v2 = vpop.xlane.xlu1 %924  ;;  %v928_v42 = vpop.xlane.xlu0 %927  ;;  %v1004_v43 = vmul.f32 %v13554_v34, %v14897_v48 }
 0x26a   : > { %13559 = vrsqrt.f32 %v975_v32  ;;  %v961_v44 = vmul.f32 0.015625, %v925_v2  ;;  %v962_v37 = vmul.f32 0.015625, %v928_v42 }
 0x26b   : > { %13561 = vrsqrt.f32 %v976_v38  ;;  %v1026_v53 = vmul.f32 %v15004_v45, %v1004_v43 }
 0x26c   : > { %v13556_v46 = vpop.eup %13555  ;;  %v977_v36 = vadd.f32 1e-05, %v961_v44  ;;  %v978_v57 = vadd.f32 1e-05, %v962_v37 }
 0x26d   : > { %v931_v50 = vpop.xlane.xlu1 %930  ;;  %v1005_v51 = vmul.f32 %v13556_v46, %v14905_v56  ;;  %v934_v60 = vpop.xlane.xlu0 %933  ;;  %v1048_v62 = vadd.f32 %v15009_v54, %v1026_v53 }
 0x26e   : > { %13563 = vrsqrt.f32 %v977_v36  ;;  %v963_v40 = vmul.f32 0.015625, %v931_v50  ;;  %v964_v7 = vmul.f32 0.015625, %v934_v60 }
 0x26f   : > { %v1027_v48 = vmul.f32 %v15004_v45, %v1005_v51 }
 0x270   : > { %v13558_v41 = vpop.eup %13557  ;;  %v979_v59 = vadd.f32 1e-05, %v963_v40  ;;  %v980_v16 = vadd.f32 1e-05, %v964_v7 }
 0x271   : > { %v937_v61 = vpop.xlane.xlu1 %936  ;;  %v1049_v63 = vadd.f32 %v15009_v54, %v1027_v48  ;;  %v1006_v56 = vmul.f32 %v13558_v41, %v14899_v52  ;;  %v940_v18 = vpop.xlane.xlu0 %939 }
 0x272   : > { %13565 = vrsqrt.f32 %v979_v59  ;;  %v965_v0 = vmul.f32 0.015625, %v937_v61  ;;  %v966_v29 = vmul.f32 0.015625, %v940_v18 }
 0x273   : > { %v1064_v1 = vpack.c.bf16 %v1049_v63, %v1048_v62  ;;  %13567 = vrsqrt.f32 %v978_v57  ;;  %v1028_v9 = vmul.f32 %v15004_v45, %v1006_v56 }
 0x274   : > { %v13560_v3 = vpop.eup %13559  ;;  %v981_v11 = vadd.f32 1e-05, %v965_v0  ;;  %v982_v32 = vadd.f32 1e-05, %v966_v29 }
 0x275   : > { %11621 = vmatmul.mubr.msk.bf16.vlgmr.msra.gmra.mrb[0].mxu0 %vm810_vm1, %v1064_v1  ;;  %v1007_v8 = vmul.f32 %v13560_v3, %v14908_v58  ;;  %v13562_v10 = vpop.eup %13561  ;;  %v943_v12 = vpop.xlane.xlu1 %942  ;;  %v1050_v19 = vadd.f32 %v15009_v54, %v1028_v9 }
 0x276   : > { %1203 = vmatprep.mubr.bf16.mxu0 %v18154_v6  ;;  %v1008_v21 = vmul.f32 %v13562_v10, %v14919_v4  ;;  %13569 = vrsqrt.f32 %v981_v11  ;;  %v967_v22 = vmul.f32 0.015625, %v943_v12  ;;  %v946_v38 = vpop.xlane.xlu0 %945 }
 0x277   : > { %v1029_v13 = vmul.f32 %v15004_v45, %v1007_v8  ;;  %13571 = vrsqrt.f32 %v980_v16  ;;  %v968_v36 = vmul.f32 0.015625, %v946_v38 }
 0x278   : > { %v13564_v52 = vpop.eup %13563  ;;  %v1030_v55 = vmul.f32 %v15004_v45, %v1008_v21  ;;  %v983_v31 = vadd.f32 1e-05, %v967_v22 }
 0x279   : > { %v1051_v20 = vadd.f32 %v15009_v54, %v1029_v13  ;;  %v1009_v58 = vmul.f32 %v13564_v52, %v14921_v5  ;;  %v949_v34 = vpop.xlane.xlu1 %948  ;;  %v984_v53 = vadd.f32 1e-05, %v968_v36 }
 0x27a   : > { %v1052_v39 = vadd.f32 %v15009_v54, %v1030_v55  ;;  %13573 = vrsqrt.f32 %v983_v31  ;;  %v969_v42 = vmul.f32 0.015625, %v949_v34  ;;  %v1087_v34 = vlaneseq }
 0x27b   : > { %v1065_v26 = vpack.c.bf16 %v1051_v20, %v1050_v19  ;;  %v1031_v27 = vmul.f32 %v15004_v45, %v1009_v58  ;;  %13575 = vrsqrt.f32 %v982_v32 }
 0x27c   : > { %v13566_v28 = vpop.eup %13565 }
 0x27d   : > { %11622 = vmatmul.mubr.msk.bf16.gmra.mrb[4].mxu0 %vm810_vm1, %v1065_v26  ;;  %v13568_v30 = vpop.eup %13567  ;;  %v1053_v4 = vadd.f32 %v15009_v54, %v1031_v27  ;;  %v1011_v5 = vmul.f32 %v13566_v28, %v14934_v15  ;;  %v985_v15 = vadd.f32 1e-05, %v969_v42 }
 0x27e   : > { %1213 = vmatprep.mubr.bf16.mxu0 %v18154_v6  ;;  %v1010_v2 = vmul.f32 %v13568_v30, %v14931_v14 }
 0x27f   : > { %v1066_v43 = vpack.c.bf16 %v1053_v4, %v1052_v39  ;;  %v1033_v44 = vmul.f32 %v15004_v45, %v1011_v5  ;;  %13577 = vrsqrt.f32 %v985_v15  ;;  %v15072_v4 = vshrl.u32 %v1087_v34, 7 }
 0x280   : > { %v13570_v46 = vpop.eup %13569  ;;  %v1032_v37 = vmul.f32 %v15004_v45, %v1010_v2  ;;  %13579 = vrsqrt.f32 %v984_v53 }
 0x281   : > { %v13572_v50 = vpop.eup %13571  ;;  %v1055_v51 = vadd.f32 %v15009_v54, %v1033_v44  ;;  %v1013_v14 = vmul.f32 %v13570_v46, %v14946_v25  ;;  %18295 = vst [vmem:[#allocation39_spill] sm:$0xff] %v15072_v4 }
 0x282   : > { %v1054_v40 = vadd.f32 %v15009_v54, %v1032_v37  ;;  %v1012_v48 = vmul.f32 %v13572_v50, %v14943_v24 }
 0x283   : > { %v1035_v57 = vmul.f32 %v15004_v45, %v1013_v14 }
 0x284   : > { %v1067_v41 = vpack.c.bf16 %v1055_v51, %v1054_v40  ;;  %v13574_v59 = vpop.eup %13573  ;;  %v1034_v60 = vmul.f32 %v15004_v45, %v1012_v48 }
 0x285   : > { %11623 = vmatmul.mubr.msk.bf16.gmra.mrb[8].mxu0 %vm810_vm1, %v1066_v43  ;;  %v13576_v61 = vpop.eup %13575  ;;  %v1057_v25 = vadd.f32 %v15009_v54, %v1035_v57  ;;  %v1015_v62 = vmul.f32 %v13574_v59, %v14958_v33 }
 0x286   : > { %1223 = vmatprep.mubr.bf16.mxu0 %v18154_v6  ;;  %v1056_v63 = vadd.f32 %v15009_v54, %v1034_v60  ;;  %v1014_v24 = vmul.f32 %v13576_v61, %v14955_v35 }
 0x287   : > { %v1037_v0 = vmul.f32 %v15004_v45, %v1015_v62 }
 0x288   : > { %v1068_v56 = vpack.c.bf16 %v1057_v25, %v1056_v63  ;;  %v1036_v3 = vmul.f32 %v15004_v45, %v1014_v24 }
 0x289   : > { %v13578_v1 = vpop.eup %13577  ;;  %v1059_v8 = vadd.f32 %v15009_v54, %v1037_v0 }
 0x28a   : > { %v13580_v7 = vpop.eup %13579  ;;  %v1017_v9 = vmul.f32 %v13578_v1, %v14971_v49  ;;  %v1058_v33 = vadd.f32 %v15009_v54, %v1036_v3 }
 0x28b   : > { %v1016_v10 = vmul.f32 %v13580_v7, %v14967_v47 }
 0x28c   : > { %v1069_v35 = vpack.c.bf16 %v1059_v8, %v1058_v33  ;;  %v1039_v11 = vmul.f32 %v15004_v45, %v1017_v9 }
 0x28d   : > { %11624 = vmatmul.mubr.msk.bf16.gmra.mrb[12].mxu0 %vm810_vm1, %v1067_v41  ;;  %v1038_v12 = vmul.f32 %v15004_v45, %v1016_v10 }
 0x28e   : > { %1233 = vmatprep.mubr.bf16.mxu0 %v18154_v6  ;;  %v1061_v13 = vadd.f32 %v15009_v54, %v1039_v11 }
 0x28f   : > { %v1060_v52 = vadd.f32 %v15009_v54, %v1038_v12 }
 0x291   : > { %v1070_v16 = vpack.c.bf16 %v1061_v13, %v1060_v52 }
 0x295   : > { %11625 = vmatmul.mubr.msk.bf16.gmra.mrb[16].mxu0 %vm810_vm1, %v1068_v56 }
 0x296   : > { %1243 = vmatprep.mubr.bf16.mxu0 %v18154_v6 }
 0x29d   : > { %11626 = vmatmul.mubr.msk.bf16.gmra.mrb[20].mxu0 %vm810_vm1, %v1069_v35 }
 0x29e   : > { %1253 = vmatprep.mubr.bf16.mxu0 %v18154_v6 }
 0x2a5   : > { %11627 = vmatmul.mubr.msk.bf16.gmra.mrb[24].mxu0 %vm810_vm1, %v1070_v16 }
 0x2a6   : > { %1263 = vmatprep.mubr.bf16.mxu0 %v18154_v6 }
 0x2f2   : > { %v952_v49 = vpop.xlane.xlu0 %951 }
 0x2f3   : > { %v970_v47 = vmul.f32 0.015625, %v952_v49 }
 0x2f5   : > { %v986_v18 = vadd.f32 1e-05, %v970_v47 }
 0x2f6   : > { %v955_v19 = vpop.xlane.xlu1 %954 }
 0x2f7   : > { %13581 = vrsqrt.f32 %v986_v18  ;;  %v971_v20 = vmul.f32 0.015625, %v955_v19 }
 0x2f9   : > { %v987_v21 = vadd.f32 1e-05, %v971_v20 }
 0x2fb   : > { %13583 = vrsqrt.f32 %v987_v21 }
 0x301   : > { %v13582_v58 = vpop.eup %13581 }
 0x302   : > { %v1018_v22 = vmul.f32 %v13582_v58, %v14991_v17  ;;  %v18156_v17 = vmov 0.0  }
 0x303   : > { %12314 = vmatprep.subr.bf16.mxu1 %v18156_v17  ;;  %12308 = vmatprep.subr.bf16.mxu0 %v18156_v17 }
 0x304   : > { %v1040_v28 = vmul.f32 %v15004_v45, %v1018_v22  ;;  %12316 = vmatprep.mubr.msk.bf16.mxu1 %vm14355_vm2, %v18156_v17 }
 0x305   : > { %v13584_v26 = vpop.eup %13583 }
 0x306   : > { %v1019_v27 = vmul.f32 %v13584_v26, %v14996_v23  ;;  %v1062_v55 = vadd.f32 %v15009_v54, %v1040_v28  ;;  %v15077_v23 = vsub.s32 0, %v15072_v4 }
 0x308   : > { %v1041_v29 = vmul.f32 %v15004_v45, %v1019_v27  ;;  %18296 = vst [vmem:[#allocation40_spill] sm:$0xff] %v15077_v23  ;;  %v15081_v45 = vld [vmem:[%s1084_s1] sm:$0x3] }
 0x309   : > { %v15085_v5 = vrot.slane %v15081_v45, %v15077_v23 }
 0x30a   : > { %v1063_v30 = vadd.f32 %v15009_v54, %v1041_v29 }
 0x30c   : > { %v1071_v31 = vpack.c.bf16 %v1063_v30, %v1062_v55 }
 0x30e   : > { %11628 = vmatmul.mubr.msk.bf16.gmra.mrb[28].mxu0 %vm810_vm1, %v1071_v31 }
 0x30f   : > { %12310 = vmatprep.mubr.msk.bf16.mxu0 %vm14355_vm2, %v18156_v17 }
 0x348   : > { %v1195_v54 = vpop.f32.mrb[0].mxu0 }
 0x349   : > { %v15087_v32 = vpop.f32.mrb[1].mxu0  ;;  %v15121_v51 = vadd.f32 %v1195_v54, %v15085_v5 }
 0x34a   : > { %v1199_v38 = vpop.f32.mrb[2].mxu0 }
 0x34b   : > { %v15094_v39 = vadd.f32 %v1199_v38, %v15085_v5  ;;  %v15096_v2 = vpop.f32.mrb[3].mxu0  ;;  %v15136_v57 = vpack.c.bf16 %v15121_v51, %v15121_v51 }
 0x34d   : > { %v15100_v42 = vpack.c.bf16 %v15094_v39, %v15094_v39  ;;  %v1275_v54 = vmul.f32 0.25, %v15094_v39 }
 0x34f   : > { %1651 = vrot.lane.b32.xlu0 %v15100_v42, %s14356_s18 }
 0x350   : > { %v1205_v43 = vpop.f32.mrb[4].mxu0 }
 0x351   : > { %v15105_v44 = vadd.f32 %v1205_v43, %v15085_v5  ;;  %v15107_v46 = vpop.f32.mrb[5].mxu0  ;;  %v15248_v43 = vpack.c.bf16 %v1275_v54, %v1275_v54 }
 0x352   : > { %v1209_v36 = vpop.f32.mrb[6].mxu0 }
 0x353   : > { %v15111_v37 = vpack.c.bf16 %v15105_v44, %v15105_v44  ;;  %v15114_v50 = vadd.f32 %v1209_v36, %v15085_v5  ;;  %v15116_v15 = vpop.f32.mrb[7].mxu0 }
 0x355   : > { %1700 = vrot.lane.b32.xlu1 %v15111_v37, %s14356_s18  ;;  %v15125_v14 = vpack.c.bf16 %v15114_v50, %v15114_v50 }
 0x358   : > { %v1215_v53 = vpop.f32.mrb[8].mxu0 }
 0x359   : > { %v15128_v40 = vadd.f32 %v1215_v53, %v15085_v5  ;;  %1749 = vrot.lane.b32.xlu1 %v15125_v14, %s14356_s18  ;;  %v15132_v48 = vpop.f32.mrb[9].mxu0 }
 0x35a   : > { %v1219_v41 = vpop.f32.mrb[10].mxu0 }
 0x35b   : > { %v15140_v59 = vpack.c.bf16 %v15128_v40, %v15128_v40  ;;  %v15143_v60 = vadd.f32 %v1219_v41, %v15085_v5  ;;  %v15145_v61 = vpop.f32.mrb[11].mxu0  ;;  %v1276_v41 = vmul.f32 0.25, %v15105_v44  ;;  %v1277_v44 = vmul.f32 0.25, %v15114_v50 }
 0x35c   : > { %v1278_v50 = vmul.f32 0.25, %v15128_v40 }
 0x35d   : > { %1601 = vrot.lane.b32.xlu1 %v15136_v57, %s14356_s18  ;;  %1798 = vrot.lane.b32.xlu0 %v15140_v59, %s14356_s18  ;;  %v15153_v25 = vpack.c.bf16 %v15143_v60, %v15143_v60 }
 0x360   : > { %v1225_v62 = vpop.f32.mrb[12].mxu0 }
 0x361   : > { %v15156_v63 = vadd.f32 %v1225_v62, %v15085_v5  ;;  %1847 = vrot.lane.b32.xlu1 %v15153_v25, %s14356_s18  ;;  %v15160_v24 = vpop.f32.mrb[13].mxu0  ;;  %v15257_v62 = vpack.c.bf16 %v1276_v41, %v1276_v41 }
 0x362   : > { %v1229_v56 = vpop.f32.mrb[14].mxu0 }
 0x363   : > { %v15164_v0 = vpack.c.bf16 %v15156_v63, %v15156_v63  ;;  %v15167_v1 = vadd.f32 %v1229_v56, %v15085_v5  ;;  %v15169_v3 = vpop.f32.mrb[15].mxu0 }
 0x365   : > { %v15173_v7 = vpack.c.bf16 %v15167_v1, %v15167_v1  ;;  %1896 = vrot.lane.b32.xlu0 %v15164_v0, %s14356_s18 }
 0x367   : > { %1945 = vrot.lane.b32.xlu1 %v15173_v7, %s14356_s18 }
 0x368   : > { %v1235_v8 = vpop.f32.mrb[16].mxu0 }
 0x369   : > { %v15180_v9 = vadd.f32 %v1235_v8, %v15085_v5  ;;  %v15182_v33 = vpop.f32.mrb[17].mxu0  ;;  %v1274_v8 = vmul.f32 0.25, %v15121_v51 }
 0x36a   : > { %v1239_v10 = vpop.f32.mrb[18].mxu0 }
 0x36b   : > { %v15186_v35 = vpack.c.bf16 %v15180_v9, %v15180_v9  ;;  %v15189_v11 = vadd.f32 %v1239_v10, %v15085_v5  ;;  %v15191_v12 = vpop.f32.mrb[19].mxu0 }
 0x36d   : > { %v15195_v13 = vpack.c.bf16 %v15189_v11, %v15189_v11  ;;  %1994 = vrot.lane.b32.xlu0 %v15186_v35, %s14356_s18 }
 0x36f   : > { %2043 = vrot.lane.b32.xlu1 %v15195_v13, %s14356_s18 }
 0x370   : > { %v1245_v52 = vpop.f32.mrb[20].mxu0 }
 0x371   : > { %v15202_v16 = vadd.f32 %v1245_v52, %v15085_v5  ;;  %v15204_v49 = vpop.f32.mrb[21].mxu0  ;;  %v15269_v52 = vpack.c.bf16 %v1274_v8, %v1274_v8  ;;  %v1283_v8 = vmul.f32 0.25, %v15189_v11 }
 0x372   : > { %v1249_v47 = vpop.f32.mrb[22].mxu0 }
 0x373   : > { %v15208_v18 = vpack.c.bf16 %v15202_v16, %v15202_v16  ;;  %v15211_v19 = vadd.f32 %v1249_v47, %v15085_v5  ;;  %v15213_v20 = vpop.f32.mrb[23].mxu0 }
 0x375   : > { %v15217_v21 = vpack.c.bf16 %v15211_v19, %v15211_v19  ;;  %2092 = vrot.lane.b32.xlu0 %v15208_v18, %s14356_s18 }
 0x377   : > { %18297 = vst [vmem:[#allocation41_spill] sm:$0xff] %v15217_v21  ;;  %2141 = vrot.lane.b32.xlu1 %v15217_v21, %s14356_s18 }
 0x378   : > { %v1255_v58 = vpop.f32.mrb[24].mxu0 }
 0x379   : > { %v15224_v22 = vadd.f32 %v1255_v58, %v15085_v5  ;;  %v15226_v26 = vpop.f32.mrb[25].mxu0  ;;  %v15271_v58 = vpack.c.bf16 %v1277_v44, %v1277_v44 }
 0x37a   : > { %18298 = vst [vmem:[#allocation42_spill] sm:$0xff] %v15226_v26  ;;  %v1259_v27 = vpop.f32.mrb[26].mxu0 }
 0x37b   : > { %v15230_v28 = vpack.c.bf16 %v15224_v22, %v15224_v22  ;;  %v15233_v29 = vadd.f32 %v1259_v27, %v15085_v5  ;;  %v15235_v55 = vpop.f32.mrb[27].mxu0 }
 0x37d   : > { %18299 = vst [vmem:[#allocation43_spill] sm:$0xff] %v15230_v28  ;;  %v15239_v30 = vpack.c.bf16 %v15233_v29, %v15233_v29  ;;  %2190 = vrot.lane.b32.xlu0 %v15230_v28, %s14356_s18 }
 0x37f   : > { %18300 = vst [vmem:[#allocation44_spill] sm:$0xff] %v15239_v30  ;;  %2239 = vrot.lane.b32.xlu1 %v15239_v30, %s14356_s18 }
 0x3c1   : > { %v1652_v31 = vpop.permute.xlu0 %1651 }
 0x3c2   : > { %v1657_v34 = vsel %vm1603_vm3, %v1652_v31, 0 }
 0x3c3   : > { %12315 = vmatpush3.bf16.xpose.msra.mxu1 %v1657_v34  ;;  %v15284_v34 = vpack.c.bf16 %v1278_v50, %v1278_v50 }
 0x3c4   : > { %12320 = vmatprep.subr.bf16.mxu1 %v18156_v17 }
 0x3c7   : > { %v1701_v38 = vpop.permute.xlu1 %1700 }
 0x3c8   : > { %v1706_v36 = vsel %vm1603_vm3, %v1701_v38, 0 }
 0x3ca   : > { %12317 = vmatmul.mubr.msk.bf16.vlgmr.msra.gmra.mrb[0].mxu1 %vm1603_vm3, %v15248_v43 }
 0x3cb   : > { %v1750_v53 = vpop.permute.xlu1 %1749  ;;  %12321 = vmatpush3.bf16.xpose.msra.mxu1 %v1706_v36  ;;  %12322 = vmatprep.mubr.msk.bf16.mxu1 %vm14355_vm2, %v18156_v17 }
 0x3cc   : > { %12326 = vmatprep.subr.bf16.mxu1 %v18156_v17  ;;  %v1755_v10 = vsel %vm1603_vm3, %v1750_v53, 0 }
 0x3cf   : > { %v1602_v39 = vpop.permute.xlu1 %1601  ;;  %v1799_v47 = vpop.permute.xlu0 %1798 }
 0x3d0   : > { %v1608_v56 = vsel %vm1603_vm3, %v1602_v39, 0  ;;  %v1804_v27 = vsel %vm1603_vm3, %v1799_v47, 0 }
 0x3d1   : > { %12309 = vmatpush3.bf16.xpose.msra.mxu0 %v1608_v56  ;;  %v1279_v56 = vmul.f32 0.25, %v15143_v60 }
 0x3d2   : > { %12323 = vmatmul.mubr.msk.bf16.vlgmr.msra.gmra.mrb[4].mxu1 %vm1603_vm3, %v15257_v62  ;;  %12362 = vmatprep.subr.bf16.mxu0 %v18156_v17 }
 0x3d3   : > { %12327 = vmatpush3.bf16.xpose.msra.mxu1 %v1755_v10  ;;  %12328 = vmatprep.mubr.msk.bf16.mxu1 %vm14355_vm2, %v18156_v17  ;;  %v1848_v51 = vpop.permute.xlu1 %1847 }
 0x3d4   : > { %12332 = vmatprep.subr.bf16.mxu1 %v18156_v17  ;;  %v1853_v36 = vsel %vm1603_vm3, %v1848_v51, 0  ;;  %v15316_v51 = vpack.c.bf16 %v1279_v56, %v1279_v56 }
 0x3d7   : > { %v1897_v11 = vpop.permute.xlu0 %1896 }
 0x3d8   : > { %12311 = vmatmul.mubr.msk.bf16.vlgmr.msra.gmra.mrb[32].mxu0 %vm1603_vm3, %v15269_v52  ;;  %v1902_v50 = vsel %vm1603_vm3, %v1897_v11, 0  ;;  %v1287_v11 = vmul.f32 0.25, %v15233_v29 }
 0x3d9   : > { %12364 = vmatprep.mubr.msk.bf16.mxu0 %vm14355_vm2, %v18156_v17  ;;  %v1946_v31 = vpop.permute.xlu1 %1945 }
 0x3da   : > { %12329 = vmatmul.mubr.msk.bf16.vlgmr.msra.gmra.mrb[8].mxu1 %vm1603_vm3, %v15271_v58 }
 0x3db   : > { %12333 = vmatpush3.bf16.xpose.msra.mxu1 %v1804_v27  ;;  %12334 = vmatprep.mubr.msk.bf16.mxu1 %vm14355_vm2, %v18156_v17 }
 0x3dc   : > { %12338 = vmatprep.subr.bf16.mxu1 %v18156_v17 }
 0x3e1   : > { %v2044_v54 = vpop.permute.xlu1 %2043  ;;  %v1265_v38 = vpop.f32.mrb[28].mxu0 }
 0x3e2   : > { %v2049_v53 = vsel %vm1603_vm3, %v2044_v54, 0  ;;  %v15289_v41 = vadd.f32 %v1265_v38, %v15085_v5  ;;  %v15291_v39 = vpop.f32.mrb[29].mxu0  ;;  %12335 = vmatmul.mubr.msk.bf16.vlgmr.msra.gmra.mrb[12].mxu1 %vm1603_vm3, %v15284_v34  ;;  %v1280_v38 = vmul.f32 0.25, %v15156_v63 }
 0x3e3   : > { %18301 = vst [vmem:[#allocation45_spill] sm:$0xff] %v15291_v39  ;;  %v1269_v40 = vpop.f32.mrb[30].mxu0  ;;  %12339 = vmatpush3.bf16.xpose.msra.mxu1 %v1853_v36  ;;  %12363 = vmatpush3.bf16.xpose.msra.mxu0 %v2049_v53  ;;  %v1285_v36 = vmul.f32 0.25, %v15211_v19  ;;  %v1281_v19 = vmul.f32 0.25, %v15167_v1  ;;  %v1282_v1 = vmul.f32 0.25, %v15180_v9 }
 0x3e4   : > { %v15299_v10 = vpack.c.bf16 %v15289_v41, %v15289_v41  ;;  %v15302_v44 = vadd.f32 %v1269_v40, %v15085_v5  ;;  %v15304_v47 = vpop.f32.mrb[31].mxu0  ;;  %12340 = vmatprep.mubr.msk.bf16.mxu1 %vm14355_vm2, %v18156_v17  ;;  %12344 = vmatprep.subr.bf16.mxu1 %v18156_v17  ;;  %v15318_v5 = vpack.c.bf16 %v1283_v8, %v1283_v8  ;;  %v1951_v8 = vsel %vm1603_vm3, %v1946_v31, 0  ;;  %v1995_v31 = vpop.permute.xlu0 %1994 }
 0x3e5   : > { %18303 = vst [vmem:[#allocation47_spill] sm:$0xff] %v15304_v47  ;;  %12374 = vmatprep.subr.bf16.mxu0 %v18156_v17  ;;  %v15336_v53 = vpack.c.bf16 %v1280_v38, %v1280_v38  ;;  %v15338_v40 = vpack.c.bf16 %v1285_v36, %v1285_v36  ;;  %v15369_v38 = vpack.c.bf16 %v1282_v1, %v1282_v1 }
 0x3e6   : > { %18302 = vst [vmem:[#allocation46_spill] sm:$0xff] %v15299_v10  ;;  %v15312_v60 = vpack.c.bf16 %v15302_v44, %v15302_v44  ;;  %2288 = vrot.lane.b32.xlu0 %v15299_v10, %s14356_s18 }
 0x3e7   : > { %18305 = vst [vmem:[#allocation49_spill] sm:$0xff] %v15338_v40 }
 0x3e8   : > { %18304 = vst [vmem:[#allocation48_spill] sm:$0xff] %v15312_v60  ;;  %2337 = vrot.lane.b32.xlu1 %v15312_v60, %s14356_s18  ;;  %v2093_v29 = vpop.permute.xlu0 %2092  ;;  %s18536_s18 = sld [smem:[#allocation118_spill]] }
 0x3e9   : > { %v2142_v27 = vpop.permute.xlu1 %2141  ;;  %v2098_v36 = vsel %vm1603_vm3, %v2093_v29, 0 }
 0x3ea   : > { %v2147_v54 = vsel %vm1603_vm3, %v2142_v27, 0  ;;  %12341 = vmatmul.mubr.msk.bf16.vlgmr.msra.gmra.mrb[16].mxu1 %vm1603_vm3, %v15316_v51  ;;  %12365 = vmatmul.mubr.msk.bf16.vlgmr.msra.gmra.mrb[36].mxu0 %vm1603_vm3, %v15318_v5  ;;  %v15354_v27 = vpack.c.bf16 %v1281_v19, %v1281_v19  ;;  %v1286_v19 = vmul.f32 0.25, %v15224_v22 }
 0x3eb   : > { %12345 = vmatpush3.bf16.xpose.msra.mxu1 %v1902_v50  ;;  %12375 = vmatpush3.bf16.xpose.msra.mxu0 %v2147_v54  ;;  %v15356_v50 = vpack.c.bf16 %v1287_v11, %v1287_v11  ;;  %v2000_v54 = vsel %vm1603_vm3, %v1995_v31, 0 }
 0x3ec   : > { %12346 = vmatprep.mubr.msk.bf16.mxu1 %vm14355_vm2, %v18156_v17  ;;  %12376 = vmatprep.mubr.msk.bf16.mxu0 %vm14355_vm2, %v18156_v17  ;;  %v15387_v11 = vpack.c.bf16 %v1286_v19, %v1286_v19 }
 0x3ed   : > { %12350 = vmatprep.subr.bf16.mxu1 %v18156_v17  ;;  %12386 = vmatprep.subr.bf16.mxu0 %v18156_v17  ;;  %18306 = vst [vmem:[#allocation50_spill] sm:$0xff] %v15356_v50 }
 0x3ee   : > { %18307 = vst [vmem:[#allocation51_spill] sm:$0xff] %v15387_v11 }
 0x3ef   : > { %v2191_v9 = vpop.permute.xlu0 %2190 }
 0x3f1   : > { %v2240_v56 = vpop.permute.xlu1 %2239 }
 0x3f2   : > { %v2245_v63 = vsel %vm1603_vm3, %v2240_v56, 0  ;;  %12347 = vmatmul.mubr.msk.bf16.vlgmr.msra.gmra.mrb[20].mxu1 %vm1603_vm3, %v15336_v53  ;;  %12377 = vmatmul.mubr.msk.bf16.vlgmr.msra.gmra.mrb[40].mxu0 %vm1603_vm3, %v15338_v40  ;;  %v1284_v56 = vmul.f32 0.25, %v15202_v16  ;;  %v18153_v16 = vsub.s32 1, %v15072_v4 }
 0x3f3   : > { %12351 = vmatpush3.bf16.xpose.msra.mxu1 %v1951_v8  ;;  %12387 = vmatpush3.bf16.xpose.msra.mxu0 %v2245_v63  ;;  %v2196_v63 = vsel %vm1603_vm3, %v2191_v9, 0 }
 0x3f4   : > { %12352 = vmatprep.mubr.msk.bf16.mxu1 %vm14355_vm2, %v18156_v17  ;;  %12388 = vmatprep.mubr.msk.bf16.mxu0 %vm14355_vm2, %v18156_v17  ;;  %v15378_v8 = vpack.c.bf16 %v1284_v56, %v1284_v56  ;;  %v15397_v31 = vrot.slane %v15081_v45, %v18153_v16  ;;  %v1288_v56 = vmul.f32 0.25, %v15289_v41 }
 0x3f5   : > { %12356 = vmatprep.subr.bf16.mxu1 %v18156_v17  ;;  %12398 = vmatprep.subr.bf16.mxu0 %v18156_v17 }
 0x3f6   : > { %v1198_v22 = vadd.f32 %v15087_v32, %v15397_v31  ;;  %v15413_v19 = vpack.c.bf16 %v1288_v56, %v1288_v56 }
 0x3f8   : > { %v15407_v45 = vpack.c.bf16 %v1198_v22, %v1198_v22  ;;  %18310 = vst [vmem:[#allocation54_spill] sm:$0xff] %v15413_v19 }
 0x3fa   : > { %12353 = vmatmul.mubr.msk.bf16.vlgmr.msra.gmra.mrb[24].mxu1 %vm1603_vm3, %v15354_v27  ;;  %12389 = vmatmul.mubr.msk.bf16.vlgmr.msra.gmra.mrb[44].mxu0 %vm1603_vm3, %v15356_v50  ;;  %18308 = vst [vmem:[#allocation52_spill] sm:$0xff] %v15407_v45  ;;  %v2583_v41 = vsel %vm2581_vm4, %v15407_v45, 0 }
 0x3fb   : > { %12357 = vmatpush3.bf16.xpose.msra.mxu1 %v2000_v54  ;;  %12358 = vmatprep.mubr.msk.bf16.mxu1 %vm14355_vm2, %v18156_v17 }
 0x3fc   : > { %12368 = vmatprep.subr.bf16.mxu1 %v18156_v17  ;;  %12400 = vmatprep.mubr.msk.bf16.mxu0 %vm14355_vm2, %v18156_v17 }
 0x402   : > { %12359 = vmatmul.mubr.msk.bf16.vlgmr.msra.gmra.mrb[28].mxu1 %vm1603_vm3, %v15369_v38 }
 0x403   : > { %12369 = vmatpush3.bf16.xpose.msra.mxu1 %v2098_v36  ;;  %12370 = vmatprep.mubr.msk.bf16.mxu1 %vm14355_vm2, %v18156_v17  ;;  %v1202_v36 = vadd.f32 %v15096_v2, %v15397_v31 }
 0x404   : > { %12380 = vmatprep.subr.bf16.mxu1 %v18156_v17 }
 0x405   : > { %v15411_v32 = vpack.c.bf16 %v1202_v36, %v1202_v36  ;;  %v1314_v36 = vld [vmem:[%s14817_s0] sm:$0xff] }
 0x407   : > { %18309 = vst [vmem:[#allocation53_spill] sm:$0xff] %v15411_v32 }
 0x40a   : > { %12371 = vmatmul.mubr.msk.bf16.vlgmr.msra.gmra.mrb[32].mxu1 %vm1603_vm3, %v15378_v8 }
 0x40b   : > { %12381 = vmatpush3.bf16.xpose.msra.mxu1 %v2196_v63  ;;  %12382 = vmatprep.mubr.msk.bf16.mxu1 %vm14355_vm2, %v18156_v17  ;;  %v1289_v63 = vmul.f32 0.25, %v15302_v44  ;;  %v2629_v44 = vsel %vm2581_vm4, %v15411_v32, 0 }
 0x40c   : > { %12392 = vmatprep.subr.bf16.mxu1 %v18156_v17 }
 0x40d   : > { %v15415_v2 = vpack.c.bf16 %v1289_v63, %v1289_v63 }
 0x40f   : > { %18311 = vst [vmem:[#allocation55_spill] sm:$0xff] %v15415_v2 }
 0x412   : > { %12383 = vmatmul.mubr.msk.bf16.vlgmr.msra.gmra.mrb[36].mxu1 %vm1603_vm3, %v15387_v11 }
 0x413   : > { %12394 = vmatprep.mubr.msk.bf16.mxu1 %vm14355_vm2, %v18156_v17 }
 0x458   : > { %v2289_v54 = vpop.permute.xlu0 %2288 }
 0x459   : > { %v2294_v1 = vsel %vm1603_vm3, %v2289_v54, 0  ;;  %v14357_v54 = vmov 1966171168  }
 0x45a   : > { %v2338_v29 = vpop.permute.xlu1 %2337  ;;  %12393 = vmatpush3.bf16.xpose.msra.mxu1 %v2294_v1  ;;  %v1320_v22 = vunpack.c.l.s4 %v14357_v54 }
 0x45b   : > { %v2343_v9 = vsel %vm1603_vm3, %v2338_v29, 0  ;;  %12404 = vmatprep.subr.bf16.mxu1 %v18156_v17 }
 0x45c   : > { %12399 = vmatpush3.bf16.xpose.msra.mxu0 %v2343_v9  ;;  %v1321_v1 = vunpack.c.0.s8 %v1320_v22 }
 0x45d   : > { %12410 = vmatprep.subr.bf16.mxu0 %v18156_v17 }
 0x45e   : > { %v15432_v29 = vsub.s32 %v1321_v1, %v15072_v4 }
 0x460   : > { %18312 = vst [vmem:[#allocation56_spill] sm:$0xff] %v15432_v29  ;;  %v1325_v56 = vrot.slane %v1314_v36, %v15432_v29 }
 0x461   : > { %12395 = vmatmul.mubr.msk.bf16.vlgmr.msra.gmra.mrb[40].mxu1 %vm1603_vm3, %v15413_v19 }
 0x462   : > { %12405 = vmatpush3.bf16.msra.mxu1 %v2583_v41  ;;  %12406 = vmatprep.mubr.msk.bf16.mxu1 %vm14355_vm2, %v18156_v17  ;;  %v1333_v9 = vcombine.high %v1325_v56, %v1325_v56 }
 0x463   : > { %12401 = vmatmul.mubr.msk.bf16.vlgmr.msra.gmra.mrb[48].mxu0 %vm1603_vm3, %v15415_v2  ;;  %12416 = vmatprep.subr.bf16.mxu1 %v18156_v17  ;;  %v1318_v2 = vcombine.high %v1314_v36, %v1314_v36 }
 0x464   : > { %12411 = vmatpush3.bf16.msra.mxu0 %v2629_v44  ;;  %12412 = vmatprep.mubr.msk.bf16.mxu0 %vm14355_vm2, %v18156_v17  ;;  %v1355_v63 = vrot.slane %v1333_v9, %v15432_v29 }
 0x465   : > { %12422 = vmatprep.subr.bf16.mxu0 %v18156_v17  ;;  %v1341_v17 = vrot.slane %v1325_v56, %v15432_v29 }
 0x466   : > { %v15438_v41 = vrot.slane %v1355_v63, %v15077_v23 }
 0x467   : > { %v1363_v9 = vcombine.high %v1341_v17, %v1341_v17  ;;  %v15447_v19 = vrot.slane %v1341_v17, %v15077_v23 }
 0x468   : > { %18313 = vst [vmem:[#allocation57_spill] sm:$0xff] %v15438_v41 }
 0x469   : > { %18314 = vst [vmem:[#allocation58_spill] sm:$0xff] %v15447_v19 }
 0x49d   : > { %v1693_v44 = vpop.f32.mrb[0].mxu1 }
 0x49e   : > { %v12318_v16 = vpop.f32.mrb[1].mxu1  ;;  %v15441_v6 = vadd.f32 %v1693_v44, %v15438_v41  ;;  %v1365_v44 = vcombine.high %v1355_v63, %v1355_v63 }
 0x49f   : > { %v1696_v54 = vpop.f32.mrb[2].mxu1  ;;  %v15450_v16 = vrot.slane %v1363_v9, %v15077_v23 }
 0x4a0   : > { %v12319_v22 = vpop.f32.mrb[3].mxu1  ;;  %v2389_v1 = vsel %vm2385_vm5, %v15441_v6, -inf  ;;  %v1332_v54 = vrot.slane %v1318_v2, %v15432_v29 }
 0x4a1   : > { %2390 = vmax.xlane.f32.xlu1 %v2389_v1  ;;  %18315 = vst [vmem:[#allocation59_spill] sm:$0xff] %v15450_v16 }
 0x4a2   : > { %v1348_v2 = vrot.slane %v1332_v54, %v15432_v29 }
 0x4a5   : > { %v1742_v4 = vpop.f32.mrb[4].mxu1 }
 0x4a6   : > { %v12324_v32 = vpop.f32.mrb[5].mxu1  ;;  %v15459_v17 = vadd.f32 %v1742_v4, %v15450_v16  ;;  %v1334_v4 = vcombine.high %v1332_v54, %v1332_v54 }
 0x4a7   : > { %v1745_v45 = vpop.f32.mrb[6].mxu1 }
 0x4a8   : > { %v12325_v60 = vpop.f32.mrb[7].mxu1  ;;  %v15462_v45 = vrot.slane %v1365_v44, %v15077_v23  ;;  %v2392_v9 = vsel %vm2385_vm5, %v15459_v17, -inf }
 0x4aa   : > { %18316 = vst [vmem:[#allocation60_spill] sm:$0xff] %v15462_v45 }
 0x4ab   : > { %v1644_v22 = vpop.f32.mrb[32].mxu0 }
 0x4ac   : > { %v12312_v41 = vpop.f32.mrb[33].mxu0  ;;  %v15454_v1 = vadd.f32 %v1644_v22, %v15447_v19  ;;  %v15471_v22 = vrot.slane %v1348_v2, %v15077_v23 }
 0x4ad   : > { %v1647_v56 = vpop.f32.mrb[34].mxu0  ;;  %v1791_v32 = vpop.f32.mrb[8].mxu1 }
 0x4ae   : > { %v12313_v50 = vpop.f32.mrb[35].mxu0  ;;  %v12330_v36 = vpop.f32.mrb[9].mxu1  ;;  %v2386_v60 = vsel %vm2385_vm5, %v15454_v1, -inf  ;;  %18317 = vst [vmem:[#allocation61_spill] sm:$0xff] %v15471_v22 }
 0x4af   : > { %2387 = vmax.xlane.f32.xlu0 %v2386_v60  ;;  %v1794_v63 = vpop.f32.mrb[10].mxu1  ;;  %v15468_v50 = vadd.f32 %v1791_v32, %v15462_v45 }
 0x4b0   : > { %v12331_v41 = vpop.f32.mrb[11].mxu1  ;;  %v1362_v63 = vrot.slane %v1334_v4, %v15432_v29 }
 0x4b1   : > { %v2395_v36 = vsel %vm2385_vm5, %v15468_v50, -inf }
 0x4b2   : > { %v15482_v16 = vrot.slane %v1362_v63, %v15077_v23 }
 0x4b3   : > { %2393 = vmax.xlane.f32.xlu0 %v2392_v9 }
 0x4b4   : > { %18318 = vst [vmem:[#allocation62_spill] sm:$0xff] %v15482_v16 }
 0x4b5   : > { %v1840_v56 = vpop.f32.mrb[12].mxu1 }
 0x4b6   : > { %v12336_v44 = vpop.f32.mrb[13].mxu1  ;;  %v15476_v60 = vadd.f32 %v1840_v56, %v15471_v22  ;;  %v1364_v22 = vcombine.high %v1348_v2, %v1348_v2 }
 0x4b7   : > { %2396 = vmax.xlane.f32.xlu0 %v2395_v36  ;;  %v1843_v41 = vpop.f32.mrb[14].mxu1  ;;  %v1315_v44 = vld [vmem:[%s14817_s0 + $0x8] sm:$0xff]  ;;  %s14358_s0 = smov 48  }
 0x4b8   : > { %v12337_v32 = vpop.f32.mrb[15].mxu1  ;;  %v2398_v45 = vsel %vm2385_vm5, %v15476_v60, -inf  ;;  %v1374_v39 = vrot.slane %v1315_v44, %v15432_v29 }
 0x4ba   : > { %v1382_v11 = vcombine.high %v1374_v39, %v1374_v39 }
 0x4bb   : > { %2399 = vmax.xlane.f32.xlu0 %v2398_v45  ;;  %v15492_v45 = vrot.slane %v1364_v22, %v15077_v23 }
 0x4bc   : > { %v1404_v22 = vrot.slane %v1382_v11, %v15432_v29  ;;  %v1390_v11 = vrot.slane %v1374_v39, %v15432_v29 }
 0x4bd   : > { %v1889_v54 = vpop.f32.mrb[16].mxu1  ;;  %v2085_v9 = vpop.f32.mrb[36].mxu0  ;;  %18319 = vst [vmem:[#allocation63_spill] sm:$0xff] %v15492_v45 }
 0x4be   : > { %v12342_v19 = vpop.f32.mrb[17].mxu1  ;;  %v12366_v10 = vpop.f32.mrb[37].mxu0  ;;  %v15486_v56 = vadd.f32 %v1889_v54, %v15482_v16 }
 0x4bf   : > { %v1892_v4 = vpop.f32.mrb[18].mxu1  ;;  %v2088_v36 = vpop.f32.mrb[38].mxu0  ;;  %v1367_v19 = vcombine.high %v1315_v44, %v1315_v44 }
 0x4c0   : > { %v12343_v41 = vpop.f32.mrb[19].mxu1  ;;  %v12367_v32 = vpop.f32.mrb[39].mxu0  ;;  %v2401_v30 = vsel %vm2385_vm5, %v15486_v56, -inf  ;;  %v1366_v4 = vcombine.high %v1362_v63, %v1362_v63 }
 0x4c1   : > { %2402 = vmax.xlane.f32.xlu1 %v2401_v30  ;;  %v1381_v28 = vrot.slane %v1367_v19, %v15432_v29 }
 0x4c2   : > { %v15502_v44 = vrot.slane %v1366_v4, %v15077_v23 }
 0x4c3   : > { %v1383_v63 = vcombine.high %v1381_v28, %v1381_v28 }
 0x4c4   : > { %18320 = vst [vmem:[#allocation64_spill] sm:$0xff] %v15502_v44 }
 0x4c5   : > { %v1938_v10 = vpop.f32.mrb[20].mxu1  ;;  %v2183_v47 = vpop.f32.mrb[40].mxu0 }
 0x4c6   : > { %v12348_v54 = vpop.f32.mrb[21].mxu1  ;;  %v12378_v16 = vpop.f32.mrb[41].mxu0  ;;  %v15495_v2 = vadd.f32 %v1938_v10, %v15492_v45  ;;  %v1414_v10 = vcombine.high %v1404_v22, %v1404_v22 }
 0x4c7   : > { %v1941_v36 = vpop.f32.mrb[22].mxu1  ;;  %v2186_v41 = vpop.f32.mrb[42].mxu0  ;;  %v15505_v16 = vrot.slane %v1404_v22, %v15077_v23 }
 0x4c8   : > { %v12349_v32 = vpop.f32.mrb[23].mxu1  ;;  %v12379_v40 = vpop.f32.mrb[43].mxu0  ;;  %v2404_v30 = vsel %vm2385_vm5, %v15495_v2, -inf  ;;  %v15517_v22 = vrot.slane %v1414_v10, %v15077_v23 }
 0x4c9   : > { %2405 = vmax.xlane.f32.xlu0 %v2404_v30  ;;  %18321 = vst [vmem:[#allocation65_spill] sm:$0xff] %v15505_v16  ;;  %v15514_v26 = vadd.f32 %v2085_v9, %v15505_v16 }
 0x4ca   : > { %18322 = vst [vmem:[#allocation66_spill] sm:$0xff] %v15517_v22 }
 0x4cb   : > { %v2413_v39 = vsel %vm2385_vm5, %v15514_v26, -inf }
 0x4cd   : > { %v1987_v54 = vpop.f32.mrb[24].mxu1  ;;  %v2281_v36 = vpop.f32.mrb[44].mxu0 }
 0x4ce   : > { %v12354_v41 = vpop.f32.mrb[25].mxu1  ;;  %v12390_v40 = vpop.f32.mrb[45].mxu0  ;;  %v15508_v32 = vadd.f32 %v1987_v54, %v15502_v44  ;;  %v15521_v54 = vrot.slane %v1390_v11, %v15077_v23 }
 0x4cf   : > { %v1990_v45 = vpop.f32.mrb[26].mxu1  ;;  %v2284_v19 = vpop.f32.mrb[46].mxu0  ;;  %v1411_v41 = vrot.slane %v1383_v63, %v15432_v29  ;;  %v1412_v63 = vcombine.high %v1390_v11, %v1390_v11 }
 0x4d0   : > { %v12355_v30 = vpop.f32.mrb[27].mxu1  ;;  %v12391_v21 = vpop.f32.mrb[47].mxu0  ;;  %v2407_v4 = vsel %vm2385_vm5, %v15508_v32, -inf  ;;  %18323 = vst [vmem:[#allocation67_spill] sm:$0xff] %v15521_v54 }
 0x4d1   : > { %2408 = vmax.xlane.f32.xlu1 %v2407_v4  ;;  %v15526_v21 = vadd.f32 %v2183_v47, %v15517_v22  ;;  %v15529_v45 = vrot.slane %v1411_v41, %v15077_v23 }
 0x4d3   : > { %18324 = vst [vmem:[#allocation68_spill] sm:$0xff] %v15529_v45  ;;  %v2419_v4 = vsel %vm2385_vm5, %v15526_v21, -inf  ;;  %v15539_v47 = vadd.f32 %v2281_v36, %v15529_v45 }
 0x4d5   : > { %2414 = vmax.xlane.f32.xlu1 %v2413_v39  ;;  %v2036_v9 = vpop.f32.mrb[28].mxu1  ;;  %v15542_v39 = vrot.slane %v1412_v63, %v15077_v23 }
 0x4d6   : > { %v12360_v40 = vpop.f32.mrb[29].mxu1  ;;  %v15532_v10 = vadd.f32 %v2036_v9, %v15521_v54  ;;  %v2425_v9 = vsel %vm2385_vm5, %v15539_v47, -inf }
 0x4d7   : > { %v2039_v19 = vpop.f32.mrb[30].mxu1  ;;  %18325 = vst [vmem:[#allocation69_spill] sm:$0xff] %v15542_v39 }
 0x4d8   : > { %v12361_v30 = vpop.f32.mrb[31].mxu1  ;;  %v2410_v16 = vsel %vm2385_vm5, %v15532_v10, -inf }
 0x4d9   : > { %2420 = vmax.xlane.f32.xlu1 %v2419_v4  ;;  %2411 = vmax.xlane.f32.xlu0 %v2410_v16  ;;  %v1397_v30 = vrot.slane %v1381_v28, %v15432_v29  ;;  %v1415_v29 = vcombine.high %v1411_v41, %v1411_v41 }
 0x4db   : > { %v15553_v16 = vrot.slane %v1397_v30, %v15077_v23  ;;  %v1413_v28 = vcombine.high %v1397_v30, %v1397_v30 }
 0x4dd   : > { %2426 = vmax.xlane.f32.xlu1 %v2425_v9  ;;  %v2134_v11 = vpop.f32.mrb[32].mxu1  ;;  %18326 = vst [vmem:[#allocation70_spill] sm:$0xff] %v15553_v16 }
 0x4de   : > { %v12372_v40 = vpop.f32.mrb[33].mxu1  ;;  %v15547_v19 = vadd.f32 %v2134_v11, %v15542_v39  ;;  %v15562_v39 = vrot.slane %v1413_v28, %v15077_v23 }
 0x4df   : > { %v2137_v22 = vpop.f32.mrb[34].mxu1 }
 0x4e0   : > { %v12373_v54 = vpop.f32.mrb[35].mxu1  ;;  %v2416_v36 = vsel %vm2385_vm5, %v15547_v19, -inf  ;;  %18327 = vst [vmem:[#allocation71_spill] sm:$0xff] %v15562_v39 }
 0x4e1   : > { %2417 = vmax.xlane.f32.xlu0 %v2416_v36 }
 0x4e5   : > { %v2232_v63 = vpop.f32.mrb[36].mxu1 }
 0x4e6   : > { %v12384_v4 = vpop.f32.mrb[37].mxu1  ;;  %v15556_v9 = vadd.f32 %v2232_v63, %v15553_v16 }
 0x4e7   : > { %v2235_v40 = vpop.f32.mrb[38].mxu1  ;;  %v15565_v4 = vrot.slane %v1415_v29, %v15077_v23 }
 0x4e8   : > { %v12385_v45 = vpop.f32.mrb[39].mxu1  ;;  %v2422_v11 = vsel %vm2385_vm5, %v15556_v9, -inf }
 0x4e9   : > { %2423 = vmax.xlane.f32.xlu0 %v2422_v11  ;;  %18328 = vst [vmem:[#allocation72_spill] sm:$0xff] %v15565_v4 }
 0x52e   : > { %v2391_v22 = vpop.xlane.xlu1 %2390 }
 0x52f   : > { %v2435_v54 = vsub.f32 %v15441_v6, %v2391_v22 }
 0x531   : > { %v2452_v36 = vmul.f32 1.442695, %v2435_v54 }
 0x533   : > { %13585 = vpow2.f32 %v2452_v36 }
 0x534   : > { %v2330_v63 = vpop.f32.mrb[40].mxu1 }
 0x535   : > { %v12396_v40 = vpop.f32.mrb[41].mxu1  ;;  %v15568_v45 = vadd.f32 %v2330_v63, %v15562_v39 }
 0x536   : > { %v2333_v16 = vpop.f32.mrb[42].mxu1  ;;  %v2379_v11 = vpop.f32.mrb[48].mxu0 }
 0x537   : > { %v12397_v30 = vpop.f32.mrb[43].mxu1  ;;  %v12402_v44 = vpop.f32.mrb[49].mxu0  ;;  %v2428_v6 = vsel %vm2385_vm5, %v15568_v45, -inf  ;;  %v15573_v41 = vadd.f32 %v2379_v11, %v15565_v4 }
 0x538   : > { %v2382_v28 = vpop.f32.mrb[50].mxu0  ;;  %2429 = vmax.xlane.f32.xlu0 %v2428_v6 }
 0x539   : > { %v12403_v22 = vpop.f32.mrb[51].mxu0  ;;  %v2431_v29 = vsel %vm2385_vm5, %v15573_v41, -inf }
 0x53a   : > { %2432 = vmax.xlane.f32.xlu1 %v2431_v29 }
 0x53c   : > { %v2388_v54 = vpop.xlane.xlu0 %2387 }
 0x53d   : > { %v15577_v36 = vpop.eup %13585  ;;  %v2434_v16 = vsub.f32 %v15454_v1, %v2388_v54 }
 0x53e   : > { %v2485_v44 = vsel %vm2385_vm5, %v15577_v36, 0.0 }
 0x53f   : > { %v2450_v63 = vmul.f32 1.442695, %v2434_v16  ;;  %2486 = vadd.xlane.f32.xlu1 %v2485_v44 }
 0x540   : > { %v2394_v40 = vpop.xlane.xlu0 %2393 }
 0x541   : > { %13587 = vpow2.f32 %v2450_v63  ;;  %v2436_v11 = vsub.f32 %v15459_v17, %v2394_v40 }
 0x543   : > { %v2454_v30 = vmul.f32 1.442695, %v2436_v11 }
 0x544   : > { %v2397_v6 = vpop.xlane.xlu0 %2396 }
 0x545   : > { %13589 = vpow2.f32 %v2454_v30  ;;  %v2437_v28 = vsub.f32 %v15468_v50, %v2397_v6 }
 0x547   : > { %v2456_v22 = vmul.f32 1.442695, %v2437_v28 }
 0x548   : > { %v2400_v29 = vpop.xlane.xlu0 %2399 }
 0x549   : > { %13591 = vpow2.f32 %v2456_v22  ;;  %v2438_v23 = vsub.f32 %v15476_v60, %v2400_v29 }
 0x54b   : > { %v15585_v1 = vpop.eup %13587  ;;  %v2458_v54 = vmul.f32 1.442695, %v2438_v23 }
 0x54c   : > { %v2482_v16 = vsel %vm2385_vm5, %v15585_v1, 0.0 }
 0x54d   : > { %13593 = vpow2.f32 %v2458_v54  ;;  %2483 = vadd.xlane.f32.xlu0 %v2482_v16 }
 0x54e   : > { %v2403_v44 = vpop.xlane.xlu1 %2402 }
 0x54f   : > { %v15589_v17 = vpop.eup %13589  ;;  %v2439_v63 = vsub.f32 %v15486_v56, %v2403_v44 }
 0x550   : > { %v2488_v50 = vsel %vm2385_vm5, %v15589_v17, 0.0 }
 0x551   : > { %v2460_v40 = vmul.f32 1.442695, %v2439_v63  ;;  %2489 = vadd.xlane.f32.xlu0 %v2488_v50 }
 0x553   : > { %v15594_v11 = vpop.eup %13591  ;;  %13595 = vpow2.f32 %v2460_v40 }
 0x554   : > { %v2491_v23 = vsel %vm2385_vm5, %v15594_v11, 0.0 }
 0x555   : > { %2492 = vadd.xlane.f32.xlu1 %v2491_v23 }
 0x556   : > { %v2406_v60 = vpop.xlane.xlu0 %2405 }
 0x557   : > { %v15598_v30 = vpop.eup %13593  ;;  %v2440_v6 = vsub.f32 %v15495_v2, %v2406_v60 }
 0x558   : > { %v2494_v56 = vsel %vm2385_vm5, %v15598_v30, 0.0 }
 0x559   : > { %v2462_v28 = vmul.f32 1.442695, %v2440_v6  ;;  %2495 = vadd.xlane.f32.xlu0 %v2494_v56 }
 0x55b   : > { %13597 = vpow2.f32 %v2462_v28 }
 0x55d   : > { %v15603_v22 = vpop.eup %13595 }
 0x55e   : > { %v2409_v29 = vpop.xlane.xlu1 %2408  ;;  %v2497_v54 = vsel %vm2385_vm5, %v15603_v22, 0.0 }
 0x55f   : > { %v2441_v16 = vsub.f32 %v15508_v32, %v2409_v29  ;;  %2498 = vadd.xlane.f32.xlu1 %v2497_v54 }
 0x561   : > { %v2464_v44 = vmul.f32 1.442695, %v2441_v16 }
 0x562   : > { %v2415_v63 = vpop.xlane.xlu1 %2414 }
 0x563   : > { %13599 = vpow2.f32 %v2464_v44  ;;  %v2443_v2 = vsub.f32 %v15514_v26, %v2415_v63 }
 0x565   : > { %v15609_v50 = vpop.eup %13597  ;;  %v2468_v40 = vmul.f32 1.442695, %v2443_v2 }
 0x566   : > { %v2421_v23 = vpop.xlane.xlu1 %2420  ;;  %v2412_v60 = vpop.xlane.xlu0 %2411  ;;  %v2500_v6 = vsel %vm2385_vm5, %v15609_v50, 0.0 }
 0x567   : > { %13601 = vpow2.f32 %v2468_v40  ;;  %v2445_v56 = vsub.f32 %v15526_v21, %v2421_v23  ;;  %v2442_v28 = vsub.f32 %v15532_v10, %v2412_v60  ;;  %2501 = vadd.xlane.f32.xlu0 %v2500_v6 }
 0x569   : > { %v2472_v32 = vmul.f32 1.442695, %v2445_v56  ;;  %v2466_v29 = vmul.f32 1.442695, %v2442_v28 }
 0x56a   : > { %v2427_v54 = vpop.xlane.xlu1 %2426 }
 0x56b   : > { %13603 = vpow2.f32 %v2472_v32  ;;  %v2447_v26 = vsub.f32 %v15539_v47, %v2427_v54 }
 0x56c   : > { %13605 = vpow2.f32 %v2466_v29 }
 0x56d   : > { %v15616_v16 = vpop.eup %13599  ;;  %v2476_v44 = vmul.f32 1.442695, %v2447_v26 }
 0x56e   : > { %v2418_v63 = vpop.xlane.xlu0 %2417  ;;  %v2503_v2 = vsel %vm2385_vm5, %v15616_v16, 0.0 }
 0x56f   : > { %13607 = vpow2.f32 %v2476_v44  ;;  %v2444_v21 = vsub.f32 %v15547_v19, %v2418_v63  ;;  %2504 = vadd.xlane.f32.xlu1 %v2503_v2 }
 0x571   : > { %v15621_v10 = vpop.eup %13601  ;;  %v2470_v40 = vmul.f32 1.442695, %v2444_v21 }
 0x572   : > { %v2509_v23 = vsel %vm2385_vm5, %v15621_v10, 0.0 }
 0x573   : > { %13609 = vpow2.f32 %v2470_v40  ;;  %2510 = vadd.xlane.f32.xlu1 %v2509_v23 }
 0x575   : > { %v15625_v47 = vpop.eup %13603 }
 0x576   : > { %v15627_v60 = vpop.eup %13605  ;;  %v2424_v6 = vpop.xlane.xlu0 %2423  ;;  %v2515_v56 = vsel %vm2385_vm5, %v15625_v47, 0.0 }
 0x577   : > { %v2446_v28 = vsub.f32 %v15556_v9, %v2424_v6  ;;  %2516 = vadd.xlane.f32.xlu1 %v2515_v56  ;;  %v2506_v19 = vsel %vm2385_vm5, %v15627_v60, 0.0 }
 0x578   : > { %2507 = vadd.xlane.f32.xlu0 %v2506_v19 }
 0x579   : > { %v15634_v32 = vpop.eup %13607  ;;  %v2474_v29 = vmul.f32 1.442695, %v2446_v28 }
 0x57a   : > { %v2521_v54 = vsel %vm2385_vm5, %v15634_v32, 0.0 }
 0x57b   : > { %13611 = vpow2.f32 %v2474_v29  ;;  %2522 = vadd.xlane.f32.xlu1 %v2521_v54  ;;  %v1212_v29 = vadd.f32 %v15116_v15, %v15397_v31 }
 0x57d   : > { %v15638_v26 = vpop.eup %13609 }
 0x57e   : > { %v2512_v44 = vsel %vm2385_vm5, %v15638_v26, 0.0 }
 0x57f   : > { %2513 = vadd.xlane.f32.xlu0 %v2512_v44 }
 0x585   : > { %v15642_v9 = vpop.eup %13611 }
 0x586   : > { %v2518_v63 = vsel %vm2385_vm5, %v15642_v9, 0.0 }
 0x587   : > { %2519 = vadd.xlane.f32.xlu0 %v2518_v63  ;;  %v15658_v63 = vpack.c.bf16 %v1212_v29, %v1212_v29 }
 0x589   : > { %18329 = vst [vmem:[#allocation73_spill] sm:$0xff] %v15658_v63  ;;  %v2721_v15 = vsel %vm2581_vm4, %v15658_v63, 0 }
 0x5c5   : > { %v2430_v2 = vpop.xlane.xlu0 %2429 }
 0x5c6   : > { %v2448_v21 = vsub.f32 %v15568_v45, %v2430_v2 }
 0x5c7   : > { %v2433_v40 = vpop.xlane.xlu1 %2432 }
 0x5c8   : > { %v2478_v23 = vmul.f32 1.442695, %v2448_v21  ;;  %v2449_v6 = vsub.f32 %v15573_v41, %v2433_v40 }
 0x5ca   : > { %13613 = vpow2.f32 %v2478_v23  ;;  %v2480_v56 = vmul.f32 1.442695, %v2449_v6  ;;  %v18330_v23 = vmov 0.0  }
 0x5cc   : > { %13615 = vpow2.f32 %v2480_v56  ;;  %v2487_v28 = vpop.xlane.xlu1 %2486  ;;  %v1208_v56 = vadd.f32 %v15107_v46, %v15397_v31  ;;  %v1222_v46 = vadd.f32 %v15145_v61, %v15397_v31 }
 0x5cd   : > { %13617 = vrcp.f32 %v2487_v28 }
 0x5ce   : > { %v15669_v29 = vpack.c.bf16 %v1208_v56, %v1208_v56 }
 0x5d0   : > { %18331 = vst [vmem:[#allocation74_spill] sm:$0xff] %v15669_v29 }
 0x5d4   : > { %v15648_v19 = vpop.eup %13613 }
 0x5d5   : > { %v2524_v54 = vsel %vm2385_vm5, %v15648_v19, 0.0 }
 0x5d6   : > { %v15654_v44 = vpop.eup %13615  ;;  %2525 = vadd.xlane.f32.xlu0 %v2524_v54 }
 0x5d7   : > { %v13618_v45 = vpop.eup %13617  ;;  %v2527_v41 = vsel %vm2385_vm5, %v15654_v44, 0.0 }
 0x5d8   : > { %2528 = vadd.xlane.f32.xlu1 %v2527_v41  ;;  %v2547_v2 = vmul.f32 %v13618_v45, %v15577_v36 }
 0x5da   : > { %v2484_v21 = vpop.xlane.xlu0 %2483  ;;  %v2563_v40 = vpack.c.bf16 %v2547_v2, %v2547_v2 }
 0x5db   : > { %13619 = vrcp.f32 %v2484_v21  ;;  %v1218_v21 = vadd.f32 %v15132_v48, %v15397_v31 }
 0x5dc   : > { %12413 = vmatmul.mubr.msk.bf16.vlgmr.msra.gmra.mrb[52].mxu0 %vm2385_vm5, %v2563_v40  ;;  %v2675_v40 = vsel %vm2581_vm4, %v15669_v29, 0 }
 0x5dd   : > { %12423 = vmatpush3.bf16.msra.mxu0 %v2721_v15  ;;  %12424 = vmatprep.mubr.msk.bf16.mxu0 %vm14355_vm2, %v18330_v23  ;;  %v15689_v61 = vpack.c.bf16 %v1218_v21, %v1218_v21 }
 0x5de   : > { %v2490_v6 = vpop.xlane.xlu0 %2489  ;;  %12434 = vmatprep.subr.bf16.mxu0 %v18330_v23 }
 0x5df   : > { %13621 = vrcp.f32 %v2490_v6  ;;  %18332 = vst [vmem:[#allocation75_spill] sm:$0xff] %v15689_v61  ;;  %v15691_v6 = vpack.c.bf16 %v1222_v46, %v1222_v46 }
 0x5e1   : > { %18333 = vst [vmem:[#allocation76_spill] sm:$0xff] %v15691_v6 }
 0x5e2   : > { %v2493_v36 = vpop.xlane.xlu1 %2492 }
 0x5e3   : > { %13623 = vrcp.f32 %v2493_v36 }
 0x5e5   : > { %v13620_v28 = vpop.eup %13619 }
 0x5e6   : > { %v2496_v54 = vpop.xlane.xlu0 %2495  ;;  %v2546_v45 = vmul.f32 %v13620_v28, %v15585_v1 }
 0x5e7   : > { %13625 = vrcp.f32 %v2496_v54 }
 0x5e8   : > { %v2562_v41 = vpack.c.bf16 %v2546_v45, %v2546_v45  ;;  %v2767_v45 = vsel %vm2581_vm4, %v15689_v61, 0 }
 0x5e9   : > { %v13622_v2 = vpop.eup %13621  ;;  %3367 = vrot.lane.b32.xlu1 %v15100_v42, %s14358_s0 }
 0x5ea   : > { %12407 = vmatmul.mubr.msk.bf16.vlgmr.msra.gmra.mrb[44].mxu1 %vm2385_vm5, %v2562_v41  ;;  %v2548_v48 = vmul.f32 %v13622_v2, %v15589_v17  ;;  %v1228_v17 = vadd.f32 %v15160_v24, %v15397_v31  ;;  %v1232_v41 = vadd.f32 %v15169_v3, %v15397_v31 }
 0x5eb   : > { %12417 = vmatpush3.bf16.msra.mxu1 %v2675_v40  ;;  %12418 = vmatprep.mubr.msk.bf16.mxu1 %vm14355_vm2, %v18330_v23 }
 0x5ec   : > { %v2499_v1 = vpop.xlane.xlu1 %2498  ;;  %3317 = vrot.lane.b32.xlu0 %v15136_v57, %s14358_s0  ;;  %12428 = vmatprep.subr.bf16.mxu1 %v18330_v23  ;;  %v2564_v36 = vpack.c.bf16 %v2548_v48, %v2548_v48  ;;  %v15716_v21 = vpack.c.bf16 %v1228_v17, %v1228_v17  ;;  %v15721_v46 = vpack.c.bf16 %v1232_v41, %v1232_v41 }
 0x5ed   : > { %v13624_v15 = vpop.eup %13623  ;;  %13627 = vrcp.f32 %v2499_v1  ;;  %3315 = vrot.lane.b32.xlu1 %v15269_v52, %s14359_s23 }
 0x5ee   : > { %v2549_v56 = vmul.f32 %v13624_v15, %v15594_v11  ;;  %v2813_v11 = vsel %vm2581_vm4, %v15691_v6, 0  ;;  %18334 = vst [vmem:[#allocation77_spill] sm:$0xff] %v15716_v21  ;;  %18335 = vst [vmem:[#allocation78_spill] sm:$0xff] %v15721_v46  ;;  %v2859_v1 = vsel %vm2581_vm4, %v15716_v21, 0  ;;  %v1238_v15 = vadd.f32 %v15182_v33, %v15397_v31 }
 0x5f0   : > { %3417 = vrot.lane.b32.xlu0 %v15111_v37, %s14358_s0  ;;  %v2565_v28 = vpack.c.bf16 %v2549_v56, %v2549_v56 }
 0x5f1   : > { %v13626_v54 = vpop.eup %13625  ;;  %3365 = vrot.lane.b32.xlu1 %v15248_v43, %s14359_s23 }
 0x5f2   : > { %12419 = vmatmul.mubr.msk.bf16.vlgmr.msra.gmra.mrb[48].mxu1 %vm2385_vm5, %v2564_v36  ;;  %12425 = vmatmul.mubr.msk.bf16.vlgmr.msra.gmra.mrb[56].mxu0 %vm2385_vm5, %v2565_v28  ;;  %v2550_v24 = vmul.f32 %v13626_v54, %v15598_v30  ;;  %v15746_v36 = vpack.c.bf16 %v1238_v15, %v1238_v15 }
 0x5f3   : > { %12429 = vmatpush3.bf16.msra.mxu1 %v2767_v45  ;;  %12435 = vmatpush3.bf16.msra.mxu0 %v2813_v11  ;;  %v1242_v45 = vadd.f32 %v15191_v12, %v15397_v31 }
 0x5f4   : > { %3415 = vrot.lane.b32.xlu0 %v15257_v62, %s14359_s23  ;;  %v2502_v2 = vpop.xlane.xlu0 %2501  ;;  %12430 = vmatprep.mubr.msk.bf16.mxu1 %vm14355_vm2, %v18330_v23  ;;  %v2566_v30 = vpack.c.bf16 %v2550_v24, %v2550_v24  ;;  %18336 = vst [vmem:[#allocation79_spill] sm:$0xff] %v15746_v36  ;;  %v2951_v11 = vsel %vm2581_vm4, %v15746_v36, 0 }
 0x5f5   : > { %13629 = vrcp.f32 %v2502_v2  ;;  %3467 = vrot.lane.b32.xlu1 %v15125_v14, %s14358_s0  ;;  %12440 = vmatprep.subr.bf16.mxu1 %v18330_v23  ;;  %v15765_v2 = vpack.c.bf16 %v1242_v45, %v1242_v45 }
 0x5f6   : > { %12436 = vmatprep.mubr.msk.bf16.mxu0 %vm14355_vm2, %v18330_v23  ;;  %12446 = vmatprep.subr.bf16.mxu0 %v18330_v23 }
 0x5f7   : > { %v13628_v3 = vpop.eup %13627  ;;  %18337 = vst [vmem:[#allocation80_spill] sm:$0xff] %v15765_v2 }
 0x5f8   : > { %3517 = vrot.lane.b32.xlu0 %v15140_v59, %s14358_s0  ;;  %v2551_v40 = vmul.f32 %v13628_v3, %v15603_v22  ;;  %v2905_v22 = vsel %vm2581_vm4, %v15721_v46, 0 }
 0x5f9   : > { %3465 = vrot.lane.b32.xlu1 %v15271_v58, %s14359_s23 }
 0x5fa   : > { %12431 = vmatmul.mubr.msk.bf16.vlgmr.msra.gmra.mrb[52].mxu1 %vm2385_vm5, %v2566_v30  ;;  %v2567_v48 = vpack.c.bf16 %v2551_v40, %v2551_v40  ;;  %v1252_v40 = vadd.f32 %v15213_v20, %v15397_v31 }
 0x5fb   : > { %12441 = vmatpush3.bf16.msra.mxu1 %v2859_v1  ;;  %12442 = vmatprep.mubr.msk.bf16.mxu1 %vm14355_vm2, %v18330_v23  ;;  %v2997_v1 = vsel %vm2581_vm4, %v15765_v2, 0 }
 0x5fc   : > { %12437 = vmatmul.mubr.msk.bf16.vlgmr.msra.gmra.mrb[60].mxu0 %vm2385_vm5, %v2567_v48  ;;  %v2505_v56 = vpop.xlane.xlu1 %2504  ;;  %3515 = vrot.lane.b32.xlu0 %v15284_v34, %s14359_s23 }
 0x5fd   : > { %12447 = vmatpush3.bf16.msra.mxu0 %v2905_v22  ;;  %13631 = vrcp.f32 %v2505_v56  ;;  %3567 = vrot.lane.b32.xlu1 %v15153_v25, %s14358_s0  ;;  %v15787_v56 = vpack.c.bf16 %v1252_v40, %v1252_v40 }
 0x5fe   : > { %12452 = vmatprep.subr.bf16.mxu1 %v18330_v23  ;;  %12448 = vmatprep.mubr.msk.bf16.mxu0 %vm14355_vm2, %v18330_v23 }
 0x5ff   : > { %v13630_v33 = vpop.eup %13629  ;;  %12458 = vmatprep.subr.bf16.mxu0 %v18330_v23  ;;  %18338 = vst [vmem:[#allocation81_spill] sm:$0xff] %v15787_v56  ;;  %v3089_v45 = vsel %vm2581_vm4, %v15787_v56, 0 }
 0x600   : > { %v2511_v28 = vpop.xlane.xlu1 %2510  ;;  %3617 = vrot.lane.b32.xlu0 %v15164_v0, %s14358_s0  ;;  %v2552_v54 = vmul.f32 %v13630_v33, %v15609_v50 }
 0x601   : > { %13633 = vrcp.f32 %v2511_v28  ;;  %3565 = vrot.lane.b32.xlu1 %v15316_v51, %s14359_s23 }
 0x602   : > { %v2568_v17 = vpack.c.bf16 %v2552_v54, %v2552_v54 }
 0x604   : > { %3615 = vrot.lane.b32.xlu0 %v15336_v53, %s14359_s23  ;;  %12443 = vmatmul.mubr.msk.bf16.vlgmr.msra.gmra.mrb[56].mxu1 %vm2385_vm5, %v2568_v17  ;;  %v2517_v50 = vpop.xlane.xlu1 %2516 }
 0x605   : > { %12453 = vmatpush3.bf16.msra.mxu1 %v2951_v11  ;;  %v2508_v41 = vpop.xlane.xlu0 %2507  ;;  %3667 = vrot.lane.b32.xlu1 %v15173_v7, %s14358_s0 }
 0x606   : > { %13635 = vrcp.f32 %v2508_v41  ;;  %12454 = vmatprep.mubr.msk.bf16.mxu1 %vm14355_vm2, %v18330_v23  ;;  %12464 = vmatprep.subr.bf16.mxu1 %v18330_v23  ;;  %v18340_v41 = vld [vmem:[#allocation42_spill] sm:$0xff] }
 0x607   : > { %v13632_v12 = vpop.eup %13631  ;;  %13637 = vrcp.f32 %v2517_v50  ;;  %v1258_v50 = vadd.f32 %v18340_v41, %v15397_v31  ;;  %v18350_v41 = vld [vmem:[#allocation46_spill] sm:$0xff] }
 0x608   : > { %3717 = vrot.lane.b32.xlu0 %v15186_v35, %s14358_s0  ;;  %v2553_v24 = vmul.f32 %v13632_v12, %v15616_v16  ;;  %v1248_v16 = vadd.f32 %v15204_v49, %v15397_v31  ;;  %v2523_v15 = vpop.xlane.xlu1 %2522 }
 0x609   : > { %3665 = vrot.lane.b32.xlu1 %v15354_v27, %s14359_s23 }
 0x60a   : > { %v2569_v3 = vpack.c.bf16 %v2553_v24, %v2553_v24  ;;  %v15791_v49 = vpack.c.bf16 %v1248_v16, %v1248_v16 }
 0x60b   : > { %v13634_v30 = vpop.eup %13633 }
 0x60c   : > { %12449 = vmatmul.mubr.msk.bf16.vlgmr.msra.gmra.mrb[64].mxu0 %vm2385_vm5, %v2569_v3  ;;  %3715 = vrot.lane.b32.xlu0 %v15369_v38, %s14359_s23  ;;  %v2514_v48 = vpop.xlane.xlu0 %2513  ;;  %v2555_v20 = vmul.f32 %v13634_v30, %v15621_v10  ;;  %18339 = vst [vmem:[#allocation82_spill] sm:$0xff] %v15791_v49  ;;  %v1262_v10 = vadd.f32 %v15235_v55, %v15397_v31  ;;  %v18341_v55 = vld [vmem:[#allocation41_spill] sm:$0xff]  ;;  %v18343_v30 = vld [vmem:[#allocation43_spill] sm:$0xff] }
 0x60d   : > { %12459 = vmatpush3.bf16.msra.mxu0 %v2997_v1  ;;  %13639 = vrcp.f32 %v2514_v48  ;;  %3767 = vrot.lane.b32.xlu1 %v15195_v13, %s14358_s0  ;;  %v15821_v1 = vpack.c.bf16 %v1258_v50, %v1258_v50 }
 0x60e   : > { %12460 = vmatprep.mubr.msk.bf16.mxu0 %vm14355_vm2, %v18330_v23  ;;  %12470 = vmatprep.subr.bf16.mxu0 %v18330_v23  ;;  %13641 = vrcp.f32 %v2523_v15  ;;  %v2571_v28 = vpack.c.bf16 %v2555_v20, %v2555_v20  ;;  %v15815_v3 = vpack.c.bf16 %v1262_v10, %v1262_v10  ;;  %v18346_v20 = vld [vmem:[#allocation47_spill] sm:$0xff]  ;;  %v18349_v10 = vld [vmem:[#allocation44_spill] sm:$0xff] }
 0x60f   : > { %18344 = vst [vmem:[#allocation41_spill] sm:$0xff] %v15821_v1 }
 0x610   : > { %v13636_v22 = vpop.eup %13635  ;;  %3817 = vrot.lane.b32.xlu0 %v15208_v18, %s14358_s0  ;;  %18342 = vst [vmem:[#allocation42_spill] sm:$0xff] %v15815_v3 }
 0x611   : > { %3765 = vrot.lane.b32.xlu1 %v15318_v5, %s14359_s23  ;;  %v2554_v33 = vmul.f32 %v13636_v22, %v15627_v60  ;;  %v13638_v54 = vpop.eup %13637  ;;  %v3043_v60 = vsel %vm2581_vm4, %v15791_v49, 0  ;;  %v1272_v22 = vadd.f32 %v18346_v20, %v15397_v31  ;;  %v18355_v20 = vld [vmem:[#allocation55_spill] sm:$0xff] }
 0x612   : > { %v2557_v12 = vmul.f32 %v13638_v54, %v15625_v47  ;;  %v18345_v47 = vld [vmem:[#allocation49_spill] sm:$0xff] }
 0x613   : > { %v2570_v17 = vpack.c.bf16 %v2554_v33, %v2554_v33  ;;  %v3181_v33 = vsel %vm2581_vm4, %v15815_v3, 0 }
 0x614   : > { %12461 = vmatmul.mubr.msk.bf16.vlgmr.msra.gmra.mrb[68].mxu0 %vm2385_vm5, %v2571_v28  ;;  %3815 = vrot.lane.b32.xlu0 %v15378_v8, %s14359_s23  ;;  %v2520_v11 = vpop.xlane.xlu0 %2519  ;;  %v2573_v48 = vpack.c.bf16 %v2557_v12, %v2557_v12  ;;  %v18348_v28 = vld [vmem:[#allocation45_spill] sm:$0xff] }
 0x615   : > { %12471 = vmatpush3.bf16.msra.mxu0 %v3089_v45  ;;  %12455 = vmatmul.mubr.msk.bf16.vlgmr.msra.gmra.mrb[60].mxu1 %vm2385_vm5, %v2570_v17  ;;  %13643 = vrcp.f32 %v2520_v11  ;;  %v1268_v54 = vadd.f32 %v18348_v28, %v15397_v31  ;;  %v3135_v17 = vsel %vm2581_vm4, %v15821_v1, 0  ;;  %v15845_v31 = vpack.c.bf16 %v1272_v22, %v1272_v22  ;;  %v18356_v22 = vld [vmem:[#allocation53_spill] sm:$0xff] }
 0x616   : > { %12465 = vmatpush3.bf16.msra.mxu1 %v3043_v60  ;;  %3867 = vrot.lane.b32.xlu1 %v18341_v55, %s14358_s0 }
 0x617   : > { %v13640_v24 = vpop.eup %13639  ;;  %12466 = vmatprep.mubr.msk.bf16.mxu1 %vm14355_vm2, %v18330_v23  ;;  %12472 = vmatprep.mubr.msk.bf16.mxu0 %vm14355_vm2, %v18330_v23  ;;  %v15851_v60 = vpack.c.bf16 %v1268_v54, %v1268_v54 }
 0x618   : > { %3917 = vrot.lane.b32.xlu0 %v18343_v30, %s14358_s0  ;;  %12476 = vmatprep.subr.bf16.mxu1 %v18330_v23  ;;  %v2556_v40 = vmul.f32 %v13640_v24, %v15638_v26  ;;  %v13642_v15 = vpop.eup %13641  ;;  %v18347_v26 = vld [vmem:[#allocation51_spill] sm:$0xff] }
 0x619   : > { %12482 = vmatprep.subr.bf16.mxu0 %v18330_v23  ;;  %v2559_v45 = vmul.f32 %v13642_v15, %v15634_v32  ;;  %v18351_v32 = vld [vmem:[#allocation50_spill] sm:$0xff]  ;;  %v18354_v15 = vld [vmem:[#allocation52_spill] sm:$0xff] }
 0x61a   : > { %3865 = vrot.lane.b32.xlu1 %v18345_v47, %s14359_s23  ;;  %v2572_v16 = vpack.c.bf16 %v2556_v40, %v2556_v40  ;;  %v3273_v40 = vsel %vm2581_vm4, %v15845_v31, 0 }
 0x61b   : > { %v2575_v12 = vpack.c.bf16 %v2559_v45, %v2559_v45 }
 0x61c   : > { %12473 = vmatmul.mubr.msk.bf16.vlgmr.msra.gmra.mrb[72].mxu0 %vm2385_vm5, %v2573_v48  ;;  %3915 = vrot.lane.b32.xlu0 %v18347_v26, %s14359_s23  ;;  %v18352_v48 = vld [vmem:[#allocation54_spill] sm:$0xff] }
 0x61d   : > { %12483 = vmatpush3.bf16.msra.mxu0 %v3181_v33  ;;  %12467 = vmatmul.mubr.msk.bf16.vlgmr.msra.gmra.mrb[64].mxu1 %vm2385_vm5, %v2572_v16  ;;  %v18353_v16 = vld [vmem:[#allocation48_spill] sm:$0xff] }
 0x61e   : > { %12477 = vmatpush3.bf16.msra.mxu1 %v3135_v17  ;;  %3967 = vrot.lane.b32.xlu1 %v18349_v10, %s14358_s0 }
 0x61f   : > { %v13644_v11 = vpop.eup %13643  ;;  %12478 = vmatprep.mubr.msk.bf16.mxu1 %vm14355_vm2, %v18330_v23  ;;  %12484 = vmatprep.mubr.msk.bf16.mxu0 %vm14355_vm2, %v18330_v23 }
 0x620   : > { %4017 = vrot.lane.b32.xlu0 %v18350_v41, %s14358_s0  ;;  %12488 = vmatprep.subr.bf16.mxu1 %v18330_v23  ;;  %v2558_v50 = vmul.f32 %v13644_v11, %v15642_v9  ;;  %v3227_v9 = vsel %vm2581_vm4, %v15851_v60, 0 }
 0x621   : > { %12494 = vmatprep.subr.bf16.mxu0 %v18330_v23 }
 0x622   : > { %3965 = vrot.lane.b32.xlu1 %v18351_v32, %s14359_s23  ;;  %v2574_v24 = vpack.c.bf16 %v2558_v50, %v2558_v50 }
 0x624   : > { %12485 = vmatmul.mubr.msk.bf16.vlgmr.msra.gmra.mrb[76].mxu0 %vm2385_vm5, %v2575_v12  ;;  %4015 = vrot.lane.b32.xlu0 %v18352_v48, %s14359_s23 }
 0x625   : > { %12495 = vmatpush3.bf16.msra.mxu0 %v3273_v40  ;;  %12479 = vmatmul.mubr.msk.bf16.vlgmr.msra.gmra.mrb[68].mxu1 %vm2385_vm5, %v2574_v24 }
 0x626   : > { %12489 = vmatpush3.bf16.msra.mxu1 %v3227_v9  ;;  %4067 = vrot.lane.b32.xlu1 %v18353_v16, %s14358_s0 }
 0x627   : > { %12490 = vmatprep.mubr.msk.bf16.mxu1 %vm14355_vm2, %v18330_v23  ;;  %12500 = vmatprep.subr.bf16.mxu1 %v18330_v23 }
 0x628   : > { %4307 = vrot.lane.b32.xlu0 %v18354_v15, %s14359_s23  ;;  %12496 = vmatprep.mubr.msk.bf16.mxu0 %vm14355_vm2, %v18330_v23 }
 0x629   : > { %12506 = vmatprep.subr.bf16.mxu0 %v18330_v23 }
 0x62a   : > { %4065 = vrot.lane.b32.xlu1 %v18355_v20, %s14359_s23 }
 0x62c   : > { %4403 = vrot.lane.b32.xlu0 %v15669_v29, %s14359_s23 }
 0x62e   : > { %4355 = vrot.lane.b32.xlu1 %v18356_v22, %s14359_s23 }
 0x630   : > { %4499 = vrot.lane.b32.xlu0 %v15689_v61, %s14359_s23 }
 0x632   : > { %4451 = vrot.lane.b32.xlu1 %v15658_v63, %s14359_s23 }
 0x634   : > { %4595 = vrot.lane.b32.xlu0 %v15716_v21, %s14359_s23 }
 0x636   : > { %4547 = vrot.lane.b32.xlu1 %v15691_v6, %s14359_s23 }
 0x638   : > { %4691 = vrot.lane.b32.xlu0 %v15746_v36, %s14359_s23 }
 0x63a   : > { %4643 = vrot.lane.b32.xlu1 %v15721_v46, %s14359_s23 }
 0x63e   : > { %4739 = vrot.lane.b32.xlu1 %v15765_v2, %s14359_s23 }
 0x642   : > { %4787 = vrot.lane.b32.xlu1 %v15791_v49, %s14359_s23 }
 0x646   : > { %4835 = vrot.lane.b32.xlu1 %v15787_v56, %s14359_s23 }
 0x663   : > { %v2526_v33 = vpop.xlane.xlu0 %2525 }
 0x664   : > { %13645 = vrcp.f32 %v2526_v33 }
 0x665   : > { %v2529_v28 = vpop.xlane.xlu1 %2528 }
 0x666   : > { %13647 = vrcp.f32 %v2529_v28 }
 0x667   : > { %v3318_v54 = vpop.permute.xlu0 %3317 }
 0x668   : > { %v3323_v21 = vsel %vm1603_vm3, %v3318_v54, 0 }
 0x669   : > { %v3368_v17 = vpop.permute.xlu1 %3367 }
 0x66a   : > { %v3373_v28 = vsel %vm1603_vm3, %v3368_v17, 0 }
 0x66b   : > { %v3418_v45 = vpop.permute.xlu0 %3417 }
 0x66d   : > { %v3316_v11 = vpop.permute.xlu1 %3315 }
 0x66e   : > { %v13646_v50 = vpop.eup %13645 }
 0x66f   : > { %v3416_v12 = vpop.permute.xlu0 %3415  ;;  %v2560_v24 = vmul.f32 %v13646_v50, %v15648_v19 }
 0x670   : > { %v13648_v40 = vpop.eup %13647 }
 0x671   : > { %v3366_v9 = vpop.permute.xlu1 %3365  ;;  %v2576_v36 = vpack.c.bf16 %v2560_v24, %v2560_v24  ;;  %v2561_v49 = vmul.f32 %v13648_v40, %v15654_v44 }
 0x673   : > { %12491 = vmatmul.mubr.msk.bf16.vlgmr.msra.gmra.mrb[72].mxu1 %vm2385_vm5, %v2576_v36  ;;  %v3518_v33 = vpop.permute.xlu0 %3517  ;;  %v2577_v56 = vpack.c.bf16 %v2561_v49, %v2561_v49 }
 0x674   : > { %12501 = vmatpush3.bf16.xpose.msra.mxu1 %v3323_v21  ;;  %12502 = vmatprep.mubr.msk.bf16.mxu1 %vm14355_vm2, %v18330_v23  ;;  %v3423_v21 = vsel %vm1603_vm3, %v3418_v45, 0 }
 0x675   : > { %12497 = vmatmul.mubr.msk.bf16.vlgmr.msra.gmra.mrb[80].mxu0 %vm2385_vm5, %v2577_v56  ;;  %v3468_v19 = vpop.permute.xlu1 %3467  ;;  %12512 = vmatprep.subr.bf16.mxu1 %v18330_v23 }
 0x676   : > { %12507 = vmatpush3.bf16.xpose.msra.mxu0 %v3373_v28  ;;  %12508 = vmatprep.mubr.msk.bf16.mxu0 %vm14355_vm2, %v18330_v23  ;;  %v3473_v56 = vsel %vm1603_vm3, %v3468_v19, 0 }
 0x677   : > { %v3516_v44 = vpop.permute.xlu0 %3515  ;;  %12518 = vmatprep.subr.bf16.mxu0 %v18330_v23 }
 0x679   : > { %v3466_v36 = vpop.permute.xlu1 %3465 }
 0x67b   : > { %12503 = vmatmul.mubr.msk.bf16.vlgmr.msra.gmra.mrb[76].mxu1 %vm1603_vm3, %v3316_v11  ;;  %v3618_v49 = vpop.permute.xlu0 %3617  ;;  %v3523_v11 = vsel %vm1603_vm3, %v3518_v33, 0 }
 0x67c   : > { %12513 = vmatpush3.bf16.xpose.msra.mxu1 %v3423_v21  ;;  %12514 = vmatprep.mubr.msk.bf16.mxu1 %vm14355_vm2, %v18330_v23  ;;  %v3623_v33 = vsel %vm1603_vm3, %v3618_v49, 0 }
 0x67d   : > { %12509 = vmatmul.mubr.msk.bf16.vlgmr.msra.gmra.mrb[84].mxu0 %vm1603_vm3, %v3366_v9  ;;  %v3568_v54 = vpop.permute.xlu1 %3567  ;;  %12524 = vmatprep.subr.bf16.mxu1 %v18330_v23 }
 0x67e   : > { %12519 = vmatpush3.bf16.xpose.msra.mxu0 %v3473_v56  ;;  %12520 = vmatprep.mubr.msk.bf16.mxu0 %vm14355_vm2, %v18330_v23  ;;  %v3573_v24 = vsel %vm1603_vm3, %v3568_v54, 0 }
 0x67f   : > { %v3616_v17 = vpop.permute.xlu0 %3615  ;;  %12530 = vmatprep.subr.bf16.mxu0 %v18330_v23 }
 0x681   : > { %v3566_v45 = vpop.permute.xlu1 %3565 }
 0x683   : > { %12515 = vmatmul.mubr.msk.bf16.vlgmr.msra.gmra.mrb[80].mxu1 %vm1603_vm3, %v3416_v12  ;;  %v3718_v50 = vpop.permute.xlu0 %3717 }
 0x684   : > { %12525 = vmatpush3.bf16.xpose.msra.mxu1 %v3523_v11  ;;  %12526 = vmatprep.mubr.msk.bf16.mxu1 %vm14355_vm2, %v18330_v23  ;;  %v3723_v49 = vsel %vm1603_vm3, %v3718_v50, 0 }
 0x685   : > { %12521 = vmatmul.mubr.msk.bf16.vlgmr.msra.gmra.mrb[88].mxu0 %vm1603_vm3, %v3466_v36  ;;  %v3668_v40 = vpop.permute.xlu1 %3667  ;;  %12536 = vmatprep.subr.bf16.mxu1 %v18330_v23 }
 0x686   : > { %12531 = vmatpush3.bf16.xpose.msra.mxu0 %v3573_v24  ;;  %12532 = vmatprep.mubr.msk.bf16.mxu0 %vm14355_vm2, %v18330_v23  ;;  %v3673_v19 = vsel %vm1603_vm3, %v3668_v40, 0 }
 0x687   : > { %v3716_v9 = vpop.permute.xlu0 %3715  ;;  %12542 = vmatprep.subr.bf16.mxu0 %v18330_v23 }
 0x689   : > { %v3666_v12 = vpop.permute.xlu1 %3665 }
 0x68b   : > { %12527 = vmatmul.mubr.msk.bf16.vlgmr.msra.gmra.mrb[84].mxu1 %vm1603_vm3, %v3516_v44  ;;  %v3818_v28 = vpop.permute.xlu0 %3817 }
 0x68c   : > { %12537 = vmatpush3.bf16.xpose.msra.mxu1 %v3623_v33  ;;  %12538 = vmatprep.mubr.msk.bf16.mxu1 %vm14355_vm2, %v18330_v23 }
 0x68d   : > { %12533 = vmatmul.mubr.msk.bf16.vlgmr.msra.gmra.mrb[92].mxu0 %vm1603_vm3, %v3566_v45  ;;  %v3768_v36 = vpop.permute.xlu1 %3767  ;;  %12548 = vmatprep.subr.bf16.mxu1 %v18330_v23 }
 0x68e   : > { %12543 = vmatpush3.bf16.xpose.msra.mxu0 %v3673_v19  ;;  %12544 = vmatprep.mubr.msk.bf16.mxu0 %vm14355_vm2, %v18330_v23  ;;  %v3773_v56 = vsel %vm1603_vm3, %v3768_v36, 0 }
 0x68f   : > { %12554 = vmatprep.subr.bf16.mxu0 %v18330_v23  ;;  %v3816_v44 = vpop.permute.xlu0 %3815 }
 0x691   : > { %v3766_v21 = vpop.permute.xlu1 %3765 }
 0x693   : > { %12539 = vmatmul.mubr.msk.bf16.vlgmr.msra.gmra.mrb[88].mxu1 %vm1603_vm3, %v3616_v17  ;;  %v3918_v45 = vpop.permute.xlu0 %3917  ;;  %v3823_v17 = vsel %vm1603_vm3, %v3818_v28, 0 }
 0x694   : > { %12549 = vmatpush3.bf16.xpose.msra.mxu1 %v3723_v49  ;;  %12550 = vmatprep.mubr.msk.bf16.mxu1 %vm14355_vm2, %v18330_v23 }
 0x695   : > { %12545 = vmatmul.mubr.msk.bf16.vlgmr.msra.gmra.mrb[96].mxu0 %vm1603_vm3, %v3666_v12  ;;  %v3868_v54 = vpop.permute.xlu1 %3867  ;;  %12560 = vmatprep.subr.bf16.mxu1 %v18330_v23 }
 0x696   : > { %12555 = vmatpush3.bf16.xpose.msra.mxu0 %v3773_v56  ;;  %12556 = vmatprep.mubr.msk.bf16.mxu0 %vm14355_vm2, %v18330_v23  ;;  %v3873_v50 = vsel %vm1603_vm3, %v3868_v54, 0 }
 0x697   : > { %12566 = vmatprep.subr.bf16.mxu0 %v18330_v23  ;;  %v3916_v40 = vpop.permute.xlu0 %3915 }
 0x699   : > { %v3866_v11 = vpop.permute.xlu1 %3865 }
 0x69b   : > { %12551 = vmatmul.mubr.msk.bf16.vlgmr.msra.gmra.mrb[92].mxu1 %vm1603_vm3, %v3716_v9  ;;  %v3923_v9 = vsel %vm1603_vm3, %v3918_v45, 0  ;;  %v4018_v33 = vpop.permute.xlu0 %4017 }
 0x69c   : > { %12561 = vmatpush3.bf16.xpose.msra.mxu1 %v3823_v17  ;;  %12562 = vmatprep.mubr.msk.bf16.mxu1 %vm14355_vm2, %v18330_v23 }
 0x69d   : > { %12557 = vmatmul.mubr.msk.bf16.vlgmr.msra.gmra.mrb[100].mxu0 %vm1603_vm3, %v3766_v21  ;;  %v3968_v24 = vpop.permute.xlu1 %3967  ;;  %12572 = vmatprep.subr.bf16.mxu1 %v18330_v23  ;;  %v4023_v21 = vsel %vm1603_vm3, %v4018_v33, 0 }
 0x69e   : > { %12567 = vmatpush3.bf16.xpose.msra.mxu0 %v3873_v50  ;;  %12568 = vmatprep.mubr.msk.bf16.mxu0 %vm14355_vm2, %v18330_v23  ;;  %v3973_v28 = vsel %vm1603_vm3, %v3968_v24, 0 }
 0x69f   : > { %12578 = vmatprep.subr.bf16.mxu0 %v18330_v23  ;;  %v4016_v36 = vpop.permute.xlu0 %4015 }
 0x6a1   : > { %v3966_v12 = vpop.permute.xlu1 %3965 }
 0x6a3   : > { %12563 = vmatmul.mubr.msk.bf16.vlgmr.msra.gmra.mrb[96].mxu1 %vm1603_vm3, %v3816_v44  ;;  %v4308_v54 = vpop.permute.xlu0 %4307 }
 0x6a4   : > { %12573 = vmatpush3.bf16.xpose.msra.mxu1 %v3923_v9  ;;  %12574 = vmatprep.mubr.msk.bf16.mxu1 %vm14355_vm2, %v18330_v23  ;;  %v4313_v24 = vsel %vm2581_vm4, %v4308_v54, 0 }
 0x6a5   : > { %12569 = vmatmul.mubr.msk.bf16.vlgmr.msra.gmra.mrb[104].mxu0 %vm1603_vm3, %v3866_v11  ;;  %12584 = vmatprep.subr.bf16.mxu1 %v18330_v23  ;;  %v4068_v19 = vpop.permute.xlu1 %4067 }
 0x6a6   : > { %12579 = vmatpush3.bf16.xpose.msra.mxu0 %v3973_v28  ;;  %12580 = vmatprep.mubr.msk.bf16.mxu0 %vm14355_vm2, %v18330_v23  ;;  %v4073_v49 = vsel %vm1603_vm3, %v4068_v19, 0 }
 0x6a7   : > { %12590 = vmatprep.subr.bf16.mxu0 %v18330_v23 }
 0x6a9   : > { %v4066_v44 = vpop.permute.xlu1 %4065 }
 0x6ab   : > { %12575 = vmatmul.mubr.msk.bf16.vlgmr.msra.gmra.mrb[100].mxu1 %vm1603_vm3, %v3916_v40 }
 0x6ac   : > { %12585 = vmatpush3.bf16.xpose.msra.mxu1 %v4023_v21  ;;  %12586 = vmatprep.mubr.msk.bf16.mxu1 %vm14355_vm2, %v18330_v23 }
 0x6ad   : > { %12581 = vmatmul.mubr.msk.bf16.vlgmr.msra.gmra.mrb[108].mxu0 %vm1603_vm3, %v3966_v12  ;;  %12596 = vmatprep.subr.bf16.mxu1 %v18330_v23  ;;  %v4356_v17 = vpop.permute.xlu1 %4355 }
 0x6ae   : > { %12591 = vmatpush3.bf16.xpose.msra.mxu0 %v4073_v49  ;;  %12592 = vmatprep.mubr.msk.bf16.mxu0 %vm14355_vm2, %v18330_v23  ;;  %v4361_v40 = vsel %vm2581_vm4, %v4356_v17, 0 }
 0x6af   : > { %v15979_v56 = vpop.f32.mrb[52].mxu0  ;;  %12602 = vmatprep.subr.bf16.mxu0 %v18330_v23 }
 0x6b0   : > { %18357 = vst [vmem:[#allocation49_spill] sm:$0xff] %v15979_v56  ;;  %v12414_v45 = vpop.f32.mrb[53].mxu0 }
 0x6b1   : > { %v2668_v11 = vpop.f32.mrb[54].mxu0 }
 0x6b2   : > { %v12415_v50 = vpop.f32.mrb[55].mxu0 }
 0x6b3   : > { %12587 = vmatmul.mubr.msk.bf16.vlgmr.msra.gmra.mrb[104].mxu1 %vm1603_vm3, %v4016_v36 }
 0x6b4   : > { %12597 = vmatpush3.bf16.msra.mxu1 %v4313_v24  ;;  %12598 = vmatprep.mubr.msk.bf16.mxu1 %vm14355_vm2, %v18330_v23 }
 0x6b5   : > { %12593 = vmatmul.mubr.msk.bf16.vlgmr.msra.gmra.mrb[112].mxu0 %vm1603_vm3, %v4066_v44  ;;  %12608 = vmatprep.subr.bf16.mxu1 %v18330_v23 }
 0x6b6   : > { %12603 = vmatpush3.bf16.msra.mxu0 %v4361_v40  ;;  %12604 = vmatprep.mubr.msk.bf16.mxu0 %vm14355_vm2, %v18330_v23 }
 0x6b7   : > { %12614 = vmatprep.subr.bf16.mxu0 %v18330_v23 }
 0x6bd   : > { %v15992_v12 = vpop.f32.mrb[44].mxu1 }
 0x6be   : > { %18358 = vst [vmem:[#allocation47_spill] sm:$0xff] %v15992_v12  ;;  %v12408_v9 = vpop.f32.mrb[45].mxu1 }
 0x6bf   : > { %v2622_v33 = vpop.f32.mrb[46].mxu1 }
 0x6c0   : > { %v12409_v28 = vpop.f32.mrb[47].mxu1 }
 0x6c5   : > { %v15994_v19 = vpop.f32.mrb[56].mxu0  ;;  %v15996_v36 = vpop.f32.mrb[48].mxu1 }
 0x6c6   : > { %18359 = vst [vmem:[#allocation45_spill] sm:$0xff] %v15994_v19  ;;  %18360 = vst [vmem:[#allocation44_spill] sm:$0xff] %v15996_v36  ;;  %v12426_v21 = vpop.f32.mrb[57].mxu0  ;;  %v12420_v49 = vpop.f32.mrb[49].mxu1 }
 0x6c7   : > { %v2760_v44 = vpop.f32.mrb[58].mxu0  ;;  %v2714_v54 = vpop.f32.mrb[50].mxu1 }
 0x6c8   : > { %v12427_v45 = vpop.f32.mrb[59].mxu0  ;;  %v12421_v11 = vpop.f32.mrb[51].mxu1 }
 0x6cd   : > { %v15998_v17 = vpop.f32.mrb[52].mxu1 }
 0x6ce   : > { %18361 = vst [vmem:[#allocation50_spill] sm:$0xff] %v15998_v17  ;;  %v12432_v50 = vpop.f32.mrb[53].mxu1 }
 0x6cf   : > { %v2806_v24 = vpop.f32.mrb[54].mxu1  ;;  %v16000_v40 = vpop.f32.mrb[60].mxu0 }
 0x6d0   : > { %18362 = vst [vmem:[#allocation83_spill] sm:$0xff] %v16000_v40  ;;  %v12433_v12 = vpop.f32.mrb[55].mxu1  ;;  %v12438_v9 = vpop.f32.mrb[61].mxu0 }
 0x6d1   : > { %v2852_v33 = vpop.f32.mrb[62].mxu0 }
 0x6d2   : > { %v12439_v28 = vpop.f32.mrb[63].mxu0 }
 0x6d7   : > { %v16002_v56 = vpop.f32.mrb[56].mxu1 }
 0x6d8   : > { %18363 = vst [vmem:[#allocation84_spill] sm:$0xff] %v16002_v56  ;;  %v12444_v19 = vpop.f32.mrb[57].mxu1 }
 0x6d9   : > { %v2898_v36 = vpop.f32.mrb[58].mxu1 }
 0x6da   : > { %v12445_v21 = vpop.f32.mrb[59].mxu1 }
 0x6df   : > { %v16004_v49 = vpop.f32.mrb[64].mxu0 }
 0x6e0   : > { %18364 = vst [vmem:[#allocation85_spill] sm:$0xff] %v16004_v49  ;;  %v12450_v44 = vpop.f32.mrb[65].mxu0 }
 0x6e1   : > { %v2944_v54 = vpop.f32.mrb[66].mxu0 }
 0x6e2   : > { %v12451_v45 = vpop.f32.mrb[67].mxu0 }
 0x6e7   : > { %v16006_v11 = vpop.f32.mrb[68].mxu0 }
 0x6e8   : > { %18365 = vst [vmem:[#allocation86_spill] sm:$0xff] %v16006_v11  ;;  %v16008_v50 = vpop.f32.mrb[60].mxu1  ;;  %v12462_v24 = vpop.f32.mrb[69].mxu0 }
 0x6e9   : > { %18366 = vst [vmem:[#allocation87_spill] sm:$0xff] %v16008_v50  ;;  %v12456_v17 = vpop.f32.mrb[61].mxu1  ;;  %v3036_v12 = vpop.f32.mrb[70].mxu0 }
 0x6ea   : > { %v2990_v9 = vpop.f32.mrb[62].mxu1  ;;  %v12463_v33 = vpop.f32.mrb[71].mxu0 }
 0x6eb   : > { %v12457_v28 = vpop.f32.mrb[63].mxu1 }
 0x6ef   : > { %v16010_v40 = vpop.f32.mrb[72].mxu0 }
 0x6f0   : > { %18367 = vst [vmem:[#allocation88_spill] sm:$0xff] %v16010_v40  ;;  %v16012_v19 = vpop.f32.mrb[64].mxu1  ;;  %v12474_v36 = vpop.f32.mrb[73].mxu0 }
 0x6f1   : > { %18368 = vst [vmem:[#allocation89_spill] sm:$0xff] %v16012_v19  ;;  %v12468_v21 = vpop.f32.mrb[65].mxu1  ;;  %v3128_v56 = vpop.f32.mrb[74].mxu0 }
 0x6f2   : > { %v3082_v44 = vpop.f32.mrb[66].mxu1  ;;  %v12475_v54 = vpop.f32.mrb[75].mxu0 }
 0x6f3   : > { %v12469_v45 = vpop.f32.mrb[67].mxu1 }
 0x6f7   : > { %v16014_v49 = vpop.f32.mrb[76].mxu0 }
 0x6f8   : > { %18369 = vst [vmem:[#allocation90_spill] sm:$0xff] %v16014_v49  ;;  %v16016_v11 = vpop.f32.mrb[68].mxu1  ;;  %v12486_v24 = vpop.f32.mrb[77].mxu0  ;;  %v18373_v49 = vld [vmem:[#allocation58_spill] sm:$0xff] }
 0x6f9   : > { %18370 = vst [vmem:[#allocation91_spill] sm:$0xff] %v16016_v11  ;;  %v12480_v17 = vpop.f32.mrb[69].mxu1  ;;  %v3220_v12 = vpop.f32.mrb[78].mxu0 }
 0x6fa   : > { %v3174_v9 = vpop.f32.mrb[70].mxu1  ;;  %v12487_v33 = vpop.f32.mrb[79].mxu0 }
 0x6fb   : > { %v12481_v28 = vpop.f32.mrb[71].mxu1  ;;  %v18374_v9 = vld [vmem:[#allocation57_spill] sm:$0xff] }
 0x746   : > { %v16018_v50 = vpop.f32.mrb[72].mxu1 }
 0x747   : > { %18371 = vst [vmem:[#allocation92_spill] sm:$0xff] %v16018_v50  ;;  %v12492_v40 = vpop.f32.mrb[73].mxu1 }
 0x748   : > { %v3266_v19 = vpop.f32.mrb[74].mxu1  ;;  %v16020_v36 = vpop.f32.mrb[80].mxu0 }
 0x749   : > { %18372 = vst [vmem:[#allocation93_spill] sm:$0xff] %v16020_v36  ;;  %v12493_v56 = vpop.f32.mrb[75].mxu1  ;;  %v12498_v21 = vpop.f32.mrb[81].mxu0  ;;  %v18376_v36 = vld [vmem:[#allocation60_spill] sm:$0xff] }
 0x74a   : > { %v3312_v44 = vpop.f32.mrb[82].mxu0 }
 0x74b   : > { %v12499_v54 = vpop.f32.mrb[83].mxu0 }
 0x74c   : > { %v18375_v54 = vld [vmem:[#allocation59_spill] sm:$0xff] }
 0x74e   : > { %v3359_v45 = vpop.f32.mrb[76].mxu1 }
 0x74f   : > { %v16023_v2 = vadd.f32 %v3359_v45, %v18373_v49  ;;  %v12504_v24 = vpop.f32.mrb[77].mxu1 }
 0x750   : > { %v3362_v17 = vpop.f32.mrb[78].mxu1  ;;  %v3409_v12 = vpop.f32.mrb[84].mxu0 }
 0x751   : > { %v16026_v33 = vadd.f32 %v3409_v12, %v18374_v9  ;;  %v12505_v28 = vpop.f32.mrb[79].mxu1  ;;  %v12510_v50 = vpop.f32.mrb[85].mxu0  ;;  %v4115_v40 = vsel %vm2385_vm5, %v16023_v2, -inf }
 0x752   : > { %v3412_v19 = vpop.f32.mrb[86].mxu0  ;;  %4116 = vmax.xlane.f32.xlu0 %v4115_v40 }
 0x753   : > { %v12511_v56 = vpop.f32.mrb[87].mxu0  ;;  %v4118_v21 = vsel %vm2385_vm5, %v16026_v33, -inf }
 0x754   : > { %4119 = vmax.xlane.f32.xlu1 %v4118_v21 }
 0x756   : > { %v3459_v44 = vpop.f32.mrb[80].mxu1 }
 0x757   : > { %v16033_v45 = vadd.f32 %v3459_v44, %v18375_v54  ;;  %v12516_v24 = vpop.f32.mrb[81].mxu1  ;;  %v18377_v54 = vld [vmem:[#allocation61_spill] sm:$0xff] }
 0x758   : > { %v3462_v17 = vpop.f32.mrb[82].mxu1  ;;  %v3509_v12 = vpop.f32.mrb[88].mxu0 }
 0x759   : > { %v16036_v28 = vadd.f32 %v3509_v12, %v18376_v36  ;;  %v12517_v50 = vpop.f32.mrb[83].mxu1  ;;  %v12522_v11 = vpop.f32.mrb[89].mxu0  ;;  %v4121_v40 = vsel %vm2385_vm5, %v16033_v45, -inf  ;;  %v18378_v36 = vld [vmem:[#allocation62_spill] sm:$0xff] }
 0x75a   : > { %v3512_v19 = vpop.f32.mrb[90].mxu0  ;;  %4122 = vmax.xlane.f32.xlu0 %v4121_v40 }
 0x75b   : > { %v12523_v56 = vpop.f32.mrb[91].mxu0  ;;  %v4124_v21 = vsel %vm2385_vm5, %v16036_v28, -inf }
 0x75e   : > { %4125 = vmax.xlane.f32.xlu0 %v4124_v21  ;;  %v3559_v44 = vpop.f32.mrb[84].mxu1 }
 0x75f   : > { %v16043_v24 = vadd.f32 %v3559_v44, %v18377_v54  ;;  %v12528_v17 = vpop.f32.mrb[85].mxu1  ;;  %v18379_v54 = vld [vmem:[#allocation63_spill] sm:$0xff] }
 0x760   : > { %v3562_v9 = vpop.f32.mrb[86].mxu1  ;;  %v3609_v12 = vpop.f32.mrb[92].mxu0 }
 0x761   : > { %v16046_v50 = vadd.f32 %v3609_v12, %v18378_v36  ;;  %v12529_v11 = vpop.f32.mrb[87].mxu1  ;;  %v12534_v49 = vpop.f32.mrb[93].mxu0  ;;  %v4127_v40 = vsel %vm2385_vm5, %v16043_v24, -inf  ;;  %v18380_v36 = vld [vmem:[#allocation64_spill] sm:$0xff] }
 0x762   : > { %v3612_v19 = vpop.f32.mrb[94].mxu0  ;;  %4128 = vmax.xlane.f32.xlu0 %v4127_v40 }
 0x763   : > { %v12535_v56 = vpop.f32.mrb[95].mxu0  ;;  %v4130_v21 = vsel %vm2385_vm5, %v16046_v50, -inf }
 0x764   : > { %4131 = vmax.xlane.f32.xlu1 %v4130_v21 }
 0x766   : > { %v3659_v44 = vpop.f32.mrb[88].mxu1 }
 0x767   : > { %v16053_v17 = vadd.f32 %v3659_v44, %v18379_v54  ;;  %v12540_v9 = vpop.f32.mrb[89].mxu1  ;;  %v18381_v54 = vld [vmem:[#allocation67_spill] sm:$0xff] }
 0x768   : > { %v3662_v61 = vpop.f32.mrb[90].mxu1  ;;  %v3709_v12 = vpop.f32.mrb[96].mxu0 }
 0x769   : > { %v16056_v11 = vadd.f32 %v3709_v12, %v18380_v36  ;;  %v12541_v49 = vpop.f32.mrb[91].mxu1  ;;  %v12546_v46 = vpop.f32.mrb[97].mxu0  ;;  %v4133_v40 = vsel %vm2385_vm5, %v16053_v17, -inf  ;;  %v18382_v36 = vld [vmem:[#allocation65_spill] sm:$0xff] }
 0x76a   : > { %v3712_v19 = vpop.f32.mrb[98].mxu0  ;;  %4134 = vmax.xlane.f32.xlu0 %v4133_v40 }
 0x76b   : > { %v12547_v56 = vpop.f32.mrb[99].mxu0  ;;  %v4136_v21 = vsel %vm2385_vm5, %v16056_v11, -inf }
 0x76c   : > { %4137 = vmax.xlane.f32.xlu1 %v4136_v21 }
 0x76e   : > { %v3759_v44 = vpop.f32.mrb[92].mxu1 }
 0x76f   : > { %v16063_v9 = vadd.f32 %v3759_v44, %v18381_v54  ;;  %v12552_v61 = vpop.f32.mrb[93].mxu1  ;;  %v18383_v54 = vld [vmem:[#allocation69_spill] sm:$0xff] }
 0x770   : > { %v3762_v29 = vpop.f32.mrb[94].mxu1  ;;  %v3809_v12 = vpop.f32.mrb[100].mxu0 }
 0x771   : > { %v16066_v49 = vadd.f32 %v3809_v12, %v18382_v36  ;;  %v12553_v46 = vpop.f32.mrb[95].mxu1  ;;  %v12558_v6 = vpop.f32.mrb[101].mxu0  ;;  %v4139_v40 = vsel %vm2385_vm5, %v16063_v9, -inf  ;;  %v18384_v36 = vld [vmem:[#allocation66_spill] sm:$0xff] }
 0x772   : > { %v3812_v19 = vpop.f32.mrb[102].mxu0  ;;  %4140 = vmax.xlane.f32.xlu0 %v4139_v40 }
 0x773   : > { %v12559_v56 = vpop.f32.mrb[103].mxu0  ;;  %v4142_v21 = vsel %vm2385_vm5, %v16066_v49, -inf }
 0x774   : > { %4143 = vmax.xlane.f32.xlu1 %v4142_v21 }
 0x776   : > { %v3859_v44 = vpop.f32.mrb[96].mxu1 }
 0x777   : > { %v16073_v61 = vadd.f32 %v3859_v44, %v18383_v54  ;;  %v12564_v29 = vpop.f32.mrb[97].mxu1  ;;  %v18385_v54 = vld [vmem:[#allocation70_spill] sm:$0xff] }
 0x778   : > { %v3862_v15 = vpop.f32.mrb[98].mxu1  ;;  %v3909_v12 = vpop.f32.mrb[104].mxu0 }
 0x779   : > { %v16076_v46 = vadd.f32 %v3909_v12, %v18384_v36  ;;  %v12565_v6 = vpop.f32.mrb[99].mxu1  ;;  %v12570_v63 = vpop.f32.mrb[105].mxu0  ;;  %v4145_v40 = vsel %vm2385_vm5, %v16073_v61, -inf  ;;  %v18386_v36 = vld [vmem:[#allocation68_spill] sm:$0xff] }
 0x77a   : > { %v3912_v19 = vpop.f32.mrb[106].mxu0  ;;  %4146 = vmax.xlane.f32.xlu0 %v4145_v40 }
 0x77b   : > { %v12571_v56 = vpop.f32.mrb[107].mxu0  ;;  %v4148_v21 = vsel %vm2385_vm5, %v16076_v46, -inf }
 0x77c   : > { %4149 = vmax.xlane.f32.xlu1 %v4148_v21 }
 0x77e   : > { %v3959_v44 = vpop.f32.mrb[100].mxu1 }
 0x77f   : > { %v16083_v29 = vadd.f32 %v3959_v44, %v18385_v54  ;;  %v12576_v15 = vpop.f32.mrb[101].mxu1 }
 0x780   : > { %v3962_v48 = vpop.f32.mrb[102].mxu1  ;;  %v4009_v12 = vpop.f32.mrb[108].mxu0 }
 0x781   : > { %v16086_v6 = vadd.f32 %v4009_v12, %v18386_v36  ;;  %v12577_v63 = vpop.f32.mrb[103].mxu1  ;;  %v12582_v22 = vpop.f32.mrb[109].mxu0  ;;  %v4151_v40 = vsel %vm2385_vm5, %v16083_v29, -inf }
 0x782   : > { %v4012_v19 = vpop.f32.mrb[110].mxu0  ;;  %4152 = vmax.xlane.f32.xlu0 %v4151_v40 }
 0x783   : > { %v12583_v56 = vpop.f32.mrb[111].mxu0  ;;  %v4154_v21 = vsel %vm2385_vm5, %v16086_v6, -inf }
 0x784   : > { %4155 = vmax.xlane.f32.xlu1 %v4154_v21 }
 0x786   : > { %v4059_v44 = vpop.f32.mrb[104].mxu1 }
 0x787   : > { %v16093_v15 = vadd.f32 %v4059_v44, %v15562_v39  ;;  %v12588_v48 = vpop.f32.mrb[105].mxu1 }
 0x788   : > { %v4062_v54 = vpop.f32.mrb[106].mxu1  ;;  %v4109_v12 = vpop.f32.mrb[112].mxu0 }
 0x789   : > { %v12589_v36 = vpop.f32.mrb[107].mxu1  ;;  %v12594_v63 = vpop.f32.mrb[113].mxu0  ;;  %v4157_v22 = vsel %vm2385_vm5, %v16093_v15, -inf  ;;  %v16102_v19 = vadd.f32 %v4109_v12, %v15565_v4 }
 0x78a   : > { %v4112_v41 = vpop.f32.mrb[114].mxu0  ;;  %4158 = vmax.xlane.f32.xlu0 %v4157_v22  ;;  %v16106_v36 = vpop.permute.xlu1 %4451 }
 0x78b   : > { %v12595_v40 = vpop.f32.mrb[115].mxu0  ;;  %v4160_v54 = vsel %vm2385_vm5, %v16102_v19, -inf  ;;  %v16110_v41 = vpop.permute.xlu0 %4403 }
 0x78e   : > { %v16108_v56 = vpop.permute.xlu1 %4547 }
 0x78f   : > { %v16114_v44 = vpop.permute.xlu0 %4499 }
 0x792   : > { %v16112_v21 = vpop.permute.xlu1 %4643 }
 0x793   : > { %18387 = vst [vmem:[#allocation94_spill] sm:$0xff] %v16112_v21  ;;  %v16118_v63 = vpop.permute.xlu0 %4595 }
 0x795   : > { %4931 = vrot.lane.b32.xlu1 %v15815_v3, %s14359_s23 }
 0x796   : > { %v16116_v48 = vpop.permute.xlu1 %4739 }
 0x797   : > { %18388 = vst [vmem:[#allocation95_spill] sm:$0xff] %v16116_v48  ;;  %v16122_v22 = vpop.permute.xlu0 %4691 }
 0x798   : > { %18390 = vst [vmem:[#allocation97_spill] sm:$0xff] %v16122_v22 }
 0x79a   : > { %v16120_v12 = vpop.permute.xlu1 %4787 }
 0x79b   : > { %18389 = vst [vmem:[#allocation96_spill] sm:$0xff] %v16120_v12 }
 0x79e   : > { %v16124_v40 = vpop.permute.xlu1 %4835 }
 0x79f   : > { %18391 = vst [vmem:[#allocation98_spill] sm:$0xff] %v16124_v40 }
 0x7a0   : > { %4883 = vrot.lane.b32.xlu0 %v15821_v1, %s14359_s23 }
 0x7b9   : > { %4161 = vmax.xlane.f32.xlu1 %v4160_v54 }
 0x7df   : > { %v4117_v54 = vpop.xlane.xlu0 %4116 }
 0x7e0   : > { %v4163_v4 = vsub.f32 %v16023_v2, %v4117_v54 }
 0x7e1   : > { %v4120_v1 = vpop.xlane.xlu1 %4119 }
 0x7e2   : > { %v4179_v3 = vmul.f32 1.442695, %v4163_v4  ;;  %v4164_v39 = vsub.f32 %v16026_v33, %v4120_v1 }
 0x7e4   : > { %13649 = vpow2.f32 %v4179_v3  ;;  %v4181_v20 = vmul.f32 1.442695, %v4164_v39 }
 0x7e6   : > { %13651 = vpow2.f32 %v4181_v20 }
 0x7e7   : > { %v4123_v26 = vpop.xlane.xlu0 %4122 }
 0x7e8   : > { %v4165_v48 = vsub.f32 %v16033_v45, %v4123_v26 }
 0x7ea   : > { %v4183_v21 = vmul.f32 1.442695, %v4165_v48 }
 0x7eb   : > { %v4126_v16 = vpop.xlane.xlu0 %4125 }
 0x7ec   : > { %13653 = vpow2.f32 %v4183_v21  ;;  %v4166_v12 = vsub.f32 %v16036_v28, %v4126_v16 }
 0x7ee   : > { %v16130_v22 = vpop.eup %13649  ;;  %v4185_v40 = vmul.f32 1.442695, %v4166_v12 }
 0x7ef   : > { %v4129_v30 = vpop.xlane.xlu0 %4128  ;;  %v4211_v4 = vsel %vm2385_vm5, %v16130_v22, 0.0 }
 0x7f0   : > { %v16134_v2 = vpop.eup %13651  ;;  %13655 = vpow2.f32 %v4185_v40  ;;  %v4167_v39 = vsub.f32 %v16043_v24, %v4129_v30  ;;  %4212 = vadd.xlane.f32.xlu0 %v4211_v4 }
 0x7f1   : > { %v4132_v3 = vpop.xlane.xlu1 %4131  ;;  %v4214_v1 = vsel %vm2385_vm5, %v16134_v2, 0.0 }
 0x7f2   : > { %v4187_v26 = vmul.f32 1.442695, %v4167_v39  ;;  %v4168_v16 = vsub.f32 %v16046_v50, %v4132_v3  ;;  %4215 = vadd.xlane.f32.xlu1 %v4214_v1 }
 0x7f4   : > { %13657 = vpow2.f32 %v4187_v26  ;;  %v4189_v20 = vmul.f32 1.442695, %v4168_v16 }
 0x7f6   : > { %v16140_v33 = vpop.eup %13653  ;;  %13659 = vpow2.f32 %v4189_v20 }
 0x7f7   : > { %v4135_v45 = vpop.xlane.xlu0 %4134  ;;  %v4217_v28 = vsel %vm2385_vm5, %v16140_v33, 0.0 }
 0x7f8   : > { %v4169_v30 = vsub.f32 %v16053_v17, %v4135_v45  ;;  %4218 = vadd.xlane.f32.xlu0 %v4217_v28 }
 0x7f9   : > { %v4138_v24 = vpop.xlane.xlu1 %4137 }
 0x7fa   : > { %v16145_v21 = vpop.eup %13655  ;;  %v4191_v48 = vmul.f32 1.442695, %v4169_v30  ;;  %v4170_v12 = vsub.f32 %v16056_v11, %v4138_v24 }
 0x7fb   : > { %v4220_v50 = vsel %vm2385_vm5, %v16145_v21, 0.0 }
 0x7fc   : > { %13661 = vpow2.f32 %v4191_v48  ;;  %v4193_v40 = vmul.f32 1.442695, %v4170_v12  ;;  %4221 = vadd.xlane.f32.xlu1 %v4220_v50 }
 0x7fe   : > { %v16150_v54 = vpop.eup %13657  ;;  %13663 = vpow2.f32 %v4193_v40 }
 0x7ff   : > { %v4141_v4 = vpop.xlane.xlu0 %4140  ;;  %v4223_v17 = vsel %vm2385_vm5, %v16150_v54, 0.0 }
 0x800   : > { %v16154_v39 = vpop.eup %13659  ;;  %v4171_v3 = vsub.f32 %v16063_v9, %v4141_v4  ;;  %4224 = vadd.xlane.f32.xlu0 %v4223_v17 }
 0x801   : > { %v4144_v1 = vpop.xlane.xlu1 %4143  ;;  %v4226_v11 = vsel %vm2385_vm5, %v16154_v39, 0.0 }
 0x802   : > { %v4195_v26 = vmul.f32 1.442695, %v4171_v3  ;;  %v4172_v16 = vsub.f32 %v16066_v49, %v4144_v1  ;;  %4227 = vadd.xlane.f32.xlu1 %v4226_v11 }
 0x804   : > { %13665 = vpow2.f32 %v4195_v26  ;;  %v4197_v20 = vmul.f32 1.442695, %v4172_v16 }
 0x806   : > { %v16160_v45 = vpop.eup %13661  ;;  %13667 = vpow2.f32 %v4197_v20 }
 0x807   : > { %v4147_v28 = vpop.xlane.xlu0 %4146  ;;  %v4229_v30 = vsel %vm2385_vm5, %v16160_v45, 0.0 }
 0x808   : > { %v16164_v24 = vpop.eup %13663  ;;  %v4173_v9 = vsub.f32 %v16073_v61, %v4147_v28  ;;  %4230 = vadd.xlane.f32.xlu0 %v4229_v30 }
 0x809   : > { %v4150_v48 = vpop.xlane.xlu1 %4149  ;;  %v4232_v12 = vsel %vm2385_vm5, %v16164_v24, 0.0 }
 0x80a   : > { %v4199_v49 = vmul.f32 1.442695, %v4173_v9  ;;  %v4174_v50 = vsub.f32 %v16076_v46, %v4150_v48  ;;  %4233 = vadd.xlane.f32.xlu1 %v4232_v12 }
 0x80c   : > { %13669 = vpow2.f32 %v4199_v49  ;;  %v4201_v40 = vmul.f32 1.442695, %v4174_v50 }
 0x80e   : > { %v16170_v4 = vpop.eup %13665  ;;  %13671 = vpow2.f32 %v4201_v40 }
 0x80f   : > { %v4153_v17 = vpop.xlane.xlu0 %4152  ;;  %v4235_v3 = vsel %vm2385_vm5, %v16170_v4, 0.0 }
 0x810   : > { %v16174_v1 = vpop.eup %13667  ;;  %v4175_v61 = vsub.f32 %v16083_v29, %v4153_v17  ;;  %4236 = vadd.xlane.f32.xlu1 %v4235_v3 }
 0x811   : > { %v4156_v11 = vpop.xlane.xlu1 %4155  ;;  %v4238_v26 = vsel %vm2385_vm5, %v16174_v1, 0.0 }
 0x812   : > { %v4203_v46 = vmul.f32 1.442695, %v4175_v61  ;;  %v4176_v16 = vsub.f32 %v16086_v6, %v4156_v11  ;;  %4239 = vadd.xlane.f32.xlu0 %v4238_v26 }
 0x814   : > { %13673 = vpow2.f32 %v4203_v46  ;;  %v4205_v20 = vmul.f32 1.442695, %v4176_v16 }
 0x815   : > { %v16201_v17 = vpop.permute.xlu1 %4931 }
 0x816   : > { %v16180_v28 = vpop.eup %13669  ;;  %13675 = vpow2.f32 %v4205_v20 }
 0x817   : > { %v4241_v30 = vsel %vm2385_vm5, %v16180_v28, 0.0  ;;  %v4159_v50 = vpop.xlane.xlu0 %4158 }
 0x818   : > { %v16184_v9 = vpop.eup %13671  ;;  %4242 = vadd.xlane.f32.xlu1 %v4241_v30  ;;  %v4177_v40 = vsub.f32 %v16093_v15, %v4159_v50 }
 0x819   : > { %v4244_v29 = vsel %vm2385_vm5, %v16184_v9, 0.0 }
 0x81a   : > { %4245 = vadd.xlane.f32.xlu0 %v4244_v29  ;;  %v4207_v3 = vmul.f32 1.442695, %v4177_v40 }
 0x81c   : > { %13677 = vpow2.f32 %v4207_v3 }
 0x81e   : > { %v16188_v48 = vpop.eup %13673 }
 0x81f   : > { %v4247_v6 = vsel %vm2385_vm5, %v16188_v48, 0.0 }
 0x820   : > { %v16192_v12 = vpop.eup %13675  ;;  %4248 = vadd.xlane.f32.xlu1 %v4247_v6 }
 0x821   : > { %v4250_v49 = vsel %vm2385_vm5, %v16192_v12, 0.0 }
 0x822   : > { %4251 = vadd.xlane.f32.xlu0 %v4250_v49 }
 0x826   : > { %v16204_v46 = vpop.eup %13677 }
 0x827   : > { %v4253_v16 = vsel %vm2385_vm5, %v16204_v46, 0.0 }
 0x831   : > { %5027 = vrot.lane.b32.xlu1 %v15845_v31, %s14359_s23 }
 0x838   : > { %4979 = vrot.lane.b32.xlu0 %v15851_v60, %s14359_s23  ;;  %s9041_s23 = scalar_lea.vmem [#allocation12], %s18293_s21 }
 0x846   : > { %v4162_v61 = vpop.xlane.xlu1 %4161 }
 0x847   : > { %v4178_v11 = vsub.f32 %v16102_v19, %v4162_v61  ;;  %v16228_v19 = vpop.permute.xlu0 %4883 }
 0x849   : > { %v4209_v26 = vmul.f32 1.442695, %v4178_v11 }
 0x84b   : > { %13679 = vpow2.f32 %v4209_v26  ;;  %v4409_v26 = vsel %vm2581_vm4, %v16110_v41, 0 }
 0x855   : > { %v16208_v20 = vpop.eup %13679  ;;  %4254 = vadd.xlane.f32.xlu1 %v4253_v16 }
 0x856   : > { %v4256_v15 = vsel %vm2385_vm5, %v16208_v20, 0.0 }
 0x857   : > { %4257 = vadd.xlane.f32.xlu0 %v4256_v15 }
 0x866   : > { %5127 = vrot.lane.b32.xlu1 %v15100_v42, %s14360_s30 }
 0x86a   : > { %5125 = vrot.lane.b32.xlu1 %v15248_v43, %s14361_s26 }
 0x86d   : > { %5077 = vrot.lane.b32.xlu0 %v15136_v57, %s14360_s30 }
 0x86e   : > { %5227 = vrot.lane.b32.xlu1 %v15125_v14, %s14360_s30 }
 0x871   : > { %5075 = vrot.lane.b32.xlu0 %v15269_v52, %s14361_s26 }
 0x872   : > { %5225 = vrot.lane.b32.xlu1 %v15271_v58, %s14361_s26 }
 0x875   : > { %5177 = vrot.lane.b32.xlu0 %v15111_v37, %s14360_s30 }
 0x876   : > { %5327 = vrot.lane.b32.xlu1 %v15153_v25, %s14360_s30 }
 0x879   : > { %5175 = vrot.lane.b32.xlu0 %v15257_v62, %s14361_s26 }
 0x87a   : > { %5325 = vrot.lane.b32.xlu1 %v15316_v51, %s14361_s26 }
 0x87d   : > { %5277 = vrot.lane.b32.xlu0 %v15140_v59, %s14360_s30  ;;  %v4213_v30 = vpop.xlane.xlu0 %4212 }
 0x87e   : > { %13681 = vrcp.f32 %v4213_v30  ;;  %5427 = vrot.lane.b32.xlu1 %v15173_v7, %s14360_s30 }
 0x87f   : > { %v4216_v29 = vpop.xlane.xlu1 %4215 }
 0x880   : > { %13683 = vrcp.f32 %v4216_v29 }
 0x881   : > { %5275 = vrot.lane.b32.xlu0 %v15284_v34, %s14361_s26 }
 0x882   : > { %5425 = vrot.lane.b32.xlu1 %v15354_v27, %s14361_s26 }
 0x885   : > { %5377 = vrot.lane.b32.xlu0 %v15164_v0, %s14360_s30  ;;  %v4219_v6 = vpop.xlane.xlu0 %4218 }
 0x886   : > { %13685 = vrcp.f32 %v4219_v6  ;;  %5527 = vrot.lane.b32.xlu1 %v15195_v13, %s14360_s30  ;;  %v4505_v6 = vsel %vm2581_vm4, %v16114_v44, 0 }
 0x888   : > { %v13682_v49 = vpop.eup %13681 }
 0x889   : > { %v4222_v50 = vpop.xlane.xlu1 %4221  ;;  %5375 = vrot.lane.b32.xlu0 %v15336_v53, %s14361_s26  ;;  %v4275_v40 = vmul.f32 %v13682_v49, %v16130_v22  ;;  %v4457_v22 = vsel %vm2581_vm4, %v16106_v36, 0 }
 0x88a   : > { %v13684_v3 = vpop.eup %13683  ;;  %13687 = vrcp.f32 %v4222_v50  ;;  %5525 = vrot.lane.b32.xlu1 %v15318_v5, %s14361_s26 }
 0x88b   : > { %v4291_v61 = vpack.c.bf16 %v4275_v40, %v4275_v40  ;;  %v4276_v11 = vmul.f32 %v13684_v3, %v16134_v2  ;;  %v4553_v3 = vsel %vm2581_vm4, %v16108_v56, 0 }
 0x88d   : > { %5477 = vrot.lane.b32.xlu0 %v15186_v35, %s14360_s30  ;;  %12599 = vmatmul.mubr.msk.bf16.vlgmr.msra.gmra.mrb[108].mxu1 %vm2385_vm5, %v4291_v61  ;;  %v4225_v16 = vpop.xlane.xlu0 %4224  ;;  %v4292_v15 = vpack.c.bf16 %v4276_v11, %v4276_v11 }
 0x88e   : > { %12609 = vmatpush3.bf16.msra.mxu1 %v4409_v26  ;;  %13689 = vrcp.f32 %v4225_v16  ;;  %5627 = vrot.lane.b32.xlu1 %v18341_v55, %s14360_s30  ;;  %v4601_v26 = vsel %vm2581_vm4, %v16118_v63, 0  ;;  %v18392_v16 = vld [vmem:[#allocation43_spill] sm:$0xff]  ;;  %v18394_v63 = vld [vmem:[#allocation94_spill] sm:$0xff] }
 0x88f   : > { %12605 = vmatmul.mubr.msk.bf16.vlgmr.msra.gmra.mrb[116].mxu0 %vm2385_vm5, %v4292_v15  ;;  %v4228_v2 = vpop.xlane.xlu1 %4227  ;;  %12610 = vmatprep.mubr.msk.bf16.mxu1 %vm14355_vm2, %v18330_v23  ;;  %v18393_v15 = vld [vmem:[#allocation48_spill] sm:$0xff] }
 0x890   : > { %v13686_v41 = vpop.eup %13685  ;;  %12615 = vmatpush3.bf16.msra.mxu0 %v4457_v22  ;;  %13691 = vrcp.f32 %v4228_v2  ;;  %12620 = vmatprep.subr.bf16.mxu1 %v18330_v23 }
 0x891   : > { %5475 = vrot.lane.b32.xlu0 %v15369_v38, %s14361_s26  ;;  %v4277_v30 = vmul.f32 %v13686_v41, %v16140_v33  ;;  %12616 = vmatprep.mubr.msk.bf16.mxu0 %vm14355_vm2, %v18330_v23  ;;  %v4649_v41 = vsel %vm2581_vm4, %v18394_v63, 0 }
 0x892   : > { %5625 = vrot.lane.b32.xlu1 %v18345_v47, %s14361_s26  ;;  %12626 = vmatprep.subr.bf16.mxu0 %v18330_v23 }
 0x893   : > { %v4293_v36 = vpack.c.bf16 %v4277_v30, %v4277_v30  ;;  %v18395_v30 = vld [vmem:[#allocation51_spill] sm:$0xff] }
 0x894   : > { %v13688_v29 = vpop.eup %13687 }
 0x895   : > { %5577 = vrot.lane.b32.xlu0 %v15208_v18, %s14360_s30  ;;  %12611 = vmatmul.mubr.msk.bf16.vlgmr.msra.gmra.mrb[112].mxu1 %vm2385_vm5, %v4293_v36  ;;  %v4231_v49 = vpop.xlane.xlu0 %4230  ;;  %v4278_v33 = vmul.f32 %v13688_v29, %v16145_v21 }
 0x896   : > { %12621 = vmatpush3.bf16.msra.mxu1 %v4505_v6  ;;  %13693 = vrcp.f32 %v4231_v49  ;;  %5727 = vrot.lane.b32.xlu1 %v18349_v10, %s14360_s30  ;;  %v18396_v6 = vld [vmem:[#allocation55_spill] sm:$0xff] }
 0x897   : > { %v4234_v50 = vpop.xlane.xlu1 %4233  ;;  %v4294_v40 = vpack.c.bf16 %v4278_v33, %v4278_v33  ;;  %12622 = vmatprep.mubr.msk.bf16.mxu1 %vm14355_vm2, %v18330_v23  ;;  %12632 = vmatprep.subr.bf16.mxu1 %v18330_v23 }
 0x898   : > { %v13690_v44 = vpop.eup %13689  ;;  %13695 = vrcp.f32 %v4234_v50  ;;  %v18397_v50 = vld [vmem:[#allocation97_spill] sm:$0xff] }
 0x899   : > { %12617 = vmatmul.mubr.msk.bf16.vlgmr.msra.gmra.mrb[120].mxu0 %vm2385_vm5, %v4294_v40  ;;  %5575 = vrot.lane.b32.xlu0 %v15378_v8, %s14361_s26  ;;  %v4279_v21 = vmul.f32 %v13690_v44, %v16150_v54  ;;  %v4697_v40 = vsel %vm2581_vm4, %v18397_v50, 0  ;;  %v18398_v44 = vld [vmem:[#allocation46_spill] sm:$0xff] }
 0x89a   : > { %v13692_v61 = vpop.eup %13691  ;;  %12627 = vmatpush3.bf16.msra.mxu0 %v4553_v3  ;;  %5725 = vrot.lane.b32.xlu1 %v18351_v32, %s14361_s26  ;;  %v18399_v3 = vld [vmem:[#allocation53_spill] sm:$0xff] }
 0x89b   : > { %v4295_v11 = vpack.c.bf16 %v4279_v21, %v4279_v21  ;;  %12628 = vmatprep.mubr.msk.bf16.mxu0 %vm14355_vm2, %v18330_v23  ;;  %12638 = vmatprep.subr.bf16.mxu0 %v18330_v23  ;;  %v4280_v56 = vmul.f32 %v13692_v61, %v16154_v39 }
 0x89d   : > { %5677 = vrot.lane.b32.xlu0 %v18392_v16, %s14360_s30  ;;  %v4237_v54 = vpop.xlane.xlu1 %4236  ;;  %12623 = vmatmul.mubr.msk.bf16.vlgmr.msra.gmra.mrb[116].mxu1 %vm2385_vm5, %v4295_v11  ;;  %v4296_v2 = vpack.c.bf16 %v4280_v56, %v4280_v56  ;;  %v18400_v11 = vld [vmem:[#allocation95_spill] sm:$0xff] }
 0x89e   : > { %13697 = vrcp.f32 %v4237_v54  ;;  %12633 = vmatpush3.bf16.msra.mxu1 %v4601_v26  ;;  %5827 = vrot.lane.b32.xlu1 %v18393_v15, %s14360_s30  ;;  %v4745_v56 = vsel %vm2581_vm4, %v18400_v11, 0  ;;  %v18401_v26 = vld [vmem:[#allocation54_spill] sm:$0xff] }
 0x89f   : > { %v4240_v22 = vpop.xlane.xlu0 %4239  ;;  %12634 = vmatprep.mubr.msk.bf16.mxu1 %vm14355_vm2, %v18330_v23  ;;  %12644 = vmatprep.subr.bf16.mxu1 %v18330_v23  ;;  %v18408_v11 = vld [vmem:[#allocation78_spill] sm:$0xff] }
 0x8a0   : > { %v13694_v39 = vpop.eup %13693  ;;  %13699 = vrcp.f32 %v4240_v22 }
 0x8a1   : > { %12629 = vmatmul.mubr.msk.bf16.vlgmr.msra.gmra.mrb[124].mxu0 %vm2385_vm5, %v4296_v2  ;;  %5675 = vrot.lane.b32.xlu0 %v18395_v30, %s14361_s26  ;;  %v4281_v36 = vmul.f32 %v13694_v39, %v16160_v45  ;;  %v18402_v2 = vld [vmem:[#allocation73_spill] sm:$0xff] }
 0x8a2   : > { %v13696_v29 = vpop.eup %13695  ;;  %12639 = vmatpush3.bf16.msra.mxu0 %v4649_v41  ;;  %5825 = vrot.lane.b32.xlu1 %v18396_v6, %s14361_s26  ;;  %v18403_v41 = vld [vmem:[#allocation96_spill] sm:$0xff] }
 0x8a3   : > { %v4297_v49 = vpack.c.bf16 %v4281_v36, %v4281_v36  ;;  %12640 = vmatprep.mubr.msk.bf16.mxu0 %vm14355_vm2, %v18330_v23  ;;  %12650 = vmatprep.subr.bf16.mxu0 %v18330_v23  ;;  %v4282_v33 = vmul.f32 %v13696_v29, %v16164_v24  ;;  %v4793_v36 = vsel %vm2581_vm4, %v18403_v41, 0  ;;  %v18404_v29 = vld [vmem:[#allocation52_spill] sm:$0xff] }
 0x8a5   : > { %5777 = vrot.lane.b32.xlu0 %v18398_v44, %s14360_s30  ;;  %v4243_v45 = vpop.xlane.xlu1 %4242  ;;  %12635 = vmatmul.mubr.msk.bf16.vlgmr.msra.gmra.mrb[120].mxu1 %vm2385_vm5, %v4297_v49  ;;  %v4298_v61 = vpack.c.bf16 %v4282_v33, %v4282_v33  ;;  %v18405_v49 = vld [vmem:[#allocation76_spill] sm:$0xff] }
 0x8a6   : > { %13701 = vrcp.f32 %v4243_v45  ;;  %12645 = vmatpush3.bf16.msra.mxu1 %v4697_v40  ;;  %6115 = vrot.lane.b32.xlu1 %v18399_v3, %s14361_s26  ;;  %v18406_v40 = vld [vmem:[#allocation98_spill] sm:$0xff] }
 0x8a7   : > { %v4246_v21 = vpop.xlane.xlu0 %4245  ;;  %12646 = vmatprep.mubr.msk.bf16.mxu1 %vm14355_vm2, %v18330_v23  ;;  %12656 = vmatprep.subr.bf16.mxu1 %v18330_v23  ;;  %v4841_v45 = vsel %vm2581_vm4, %v18406_v40, 0 }
 0x8a8   : > { %v13698_v24 = vpop.eup %13697  ;;  %13703 = vrcp.f32 %v4246_v21  ;;  %v18407_v21 = vld [vmem:[#allocation74_spill] sm:$0xff] }
 0x8a9   : > { %12641 = vmatmul.mubr.msk.bf16.vlgmr.msra.gmra.mrb[128].mxu0 %vm2385_vm5, %v4298_v61  ;;  %5775 = vrot.lane.b32.xlu0 %v18401_v26, %s14361_s26  ;;  %v4283_v54 = vmul.f32 %v13698_v24, %v16170_v4 }
 0x8aa   : > { %v13700_v22 = vpop.eup %13699  ;;  %12651 = vmatpush3.bf16.msra.mxu0 %v4745_v56  ;;  %6211 = vrot.lane.b32.xlu1 %v18402_v2, %s14361_s26 }
 0x8ab   : > { %v4299_v39 = vpack.c.bf16 %v4283_v54, %v4283_v54  ;;  %12652 = vmatprep.mubr.msk.bf16.mxu0 %vm14355_vm2, %v18330_v23  ;;  %12662 = vmatprep.subr.bf16.mxu0 %v18330_v23  ;;  %v4284_v63 = vmul.f32 %v13700_v22, %v16174_v1  ;;  %v4889_v22 = vsel %vm2581_vm4, %v16228_v19, 0  ;;  %v18411_v19 = vld [vmem:[#allocation77_spill] sm:$0xff] }
 0x8ad   : > { %6067 = vrot.lane.b32.xlu0 %v18404_v29, %s14361_s26  ;;  %v4249_v4 = vpop.xlane.xlu1 %4248  ;;  %12647 = vmatmul.mubr.msk.bf16.vlgmr.msra.gmra.mrb[124].mxu1 %vm2385_vm5, %v4299_v39  ;;  %v4300_v50 = vpack.c.bf16 %v4284_v63, %v4284_v63  ;;  %v18409_v39 = vld [vmem:[#allocation75_spill] sm:$0xff] }
 0x8ae   : > { %13705 = vrcp.f32 %v4249_v4  ;;  %12657 = vmatpush3.bf16.msra.mxu1 %v4793_v36  ;;  %6307 = vrot.lane.b32.xlu1 %v18405_v49, %s14361_s26 }
 0x8af   : > { %v4252_v33 = vpop.xlane.xlu0 %4251  ;;  %12658 = vmatprep.mubr.msk.bf16.mxu1 %vm14355_vm2, %v18330_v23  ;;  %12668 = vmatprep.subr.bf16.mxu1 %v18330_v23 }
 0x8b0   : > { %v13702_v1 = vpop.eup %13701  ;;  %13707 = vrcp.f32 %v4252_v33 }
 0x8b1   : > { %6163 = vrot.lane.b32.xlu0 %v18407_v21, %s14361_s26  ;;  %12653 = vmatmul.mubr.msk.bf16.vlgmr.msra.gmra.mrb[132].mxu0 %vm2385_vm5, %v4300_v50  ;;  %v4285_v61 = vmul.f32 %v13702_v1, %v16180_v28  ;;  %v18410_v28 = vld [vmem:[#allocation80_spill] sm:$0xff]  ;;  %v18412_v50 = vld [vmem:[#allocation82_spill] sm:$0xff] }
 0x8b2   : > { %v13704_v24 = vpop.eup %13703  ;;  %12663 = vmatpush3.bf16.msra.mxu0 %v4841_v45  ;;  %6403 = vrot.lane.b32.xlu1 %v18408_v11, %s14361_s26  ;;  %v18413_v45 = vld [vmem:[#allocation79_spill] sm:$0xff] }
 0x8b3   : > { %v4301_v56 = vpack.c.bf16 %v4285_v61, %v4285_v61  ;;  %12664 = vmatprep.mubr.msk.bf16.mxu0 %vm14355_vm2, %v18330_v23  ;;  %12674 = vmatprep.subr.bf16.mxu0 %v18330_v23  ;;  %v4286_v54 = vmul.f32 %v13704_v24, %v16184_v9  ;;  %v4937_v9 = vsel %vm2581_vm4, %v16201_v17, 0  ;;  %v4980_v33 = vpop.permute.xlu0 %4979  ;;  %v18414_v61 = vld [vmem:[#allocation81_spill] sm:$0xff] }
 0x8b4   : > { %v4985_v40 = vsel %vm2581_vm4, %v4980_v33, 0 }
 0x8b5   : > { %6259 = vrot.lane.b32.xlu0 %v18409_v39, %s14361_s26  ;;  %12659 = vmatmul.mubr.msk.bf16.vlgmr.msra.gmra.mrb[128].mxu1 %vm2385_vm5, %v4301_v56  ;;  %v4302_v63 = vpack.c.bf16 %v4286_v54, %v4286_v54 }
 0x8b6   : > { %12669 = vmatpush3.bf16.msra.mxu1 %v4889_v22  ;;  %6499 = vrot.lane.b32.xlu1 %v18410_v28, %s14361_s26  ;;  %v18436_v28 = vld [vmem:[#allocation62_spill] sm:$0xff] }
 0x8b7   : > { %12670 = vmatprep.mubr.msk.bf16.mxu1 %vm14355_vm2, %v18330_v23  ;;  %12680 = vmatprep.subr.bf16.mxu1 %v18330_v23 }
 0x8b8   : > { %v13706_v41 = vpop.eup %13705 }
 0x8b9   : > { %6355 = vrot.lane.b32.xlu0 %v18411_v19, %s14361_s26  ;;  %12665 = vmatmul.mubr.msk.bf16.vlgmr.msra.gmra.mrb[136].mxu0 %vm2385_vm5, %v4302_v63  ;;  %v4287_v36 = vmul.f32 %v13706_v41, %v16188_v48  ;;  %v5028_v48 = vpop.permute.xlu1 %5027 }
 0x8ba   : > { %v13708_v4 = vpop.eup %13707  ;;  %12675 = vmatpush3.bf16.msra.mxu0 %v4937_v9  ;;  %6547 = vrot.lane.b32.xlu1 %v18412_v50, %s14361_s26 }
 0x8bb   : > { %v4303_v1 = vpack.c.bf16 %v4287_v36, %v4287_v36  ;;  %12676 = vmatprep.mubr.msk.bf16.mxu0 %vm14355_vm2, %v18330_v23  ;;  %12686 = vmatprep.subr.bf16.mxu0 %v18330_v23  ;;  %v4288_v17 = vmul.f32 %v13708_v4, %v16192_v12  ;;  %v5033_v12 = vsel %vm2581_vm4, %v5028_v48, 0 }
 0x8bd   : > { %6451 = vrot.lane.b32.xlu0 %v18413_v45, %s14361_s26  ;;  %12671 = vmatmul.mubr.msk.bf16.vlgmr.msra.gmra.mrb[132].mxu1 %vm2385_vm5, %v4303_v1  ;;  %v4304_v24 = vpack.c.bf16 %v4288_v17, %v4288_v17 }
 0x8be   : > { %12681 = vmatpush3.bf16.msra.mxu1 %v4985_v40  ;;  %6595 = vrot.lane.b32.xlu1 %v18414_v61, %s14361_s26  ;;  %v18435_v61 = vld [vmem:[#allocation61_spill] sm:$0xff] }
 0x8bf   : > { %12682 = vmatprep.mubr.msk.bf16.mxu1 %vm14355_vm2, %v18330_v23  ;;  %12692 = vmatprep.subr.bf16.mxu1 %v18330_v23 }
 0x8c1   : > { %12677 = vmatmul.mubr.msk.bf16.vlgmr.msra.gmra.mrb[140].mxu0 %vm2385_vm5, %v4304_v24 }
 0x8c2   : > { %12687 = vmatpush3.bf16.msra.mxu0 %v5033_v12  ;;  %12688 = vmatprep.mubr.msk.bf16.mxu0 %vm14355_vm2, %v18330_v23 }
 0x8c3   : > { %12698 = vmatprep.subr.bf16.mxu0 %v18330_v23 }
 0x8e2   : > { %v4255_v56 = vpop.xlane.xlu1 %4254 }
 0x8e3   : > { %13709 = vrcp.f32 %v4255_v56 }
 0x8e4   : > { %v4258_v54 = vpop.xlane.xlu0 %4257 }
 0x8e5   : > { %13711 = vrcp.f32 %v4258_v54 }
 0x8e6   : > { %v5128_v22 = vpop.permute.xlu1 %5127 }
 0x8e7   : > { %v5133_v54 = vsel %vm1603_vm3, %v5128_v22, 0 }
 0x8e8   : > { %v5078_v63 = vpop.permute.xlu0 %5077 }
 0x8e9   : > { %v5083_v24 = vsel %vm1603_vm3, %v5078_v63, 0 }
 0x8ea   : > { %v5126_v41 = vpop.permute.xlu1 %5125 }
 0x8ec   : > { %v5076_v9 = vpop.permute.xlu0 %5075 }
 0x8ed   : > { %v13710_v36 = vpop.eup %13709 }
 0x8ee   : > { %v5228_v4 = vpop.permute.xlu1 %5227  ;;  %v4289_v33 = vmul.f32 %v13710_v36, %v16204_v46 }
 0x8ef   : > { %v13712_v1 = vpop.eup %13711  ;;  %v5233_v22 = vsel %vm1603_vm3, %v5228_v4, 0 }
 0x8f0   : > { %v5178_v17 = vpop.permute.xlu0 %5177  ;;  %v4305_v40 = vpack.c.bf16 %v4289_v33, %v4289_v33  ;;  %v4290_v48 = vmul.f32 %v13712_v1, %v16208_v20 }
 0x8f1   : > { %v5183_v36 = vsel %vm1603_vm3, %v5178_v17, 0 }
 0x8f2   : > { %v5226_v12 = vpop.permute.xlu1 %5225  ;;  %12683 = vmatmul.mubr.msk.bf16.vlgmr.msra.gmra.mrb[136].mxu1 %vm2385_vm5, %v4305_v40  ;;  %v4306_v56 = vpack.c.bf16 %v4290_v48, %v4290_v48 }
 0x8f3   : > { %12693 = vmatpush3.bf16.xpose.msra.mxu1 %v5083_v24  ;;  %12694 = vmatprep.mubr.msk.bf16.mxu1 %vm14355_vm2, %v18330_v23 }
 0x8f4   : > { %12689 = vmatmul.mubr.msk.bf16.vlgmr.msra.gmra.mrb[144].mxu0 %vm2385_vm5, %v4306_v56  ;;  %v5176_v46 = vpop.permute.xlu0 %5175  ;;  %12704 = vmatprep.subr.bf16.mxu1 %v18330_v23 }
 0x8f5   : > { %12699 = vmatpush3.bf16.xpose.msra.mxu0 %v5133_v54  ;;  %12700 = vmatprep.mubr.msk.bf16.mxu0 %vm14355_vm2, %v18330_v23 }
 0x8f6   : > { %v5328_v20 = vpop.permute.xlu1 %5327  ;;  %12710 = vmatprep.subr.bf16.mxu0 %v18330_v23 }
 0x8f8   : > { %v5278_v63 = vpop.permute.xlu0 %5277 }
 0x8fa   : > { %v5326_v33 = vpop.permute.xlu1 %5325  ;;  %12695 = vmatmul.mubr.msk.bf16.vlgmr.msra.gmra.mrb[140].mxu1 %vm1603_vm3, %v5076_v9  ;;  %v5283_v9 = vsel %vm1603_vm3, %v5278_v63, 0 }
 0x8fb   : > { %12705 = vmatpush3.bf16.xpose.msra.mxu1 %v5183_v36  ;;  %12706 = vmatprep.mubr.msk.bf16.mxu1 %vm14355_vm2, %v18330_v23 }
 0x8fc   : > { %12701 = vmatmul.mubr.msk.bf16.vlgmr.msra.gmra.mrb[148].mxu0 %vm1603_vm3, %v5126_v41  ;;  %v5276_v1 = vpop.permute.xlu0 %5275  ;;  %12716 = vmatprep.subr.bf16.mxu1 %v18330_v23  ;;  %v5333_v41 = vsel %vm1603_vm3, %v5328_v20, 0 }
 0x8fd   : > { %12711 = vmatpush3.bf16.xpose.msra.mxu0 %v5233_v22  ;;  %12712 = vmatprep.mubr.msk.bf16.mxu0 %vm14355_vm2, %v18330_v23 }
 0x8fe   : > { %v5428_v40 = vpop.permute.xlu1 %5427  ;;  %12722 = vmatprep.subr.bf16.mxu0 %v18330_v23 }
 0x900   : > { %v5378_v17 = vpop.permute.xlu0 %5377 }
 0x901   : > { %v5383_v54 = vsel %vm1603_vm3, %v5378_v17, 0 }
 0x902   : > { %v5426_v48 = vpop.permute.xlu1 %5425  ;;  %12707 = vmatmul.mubr.msk.bf16.vlgmr.msra.gmra.mrb[144].mxu1 %vm1603_vm3, %v5176_v46 }
 0x903   : > { %12717 = vmatpush3.bf16.xpose.msra.mxu1 %v5283_v9  ;;  %12718 = vmatprep.mubr.msk.bf16.mxu1 %vm14355_vm2, %v18330_v23 }
 0x904   : > { %12713 = vmatmul.mubr.msk.bf16.vlgmr.msra.gmra.mrb[152].mxu0 %vm1603_vm3, %v5226_v12  ;;  %v5376_v4 = vpop.permute.xlu0 %5375  ;;  %12728 = vmatprep.subr.bf16.mxu1 %v18330_v23  ;;  %v5433_v12 = vsel %vm1603_vm3, %v5428_v40, 0 }
 0x905   : > { %12723 = vmatpush3.bf16.xpose.msra.mxu0 %v5333_v41  ;;  %12724 = vmatprep.mubr.msk.bf16.mxu0 %vm14355_vm2, %v18330_v23 }
 0x906   : > { %v5528_v24 = vpop.permute.xlu1 %5527  ;;  %12734 = vmatprep.subr.bf16.mxu0 %v18330_v23 }
 0x908   : > { %v5478_v56 = vpop.permute.xlu0 %5477 }
 0x909   : > { %v5483_v22 = vsel %vm1603_vm3, %v5478_v56, 0 }
 0x90a   : > { %v5526_v46 = vpop.permute.xlu1 %5525  ;;  %12719 = vmatmul.mubr.msk.bf16.vlgmr.msra.gmra.mrb[148].mxu1 %vm1603_vm3, %v5276_v1 }
 0x90b   : > { %12729 = vmatpush3.bf16.xpose.msra.mxu1 %v5383_v54  ;;  %12730 = vmatprep.mubr.msk.bf16.mxu1 %vm14355_vm2, %v18330_v23 }
 0x90c   : > { %12725 = vmatmul.mubr.msk.bf16.vlgmr.msra.gmra.mrb[156].mxu0 %vm1603_vm3, %v5326_v33  ;;  %v5476_v20 = vpop.permute.xlu0 %5475  ;;  %12740 = vmatprep.subr.bf16.mxu1 %v18330_v23  ;;  %v5533_v33 = vsel %vm1603_vm3, %v5528_v24, 0 }
 0x90d   : > { %12735 = vmatpush3.bf16.xpose.msra.mxu0 %v5433_v12  ;;  %12736 = vmatprep.mubr.msk.bf16.mxu0 %vm14355_vm2, %v18330_v23 }
 0x90e   : > { %v5628_v63 = vpop.permute.xlu1 %5627  ;;  %12746 = vmatprep.subr.bf16.mxu0 %v18330_v23 }
 0x910   : > { %v5578_v36 = vpop.permute.xlu0 %5577 }
 0x911   : > { %v5583_v41 = vsel %vm1603_vm3, %v5578_v36, 0 }
 0x912   : > { %12731 = vmatmul.mubr.msk.bf16.vlgmr.msra.gmra.mrb[152].mxu1 %vm1603_vm3, %v5376_v4  ;;  %v5626_v1 = vpop.permute.xlu1 %5625 }
 0x913   : > { %12741 = vmatpush3.bf16.xpose.msra.mxu1 %v5483_v22  ;;  %12742 = vmatprep.mubr.msk.bf16.mxu1 %vm14355_vm2, %v18330_v23 }
 0x914   : > { %12737 = vmatmul.mubr.msk.bf16.vlgmr.msra.gmra.mrb[160].mxu0 %vm1603_vm3, %v5426_v48  ;;  %v5576_v40 = vpop.permute.xlu0 %5575  ;;  %12752 = vmatprep.subr.bf16.mxu1 %v18330_v23  ;;  %v5633_v48 = vsel %vm1603_vm3, %v5628_v63, 0 }
 0x915   : > { %12747 = vmatpush3.bf16.xpose.msra.mxu0 %v5533_v33  ;;  %12748 = vmatprep.mubr.msk.bf16.mxu0 %vm14355_vm2, %v18330_v23 }
 0x916   : > { %12758 = vmatprep.subr.bf16.mxu0 %v18330_v23  ;;  %v5728_v9 = vpop.permute.xlu1 %5727 }
 0x918   : > { %v5678_v17 = vpop.permute.xlu0 %5677 }
 0x919   : > { %v5683_v56 = vsel %vm1603_vm3, %v5678_v17, 0 }
 0x91a   : > { %12743 = vmatmul.mubr.msk.bf16.vlgmr.msra.gmra.mrb[156].mxu1 %vm1603_vm3, %v5476_v20  ;;  %v5726_v24 = vpop.permute.xlu1 %5725 }
 0x91b   : > { %12753 = vmatpush3.bf16.xpose.msra.mxu1 %v5583_v41  ;;  %12754 = vmatprep.mubr.msk.bf16.mxu1 %vm14355_vm2, %v18330_v23 }
 0x91c   : > { %12749 = vmatmul.mubr.msk.bf16.vlgmr.msra.gmra.mrb[164].mxu0 %vm1603_vm3, %v5526_v46  ;;  %12764 = vmatprep.subr.bf16.mxu1 %v18330_v23  ;;  %v5676_v4 = vpop.permute.xlu0 %5675  ;;  %v5733_v46 = vsel %vm1603_vm3, %v5728_v9, 0 }
 0x91d   : > { %12759 = vmatpush3.bf16.xpose.msra.mxu0 %v5633_v48  ;;  %12760 = vmatprep.mubr.msk.bf16.mxu0 %vm14355_vm2, %v18330_v23 }
 0x91e   : > { %12770 = vmatprep.subr.bf16.mxu0 %v18330_v23  ;;  %v5828_v12 = vpop.permute.xlu1 %5827 }
 0x91f   : > { %v5833_v22 = vsel %vm1603_vm3, %v5828_v12, 0 }
 0x920   : > { %v5778_v54 = vpop.permute.xlu0 %5777 }
 0x921   : > { %v5783_v63 = vsel %vm1603_vm3, %v5778_v54, 0 }
 0x922   : > { %12755 = vmatmul.mubr.msk.bf16.vlgmr.msra.gmra.mrb[160].mxu1 %vm1603_vm3, %v5576_v40  ;;  %v5826_v36 = vpop.permute.xlu1 %5825 }
 0x923   : > { %12765 = vmatpush3.bf16.xpose.msra.mxu1 %v5683_v56  ;;  %12766 = vmatprep.mubr.msk.bf16.mxu1 %vm14355_vm2, %v18330_v23 }
 0x924   : > { %12761 = vmatmul.mubr.msk.bf16.vlgmr.msra.gmra.mrb[168].mxu0 %vm1603_vm3, %v5626_v1  ;;  %12776 = vmatprep.subr.bf16.mxu1 %v18330_v23  ;;  %v5776_v20 = vpop.permute.xlu0 %5775 }
 0x925   : > { %12771 = vmatpush3.bf16.xpose.msra.mxu0 %v5733_v46  ;;  %12772 = vmatprep.mubr.msk.bf16.mxu0 %vm14355_vm2, %v18330_v23 }
 0x926   : > { %12782 = vmatprep.subr.bf16.mxu0 %v18330_v23  ;;  %v6116_v33 = vpop.permute.xlu1 %6115 }
 0x927   : > { %v6121_v17 = vsel %vm2581_vm4, %v6116_v33, 0 }
 0x928   : > { %v6068_v1 = vpop.permute.xlu0 %6067 }
 0x929   : > { %v6073_v40 = vsel %vm2581_vm4, %v6068_v1, 0 }
 0x92a   : > { %12767 = vmatmul.mubr.msk.bf16.vlgmr.msra.gmra.mrb[164].mxu1 %vm1603_vm3, %v5676_v4 }
 0x92b   : > { %12777 = vmatpush3.bf16.xpose.msra.mxu1 %v5783_v63  ;;  %12778 = vmatprep.mubr.msk.bf16.mxu1 %vm14355_vm2, %v18330_v23 }
 0x92c   : > { %12773 = vmatmul.mubr.msk.bf16.vlgmr.msra.gmra.mrb[172].mxu0 %vm1603_vm3, %v5726_v24  ;;  %12788 = vmatprep.subr.bf16.mxu1 %v18330_v23 }
 0x92d   : > { %12783 = vmatpush3.bf16.xpose.msra.mxu0 %v5833_v22  ;;  %12784 = vmatprep.mubr.msk.bf16.mxu0 %vm14355_vm2, %v18330_v23 }
 0x92e   : > { %12794 = vmatprep.subr.bf16.mxu0 %v18330_v23 }
 0x932   : > { %12779 = vmatmul.mubr.msk.bf16.vlgmr.msra.gmra.mrb[168].mxu1 %vm1603_vm3, %v5776_v20 }
 0x933   : > { %12789 = vmatpush3.bf16.msra.mxu1 %v6073_v40  ;;  %12790 = vmatprep.mubr.msk.bf16.mxu1 %vm14355_vm2, %v18330_v23 }
 0x934   : > { %12785 = vmatmul.mubr.msk.bf16.vlgmr.msra.gmra.mrb[176].mxu0 %vm1603_vm3, %v5826_v36  ;;  %12800 = vmatprep.subr.bf16.mxu1 %v18330_v23 }
 0x935   : > { %12795 = vmatpush3.bf16.msra.mxu0 %v6121_v17  ;;  %12796 = vmatprep.mubr.msk.bf16.mxu0 %vm14355_vm2, %v18330_v23 }
 0x936   : > { %12806 = vmatprep.subr.bf16.mxu0 %v18330_v23 }
 0x960   : > { %v16490_v9 = vpop.f32.mrb[108].mxu1 }
 0x961   : > { %18415 = vst [vmem:[#allocation94_spill] sm:$0xff] %v16490_v9  ;;  %v12600_v41 = vpop.f32.mrb[109].mxu1 }
 0x962   : > { %v4352_v48 = vpop.f32.mrb[110].mxu1  ;;  %v16492_v4 = vpop.f32.mrb[116].mxu0 }
 0x963   : > { %18416 = vst [vmem:[#allocation97_spill] sm:$0xff] %v16492_v4  ;;  %v12601_v56 = vpop.f32.mrb[111].mxu1  ;;  %v12606_v54 = vpop.f32.mrb[117].mxu0 }
 0x964   : > { %v4400_v46 = vpop.f32.mrb[118].mxu0 }
 0x965   : > { %v12607_v12 = vpop.f32.mrb[119].mxu0 }
 0x968   : > { %v16496_v20 = vpop.f32.mrb[112].mxu1 }
 0x969   : > { %18417 = vst [vmem:[#allocation95_spill] sm:$0xff] %v16496_v20  ;;  %v12612_v63 = vpop.f32.mrb[113].mxu1 }
 0x96a   : > { %v4448_v36 = vpop.f32.mrb[114].mxu1 }
 0x96b   : > { %v12613_v22 = vpop.f32.mrb[115].mxu1 }
 0x96c   : > { %v16498_v1 = vpop.f32.mrb[120].mxu0 }
 0x96d   : > { %18418 = vst [vmem:[#allocation96_spill] sm:$0xff] %v16498_v1  ;;  %v12618_v40 = vpop.f32.mrb[121].mxu0 }
 0x96e   : > { %v4496_v17 = vpop.f32.mrb[122].mxu0 }
 0x96f   : > { %v12619_v41 = vpop.f32.mrb[123].mxu0 }
 0x970   : > { %v16502_v48 = vpop.f32.mrb[116].mxu1 }
 0x971   : > { %18419 = vst [vmem:[#allocation98_spill] sm:$0xff] %v16502_v48  ;;  %v12624_v24 = vpop.f32.mrb[117].mxu1 }
 0x972   : > { %v4544_v56 = vpop.f32.mrb[118].mxu1 }
 0x973   : > { %v12625_v54 = vpop.f32.mrb[119].mxu1 }
 0x974   : > { %v16504_v46 = vpop.f32.mrb[124].mxu0 }
 0x975   : > { %18420 = vst [vmem:[#allocation99_spill] sm:$0xff] %v16504_v46  ;;  %v12630_v63 = vpop.f32.mrb[125].mxu0 }
 0x976   : > { %v4592_v36 = vpop.f32.mrb[126].mxu0 }
 0x977   : > { %v12631_v22 = vpop.f32.mrb[127].mxu0 }
 0x978   : > { %v16508_v9 = vpop.f32.mrb[120].mxu1 }
 0x979   : > { %18421 = vst [vmem:[#allocation100_spill] sm:$0xff] %v16508_v9  ;;  %v12636_v4 = vpop.f32.mrb[121].mxu1 }
 0x97a   : > { %v4640_v33 = vpop.f32.mrb[122].mxu1 }
 0x97b   : > { %v12637_v40 = vpop.f32.mrb[123].mxu1 }
 0x97c   : > { %v16510_v17 = vpop.f32.mrb[128].mxu0 }
 0x97d   : > { %18422 = vst [vmem:[#allocation101_spill] sm:$0xff] %v16510_v17  ;;  %v12642_v41 = vpop.f32.mrb[129].mxu0 }
 0x97e   : > { %v4688_v56 = vpop.f32.mrb[130].mxu0 }
 0x97f   : > { %v12643_v54 = vpop.f32.mrb[131].mxu0 }
 0x980   : > { %v16514_v20 = vpop.f32.mrb[124].mxu1 }
 0x981   : > { %18423 = vst [vmem:[#allocation102_spill] sm:$0xff] %v16514_v20  ;;  %v12648_v1 = vpop.f32.mrb[125].mxu1 }
 0x982   : > { %v4736_v12 = vpop.f32.mrb[126].mxu1 }
 0x983   : > { %v12649_v63 = vpop.f32.mrb[127].mxu1 }
 0x984   : > { %v16516_v36 = vpop.f32.mrb[132].mxu0 }
 0x985   : > { %18424 = vst [vmem:[#allocation103_spill] sm:$0xff] %v16516_v36  ;;  %v12654_v33 = vpop.f32.mrb[133].mxu0 }
 0x986   : > { %v4784_v22 = vpop.f32.mrb[134].mxu0 }
 0x987   : > { %v12655_v40 = vpop.f32.mrb[135].mxu0 }
 0x988   : > { %v16520_v48 = vpop.f32.mrb[128].mxu1 }
 0x989   : > { %18425 = vst [vmem:[#allocation104_spill] sm:$0xff] %v16520_v48  ;;  %v12660_v46 = vpop.f32.mrb[129].mxu1 }
 0x98a   : > { %v4832_v24 = vpop.f32.mrb[130].mxu1  ;;  %v18432_v46 = vld [vmem:[#allocation57_spill] sm:$0xff] }
 0x98b   : > { %v12661_v41 = vpop.f32.mrb[131].mxu1 }
 0x98c   : > { %v16522_v56 = vpop.f32.mrb[136].mxu0 }
 0x98d   : > { %18426 = vst [vmem:[#allocation105_spill] sm:$0xff] %v16522_v56  ;;  %v12666_v12 = vpop.f32.mrb[137].mxu0  ;;  %v18431_v56 = vld [vmem:[#allocation58_spill] sm:$0xff] }
 0x98e   : > { %v4880_v54 = vpop.f32.mrb[138].mxu0 }
 0x98f   : > { %v12667_v63 = vpop.f32.mrb[139].mxu0 }
 0x990   : > { %v16526_v9 = vpop.f32.mrb[132].mxu1 }
 0x991   : > { %18427 = vst [vmem:[#allocation106_spill] sm:$0xff] %v16526_v9  ;;  %v12672_v17 = vpop.f32.mrb[133].mxu1 }
 0x992   : > { %v4928_v4 = vpop.f32.mrb[134].mxu1 }
 0x993   : > { %v12673_v33 = vpop.f32.mrb[135].mxu1 }
 0x994   : > { %v16528_v22 = vpop.f32.mrb[140].mxu0 }
 0x995   : > { %18428 = vst [vmem:[#allocation107_spill] sm:$0xff] %v16528_v22  ;;  %v12678_v24 = vpop.f32.mrb[141].mxu0 }
 0x996   : > { %v4976_v40 = vpop.f32.mrb[142].mxu0 }
 0x997   : > { %v12679_v41 = vpop.f32.mrb[143].mxu0 }
 0x9c5   : > { %v16532_v20 = vpop.f32.mrb[136].mxu1 }
 0x9c6   : > { %18429 = vst [vmem:[#allocation108_spill] sm:$0xff] %v16532_v20  ;;  %v12684_v36 = vpop.f32.mrb[137].mxu1  ;;  %v18434_v20 = vld [vmem:[#allocation60_spill] sm:$0xff] }
 0x9c7   : > { %v5024_v1 = vpop.f32.mrb[138].mxu1  ;;  %v16534_v12 = vpop.f32.mrb[144].mxu0 }
 0x9c8   : > { %18430 = vst [vmem:[#allocation109_spill] sm:$0xff] %v16534_v12  ;;  %v12685_v17 = vpop.f32.mrb[139].mxu1  ;;  %v12690_v4 = vpop.f32.mrb[145].mxu0 }
 0x9c9   : > { %v5072_v63 = vpop.f32.mrb[146].mxu0 }
 0x9ca   : > { %v12691_v33 = vpop.f32.mrb[147].mxu0  ;;  %v18433_v63 = vld [vmem:[#allocation59_spill] sm:$0xff] }
 0x9cd   : > { %v5119_v48 = vpop.f32.mrb[140].mxu1 }
 0x9ce   : > { %v16539_v45 = vadd.f32 %v5119_v48, %v18431_v56  ;;  %v12696_v24 = vpop.f32.mrb[141].mxu1 }
 0x9cf   : > { %v5122_v40 = vpop.f32.mrb[142].mxu1  ;;  %v5169_v41 = vpop.f32.mrb[148].mxu0 }
 0x9d0   : > { %v16542_v9 = vadd.f32 %v5169_v41, %v18432_v46  ;;  %v12697_v36 = vpop.f32.mrb[143].mxu1  ;;  %v12702_v1 = vpop.f32.mrb[149].mxu0  ;;  %v5875_v22 = vsel %vm2385_vm5, %v16539_v45, -inf }
 0x9d1   : > { %v5172_v54 = vpop.f32.mrb[150].mxu0  ;;  %5876 = vmax.xlane.f32.xlu0 %v5875_v22 }
 0x9d2   : > { %v12703_v17 = vpop.f32.mrb[151].mxu0  ;;  %v5878_v4 = vsel %vm2385_vm5, %v16542_v9, -inf }
 0x9d3   : > { %5879 = vmax.xlane.f32.xlu1 %v5878_v4 }
 0x9d5   : > { %v5219_v48 = vpop.f32.mrb[144].mxu1 }
 0x9d6   : > { %v16549_v33 = vadd.f32 %v5219_v48, %v18433_v63  ;;  %v12708_v24 = vpop.f32.mrb[145].mxu1 }
 0x9d7   : > { %v5222_v40 = vpop.f32.mrb[146].mxu1  ;;  %v5269_v41 = vpop.f32.mrb[152].mxu0 }
 0x9d8   : > { %v16552_v36 = vadd.f32 %v5269_v41, %v18434_v20  ;;  %v12709_v1 = vpop.f32.mrb[147].mxu1  ;;  %v12714_v12 = vpop.f32.mrb[153].mxu0  ;;  %v5881_v22 = vsel %vm2385_vm5, %v16549_v33, -inf }
 0x9d9   : > { %v5272_v54 = vpop.f32.mrb[154].mxu0  ;;  %5882 = vmax.xlane.f32.xlu0 %v5881_v22 }
 0x9da   : > { %v12715_v17 = vpop.f32.mrb[155].mxu0  ;;  %v5884_v4 = vsel %vm2385_vm5, %v16552_v36, -inf }
 0x9dd   : > { %5885 = vmax.xlane.f32.xlu0 %v5884_v4  ;;  %v5319_v48 = vpop.f32.mrb[148].mxu1 }
 0x9de   : > { %v16559_v24 = vadd.f32 %v5319_v48, %v18435_v61  ;;  %v12720_v40 = vpop.f32.mrb[149].mxu1  ;;  %v18437_v61 = vld [vmem:[#allocation63_spill] sm:$0xff] }
 0x9df   : > { %v5322_v50 = vpop.f32.mrb[150].mxu1  ;;  %v5369_v41 = vpop.f32.mrb[156].mxu0 }
 0x9e0   : > { %v16562_v1 = vadd.f32 %v5369_v41, %v18436_v28  ;;  %v12721_v12 = vpop.f32.mrb[151].mxu1  ;;  %v12726_v20 = vpop.f32.mrb[157].mxu0  ;;  %v5887_v22 = vsel %vm2385_vm5, %v16559_v24, -inf  ;;  %v18438_v28 = vld [vmem:[#allocation64_spill] sm:$0xff] }
 0x9e1   : > { %v5372_v54 = vpop.f32.mrb[158].mxu0  ;;  %5888 = vmax.xlane.f32.xlu0 %v5887_v22 }
 0x9e2   : > { %v12727_v17 = vpop.f32.mrb[159].mxu0  ;;  %v5890_v4 = vsel %vm2385_vm5, %v16562_v1, -inf }
 0x9e3   : > { %5891 = vmax.xlane.f32.xlu1 %v5890_v4 }
 0x9e5   : > { %v5419_v48 = vpop.f32.mrb[152].mxu1 }
 0x9e6   : > { %v16569_v40 = vadd.f32 %v5419_v48, %v18437_v61  ;;  %v12732_v50 = vpop.f32.mrb[153].mxu1  ;;  %v18439_v61 = vld [vmem:[#allocation67_spill] sm:$0xff] }
 0x9e7   : > { %v5422_v63 = vpop.f32.mrb[154].mxu1  ;;  %v5469_v41 = vpop.f32.mrb[160].mxu0 }
 0x9e8   : > { %v16572_v12 = vadd.f32 %v5469_v41, %v18438_v28  ;;  %v12733_v20 = vpop.f32.mrb[155].mxu1  ;;  %v12738_v46 = vpop.f32.mrb[161].mxu0  ;;  %v5893_v22 = vsel %vm2385_vm5, %v16569_v40, -inf  ;;  %v18440_v28 = vld [vmem:[#allocation65_spill] sm:$0xff] }
 0x9e9   : > { %v5472_v54 = vpop.f32.mrb[162].mxu0  ;;  %5894 = vmax.xlane.f32.xlu0 %v5893_v22 }
 0x9ea   : > { %v12739_v17 = vpop.f32.mrb[163].mxu0  ;;  %v5896_v4 = vsel %vm2385_vm5, %v16572_v12, -inf }
 0x9eb   : > { %5897 = vmax.xlane.f32.xlu1 %v5896_v4 }
 0x9ed   : > { %v5519_v48 = vpop.f32.mrb[156].mxu1 }
 0x9ee   : > { %v16579_v50 = vadd.f32 %v5519_v48, %v18439_v61  ;;  %v12744_v63 = vpop.f32.mrb[157].mxu1  ;;  %v18441_v61 = vld [vmem:[#allocation69_spill] sm:$0xff] }
 0x9ef   : > { %v5522_v56 = vpop.f32.mrb[158].mxu1  ;;  %v5569_v41 = vpop.f32.mrb[164].mxu0 }
 0x9f0   : > { %v16582_v20 = vadd.f32 %v5569_v41, %v18440_v28  ;;  %v12745_v46 = vpop.f32.mrb[159].mxu1  ;;  %v12750_v19 = vpop.f32.mrb[165].mxu0  ;;  %v5899_v22 = vsel %vm2385_vm5, %v16579_v50, -inf  ;;  %v18442_v28 = vld [vmem:[#allocation66_spill] sm:$0xff] }
 0x9f1   : > { %v5572_v54 = vpop.f32.mrb[166].mxu0  ;;  %5900 = vmax.xlane.f32.xlu0 %v5899_v22 }
 0x9f2   : > { %v12751_v17 = vpop.f32.mrb[167].mxu0  ;;  %v5902_v4 = vsel %vm2385_vm5, %v16582_v20, -inf }
 0x9f3   : > { %5903 = vmax.xlane.f32.xlu1 %v5902_v4 }
 0x9f5   : > { %v5619_v48 = vpop.f32.mrb[160].mxu1 }
 0x9f6   : > { %v16589_v63 = vadd.f32 %v5619_v48, %v18441_v61  ;;  %v12756_v56 = vpop.f32.mrb[161].mxu1  ;;  %v18443_v61 = vld [vmem:[#allocation70_spill] sm:$0xff] }
 0x9f7   : > { %v5622_v39 = vpop.f32.mrb[162].mxu1  ;;  %v5669_v41 = vpop.f32.mrb[168].mxu0 }
 0x9f8   : > { %v16592_v46 = vadd.f32 %v5669_v41, %v18442_v28  ;;  %v12757_v19 = vpop.f32.mrb[163].mxu1  ;;  %v12762_v11 = vpop.f32.mrb[169].mxu0  ;;  %v5905_v22 = vsel %vm2385_vm5, %v16589_v63, -inf  ;;  %v18444_v28 = vld [vmem:[#allocation68_spill] sm:$0xff] }
 0x9f9   : > { %v5672_v54 = vpop.f32.mrb[170].mxu0  ;;  %5906 = vmax.xlane.f32.xlu0 %v5905_v22 }
 0x9fa   : > { %v12763_v17 = vpop.f32.mrb[171].mxu0  ;;  %v5908_v4 = vsel %vm2385_vm5, %v16592_v46, -inf }
 0x9fb   : > { %5909 = vmax.xlane.f32.xlu1 %v5908_v4 }
 0x9fd   : > { %v5719_v48 = vpop.f32.mrb[164].mxu1 }
 0x9fe   : > { %v16599_v56 = vadd.f32 %v5719_v48, %v18443_v61  ;;  %v12768_v39 = vpop.f32.mrb[165].mxu1  ;;  %v18445_v61 = vld [vmem:[#allocation71_spill] sm:$0xff] }
 0x9ff   : > { %v5722_v21 = vpop.f32.mrb[166].mxu1  ;;  %v5769_v41 = vpop.f32.mrb[172].mxu0 }
 0xa00   : > { %v16602_v19 = vadd.f32 %v5769_v41, %v18444_v28  ;;  %v12769_v11 = vpop.f32.mrb[167].mxu1  ;;  %v12774_v49 = vpop.f32.mrb[173].mxu0  ;;  %v5911_v22 = vsel %vm2385_vm5, %v16599_v56, -inf }
 0xa01   : > { %v5772_v54 = vpop.f32.mrb[174].mxu0  ;;  %5912 = vmax.xlane.f32.xlu0 %v5911_v22 }
 0xa02   : > { %v12775_v17 = vpop.f32.mrb[175].mxu0  ;;  %v5914_v4 = vsel %vm2385_vm5, %v16602_v19, -inf  ;;  %v18446_v54 = vld [vmem:[#allocation42_spill] sm:$0xff] }
 0xa03   : > { %5915 = vmax.xlane.f32.xlu1 %v5914_v4  ;;  %v18447_v17 = vld [vmem:[#allocation41_spill] sm:$0xff]  ;;  %v18448_v4 = vld [vmem:[#allocation72_spill] sm:$0xff] }
 0xa05   : > { %v5819_v48 = vpop.f32.mrb[168].mxu1 }
 0xa06   : > { %v16609_v39 = vadd.f32 %v5819_v48, %v18445_v61  ;;  %v12780_v21 = vpop.f32.mrb[169].mxu1 }
 0xa07   : > { %v5822_v29 = vpop.f32.mrb[170].mxu1  ;;  %v5869_v41 = vpop.f32.mrb[176].mxu0 }
 0xa08   : > { %v12781_v28 = vpop.f32.mrb[171].mxu1  ;;  %v12786_v11 = vpop.f32.mrb[177].mxu0  ;;  %v5917_v49 = vsel %vm2385_vm5, %v16609_v39, -inf  ;;  %v16618_v48 = vadd.f32 %v5869_v41, %v18448_v4 }
 0xa09   : > { %v5872_v2 = vpop.f32.mrb[178].mxu0  ;;  %5918 = vmax.xlane.f32.xlu0 %v5917_v49  ;;  %v16622_v28 = vpop.permute.xlu1 %6211 }
 0xa0a   : > { %v12787_v22 = vpop.f32.mrb[179].mxu0  ;;  %v5920_v29 = vsel %vm2385_vm5, %v16618_v48, -inf  ;;  %v16626_v2 = vpop.permute.xlu0 %6163 }
 0xa0d   : > { %v16624_v21 = vpop.permute.xlu1 %6307 }
 0xa0e   : > { %v16630_v49 = vpop.permute.xlu0 %6259 }
 0xa11   : > { %v16628_v11 = vpop.permute.xlu1 %6403 }
 0xa12   : > { %18449 = vst [vmem:[#allocation110_spill] sm:$0xff] %v16628_v11 }
 0xa14   : > { %6691 = vrot.lane.b32.xlu1 %v18446_v54, %s14361_s26 }
 0xa15   : > { %v16632_v22 = vpop.permute.xlu1 %6499 }
 0xa16   : > { %18450 = vst [vmem:[#allocation111_spill] sm:$0xff] %v16632_v22 }
 0xa19   : > { %v16636_v41 = vpop.permute.xlu1 %6547 }
 0xa1a   : > { %18451 = vst [vmem:[#allocation112_spill] sm:$0xff] %v16636_v41 }
 0xa1d   : > { %v16640_v4 = vpop.permute.xlu1 %6595 }
 0xa1e   : > { %18453 = vst [vmem:[#allocation114_spill] sm:$0xff] %v16640_v4 }
 0xa1f   : > { %6643 = vrot.lane.b32.xlu0 %v18447_v17, %s14361_s26  ;;  %v16634_v17 = vpop.permute.xlu0 %6355 }
 0xa23   : > { %v16638_v54 = vpop.permute.xlu0 %6451 }
 0xa24   : > { %18452 = vst [vmem:[#allocation113_spill] sm:$0xff] %v16638_v54 }
 0xa38   : > { %5921 = vmax.xlane.f32.xlu1 %v5920_v29 }
 0xa5e   : > { %v5877_v29 = vpop.xlane.xlu0 %5876 }
 0xa5f   : > { %v5923_v61 = vsub.f32 %v16539_v45, %v5877_v29 }
 0xa60   : > { %v5880_v26 = vpop.xlane.xlu1 %5879 }
 0xa61   : > { %v5939_v3 = vmul.f32 1.442695, %v5923_v61  ;;  %v5924_v44 = vsub.f32 %v16542_v9, %v5880_v26 }
 0xa63   : > { %13713 = vpow2.f32 %v5939_v3  ;;  %v5941_v6 = vmul.f32 1.442695, %v5924_v44 }
 0xa65   : > { %13715 = vpow2.f32 %v5941_v6 }
 0xa66   : > { %v5883_v30 = vpop.xlane.xlu0 %5882 }
 0xa67   : > { %v5925_v22 = vsub.f32 %v16549_v33, %v5883_v30 }
 0xa69   : > { %v5943_v11 = vmul.f32 1.442695, %v5925_v22 }
 0xa6a   : > { %v5886_v15 = vpop.xlane.xlu0 %5885 }
 0xa6b   : > { %13717 = vpow2.f32 %v5943_v11  ;;  %v5926_v41 = vsub.f32 %v16552_v36, %v5886_v15 }
 0xa6d   : > { %v16646_v54 = vpop.eup %13713  ;;  %v5945_v4 = vmul.f32 1.442695, %v5926_v41 }
 0xa6e   : > { %v5889_v16 = vpop.xlane.xlu0 %5888  ;;  %v5971_v45 = vsel %vm2385_vm5, %v16646_v54, 0.0 }
 0xa6f   : > { %v16650_v61 = vpop.eup %13715  ;;  %13719 = vpow2.f32 %v5945_v4  ;;  %v5927_v6 = vsub.f32 %v16559_v24, %v5889_v16  ;;  %5972 = vadd.xlane.f32.xlu0 %v5971_v45 }
 0xa70   : > { %v5892_v44 = vpop.xlane.xlu1 %5891  ;;  %v5974_v30 = vsel %vm2385_vm5, %v16650_v61, 0.0 }
 0xa71   : > { %v5947_v3 = vmul.f32 1.442695, %v5927_v6  ;;  %v5928_v15 = vsub.f32 %v16562_v1, %v5892_v44  ;;  %5975 = vadd.xlane.f32.xlu1 %v5974_v30 }
 0xa73   : > { %13721 = vpow2.f32 %v5947_v3  ;;  %v5949_v26 = vmul.f32 1.442695, %v5928_v15 }
 0xa75   : > { %v16656_v9 = vpop.eup %13717  ;;  %13723 = vpow2.f32 %v5949_v26 }
 0xa76   : > { %v5895_v33 = vpop.xlane.xlu0 %5894  ;;  %v5977_v36 = vsel %vm2385_vm5, %v16656_v9, 0.0 }
 0xa77   : > { %v5929_v16 = vsub.f32 %v16569_v40, %v5895_v33  ;;  %5978 = vadd.xlane.f32.xlu0 %v5977_v36 }
 0xa78   : > { %v5898_v24 = vpop.xlane.xlu1 %5897 }
 0xa79   : > { %v16661_v4 = vpop.eup %13719  ;;  %v5951_v11 = vmul.f32 1.442695, %v5929_v16  ;;  %v5930_v22 = vsub.f32 %v16572_v12, %v5898_v24 }
 0xa7a   : > { %v5980_v1 = vsel %vm2385_vm5, %v16661_v4, 0.0 }
 0xa7b   : > { %13725 = vpow2.f32 %v5951_v11  ;;  %v5953_v41 = vmul.f32 1.442695, %v5930_v22  ;;  %5981 = vadd.xlane.f32.xlu1 %v5980_v1 }
 0xa7d   : > { %v16666_v29 = vpop.eup %13721  ;;  %13727 = vpow2.f32 %v5953_v41 }
 0xa7e   : > { %v5901_v45 = vpop.xlane.xlu0 %5900  ;;  %v5983_v40 = vsel %vm2385_vm5, %v16666_v29, 0.0 }
 0xa7f   : > { %v16670_v6 = vpop.eup %13723  ;;  %v5931_v44 = vsub.f32 %v16579_v50, %v5901_v45  ;;  %5984 = vadd.xlane.f32.xlu0 %v5983_v40 }
 0xa80   : > { %v5904_v30 = vpop.xlane.xlu1 %5903  ;;  %v5986_v12 = vsel %vm2385_vm5, %v16670_v6, 0.0 }
 0xa81   : > { %v5955_v3 = vmul.f32 1.442695, %v5931_v44  ;;  %v5932_v15 = vsub.f32 %v16582_v20, %v5904_v30  ;;  %5987 = vadd.xlane.f32.xlu1 %v5986_v12 }
 0xa83   : > { %13729 = vpow2.f32 %v5955_v3  ;;  %v5957_v26 = vmul.f32 1.442695, %v5932_v15 }
 0xa85   : > { %v16676_v33 = vpop.eup %13725  ;;  %13731 = vpow2.f32 %v5957_v26 }
 0xa86   : > { %v5907_v36 = vpop.xlane.xlu0 %5906  ;;  %v5989_v16 = vsel %vm2385_vm5, %v16676_v33, 0.0 }
 0xa87   : > { %v16680_v24 = vpop.eup %13727  ;;  %v5933_v50 = vsub.f32 %v16589_v63, %v5907_v36  ;;  %5990 = vadd.xlane.f32.xlu0 %v5989_v16 }
 0xa88   : > { %v5910_v11 = vpop.xlane.xlu1 %5909  ;;  %v5992_v22 = vsel %vm2385_vm5, %v16680_v24, 0.0 }
 0xa89   : > { %v5959_v20 = vmul.f32 1.442695, %v5933_v50  ;;  %v5934_v1 = vsub.f32 %v16592_v46, %v5910_v11  ;;  %5993 = vadd.xlane.f32.xlu1 %v5992_v22 }
 0xa8b   : > { %13733 = vpow2.f32 %v5959_v20  ;;  %v5961_v41 = vmul.f32 1.442695, %v5934_v1 }
 0xa8d   : > { %v16686_v45 = vpop.eup %13729  ;;  %13735 = vpow2.f32 %v5961_v41 }
 0xa8e   : > { %v5913_v40 = vpop.xlane.xlu0 %5912  ;;  %v5995_v44 = vsel %vm2385_vm5, %v16686_v45, 0.0 }
 0xa8f   : > { %v16690_v30 = vpop.eup %13731  ;;  %v5935_v63 = vsub.f32 %v16599_v56, %v5913_v40  ;;  %5996 = vadd.xlane.f32.xlu1 %v5995_v44 }
 0xa90   : > { %v5916_v12 = vpop.xlane.xlu1 %5915  ;;  %v5998_v3 = vsel %vm2385_vm5, %v16690_v30, 0.0 }
 0xa91   : > { %v5963_v46 = vmul.f32 1.442695, %v5935_v63  ;;  %v5936_v15 = vsub.f32 %v16602_v19, %v5916_v12  ;;  %5999 = vadd.xlane.f32.xlu0 %v5998_v3 }
 0xa93   : > { %13737 = vpow2.f32 %v5963_v46  ;;  %v5965_v26 = vmul.f32 1.442695, %v5936_v15 }
 0xa94   : > { %v16717_v40 = vpop.permute.xlu1 %6691 }
 0xa95   : > { %v16696_v36 = vpop.eup %13733  ;;  %13739 = vpow2.f32 %v5965_v26 }
 0xa96   : > { %v6001_v16 = vsel %vm2385_vm5, %v16696_v36, 0.0  ;;  %v5919_v1 = vpop.xlane.xlu0 %5918 }
 0xa97   : > { %v16700_v50 = vpop.eup %13735  ;;  %6002 = vadd.xlane.f32.xlu1 %v6001_v16  ;;  %v5937_v41 = vsub.f32 %v16609_v39, %v5919_v1  ;;  %v18458_v1 = vld [vmem:[#allocation55_spill] sm:$0xff] }
 0xa98   : > { %v6004_v56 = vsel %vm2385_vm5, %v16700_v50, 0.0 }
 0xa99   : > { %6005 = vadd.xlane.f32.xlu0 %v6004_v56  ;;  %v5967_v44 = vmul.f32 1.442695, %v5937_v41  ;;  %v18457_v56 = vld [vmem:[#allocation51_spill] sm:$0xff] }
 0xa9b   : > { %13741 = vpow2.f32 %v5967_v44 }
 0xa9d   : > { %v16704_v11 = vpop.eup %13737 }
 0xa9e   : > { %v6007_v19 = vsel %vm2385_vm5, %v16704_v11, 0.0 }
 0xa9f   : > { %v16708_v22 = vpop.eup %13739  ;;  %6008 = vadd.xlane.f32.xlu1 %v6007_v19 }
 0xaa0   : > { %v6010_v20 = vsel %vm2385_vm5, %v16708_v22, 0.0 }
 0xaa1   : > { %6011 = vadd.xlane.f32.xlu0 %v6010_v20 }
 0xaa5   : > { %v16720_v46 = vpop.eup %13741 }
 0xaa6   : > { %v6013_v15 = vsel %vm2385_vm5, %v16720_v46, 0.0 }
 0xab0   : > { %6787 = vrot.lane.b32.xlu1 %v15845_v31, %s14361_s26 }
 0xab7   : > { %6739 = vrot.lane.b32.xlu0 %v15851_v60, %s14361_s26  ;;  %s9315_s26 = scalar_lea.vmem [#allocation17], %s11612_s24 }
 0xac5   : > { %v5922_v63 = vpop.xlane.xlu1 %5921 }
 0xac6   : > { %v5938_v12 = vsub.f32 %v16618_v48, %v5922_v63  ;;  %v18459_v63 = vld [vmem:[#allocation113_spill] sm:$0xff] }
 0xac8   : > { %v5969_v3 = vmul.f32 1.442695, %v5938_v12  ;;  %v6457_v12 = vsel %vm2581_vm4, %v18459_v63, 0 }
 0xaca   : > { %13743 = vpow2.f32 %v5969_v3  ;;  %v18460_v3 = vld [vmem:[#allocation46_spill] sm:$0xff] }
 0xad4   : > { %v16724_v26 = vpop.eup %13743  ;;  %6014 = vadd.xlane.f32.xlu1 %v6013_v15  ;;  %v18461_v15 = vld [vmem:[#allocation53_spill] sm:$0xff] }
 0xad5   : > { %v6016_v39 = vsel %vm2385_vm5, %v16724_v26, 0.0 }
 0xad6   : > { %6017 = vadd.xlane.f32.xlu0 %v6016_v39 }
 0xae5   : > { %6887 = vrot.lane.b32.xlu1 %v15100_v42, %s14362_s16  ;;  %v16744_v42 = vpop.permute.xlu0 %6643 }
 0xae9   : > { %6885 = vrot.lane.b32.xlu1 %v15248_v43, %s14363_s3 }
 0xaec   : > { %6837 = vrot.lane.b32.xlu0 %v15136_v57, %s14362_s16 }
 0xaed   : > { %6987 = vrot.lane.b32.xlu1 %v15125_v14, %s14362_s16 }
 0xaf0   : > { %6835 = vrot.lane.b32.xlu0 %v15269_v52, %s14363_s3  ;;  %v6169_v52 = vsel %vm2581_vm4, %v16626_v2, 0 }
 0xaf1   : > { %6985 = vrot.lane.b32.xlu1 %v15271_v58, %s14363_s3 }
 0xaf4   : > { %6937 = vrot.lane.b32.xlu0 %v15111_v37, %s14362_s16 }
 0xaf5   : > { %7087 = vrot.lane.b32.xlu1 %v15153_v25, %s14362_s16 }
 0xaf8   : > { %6935 = vrot.lane.b32.xlu0 %v15257_v62, %s14363_s3 }
 0xaf9   : > { %7085 = vrot.lane.b32.xlu1 %v15316_v51, %s14363_s3 }
 0xafc   : > { %7037 = vrot.lane.b32.xlu0 %v15140_v59, %s14362_s16  ;;  %v5973_v14 = vpop.xlane.xlu0 %5972 }
 0xafd   : > { %13745 = vrcp.f32 %v5973_v14  ;;  %7187 = vrot.lane.b32.xlu1 %v15173_v7, %s14362_s16 }
 0xafe   : > { %v5976_v37 = vpop.xlane.xlu1 %5975 }
 0xaff   : > { %13747 = vrcp.f32 %v5976_v37  ;;  %v18462_v37 = vld [vmem:[#allocation111_spill] sm:$0xff] }
 0xb00   : > { %7035 = vrot.lane.b32.xlu0 %v15284_v34, %s14363_s3  ;;  %v6217_v34 = vsel %vm2581_vm4, %v16622_v28, 0 }
 0xb01   : > { %7185 = vrot.lane.b32.xlu1 %v15354_v27, %s14363_s3 }
 0xb04   : > { %7137 = vrot.lane.b32.xlu0 %v15164_v0, %s14362_s16  ;;  %v5979_v57 = vpop.xlane.xlu0 %5978 }
 0xb05   : > { %13749 = vrcp.f32 %v5979_v57  ;;  %7287 = vrot.lane.b32.xlu1 %v15195_v13, %s14362_s16  ;;  %v6505_v57 = vsel %vm2581_vm4, %v18462_v37, 0 }
 0xb07   : > { %v13746_v59 = vpop.eup %13745 }
 0xb08   : > { %v5982_v25 = vpop.xlane.xlu1 %5981  ;;  %7135 = vrot.lane.b32.xlu0 %v15336_v53, %s14363_s3  ;;  %v6035_v7 = vmul.f32 %v13746_v59, %v16646_v54  ;;  %v18463_v59 = vld [vmem:[#allocation54_spill] sm:$0xff] }
 0xb09   : > { %v13748_v43 = vpop.eup %13747  ;;  %13751 = vrcp.f32 %v5982_v25  ;;  %7285 = vrot.lane.b32.xlu1 %v15318_v5, %s14363_s3 }
 0xb0a   : > { %v6051_v62 = vpack.c.bf16 %v6035_v7, %v6035_v7  ;;  %v6036_v0 = vmul.f32 %v13748_v43, %v16650_v61  ;;  %v6361_v61 = vsel %vm2581_vm4, %v16634_v17, 0  ;;  %v18456_v17 = vld [vmem:[#allocation110_spill] sm:$0xff]  ;;  %v18464_v43 = vld [vmem:[#allocation73_spill] sm:$0xff] }
 0xb0b   : > { %v6409_v16 = vsel %vm2581_vm4, %v18456_v17, 0 }
 0xb0c   : > { %7237 = vrot.lane.b32.xlu0 %v15186_v35, %s14362_s16  ;;  %12791 = vmatmul.mubr.msk.bf16.vlgmr.msra.gmra.mrb[172].mxu1 %vm2385_vm5, %v6051_v62  ;;  %v5985_v13 = vpop.xlane.xlu0 %5984  ;;  %v6052_v58 = vpack.c.bf16 %v6036_v0, %v6036_v0 }
 0xb0d   : > { %12801 = vmatpush3.bf16.msra.mxu1 %v6169_v52  ;;  %13753 = vrcp.f32 %v5985_v13  ;;  %7387 = vrot.lane.b32.xlu1 %v18341_v55, %s14362_s16  ;;  %v6265_v55 = vsel %vm2581_vm4, %v16630_v49, 0  ;;  %v18465_v52 = vld [vmem:[#allocation112_spill] sm:$0xff] }
 0xb0e   : > { %12797 = vmatmul.mubr.msk.bf16.vlgmr.msra.gmra.mrb[180].mxu0 %vm2385_vm5, %v6052_v58  ;;  %v5988_v51 = vpop.xlane.xlu1 %5987  ;;  %12802 = vmatprep.mubr.msk.bf16.mxu1 %vm14355_vm2, %v18330_v23  ;;  %v6553_v13 = vsel %vm2581_vm4, %v18465_v52, 0  ;;  %v18466_v58 = vld [vmem:[#allocation52_spill] sm:$0xff] }
 0xb0f   : > { %v13750_v5 = vpop.eup %13749  ;;  %12807 = vmatpush3.bf16.msra.mxu0 %v6217_v34  ;;  %13755 = vrcp.f32 %v5988_v51  ;;  %12812 = vmatprep.subr.bf16.mxu1 %v18330_v23  ;;  %v18467_v34 = vld [vmem:[#allocation76_spill] sm:$0xff] }
 0xb10   : > { %7235 = vrot.lane.b32.xlu0 %v15369_v38, %s14363_s3  ;;  %v6037_v35 = vmul.f32 %v13750_v5, %v16656_v9  ;;  %12808 = vmatprep.mubr.msk.bf16.mxu0 %vm14355_vm2, %v18330_v23 }
 0xb11   : > { %7385 = vrot.lane.b32.xlu1 %v18345_v47, %s14363_s3  ;;  %12818 = vmatprep.subr.bf16.mxu0 %v18330_v23 }
 0xb12   : > { %v6053_v53 = vpack.c.bf16 %v6037_v35, %v6037_v35  ;;  %v18468_v35 = vld [vmem:[#allocation114_spill] sm:$0xff] }
 0xb13   : > { %v13752_v27 = vpop.eup %13751 }
 0xb14   : > { %7337 = vrot.lane.b32.xlu0 %v15208_v18, %s14362_s16  ;;  %12803 = vmatmul.mubr.msk.bf16.vlgmr.msra.gmra.mrb[176].mxu1 %vm2385_vm5, %v6053_v53  ;;  %v5991_v38 = vpop.xlane.xlu0 %5990  ;;  %v6038_v54 = vmul.f32 %v13752_v27, %v16661_v4  ;;  %v6313_v18 = vsel %vm2581_vm4, %v16624_v21, 0  ;;  %v6601_v53 = vsel %vm2581_vm4, %v18468_v35, 0  ;;  %v18469_v27 = vld [vmem:[#allocation74_spill] sm:$0xff] }
 0xb15   : > { %12813 = vmatpush3.bf16.msra.mxu1 %v6265_v55  ;;  %13757 = vrcp.f32 %v5991_v38  ;;  %7487 = vrot.lane.b32.xlu1 %v18349_v10, %s14362_s16 }
 0xb16   : > { %v5994_v47 = vpop.xlane.xlu1 %5993  ;;  %v6054_v48 = vpack.c.bf16 %v6038_v54, %v6038_v54  ;;  %12814 = vmatprep.mubr.msk.bf16.mxu1 %vm14355_vm2, %v18330_v23  ;;  %12824 = vmatprep.subr.bf16.mxu1 %v18330_v23  ;;  %v18470_v54 = vld [vmem:[#allocation78_spill] sm:$0xff] }
 0xb17   : > { %v13754_v28 = vpop.eup %13753  ;;  %13759 = vrcp.f32 %v5994_v47 }
 0xb18   : > { %12809 = vmatmul.mubr.msk.bf16.vlgmr.msra.gmra.mrb[184].mxu0 %vm2385_vm5, %v6054_v48  ;;  %7335 = vrot.lane.b32.xlu0 %v15378_v8, %s14363_s3  ;;  %v6039_v2 = vmul.f32 %v13754_v28, %v16666_v29  ;;  %v18454_v8 = vld [vmem:[#allocation43_spill] sm:$0xff]  ;;  %v6649_v28 = vsel %vm2581_vm4, %v16744_v42, 0 }
 0xb19   : > { %v13756_v10 = vpop.eup %13755  ;;  %12819 = vmatpush3.bf16.msra.mxu0 %v6313_v18  ;;  %7485 = vrot.lane.b32.xlu1 %v18351_v32, %s14363_s3  ;;  %v18455_v32 = vld [vmem:[#allocation48_spill] sm:$0xff]  ;;  %v18471_v18 = vld [vmem:[#allocation75_spill] sm:$0xff] }
 0xb1a   : > { %v6055_v49 = vpack.c.bf16 %v6039_v2, %v6039_v2  ;;  %12820 = vmatprep.mubr.msk.bf16.mxu0 %vm14355_vm2, %v18330_v23  ;;  %12830 = vmatprep.subr.bf16.mxu0 %v18330_v23  ;;  %v6040_v21 = vmul.f32 %v13756_v10, %v16670_v6  ;;  %v6697_v10 = vsel %vm2581_vm4, %v16717_v40, 0 }
 0xb1c   : > { %7437 = vrot.lane.b32.xlu0 %v18454_v8, %s14362_s16  ;;  %v5997_v9 = vpop.xlane.xlu1 %5996  ;;  %12815 = vmatmul.mubr.msk.bf16.vlgmr.msra.gmra.mrb[180].mxu1 %vm2385_vm5, %v6055_v49  ;;  %v6056_v29 = vpack.c.bf16 %v6040_v21, %v6040_v21 }
 0xb1d   : > { %13761 = vrcp.f32 %v5997_v9  ;;  %12825 = vmatpush3.bf16.msra.mxu1 %v6361_v61  ;;  %7587 = vrot.lane.b32.xlu1 %v18455_v32, %s14362_s16 }
 0xb1e   : > { %v6000_v4 = vpop.xlane.xlu0 %5999  ;;  %12826 = vmatprep.mubr.msk.bf16.mxu1 %vm14355_vm2, %v18330_v23  ;;  %12836 = vmatprep.subr.bf16.mxu1 %v18330_v23 }
 0xb1f   : > { %v13758_v6 = vpop.eup %13757  ;;  %13763 = vrcp.f32 %v6000_v4 }
 0xb20   : > { %12821 = vmatmul.mubr.msk.bf16.vlgmr.msra.gmra.mrb[188].mxu0 %vm2385_vm5, %v6056_v29  ;;  %7435 = vrot.lane.b32.xlu0 %v18457_v56, %s14363_s3  ;;  %v6041_v19 = vmul.f32 %v13758_v6, %v16676_v33 }
 0xb21   : > { %v13760_v20 = vpop.eup %13759  ;;  %12831 = vmatpush3.bf16.msra.mxu0 %v6409_v16  ;;  %7585 = vrot.lane.b32.xlu1 %v18458_v1, %s14363_s3 }
 0xb22   : > { %v6057_v41 = vpack.c.bf16 %v6041_v19, %v6041_v19  ;;  %12832 = vmatprep.mubr.msk.bf16.mxu0 %vm14355_vm2, %v18330_v23  ;;  %12842 = vmatprep.subr.bf16.mxu0 %v18330_v23  ;;  %v6042_v44 = vmul.f32 %v13760_v20, %v16680_v24 }
 0xb24   : > { %7537 = vrot.lane.b32.xlu0 %v18460_v3, %s14362_s16  ;;  %v6003_v33 = vpop.xlane.xlu1 %6002  ;;  %12827 = vmatmul.mubr.msk.bf16.vlgmr.msra.gmra.mrb[184].mxu1 %vm2385_vm5, %v6057_v41  ;;  %v6058_v14 = vpack.c.bf16 %v6042_v44, %v6042_v44 }
 0xb25   : > { %13765 = vrcp.f32 %v6003_v33  ;;  %12837 = vmatpush3.bf16.msra.mxu1 %v6457_v12  ;;  %7875 = vrot.lane.b32.xlu1 %v18461_v15, %s14363_s3 }
 0xb26   : > { %v6006_v39 = vpop.xlane.xlu0 %6005  ;;  %12838 = vmatprep.mubr.msk.bf16.mxu1 %vm14355_vm2, %v18330_v23  ;;  %12848 = vmatprep.subr.bf16.mxu1 %v18330_v23 }
 0xb27   : > { %v13762_v24 = vpop.eup %13761  ;;  %13767 = vrcp.f32 %v6006_v39 }
 0xb28   : > { %12833 = vmatmul.mubr.msk.bf16.vlgmr.msra.gmra.mrb[192].mxu0 %vm2385_vm5, %v6058_v14  ;;  %7535 = vrot.lane.b32.xlu0 %v18463_v59, %s14363_s3  ;;  %v6043_v25 = vmul.f32 %v13762_v24, %v16686_v45 }
 0xb29   : > { %v13764_v7 = vpop.eup %13763  ;;  %12843 = vmatpush3.bf16.msra.mxu0 %v6505_v57  ;;  %7971 = vrot.lane.b32.xlu1 %v18464_v43, %s14363_s3 }
 0xb2a   : > { %v6059_v62 = vpack.c.bf16 %v6043_v25, %v6043_v25  ;;  %12844 = vmatprep.mubr.msk.bf16.mxu0 %vm14355_vm2, %v18330_v23  ;;  %12854 = vmatprep.subr.bf16.mxu0 %v18330_v23  ;;  %v6044_v0 = vmul.f32 %v13764_v7, %v16690_v30 }
 0xb2c   : > { %7827 = vrot.lane.b32.xlu0 %v18466_v58, %s14363_s3  ;;  %v6009_v45 = vpop.xlane.xlu1 %6008  ;;  %12839 = vmatmul.mubr.msk.bf16.vlgmr.msra.gmra.mrb[188].mxu1 %vm2385_vm5, %v6059_v62  ;;  %v6060_v5 = vpack.c.bf16 %v6044_v0, %v6044_v0 }
 0xb2d   : > { %13769 = vrcp.f32 %v6009_v45  ;;  %12849 = vmatpush3.bf16.msra.mxu1 %v6553_v13  ;;  %8067 = vrot.lane.b32.xlu1 %v18467_v34, %s14363_s3 }
 0xb2e   : > { %v6012_v51 = vpop.xlane.xlu0 %6011  ;;  %12850 = vmatprep.mubr.msk.bf16.mxu1 %vm14355_vm2, %v18330_v23  ;;  %12860 = vmatprep.subr.bf16.mxu1 %v18330_v23 }
 0xb2f   : > { %v13766_v30 = vpop.eup %13765  ;;  %13771 = vrcp.f32 %v6012_v51 }
 0xb30   : > { %7923 = vrot.lane.b32.xlu0 %v18469_v27, %s14363_s3  ;;  %12845 = vmatmul.mubr.msk.bf16.vlgmr.msra.gmra.mrb[196].mxu0 %vm2385_vm5, %v6060_v5  ;;  %v6045_v55 = vmul.f32 %v13766_v30, %v16696_v36  ;;  %v6788_v9 = vpop.permute.xlu1 %6787 }
 0xb31   : > { %v13768_v38 = vpop.eup %13767  ;;  %12855 = vmatpush3.bf16.msra.mxu0 %v6601_v53  ;;  %8163 = vrot.lane.b32.xlu1 %v18470_v54, %s14363_s3  ;;  %v6793_v32 = vsel %vm2581_vm4, %v6788_v9, 0 }
 0xb32   : > { %v6061_v47 = vpack.c.bf16 %v6045_v55, %v6045_v55  ;;  %12856 = vmatprep.mubr.msk.bf16.mxu0 %vm14355_vm2, %v18330_v23  ;;  %12866 = vmatprep.subr.bf16.mxu0 %v18330_v23  ;;  %v6046_v48 = vmul.f32 %v13768_v38, %v16700_v50  ;;  %v18472_v50 = vld [vmem:[#allocation77_spill] sm:$0xff]  ;;  %v6740_v21 = vpop.permute.xlu0 %6739 }
 0xb33   : > { %v6745_v40 = vsel %vm2581_vm4, %v6740_v21, 0 }
 0xb34   : > { %8019 = vrot.lane.b32.xlu0 %v18471_v18, %s14363_s3  ;;  %12851 = vmatmul.mubr.msk.bf16.vlgmr.msra.gmra.mrb[192].mxu1 %vm2385_vm5, %v6061_v47  ;;  %v6062_v36 = vpack.c.bf16 %v6046_v48, %v6046_v48 }
 0xb35   : > { %12861 = vmatpush3.bf16.msra.mxu1 %v6649_v28  ;;  %12862 = vmatprep.mubr.msk.bf16.mxu1 %vm14355_vm2, %v18330_v23 }
 0xb36   : > { %12872 = vmatprep.subr.bf16.mxu1 %v18330_v23 }
 0xb37   : > { %v13770_v2 = vpop.eup %13769 }
 0xb38   : > { %8115 = vrot.lane.b32.xlu0 %v18472_v50, %s14363_s3  ;;  %12857 = vmatmul.mubr.msk.bf16.vlgmr.msra.gmra.mrb[200].mxu0 %vm2385_vm5, %v6062_v36  ;;  %v6047_v42 = vmul.f32 %v13770_v2, %v16704_v11 }
 0xb39   : > { %v13772_v49 = vpop.eup %13771  ;;  %12867 = vmatpush3.bf16.msra.mxu0 %v6697_v10  ;;  %12868 = vmatprep.mubr.msk.bf16.mxu0 %vm14355_vm2, %v18330_v23 }
 0xb3a   : > { %v6063_v61 = vpack.c.bf16 %v6047_v42, %v6047_v42  ;;  %12878 = vmatprep.subr.bf16.mxu0 %v18330_v23  ;;  %v6048_v8 = vmul.f32 %v13772_v49, %v16708_v22 }
 0xb3c   : > { %12863 = vmatmul.mubr.msk.bf16.vlgmr.msra.gmra.mrb[196].mxu1 %vm2385_vm5, %v6063_v61  ;;  %v6064_v11 = vpack.c.bf16 %v6048_v8, %v6048_v8 }
 0xb3d   : > { %12873 = vmatpush3.bf16.msra.mxu1 %v6745_v40  ;;  %12874 = vmatprep.mubr.msk.bf16.mxu1 %vm14355_vm2, %v18330_v23 }
 0xb3e   : > { %12884 = vmatprep.subr.bf16.mxu1 %v18330_v23 }
 0xb40   : > { %12869 = vmatmul.mubr.msk.bf16.vlgmr.msra.gmra.mrb[204].mxu0 %vm2385_vm5, %v6064_v11 }
 0xb41   : > { %12879 = vmatpush3.bf16.msra.mxu0 %v6793_v32  ;;  %12880 = vmatprep.mubr.msk.bf16.mxu0 %vm14355_vm2, %v18330_v23 }
 0xb42   : > { %12890 = vmatprep.subr.bf16.mxu0 %v18330_v23 }
 0xb61   : > { %v6015_v22 = vpop.xlane.xlu1 %6014 }
 0xb62   : > { %13773 = vrcp.f32 %v6015_v22 }
 0xb63   : > { %v6018_v4 = vpop.xlane.xlu0 %6017 }
 0xb64   : > { %13775 = vrcp.f32 %v6018_v4 }
 0xb65   : > { %v6888_v29 = vpop.permute.xlu1 %6887 }
 0xb66   : > { %v6893_v15 = vsel %vm1603_vm3, %v6888_v29, 0 }
 0xb67   : > { %v6838_v6 = vpop.permute.xlu0 %6837 }
 0xb68   : > { %v6843_v12 = vsel %vm1603_vm3, %v6838_v6, 0 }
 0xb69   : > { %v6886_v17 = vpop.permute.xlu1 %6885 }
 0xb6b   : > { %v6836_v16 = vpop.permute.xlu0 %6835 }
 0xb6c   : > { %v13774_v56 = vpop.eup %13773 }
 0xb6d   : > { %v6988_v19 = vpop.permute.xlu1 %6987  ;;  %v6049_v20 = vmul.f32 %v13774_v56, %v16720_v46 }
 0xb6e   : > { %v13776_v1 = vpop.eup %13775  ;;  %v6993_v37 = vsel %vm1603_vm3, %v6988_v19, 0 }
 0xb6f   : > { %v6938_v41 = vpop.permute.xlu0 %6937  ;;  %v6065_v44 = vpack.c.bf16 %v6049_v20, %v6049_v20  ;;  %v6050_v63 = vmul.f32 %v13776_v1, %v16724_v26 }
 0xb70   : > { %v6943_v14 = vsel %vm1603_vm3, %v6938_v41, 0 }
 0xb71   : > { %v6986_v3 = vpop.permute.xlu1 %6985  ;;  %12875 = vmatmul.mubr.msk.bf16.vlgmr.msra.gmra.mrb[200].mxu1 %vm2385_vm5, %v6065_v44  ;;  %v6066_v33 = vpack.c.bf16 %v6050_v63, %v6050_v63 }
 0xb72   : > { %12885 = vmatpush3.bf16.xpose.msra.mxu1 %v6843_v12  ;;  %12886 = vmatprep.mubr.msk.bf16.mxu1 %vm14355_vm2, %v18330_v23 }
 0xb73   : > { %12881 = vmatmul.mubr.msk.bf16.vlgmr.msra.gmra.mrb[208].mxu0 %vm2385_vm5, %v6066_v33  ;;  %v6936_v46 = vpop.permute.xlu0 %6935  ;;  %12896 = vmatprep.subr.bf16.mxu1 %v18330_v23 }
 0xb74   : > { %12891 = vmatpush3.bf16.xpose.msra.mxu0 %v6893_v15  ;;  %12892 = vmatprep.mubr.msk.bf16.mxu0 %vm14355_vm2, %v18330_v23 }
 0xb75   : > { %v7088_v26 = vpop.permute.xlu1 %7087  ;;  %12902 = vmatprep.subr.bf16.mxu0 %v18330_v23 }
 0xb76   : > { %v7093_v62 = vsel %vm1603_vm3, %v7088_v26, 0 }
 0xb77   : > { %v7038_v39 = vpop.permute.xlu0 %7037 }
 0xb78   : > { %v7043_v7 = vsel %vm1603_vm3, %v7038_v39, 0 }
 0xb79   : > { %v7086_v24 = vpop.permute.xlu1 %7085  ;;  %12887 = vmatmul.mubr.msk.bf16.vlgmr.msra.gmra.mrb[204].mxu1 %vm1603_vm3, %v6836_v16 }
 0xb7a   : > { %12897 = vmatpush3.bf16.xpose.msra.mxu1 %v6943_v14  ;;  %12898 = vmatprep.mubr.msk.bf16.mxu1 %vm14355_vm2, %v18330_v23 }
 0xb7b   : > { %12893 = vmatmul.mubr.msk.bf16.vlgmr.msra.gmra.mrb[212].mxu0 %vm1603_vm3, %v6886_v17  ;;  %v7036_v57 = vpop.permute.xlu0 %7035  ;;  %12908 = vmatprep.subr.bf16.mxu1 %v18330_v23 }
 0xb7c   : > { %12903 = vmatpush3.bf16.xpose.msra.mxu0 %v6993_v37  ;;  %12904 = vmatprep.mubr.msk.bf16.mxu0 %vm14355_vm2, %v18330_v23 }
 0xb7d   : > { %v7188_v59 = vpop.permute.xlu1 %7187  ;;  %12914 = vmatprep.subr.bf16.mxu0 %v18330_v23 }
 0xb7e   : > { %v7193_v34 = vsel %vm1603_vm3, %v7188_v59, 0 }
 0xb7f   : > { %v7138_v25 = vpop.permute.xlu0 %7137 }
 0xb80   : > { %v7143_v58 = vsel %vm1603_vm3, %v7138_v25, 0 }
 0xb81   : > { %v7186_v43 = vpop.permute.xlu1 %7185  ;;  %12899 = vmatmul.mubr.msk.bf16.vlgmr.msra.gmra.mrb[208].mxu1 %vm1603_vm3, %v6936_v46 }
 0xb82   : > { %12909 = vmatpush3.bf16.xpose.msra.mxu1 %v7043_v7  ;;  %12910 = vmatprep.mubr.msk.bf16.mxu1 %vm14355_vm2, %v18330_v23 }
 0xb83   : > { %12905 = vmatmul.mubr.msk.bf16.vlgmr.msra.gmra.mrb[216].mxu0 %vm1603_vm3, %v6986_v3  ;;  %v7136_v0 = vpop.permute.xlu0 %7135  ;;  %12920 = vmatprep.subr.bf16.mxu1 %v18330_v23 }
 0xb84   : > { %12915 = vmatpush3.bf16.xpose.msra.mxu0 %v7093_v62  ;;  %12916 = vmatprep.mubr.msk.bf16.mxu0 %vm14355_vm2, %v18330_v23 }
 0xb85   : > { %v7288_v52 = vpop.permute.xlu1 %7287  ;;  %12926 = vmatprep.subr.bf16.mxu0 %v18330_v23 }
 0xb86   : > { %v7293_v27 = vsel %vm1603_vm3, %v7288_v52, 0 }
 0xb87   : > { %v7238_v13 = vpop.permute.xlu0 %7237 }
 0xb88   : > { %v7243_v35 = vsel %vm1603_vm3, %v7238_v13, 0 }
 0xb89   : > { %v7286_v45 = vpop.permute.xlu1 %7285  ;;  %12911 = vmatmul.mubr.msk.bf16.vlgmr.msra.gmra.mrb[212].mxu1 %vm1603_vm3, %v7036_v57 }
 0xb8a   : > { %12921 = vmatpush3.bf16.xpose.msra.mxu1 %v7143_v58  ;;  %12922 = vmatprep.mubr.msk.bf16.mxu1 %vm14355_vm2, %v18330_v23 }
 0xb8b   : > { %12917 = vmatmul.mubr.msk.bf16.vlgmr.msra.gmra.mrb[220].mxu0 %vm1603_vm3, %v7086_v24  ;;  %v7236_v51 = vpop.permute.xlu0 %7235  ;;  %12932 = vmatprep.subr.bf16.mxu1 %v18330_v23 }
 0xb8c   : > { %12927 = vmatpush3.bf16.xpose.msra.mxu0 %v7193_v34  ;;  %12928 = vmatprep.mubr.msk.bf16.mxu0 %vm14355_vm2, %v18330_v23 }
 0xb8d   : > { %v7388_v5 = vpop.permute.xlu1 %7387  ;;  %12938 = vmatprep.subr.bf16.mxu0 %v18330_v23 }
 0xb8e   : > { %v7393_v48 = vsel %vm1603_vm3, %v7388_v5, 0 }
 0xb8f   : > { %v7338_v30 = vpop.permute.xlu0 %7337 }
 0xb90   : > { %v7343_v47 = vsel %vm1603_vm3, %v7338_v30, 0 }
 0xb91   : > { %12923 = vmatmul.mubr.msk.bf16.vlgmr.msra.gmra.mrb[216].mxu1 %vm1603_vm3, %v7136_v0  ;;  %v7386_v53 = vpop.permute.xlu1 %7385 }
 0xb92   : > { %12933 = vmatpush3.bf16.xpose.msra.mxu1 %v7243_v35  ;;  %12934 = vmatprep.mubr.msk.bf16.mxu1 %vm14355_vm2, %v18330_v23 }
 0xb93   : > { %12929 = vmatmul.mubr.msk.bf16.vlgmr.msra.gmra.mrb[224].mxu0 %vm1603_vm3, %v7186_v43  ;;  %v7336_v55 = vpop.permute.xlu0 %7335  ;;  %12944 = vmatprep.subr.bf16.mxu1 %v18330_v23 }
 0xb94   : > { %12939 = vmatpush3.bf16.xpose.msra.mxu0 %v7293_v27  ;;  %12940 = vmatprep.mubr.msk.bf16.mxu0 %vm14355_vm2, %v18330_v23 }
 0xb95   : > { %12950 = vmatprep.subr.bf16.mxu0 %v18330_v23  ;;  %v7488_v54 = vpop.permute.xlu1 %7487 }
 0xb96   : > { %v7493_v10 = vsel %vm1603_vm3, %v7488_v54, 0 }
 0xb97   : > { %v7438_v38 = vpop.permute.xlu0 %7437 }
 0xb98   : > { %v7443_v36 = vsel %vm1603_vm3, %v7438_v38, 0 }
 0xb99   : > { %12935 = vmatmul.mubr.msk.bf16.vlgmr.msra.gmra.mrb[220].mxu1 %vm1603_vm3, %v7236_v51  ;;  %v7486_v18 = vpop.permute.xlu1 %7485 }
 0xb9a   : > { %12945 = vmatpush3.bf16.xpose.msra.mxu1 %v7343_v47  ;;  %12946 = vmatprep.mubr.msk.bf16.mxu1 %vm14355_vm2, %v18330_v23 }
 0xb9b   : > { %12941 = vmatmul.mubr.msk.bf16.vlgmr.msra.gmra.mrb[228].mxu0 %vm1603_vm3, %v7286_v45  ;;  %12956 = vmatprep.subr.bf16.mxu1 %v18330_v23  ;;  %v7436_v28 = vpop.permute.xlu0 %7435 }
 0xb9c   : > { %12951 = vmatpush3.bf16.xpose.msra.mxu0 %v7393_v48  ;;  %12952 = vmatprep.mubr.msk.bf16.mxu0 %vm14355_vm2, %v18330_v23 }
 0xb9d   : > { %12962 = vmatprep.subr.bf16.mxu0 %v18330_v23  ;;  %v7588_v50 = vpop.permute.xlu1 %7587 }
 0xb9e   : > { %v7593_v61 = vsel %vm1603_vm3, %v7588_v50, 0 }
 0xb9f   : > { %v7538_v2 = vpop.permute.xlu0 %7537 }
 0xba0   : > { %v7543_v49 = vsel %vm1603_vm3, %v7538_v2, 0 }
 0xba1   : > { %12947 = vmatmul.mubr.msk.bf16.vlgmr.msra.gmra.mrb[224].mxu1 %vm1603_vm3, %v7336_v55  ;;  %v7586_v21 = vpop.permute.xlu1 %7585 }
 0xba2   : > { %12957 = vmatpush3.bf16.xpose.msra.mxu1 %v7443_v36  ;;  %12958 = vmatprep.mubr.msk.bf16.mxu1 %vm14355_vm2, %v18330_v23 }
 0xba3   : > { %12953 = vmatmul.mubr.msk.bf16.vlgmr.msra.gmra.mrb[232].mxu0 %vm1603_vm3, %v7386_v53  ;;  %12968 = vmatprep.subr.bf16.mxu1 %v18330_v23  ;;  %v7536_v42 = vpop.permute.xlu0 %7535 }
 0xba4   : > { %12963 = vmatpush3.bf16.xpose.msra.mxu0 %v7493_v10  ;;  %12964 = vmatprep.mubr.msk.bf16.mxu0 %vm14355_vm2, %v18330_v23 }
 0xba5   : > { %12974 = vmatprep.subr.bf16.mxu0 %v18330_v23  ;;  %v7876_v40 = vpop.permute.xlu1 %7875 }
 0xba6   : > { %v7881_v11 = vsel %vm2581_vm4, %v7876_v40, 0 }
 0xba7   : > { %v7828_v8 = vpop.permute.xlu0 %7827 }
 0xba8   : > { %v7833_v9 = vsel %vm2581_vm4, %v7828_v8, 0 }
 0xba9   : > { %12959 = vmatmul.mubr.msk.bf16.vlgmr.msra.gmra.mrb[228].mxu1 %vm1603_vm3, %v7436_v28 }
 0xbaa   : > { %12969 = vmatpush3.bf16.xpose.msra.mxu1 %v7543_v49  ;;  %12970 = vmatprep.mubr.msk.bf16.mxu1 %vm14355_vm2, %v18330_v23 }
 0xbab   : > { %12965 = vmatmul.mubr.msk.bf16.vlgmr.msra.gmra.mrb[236].mxu0 %vm1603_vm3, %v7486_v18  ;;  %12980 = vmatprep.subr.bf16.mxu1 %v18330_v23 }
 0xbac   : > { %12975 = vmatpush3.bf16.xpose.msra.mxu0 %v7593_v61  ;;  %12976 = vmatprep.mubr.msk.bf16.mxu0 %vm14355_vm2, %v18330_v23 }
 0xbad   : > { %12986 = vmatprep.subr.bf16.mxu0 %v18330_v23 }
 0xbb1   : > { %12971 = vmatmul.mubr.msk.bf16.vlgmr.msra.gmra.mrb[232].mxu1 %vm1603_vm3, %v7536_v42 }
 0xbb2   : > { %12981 = vmatpush3.bf16.msra.mxu1 %v7833_v9  ;;  %12982 = vmatprep.mubr.msk.bf16.mxu1 %vm14355_vm2, %v18330_v23 }
 0xbb3   : > { %12977 = vmatmul.mubr.msk.bf16.vlgmr.msra.gmra.mrb[240].mxu0 %vm1603_vm3, %v7586_v21  ;;  %12992 = vmatprep.subr.bf16.mxu1 %v18330_v23 }
 0xbb4   : > { %12987 = vmatpush3.bf16.msra.mxu0 %v7881_v11  ;;  %12988 = vmatprep.mubr.msk.bf16.mxu0 %vm14355_vm2, %v18330_v23 }
 0xbb5   : > { %12998 = vmatprep.subr.bf16.mxu0 %v18330_v23 }
 0xbdf   : > { %v16998_v32 = vpop.f32.mrb[172].mxu1 }
 0xbe0   : > { %v12792_v22 = vpop.f32.mrb[173].mxu1 }
 0xbe1   : > { %v6112_v4 = vpop.f32.mrb[174].mxu1  ;;  %v17000_v29 = vpop.f32.mrb[180].mxu0 }
 0xbe2   : > { %v13397_v6 = vpack.i.bf16 %v17000_v29, %v16998_v32  ;;  %v12793_v17 = vpop.f32.mrb[175].mxu1  ;;  %v12798_v16 = vpop.f32.mrb[181].mxu0 }
 0xbe3   : > { %v6160_v56 = vpop.f32.mrb[182].mxu0 }
 0xbe4   : > { %v12799_v19 = vpop.f32.mrb[183].mxu0 }
 0xbe7   : > { %v17004_v20 = vpop.f32.mrb[176].mxu1 }
 0xbe8   : > { %v12804_v1 = vpop.f32.mrb[177].mxu1 }
 0xbe9   : > { %v6208_v41 = vpop.f32.mrb[178].mxu1 }
 0xbea   : > { %v12805_v44 = vpop.f32.mrb[179].mxu1 }
 0xbeb   : > { %v17006_v63 = vpop.f32.mrb[184].mxu0 }
 0xbec   : > { %v13402_v12 = vpack.i.bf16 %v17006_v63, %v17004_v20  ;;  %v12810_v3 = vpop.f32.mrb[185].mxu0 }
 0xbed   : > { %v6256_v33 = vpop.f32.mrb[186].mxu0 }
 0xbee   : > { %v12811_v15 = vpop.f32.mrb[187].mxu0 }
 0xbef   : > { %v17010_v46 = vpop.f32.mrb[180].mxu1 }
 0xbf0   : > { %v12816_v26 = vpop.f32.mrb[181].mxu1 }
 0xbf1   : > { %v6304_v39 = vpop.f32.mrb[182].mxu1  ;;  %v18473_v26 = vld [vmem:[#allocation58_spill] sm:$0xff] }
 0xbf2   : > { %v12817_v14 = vpop.f32.mrb[183].mxu1 }
 0xbf3   : > { %v17012_v24 = vpop.f32.mrb[188].mxu0 }
 0xbf4   : > { %v13427_v37 = vpack.i.bf16 %v17012_v24, %v17010_v46  ;;  %v12822_v57 = vpop.f32.mrb[189].mxu0 }
 0xbf5   : > { %v6352_v59 = vpop.f32.mrb[190].mxu0 }
 0xbf6   : > { %v12823_v25 = vpop.f32.mrb[191].mxu0 }
 0xbf7   : > { %v17016_v7 = vpop.f32.mrb[184].mxu1  ;;  %v18474_v25 = vld [vmem:[#allocation57_spill] sm:$0xff] }
 0xbf8   : > { %v12828_v43 = vpop.f32.mrb[185].mxu1 }
 0xbf9   : > { %v6400_v62 = vpop.f32.mrb[186].mxu1 }
 0xbfa   : > { %v12829_v0 = vpop.f32.mrb[187].mxu1 }
 0xbfb   : > { %v17018_v52 = vpop.f32.mrb[192].mxu0 }
 0xbfc   : > { %v13432_v13 = vpack.i.bf16 %v17018_v52, %v17016_v7  ;;  %v12834_v58 = vpop.f32.mrb[193].mxu0 }
 0xbfd   : > { %v6448_v45 = vpop.f32.mrb[194].mxu0 }
 0xbfe   : > { %v12835_v34 = vpop.f32.mrb[195].mxu0 }
 0xbff   : > { %v17022_v51 = vpop.f32.mrb[188].mxu1 }
 0xc00   : > { %v12840_v5 = vpop.f32.mrb[189].mxu1 }
 0xc01   : > { %v6496_v30 = vpop.f32.mrb[190].mxu1 }
 0xc02   : > { %v12841_v35 = vpop.f32.mrb[191].mxu1 }
 0xc03   : > { %v17024_v53 = vpop.f32.mrb[196].mxu0  ;;  %v18475_v35 = vld [vmem:[#allocation59_spill] sm:$0xff] }
 0xc04   : > { %v13457_v27 = vpack.i.bf16 %v17024_v53, %v17022_v51  ;;  %v12846_v55 = vpop.f32.mrb[197].mxu0 }
 0xc05   : > { %v6544_v38 = vpop.f32.mrb[198].mxu0 }
 0xc06   : > { %v12847_v54 = vpop.f32.mrb[199].mxu0 }
 0xc07   : > { %v17028_v47 = vpop.f32.mrb[192].mxu1 }
 0xc08   : > { %v12852_v48 = vpop.f32.mrb[193].mxu1 }
 0xc09   : > { %v6592_v28 = vpop.f32.mrb[194].mxu1 }
 0xc0a   : > { %v12853_v18 = vpop.f32.mrb[195].mxu1  ;;  %v18476_v28 = vld [vmem:[#allocation60_spill] sm:$0xff] }
 0xc0b   : > { %v17030_v36 = vpop.f32.mrb[200].mxu0 }
 0xc0c   : > { %v13462_v2 = vpack.i.bf16 %v17030_v36, %v17028_v47  ;;  %v12858_v10 = vpop.f32.mrb[201].mxu0  ;;  %v18517_v36 = vld [vmem:[#allocation109_spill] sm:$0xff] }
 0xc0d   : > { %v6640_v50 = vpop.f32.mrb[202].mxu0 }
 0xc0e   : > { %v12859_v42 = vpop.f32.mrb[203].mxu0 }
 0xc0f   : > { %v17034_v49 = vpop.f32.mrb[196].mxu1 }
 0xc10   : > { %v12864_v21 = vpop.f32.mrb[197].mxu1 }
 0xc11   : > { %v6688_v61 = vpop.f32.mrb[198].mxu1 }
 0xc12   : > { %v12865_v8 = vpop.f32.mrb[199].mxu1 }
 0xc13   : > { %v17036_v40 = vpop.f32.mrb[204].mxu0 }
 0xc14   : > { %v13487_v9 = vpack.i.bf16 %v17036_v40, %v17034_v49  ;;  %v12870_v11 = vpop.f32.mrb[205].mxu0 }
 0xc15   : > { %v6736_v22 = vpop.f32.mrb[206].mxu0 }
 0xc16   : > { %v12871_v4 = vpop.f32.mrb[207].mxu0  ;;  %v18477_v22 = vld [vmem:[#allocation61_spill] sm:$0xff] }
 0xc44   : > { %v17040_v17 = vpop.f32.mrb[200].mxu1 }
 0xc45   : > { %v12876_v16 = vpop.f32.mrb[201].mxu1 }
 0xc46   : > { %v6784_v56 = vpop.f32.mrb[202].mxu1  ;;  %v17042_v19 = vpop.f32.mrb[208].mxu0 }
 0xc47   : > { %v13492_v1 = vpack.i.bf16 %v17042_v19, %v17040_v17  ;;  %v12877_v41 = vpop.f32.mrb[203].mxu1  ;;  %v12882_v44 = vpop.f32.mrb[209].mxu0 }
 0xc48   : > { %v6832_v3 = vpop.f32.mrb[210].mxu0  ;;  %v18478_v44 = vld [vmem:[#allocation62_spill] sm:$0xff] }
 0xc49   : > { %v12883_v33 = vpop.f32.mrb[211].mxu0 }
 0xc4c   : > { %v6879_v15 = vpop.f32.mrb[204].mxu1 }
 0xc4d   : > { %v17047_v39 = vadd.f32 %v6879_v15, %v18473_v26  ;;  %v12888_v14 = vpop.f32.mrb[205].mxu1 }
 0xc4e   : > { %v6882_v57 = vpop.f32.mrb[206].mxu1  ;;  %v6929_v59 = vpop.f32.mrb[212].mxu0 }
 0xc4f   : > { %v17050_v43 = vadd.f32 %v6929_v59, %v18474_v25  ;;  %v12889_v62 = vpop.f32.mrb[207].mxu1  ;;  %v12894_v0 = vpop.f32.mrb[213].mxu0  ;;  %v7635_v58 = vsel %vm2385_vm5, %v17047_v39, -inf }
 0xc50   : > { %v6932_v45 = vpop.f32.mrb[214].mxu0  ;;  %7636 = vmax.xlane.f32.xlu0 %v7635_v58  ;;  %v18479_v62 = vld [vmem:[#allocation63_spill] sm:$0xff] }
 0xc51   : > { %v12895_v34 = vpop.f32.mrb[215].mxu0  ;;  %v7638_v5 = vsel %vm2385_vm5, %v17050_v43, -inf }
 0xc52   : > { %7639 = vmax.xlane.f32.xlu1 %v7638_v5  ;;  %v18480_v5 = vld [vmem:[#allocation64_spill] sm:$0xff] }
 0xc54   : > { %v6979_v30 = vpop.f32.mrb[208].mxu1 }
 0xc55   : > { %v17057_v55 = vadd.f32 %v6979_v30, %v18475_v35  ;;  %v12900_v38 = vpop.f32.mrb[209].mxu1 }
 0xc56   : > { %v6982_v54 = vpop.f32.mrb[210].mxu1  ;;  %v7029_v48 = vpop.f32.mrb[216].mxu0 }
 0xc57   : > { %v17060_v18 = vadd.f32 %v7029_v48, %v18476_v28  ;;  %v12901_v10 = vpop.f32.mrb[211].mxu1  ;;  %v12906_v50 = vpop.f32.mrb[217].mxu0  ;;  %v7641_v42 = vsel %vm2385_vm5, %v17057_v55, -inf }
 0xc58   : > { %v7032_v21 = vpop.f32.mrb[218].mxu0  ;;  %7642 = vmax.xlane.f32.xlu0 %v7641_v42  ;;  %v18481_v42 = vld [vmem:[#allocation67_spill] sm:$0xff] }
 0xc59   : > { %v12907_v61 = vpop.f32.mrb[219].mxu0  ;;  %v7644_v8 = vsel %vm2385_vm5, %v17060_v18, -inf }
 0xc5c   : > { %7645 = vmax.xlane.f32.xlu0 %v7644_v8  ;;  %v7079_v11 = vpop.f32.mrb[212].mxu1 }
 0xc5d   : > { %v17067_v4 = vadd.f32 %v7079_v11, %v18477_v22  ;;  %v12912_v16 = vpop.f32.mrb[213].mxu1  ;;  %v18482_v22 = vld [vmem:[#allocation65_spill] sm:$0xff] }
 0xc5e   : > { %v7082_v56 = vpop.f32.mrb[214].mxu1  ;;  %v7129_v41 = vpop.f32.mrb[220].mxu0 }
 0xc5f   : > { %v17070_v3 = vadd.f32 %v7129_v41, %v18478_v44  ;;  %v12913_v33 = vpop.f32.mrb[215].mxu1  ;;  %v12918_v15 = vpop.f32.mrb[221].mxu0  ;;  %v7647_v26 = vsel %vm2385_vm5, %v17067_v4, -inf }
 0xc60   : > { %v7132_v14 = vpop.f32.mrb[222].mxu0  ;;  %7648 = vmax.xlane.f32.xlu0 %v7647_v26 }
 0xc61   : > { %v12919_v57 = vpop.f32.mrb[223].mxu0  ;;  %v7650_v59 = vsel %vm2385_vm5, %v17070_v3, -inf }
 0xc62   : > { %7651 = vmax.xlane.f32.xlu1 %v7650_v59  ;;  %v18483_v57 = vld [vmem:[#allocation69_spill] sm:$0xff] }
 0xc64   : > { %v7179_v25 = vpop.f32.mrb[216].mxu1 }
 0xc65   : > { %v17077_v0 = vadd.f32 %v7179_v25, %v18479_v62  ;;  %v12924_v58 = vpop.f32.mrb[217].mxu1 }
 0xc66   : > { %v7182_v45 = vpop.f32.mrb[218].mxu1  ;;  %v7229_v34 = vpop.f32.mrb[224].mxu0 }
 0xc67   : > { %v17080_v30 = vadd.f32 %v7229_v34, %v18480_v5  ;;  %v12925_v35 = vpop.f32.mrb[219].mxu1  ;;  %v12930_v38 = vpop.f32.mrb[225].mxu0  ;;  %v7653_v54 = vsel %vm2385_vm5, %v17077_v0, -inf  ;;  %v18484_v45 = vld [vmem:[#allocation66_spill] sm:$0xff] }
 0xc68   : > { %v7232_v48 = vpop.f32.mrb[226].mxu0  ;;  %7654 = vmax.xlane.f32.xlu0 %v7653_v54 }
 0xc69   : > { %v12931_v28 = vpop.f32.mrb[227].mxu0  ;;  %v7656_v10 = vsel %vm2385_vm5, %v17080_v30, -inf }
 0xc6a   : > { %7657 = vmax.xlane.f32.xlu1 %v7656_v10 }
 0xc6c   : > { %v7279_v50 = vpop.f32.mrb[220].mxu1 }
 0xc6d   : > { %v17087_v21 = vadd.f32 %v7279_v50, %v18481_v42  ;;  %v12936_v61 = vpop.f32.mrb[221].mxu1  ;;  %v18485_v50 = vld [vmem:[#allocation70_spill] sm:$0xff] }
 0xc6e   : > { %v7282_v8 = vpop.f32.mrb[222].mxu1  ;;  %v7329_v11 = vpop.f32.mrb[228].mxu0 }
 0xc6f   : > { %v17090_v16 = vadd.f32 %v7329_v11, %v18482_v22  ;;  %v12937_v56 = vpop.f32.mrb[223].mxu1  ;;  %v12942_v41 = vpop.f32.mrb[229].mxu0  ;;  %v7659_v44 = vsel %vm2385_vm5, %v17087_v21, -inf  ;;  %v18486_v22 = vld [vmem:[#allocation68_spill] sm:$0xff] }
 0xc70   : > { %v7332_v33 = vpop.f32.mrb[230].mxu0  ;;  %7660 = vmax.xlane.f32.xlu0 %v7659_v44 }
 0xc71   : > { %v12943_v15 = vpop.f32.mrb[231].mxu0  ;;  %v7662_v26 = vsel %vm2385_vm5, %v17090_v16, -inf }
 0xc72   : > { %7663 = vmax.xlane.f32.xlu1 %v7662_v26 }
 0xc74   : > { %v7379_v14 = vpop.f32.mrb[224].mxu1 }
 0xc75   : > { %v17097_v59 = vadd.f32 %v7379_v14, %v18483_v57  ;;  %v12948_v25 = vpop.f32.mrb[225].mxu1 }
 0xc76   : > { %v7382_v62 = vpop.f32.mrb[226].mxu1  ;;  %v7429_v58 = vpop.f32.mrb[232].mxu0  ;;  %v18487_v25 = vld [vmem:[#allocation71_spill] sm:$0xff] }
 0xc77   : > { %v17100_v34 = vadd.f32 %v7429_v58, %v18484_v45  ;;  %v12949_v5 = vpop.f32.mrb[227].mxu1  ;;  %v12954_v35 = vpop.f32.mrb[233].mxu0  ;;  %v7665_v38 = vsel %vm2385_vm5, %v17097_v59, -inf }
 0xc78   : > { %v7432_v54 = vpop.f32.mrb[234].mxu0  ;;  %7666 = vmax.xlane.f32.xlu0 %v7665_v38 }
 0xc79   : > { %v12955_v48 = vpop.f32.mrb[235].mxu0  ;;  %v7668_v28 = vsel %vm2385_vm5, %v17100_v34, -inf }
 0xc7a   : > { %7669 = vmax.xlane.f32.xlu1 %v7668_v28 }
 0xc7c   : > { %v7479_v10 = vpop.f32.mrb[228].mxu1 }
 0xc7d   : > { %v17107_v42 = vadd.f32 %v7479_v10, %v18485_v50  ;;  %v12960_v61 = vpop.f32.mrb[229].mxu1  ;;  %v18488_v10 = vld [vmem:[#allocation80_spill] sm:$0xff]  ;;  %v18489_v50 = vld [vmem:[#allocation82_spill] sm:$0xff] }
 0xc7e   : > { %v7482_v8 = vpop.f32.mrb[230].mxu1  ;;  %v7529_v11 = vpop.f32.mrb[236].mxu0  ;;  %v18490_v61 = vld [vmem:[#allocation81_spill] sm:$0xff] }
 0xc7f   : > { %v17110_v56 = vadd.f32 %v7529_v11, %v18486_v22  ;;  %v12961_v41 = vpop.f32.mrb[231].mxu1  ;;  %v12966_v44 = vpop.f32.mrb[237].mxu0  ;;  %v7671_v33 = vsel %vm2385_vm5, %v17107_v42, -inf  ;;  %v18491_v8 = vld [vmem:[#allocation79_spill] sm:$0xff]  ;;  %v18492_v11 = vld [vmem:[#allocation72_spill] sm:$0xff] }
 0xc80   : > { %v7532_v15 = vpop.f32.mrb[238].mxu0  ;;  %7672 = vmax.xlane.f32.xlu0 %v7671_v33  ;;  %v17134_v44 = vpop.permute.xlu0 %7923 }
 0xc81   : > { %v12967_v26 = vpop.f32.mrb[239].mxu0  ;;  %v7674_v14 = vsel %vm2385_vm5, %v17110_v56, -inf  ;;  %v17136_v33 = vpop.permute.xlu1 %7971 }
 0xc82   : > { %7675 = vmax.xlane.f32.xlu1 %v7674_v14 }
 0xc84   : > { %v7579_v57 = vpop.f32.mrb[232].mxu1  ;;  %v17138_v15 = vpop.permute.xlu0 %8019 }
 0xc85   : > { %v17117_v62 = vadd.f32 %v7579_v57, %v18487_v25  ;;  %v12972_v58 = vpop.f32.mrb[233].mxu1  ;;  %v17140_v26 = vpop.permute.xlu1 %8067 }
 0xc86   : > { %v7582_v45 = vpop.f32.mrb[234].mxu1  ;;  %v7629_v5 = vpop.f32.mrb[240].mxu0 }
 0xc87   : > { %v12973_v35 = vpop.f32.mrb[235].mxu1  ;;  %v12978_v38 = vpop.f32.mrb[241].mxu0  ;;  %v7677_v54 = vsel %vm2385_vm5, %v17117_v62, -inf  ;;  %v17130_v22 = vadd.f32 %v7629_v5, %v18492_v11 }
 0xc88   : > { %v7632_v48 = vpop.f32.mrb[242].mxu0  ;;  %7678 = vmax.xlane.f32.xlu0 %v7677_v54  ;;  %v17142_v14 = vpop.permute.xlu0 %8115 }
 0xc89   : > { %v12979_v28 = vpop.f32.mrb[243].mxu0  ;;  %v7680_v41 = vsel %vm2385_vm5, %v17130_v22, -inf  ;;  %v17144_v57 = vpop.permute.xlu1 %8163 }
 0xc93   : > { %8259 = vrot.lane.b32.xlu1 %v18488_v10, %s14363_s3 }
 0xc97   : > { %8307 = vrot.lane.b32.xlu1 %v18489_v50, %s14363_s3 }
 0xc9b   : > { %8355 = vrot.lane.b32.xlu1 %v18490_v61, %s14363_s3 }
 0xc9e   : > { %8211 = vrot.lane.b32.xlu0 %v18491_v8, %s14363_s3 }
 0xcbf   : > { %7681 = vmax.xlane.f32.xlu1 %v7680_v41 }
 0xcdd   : > { %v7637_v25 = vpop.xlane.xlu0 %7636 }
 0xcde   : > { %v7683_v58 = vsub.f32 %v17047_v39, %v7637_v25 }
 0xcdf   : > { %v7640_v45 = vpop.xlane.xlu1 %7639 }
 0xce0   : > { %v7699_v5 = vmul.f32 1.442695, %v7683_v58  ;;  %v7684_v35 = vsub.f32 %v17050_v43, %v7640_v45 }
 0xce2   : > { %13777 = vpow2.f32 %v7699_v5  ;;  %v7701_v38 = vmul.f32 1.442695, %v7684_v35 }
 0xce4   : > { %13779 = vpow2.f32 %v7701_v38 }
 0xce5   : > { %v7643_v54 = vpop.xlane.xlu0 %7642 }
 0xce6   : > { %v7685_v48 = vsub.f32 %v17057_v55, %v7643_v54 }
 0xce8   : > { %v7703_v28 = vmul.f32 1.442695, %v7685_v48 }
 0xce9   : > { %v7646_v10 = vpop.xlane.xlu0 %7645 }
 0xcea   : > { %13781 = vpow2.f32 %v7703_v28  ;;  %v7686_v50 = vsub.f32 %v17060_v18, %v7646_v10 }
 0xcec   : > { %v17150_v61 = vpop.eup %13777  ;;  %v7705_v8 = vmul.f32 1.442695, %v7686_v50 }
 0xced   : > { %v7649_v11 = vpop.xlane.xlu0 %7648  ;;  %v7731_v39 = vsel %vm2385_vm5, %v17150_v61, 0.0 }
 0xcee   : > { %v17154_v41 = vpop.eup %13779  ;;  %13783 = vpow2.f32 %v7705_v8  ;;  %v7687_v43 = vsub.f32 %v17067_v4, %v7649_v11  ;;  %7732 = vadd.xlane.f32.xlu0 %v7731_v39 }
 0xcef   : > { %v7652_v25 = vpop.xlane.xlu1 %7651  ;;  %v7734_v55 = vsel %vm2385_vm5, %v17154_v41, 0.0 }
 0xcf0   : > { %v7707_v58 = vmul.f32 1.442695, %v7687_v43  ;;  %v7688_v18 = vsub.f32 %v17070_v3, %v7652_v25  ;;  %7735 = vadd.xlane.f32.xlu1 %v7734_v55 }
 0xcf2   : > { %13785 = vpow2.f32 %v7707_v58  ;;  %v7709_v45 = vmul.f32 1.442695, %v7688_v18 }
 0xcf4   : > { %v17160_v5 = vpop.eup %13781  ;;  %13787 = vpow2.f32 %v7709_v45 }
 0xcf5   : > { %v7655_v35 = vpop.xlane.xlu0 %7654  ;;  %v7737_v38 = vsel %vm2385_vm5, %v17160_v5, 0.0 }
 0xcf6   : > { %v7689_v4 = vsub.f32 %v17077_v0, %v7655_v35  ;;  %7738 = vadd.xlane.f32.xlu0 %v7737_v38 }
 0xcf7   : > { %v7658_v54 = vpop.xlane.xlu1 %7657 }
 0xcf8   : > { %v17165_v48 = vpop.eup %13783  ;;  %v7711_v28 = vmul.f32 1.442695, %v7689_v4  ;;  %v7690_v10 = vsub.f32 %v17080_v30, %v7658_v54 }
 0xcf9   : > { %v7740_v3 = vsel %vm2385_vm5, %v17165_v48, 0.0 }
 0xcfa   : > { %13789 = vpow2.f32 %v7711_v28  ;;  %v7713_v50 = vmul.f32 1.442695, %v7690_v10  ;;  %7741 = vadd.xlane.f32.xlu1 %v7740_v3 }
 0xcfc   : > { %v17170_v8 = vpop.eup %13785  ;;  %13791 = vpow2.f32 %v7713_v50 }
 0xcfd   : > { %v7661_v11 = vpop.xlane.xlu0 %7660  ;;  %v7743_v0 = vsel %vm2385_vm5, %v17170_v8, 0.0 }
 0xcfe   : > { %v17174_v39 = vpop.eup %13787  ;;  %v7691_v43 = vsub.f32 %v17087_v21, %v7661_v11  ;;  %7744 = vadd.xlane.f32.xlu0 %v7743_v0 }
 0xcff   : > { %v7664_v25 = vpop.xlane.xlu1 %7663  ;;  %v7746_v30 = vsel %vm2385_vm5, %v17174_v39, 0.0 }
 0xd00   : > { %v7715_v55 = vmul.f32 1.442695, %v7691_v43  ;;  %v7692_v58 = vsub.f32 %v17090_v16, %v7664_v25  ;;  %7747 = vadd.xlane.f32.xlu1 %v7746_v30 }
 0xd02   : > { %13793 = vpow2.f32 %v7715_v55  ;;  %v7717_v18 = vmul.f32 1.442695, %v7692_v58  ;;  %v18493_v55 = vld [vmem:[#allocation42_spill] sm:$0xff]  ;;  %v18494_v58 = vld [vmem:[#allocation41_spill] sm:$0xff] }
 0xd04   : > { %v17180_v45 = vpop.eup %13789  ;;  %13795 = vpow2.f32 %v7717_v18 }
 0xd05   : > { %v7667_v35 = vpop.xlane.xlu0 %7666  ;;  %v7749_v38 = vsel %vm2385_vm5, %v17180_v45, 0.0 }
 0xd06   : > { %v17184_v4 = vpop.eup %13791  ;;  %v7693_v21 = vsub.f32 %v17097_v59, %v7667_v35  ;;  %7750 = vadd.xlane.f32.xlu0 %v7749_v38 }
 0xd07   : > { %v7670_v54 = vpop.xlane.xlu1 %7669  ;;  %v7752_v28 = vsel %vm2385_vm5, %v17184_v4, 0.0 }
 0xd08   : > { %v7719_v16 = vmul.f32 1.442695, %v7693_v21  ;;  %v7694_v10 = vsub.f32 %v17100_v34, %v7670_v54  ;;  %7753 = vadd.xlane.f32.xlu1 %v7752_v28 }
 0xd0a   : > { %13797 = vpow2.f32 %v7719_v16  ;;  %v7721_v3 = vmul.f32 1.442695, %v7694_v10 }
 0xd0c   : > { %v17190_v50 = vpop.eup %13793  ;;  %13799 = vpow2.f32 %v7721_v3 }
 0xd0d   : > { %v7755_v11 = vsel %vm2385_vm5, %v17190_v50, 0.0  ;;  %v7673_v18 = vpop.xlane.xlu0 %7672 }
 0xd0e   : > { %v17194_v0 = vpop.eup %13795  ;;  %7756 = vadd.xlane.f32.xlu1 %v7755_v11  ;;  %v7695_v38 = vsub.f32 %v17107_v42, %v7673_v18 }
 0xd0f   : > { %v7758_v59 = vsel %vm2385_vm5, %v17194_v0, 0.0  ;;  %v7676_v35 = vpop.xlane.xlu1 %7675 }
 0xd10   : > { %7759 = vadd.xlane.f32.xlu0 %v7758_v59  ;;  %v7696_v54 = vsub.f32 %v17110_v56, %v7676_v35  ;;  %v7723_v28 = vmul.f32 1.442695, %v7695_v38 }
 0xd12   : > { %v7725_v10 = vmul.f32 1.442695, %v7696_v54  ;;  %13801 = vpow2.f32 %v7723_v28  ;;  %v18495_v28 = vld [vmem:[#allocation96_spill] sm:$0xff] }
 0xd13   : > { %v17213_v3 = vpop.permute.xlu1 %8259 }
 0xd14   : > { %v17198_v43 = vpop.eup %13797  ;;  %13803 = vpow2.f32 %v7725_v10 }
 0xd15   : > { %v7761_v34 = vsel %vm2385_vm5, %v17198_v43, 0.0  ;;  %v7679_v21 = vpop.xlane.xlu0 %7678 }
 0xd16   : > { %v17202_v25 = vpop.eup %13799  ;;  %7762 = vadd.xlane.f32.xlu1 %v7761_v34  ;;  %v7697_v16 = vsub.f32 %v17117_v62, %v7679_v21 }
 0xd17   : > { %v7764_v30 = vsel %vm2385_vm5, %v17202_v25, 0.0  ;;  %v17215_v59 = vpop.permute.xlu1 %8307 }
 0xd18   : > { %7765 = vadd.xlane.f32.xlu0 %v7764_v30  ;;  %v7727_v11 = vmul.f32 1.442695, %v7697_v16  ;;  %v18496_v16 = vld [vmem:[#allocation95_spill] sm:$0xff] }
 0xd19   : > { %v17248_v10 = vpop.permute.xlu0 %8211 }
 0xd1a   : > { %13805 = vpow2.f32 %v7727_v11  ;;  %v18498_v11 = vld [vmem:[#allocation97_spill] sm:$0xff] }
 0xd1b   : > { %v17219_v30 = vpop.permute.xlu1 %8355 }
 0xd1c   : > { %v17217_v34 = vpop.eup %13801 }
 0xd1d   : > { %v7767_v56 = vsel %vm2385_vm5, %v17217_v34, 0.0 }
 0xd1e   : > { %v17221_v42 = vpop.eup %13803 }
 0xd27   : > { %8451 = vrot.lane.b32.xlu1 %v18493_v55, %s14363_s3  ;;  %v17225_v55 = vpop.eup %13805 }
 0xd28   : > { %v7773_v35 = vsel %vm2385_vm5, %v17225_v55, 0.0 }
 0xd2e   : > { %8403 = vrot.lane.b32.xlu0 %v18494_v58, %s14363_s3  ;;  %v7770_v58 = vsel %vm2385_vm5, %v17221_v42, 0.0 }
 0xd4b   : > { %7768 = vadd.xlane.f32.xlu1 %v7767_v56  ;;  %v18499_v56 = vld [vmem:[#allocation94_spill] sm:$0xff] }
 0xd4c   : > { %v7682_v62 = vpop.xlane.xlu1 %7681 }
 0xd4d   : > { %v7698_v18 = vsub.f32 %v17130_v22, %v7682_v62  ;;  %7771 = vadd.xlane.f32.xlu0 %v7770_v58  ;;  %v18497_v22 = vpack.i.bf16 %v18495_v28, %v18496_v16  ;;  %v18500_v62 = vpack.i.bf16 %v18498_v11, %v18499_v56 }
 0xd4f   : > { %v7729_v38 = vmul.f32 1.442695, %v7698_v18  ;;  %7774 = vadd.xlane.f32.xlu1 %v7773_v35 }
 0xd51   : > { %13807 = vpow2.f32 %v7729_v38 }
 0xd5b   : > { %v17232_v21 = vpop.eup %13807 }
 0xd5c   : > { %v7776_v54 = vsel %vm2385_vm5, %v17232_v21, 0.0 }
 0xd5d   : > { %7777 = vadd.xlane.f32.xlu0 %v7776_v54  ;;  %v7929_v54 = vsel %vm2581_vm4, %v17134_v44, 0 }
 0xd60   : > { %8547 = vrot.lane.b32.xlu1 %v15845_v31, %s14363_s3 }
 0xd64   : > { %13393 = vrot.lane.b32.xlu1 %v18497_v22, %s14362_s16 }
 0xd68   : > { %13403 = vrot.lane.b32.xlu1 %v13402_v12, %s14360_s30 }
 0xd73   : > { %8499 = vrot.lane.b32.xlu0 %v15851_v60, %s14363_s3  ;;  %s18540_s3 = sld [smem:[#allocation119_spill]] }
 0xd77   : > { %13388 = vrot.lane.b32.xlu0 %v18500_v62, %s14362_s16 }
 0xd79   : > { %s9588_s20 = scalar_lea.vmem %s18540_s3, %s18293_s21 }
 0xd7b   : > { %13398 = vrot.lane.b32.xlu0 %v13397_v6, %s14360_s30  ;;  %v7733_v31 = vpop.xlane.xlu0 %7732  ;;  %v7977_v6 = vsel %vm2581_vm4, %v17136_v33, 0  ;;  %v8025_v33 = vsel %vm2581_vm4, %v17138_v15, 0 }
 0xd7c   : > { %13809 = vrcp.f32 %v7733_v31  ;;  %v8073_v31 = vsel %vm2581_vm4, %v17140_v26, 0 }
 0xd7d   : > { %v7736_v58 = vpop.xlane.xlu1 %7735 }
 0xd7e   : > { %13811 = vrcp.f32 %v7736_v58 }
 0xd83   : > { %v7739_v20 = vpop.xlane.xlu0 %7738 }
 0xd84   : > { %13813 = vrcp.f32 %v7739_v20 }
 0xd86   : > { %v13810_v63 = vpop.eup %13809 }
 0xd87   : > { %v7795_v60 = vmul.f32 %v13810_v63, %v17150_v61  ;;  %v7742_v12 = vpop.xlane.xlu1 %7741  ;;  %v8121_v63 = vsel %vm2581_vm4, %v17142_v14, 0 }
 0xd88   : > { %v13812_v18 = vpop.eup %13811  ;;  %13815 = vrcp.f32 %v7742_v12 }
 0xd89   : > { %v7796_v35 = vmul.f32 %v13812_v18, %v17154_v41  ;;  %v7811_v38 = vpack.c.bf16 %v7795_v60, %v7795_v60 }
 0xd8b   : > { %12983 = vmatmul.mubr.msk.bf16.vlgmr.msra.gmra.mrb[236].mxu1 %vm2385_vm5, %v7811_v38  ;;  %v7745_v32 = vpop.xlane.xlu0 %7744  ;;  %v7812_v29 = vpack.c.bf16 %v7796_v35, %v7796_v35 }
 0xd8c   : > { %12993 = vmatpush3.bf16.msra.mxu1 %v7929_v54  ;;  %13817 = vrcp.f32 %v7745_v32  ;;  %12994 = vmatprep.mubr.msk.bf16.mxu1 %vm14355_vm2, %v18330_v23  ;;  %v8217_v54 = vsel %vm2581_vm4, %v17248_v10, 0 }
 0xd8d   : > { %12989 = vmatmul.mubr.msk.bf16.vlgmr.msra.gmra.mrb[244].mxu0 %vm2385_vm5, %v7812_v29  ;;  %v7748_v61 = vpop.xlane.xlu1 %7747  ;;  %13004 = vmatprep.subr.bf16.mxu1 %v18330_v23 }
 0xd8e   : > { %v13814_v41 = vpop.eup %13813  ;;  %12999 = vmatpush3.bf16.msra.mxu0 %v7977_v6  ;;  %13819 = vrcp.f32 %v7748_v61  ;;  %13000 = vmatprep.mubr.msk.bf16.mxu0 %vm14355_vm2, %v18330_v23 }
 0xd8f   : > { %v7797_v44 = vmul.f32 %v13814_v41, %v17160_v5  ;;  %13010 = vmatprep.subr.bf16.mxu0 %v18330_v23 }
 0xd91   : > { %v7813_v28 = vpack.c.bf16 %v7797_v44, %v7797_v44  ;;  %v8313_v44 = vsel %vm2581_vm4, %v17215_v59, 0 }
 0xd92   : > { %v13816_v16 = vpop.eup %13815 }
 0xd93   : > { %v7798_v22 = vmul.f32 %v13816_v16, %v17165_v48  ;;  %12995 = vmatmul.mubr.msk.bf16.vlgmr.msra.gmra.mrb[240].mxu1 %vm2385_vm5, %v7813_v28  ;;  %v7751_v11 = vpop.xlane.xlu0 %7750  ;;  %v8361_v28 = vsel %vm2581_vm4, %v17219_v30, 0 }
 0xd94   : > { %13005 = vmatpush3.bf16.msra.mxu1 %v8025_v33  ;;  %13821 = vrcp.f32 %v7751_v11  ;;  %13006 = vmatprep.mubr.msk.bf16.mxu1 %vm14355_vm2, %v18330_v23 }
 0xd95   : > { %v7754_v56 = vpop.xlane.xlu1 %7753  ;;  %v7814_v62 = vpack.c.bf16 %v7798_v22, %v7798_v22  ;;  %13016 = vmatprep.subr.bf16.mxu1 %v18330_v23 }
 0xd96   : > { %v13818_v5 = vpop.eup %13817  ;;  %13823 = vrcp.f32 %v7754_v56 }
 0xd97   : > { %v7799_v15 = vmul.f32 %v13818_v5, %v17170_v8  ;;  %13001 = vmatmul.mubr.msk.bf16.vlgmr.msra.gmra.mrb[248].mxu0 %vm2385_vm5, %v7814_v62 }
 0xd98   : > { %v13820_v48 = vpop.eup %13819  ;;  %13011 = vmatpush3.bf16.msra.mxu0 %v8073_v31  ;;  %13012 = vmatprep.mubr.msk.bf16.mxu0 %vm14355_vm2, %v18330_v23 }
 0xd99   : > { %v7800_v58 = vmul.f32 %v13820_v48, %v17174_v39  ;;  %v7815_v20 = vpack.c.bf16 %v7799_v15, %v7799_v15  ;;  %13022 = vmatprep.subr.bf16.mxu0 %v18330_v23  ;;  %v8169_v39 = vsel %vm2581_vm4, %v17144_v57, 0 }
 0xd9b   : > { %v7757_v60 = vpop.xlane.xlu1 %7756  ;;  %13007 = vmatmul.mubr.msk.bf16.vlgmr.msra.gmra.mrb[244].mxu1 %vm2385_vm5, %v7815_v20  ;;  %v7816_v8 = vpack.c.bf16 %v7800_v58, %v7800_v58 }
 0xd9c   : > { %13825 = vrcp.f32 %v7757_v60  ;;  %13017 = vmatpush3.bf16.msra.mxu1 %v8121_v63  ;;  %13018 = vmatprep.mubr.msk.bf16.mxu1 %vm14355_vm2, %v18330_v23 }
 0xd9d   : > { %v7760_v26 = vpop.xlane.xlu0 %7759  ;;  %13028 = vmatprep.subr.bf16.mxu1 %v18330_v23 }
 0xd9e   : > { %v13822_v12 = vpop.eup %13821  ;;  %13827 = vrcp.f32 %v7760_v26 }
 0xd9f   : > { %v7801_v18 = vmul.f32 %v13822_v12, %v17180_v45  ;;  %13013 = vmatmul.mubr.msk.bf16.vlgmr.msra.gmra.mrb[252].mxu0 %vm2385_vm5, %v7816_v8 }
 0xda0   : > { %v13824_v14 = vpop.eup %13823  ;;  %13023 = vmatpush3.bf16.msra.mxu0 %v8169_v39  ;;  %13024 = vmatprep.mubr.msk.bf16.mxu0 %vm14355_vm2, %v18330_v23 }
 0xda1   : > { %v7802_v35 = vmul.f32 %v13824_v14, %v17184_v4  ;;  %v7817_v38 = vpack.c.bf16 %v7801_v18, %v7801_v18  ;;  %13034 = vmatprep.subr.bf16.mxu0 %v18330_v23  ;;  %v8265_v4 = vsel %vm2581_vm4, %v17213_v3, 0 }
 0xda3   : > { %v7763_v32 = vpop.xlane.xlu1 %7762  ;;  %13019 = vmatmul.mubr.msk.bf16.vlgmr.msra.gmra.mrb[248].mxu1 %vm2385_vm5, %v7817_v38  ;;  %v7818_v57 = vpack.c.bf16 %v7802_v35, %v7802_v35 }
 0xda4   : > { %13829 = vrcp.f32 %v7763_v32  ;;  %13029 = vmatpush3.bf16.msra.mxu1 %v8217_v54  ;;  %13030 = vmatprep.mubr.msk.bf16.mxu1 %vm14355_vm2, %v18330_v23  ;;  %v18501_v54 = vmov 0   ;;  %v13523_v32 = vld [vmem:[%s8847_s14 + $0x10] sm:$0xff]  }
 0xda5   : > { %v7766_v45 = vpop.xlane.xlu0 %7765  ;;  %13040 = vmatprep.subr.bf16.mxu1 %v18330_v23 }
 0xda6   : > { %v13826_v29 = vpop.eup %13825  ;;  %13831 = vrcp.f32 %v7766_v45 }
 0xda7   : > { %v7803_v6 = vmul.f32 %v13826_v29, %v17190_v50  ;;  %13025 = vmatmul.mubr.msk.bf16.vlgmr.msra.gmra.mrb[0].mxu0 %vm2385_vm5, %v7818_v57  ;;  %v8452_v30 = vpop.permute.xlu1 %8451 }
 0xda8   : > { %v13828_v10 = vpop.eup %13827  ;;  %13035 = vmatpush3.bf16.msra.mxu0 %v8265_v4  ;;  %13036 = vmatprep.mubr.msk.bf16.mxu0 %vm14355_vm2, %v18330_v23  ;;  %v8457_v56 = vsel %vm2581_vm4, %v8452_v30, 0 }
 0xda9   : > { %v7804_v61 = vmul.f32 %v13828_v10, %v17194_v0  ;;  %v7819_v41 = vpack.c.bf16 %v7803_v6, %v7803_v6  ;;  %13046 = vmatprep.subr.bf16.mxu0 %v18330_v23  ;;  %v8404_v33 = vpop.permute.xlu0 %8403 }
 0xdaa   : > { %v8409_v11 = vsel %vm2581_vm4, %v8404_v33, 0 }
 0xdab   : > { %13031 = vmatmul.mubr.msk.bf16.vlgmr.msra.gmra.mrb[252].mxu1 %vm2385_vm5, %v7819_v41  ;;  %v7820_v50 = vpack.c.bf16 %v7804_v61, %v7804_v61  ;;  %v13524_v61 = vld [vmem:[%s8847_s14 + $0x18] sm:$0xff]  }
 0xdac   : > { %13041 = vmatpush3.bf16.msra.mxu1 %v8313_v44  ;;  %13042 = vmatprep.mubr.msk.bf16.mxu1 %vm14355_vm2, %v18330_v23 }
 0xdad   : > { %13052 = vmatprep.subr.bf16.mxu1 %v18330_v23 }
 0xdae   : > { %v13830_v3 = vpop.eup %13829 }
 0xdaf   : > { %v7805_v0 = vmul.f32 %v13830_v3, %v17198_v43  ;;  %13037 = vmatmul.mubr.msk.bf16.vlgmr.msra.gmra.mrb[4].mxu0 %vm2385_vm5, %v7820_v50  ;;  %v18502_v3 = vld [vmem:[#allocation99_spill] sm:$0xff] }
 0xdb0   : > { %v13832_v16 = vpop.eup %13831  ;;  %13047 = vmatpush3.bf16.msra.mxu0 %v8361_v28  ;;  %13048 = vmatprep.mubr.msk.bf16.mxu0 %vm14355_vm2, %v18330_v23  ;;  %v18503_v28 = vld [vmem:[#allocation98_spill] sm:$0xff] }
 0xdb1   : > { %v7821_v59 = vpack.c.bf16 %v7805_v0, %v7805_v0  ;;  %v7806_v22 = vmul.f32 %v13832_v16, %v17202_v25  ;;  %13058 = vmatprep.subr.bf16.mxu0 %v18330_v23  ;;  %v18504_v0 = vpack.i.bf16 %v18502_v3, %v18503_v28 }
 0xdb3   : > { %13043 = vmatmul.mubr.msk.bf16.vlgmr.msra.gmra.mrb[0].mxu1 %vm2385_vm5, %v7821_v59  ;;  %v7822_v43 = vpack.c.bf16 %v7806_v22, %v7806_v22 }
 0xdb4   : > { %13053 = vmatpush3.bf16.msra.mxu1 %v8409_v11  ;;  %13054 = vmatprep.mubr.msk.bf16.mxu1 %vm14355_vm2, %v18330_v23 }
 0xdb5   : > { %13064 = vmatprep.subr.bf16.mxu1 %v18330_v23 }
 0xdb7   : > { %13049 = vmatmul.mubr.msk.bf16.vlgmr.msra.gmra.mrb[8].mxu0 %vm2385_vm5, %v7822_v43 }
 0xdb8   : > { %13059 = vmatpush3.bf16.msra.mxu0 %v8457_v56  ;;  %13060 = vmatprep.mubr.msk.bf16.mxu0 %vm14355_vm2, %v18330_v23 }
 0xdb9   : > { %13070 = vmatprep.subr.bf16.mxu0 %v18330_v23 }
 0xdd8   : > { %v7769_v25 = vpop.xlane.xlu1 %7768 }
 0xdd9   : > { %13833 = vrcp.f32 %v7769_v25 }
 0xdda   : > { %v7772_v62 = vpop.xlane.xlu0 %7771 }
 0xddb   : > { %13835 = vrcp.f32 %v7772_v62 }
 0xddc   : > { %v7775_v5 = vpop.xlane.xlu1 %7774 }
 0xddd   : > { %13837 = vrcp.f32 %v7775_v5 }
 0xde0   : > { %v8548_v63 = vpop.permute.xlu1 %8547 }
 0xde1   : > { %v8553_v8 = vsel %vm2581_vm4, %v8548_v63, 0 }
 0xde3   : > { %v13834_v31 = vpop.eup %13833 }
 0xde4   : > { %v7807_v15 = vmul.f32 %v13834_v31, %v17217_v34  ;;  %v18505_v31 = vld [vmem:[#allocation101_spill] sm:$0xff] }
 0xde5   : > { %v13836_v48 = vpop.eup %13835 }
 0xde6   : > { %v7823_v58 = vpack.c.bf16 %v7807_v15, %v7807_v15  ;;  %v7808_v20 = vmul.f32 %v13836_v48, %v17221_v42  ;;  %v18506_v15 = vld [vmem:[#allocation100_spill] sm:$0xff] }
 0xde7   : > { %v13838_v26 = vpop.eup %13837  ;;  %v18507_v48 = vpack.i.bf16 %v18505_v31, %v18506_v15 }
 0xde8   : > { %v7824_v60 = vpack.c.bf16 %v7808_v20, %v7808_v20  ;;  %13055 = vmatmul.mubr.msk.bf16.vlgmr.msra.gmra.mrb[4].mxu1 %vm2385_vm5, %v7823_v58  ;;  %v7809_v34 = vmul.f32 %v13838_v26, %v17225_v55  ;;  %v13522_v55 = vld [vmem:[%s8847_s14 + $0x8] sm:$0xff]  }
 0xde9   : > { %13066 = vmatprep.mubr.msk.bf16.mxu1 %vm14355_vm2, %v18330_v23 }
 0xdea   : > { %13061 = vmatmul.mubr.msk.bf16.vlgmr.msra.gmra.mrb[12].mxu0 %vm2385_vm5, %v7824_v60  ;;  %v7778_v12 = vpop.xlane.xlu0 %7777  ;;  %v7825_v18 = vpack.c.bf16 %v7809_v34, %v7809_v34  ;;  %v18509_v34 = vld [vmem:[#allocation102_spill] sm:$0xff] }
 0xdeb   : > { %13071 = vmatpush3.bf16.msra.mxu0 %v8553_v8  ;;  %13839 = vrcp.f32 %v7778_v12  ;;  %13072 = vmatprep.mubr.msk.bf16.mxu0 %vm14355_vm2, %v18330_v23  ;;  %v13521_v23 = vld [vmem:[%s8847_s14] sm:$0xff]   ;;  %v18508_v12 = vld [vmem:[#allocation103_spill] sm:$0xff]  ;;  %s18542_s14 = sld [smem:[#allocation120_spill]] (!%p11858_p13) }
 0xdee   : > { %v8500_v42 = vpop.permute.xlu0 %8499 }
 0xdef   : > { %v8505_v39 = vsel %vm2581_vm4, %v8500_v42, 0  ;;  %v18510_v42 = vpack.i.bf16 %v18508_v12, %v18509_v34  ;;  %v18521_v34 = vld [vmem:[#allocation47_spill] sm:$0xff] }
 0xdf0   : > { %13065 = vmatpush3.bf16.msra.mxu1 %v8505_v39 }
 0xdf1   : > { %13076 = vmatprep.subr.bf16.mxu1 %v13521_v23 }
 0xdf2   : > { %v13389_v15 = vpop.permute.xlu0 %13388 }
 0xdf3   : > { %13067 = vmatmul.mubr.msk.bf16.vlgmr.msra.gmra.mrb[8].mxu1 %vm2385_vm5, %v7825_v18 }
 0xdf4   : > { %13077 = vmatpush3.bf16.msra.mxu1 %v13521_v23 }
 0xdf5   : > { %v13840_v14 = vpop.eup %13839  ;;  %13078 = vmatprep.subr.bf16.mxu1 %v13522_v55 }
 0xdf6   : > { %v7810_v35 = vmul.f32 %v13840_v14, %v17232_v21 }
 0xdf8   : > { %v7826_v38 = vpack.c.bf16 %v7810_v35, %v7810_v35  ;;  %13079 = vmatpush3.bf16.msra.mxu1 %v13522_v55  ;;  %v18511_v55 = vld [vmem:[#allocation105_spill] sm:$0xff] }
 0xdf9   : > { %13080 = vmatprep.subr.bf16.mxu1 %v13523_v32 }
 0xdfa   : > { %13073 = vmatmul.mubr.msk.bf16.vlgmr.msra.gmra.mrb[16].mxu0 %vm2385_vm5, %v7826_v38 }
 0xdfb   : > { %9424 = vmatprep.mubr.bf16.mxu0 %v18501_v54 }
 0xdfc   : > { %13081 = vmatpush3.bf16.msra.mxu1 %v13523_v32  ;;  %v18512_v32 = vld [vmem:[#allocation104_spill] sm:$0xff] }
 0xdfd   : > { %13082 = vmatprep.subr.bf16.mxu1 %v13524_v61 }
 0xe00   : > { %13083 = vmatpush3.bf16.msra.mxu1 %v13524_v61 }
 0xe5e   : > { %v7869_v57 = vpop.f32.mrb[236].mxu1 }
 0xe5f   : > { %v12984_v45 = vpop.f32.mrb[237].mxu1 }
 0xe60   : > { %v7872_v29 = vpop.f32.mrb[238].mxu1  ;;  %v7917_v4 = vpop.f32.mrb[244].mxu0 }
 0xe61   : > { %v13407_v21 = vpack.i.bf16 %v7917_v4, %v7869_v57  ;;  %v12985_v6 = vpop.f32.mrb[239].mxu1  ;;  %v12990_v10 = vpop.f32.mrb[245].mxu0  ;;  %v18513_v57 = vpack.i.bf16 %v18511_v55, %v18512_v32 }
 0xe62   : > { %v7920_v41 = vpop.f32.mrb[246].mxu0 }
 0xe63   : > { %v12991_v44 = vpop.f32.mrb[247].mxu0  ;;  %13408 = vrot.lane.b32.xlu0 %v13407_v21, %s14358_s0  ;;  %v18514_v41 = vld [vmem:[#allocation107_spill] sm:$0xff] }
 0xe64   : > { %v18515_v44 = vld [vmem:[#allocation106_spill] sm:$0xff] }
 0xe66   : > { %v7965_v50 = vpop.f32.mrb[240].mxu1 }
 0xe67   : > { %13418 = vrot.lane.b32.xlu0 %v18504_v0, %s14362_s16  ;;  %v12996_v16 = vpop.f32.mrb[241].mxu1 }
 0xe68   : > { %v7968_v33 = vpop.f32.mrb[242].mxu1 }
 0xe69   : > { %v12997_v59 = vpop.f32.mrb[243].mxu1 }
 0xe6a   : > { %v8013_v22 = vpop.f32.mrb[248].mxu0 }
 0xe6b   : > { %v13412_v11 = vpack.i.bf16 %v8013_v22, %v7965_v50  ;;  %v13002_v30 = vpop.f32.mrb[249].mxu0  ;;  %13428 = vrot.lane.b32.xlu0 %v13427_v37, %s14360_s30  ;;  %v18516_v50 = vpack.i.bf16 %v18514_v41, %v18515_v44 }
 0xe6c   : > { %v8016_v43 = vpop.f32.mrb[250].mxu0 }
 0xe6d   : > { %v13003_v56 = vpop.f32.mrb[251].mxu0  ;;  %13413 = vrot.lane.b32.xlu1 %v13412_v11, %s14358_s0 }
 0xe6e   : > { %v8061_v25 = vpop.f32.mrb[244].mxu1 }
 0xe6f   : > { %v13008_v62 = vpop.f32.mrb[245].mxu1 }
 0xe70   : > { %v8064_v5 = vpop.f32.mrb[246].mxu1 }
 0xe71   : > { %13423 = vrot.lane.b32.xlu1 %v18507_v48, %s14362_s16  ;;  %v13009_v58 = vpop.f32.mrb[247].mxu1 }
 0xe72   : > { %v8109_v20 = vpop.f32.mrb[252].mxu0 }
 0xe73   : > { %v13437_v63 = vpack.i.bf16 %v8109_v20, %v8061_v25  ;;  %v13014_v60 = vpop.f32.mrb[253].mxu0 }
 0xe74   : > { %v8112_v26 = vpop.f32.mrb[254].mxu0  ;;  %v13390_v60 = vunpack.i.l.bf16 %v13389_v15 }
 0xe75   : > { %v13015_v8 = vpop.f32.mrb[255].mxu0  ;;  %13433 = vrot.lane.b32.xlu1 %v13432_v13, %s14360_s30  ;;  %13438 = vrot.lane.b32.xlu0 %v13437_v63, %s14358_s0  ;;  %v13391_v63 = vunpack.i.h.bf16 %v13389_v15 }
 0xe76   : > { %v8157_v46 = vpop.f32.mrb[248].mxu1 }
 0xe77   : > { %v13020_v24 = vpop.f32.mrb[249].mxu1 }
 0xe78   : > { %v8160_v37 = vpop.f32.mrb[250].mxu1 }
 0xe79   : > { %13448 = vrot.lane.b32.xlu0 %v18510_v42, %s14362_s16  ;;  %v13021_v39 = vpop.f32.mrb[251].mxu1  ;;  %v18520_v37 = vld [vmem:[#allocation49_spill] sm:$0xff]  ;;  %v8787_v42 = vsel %vm1603_vm3, %v18521_v34, %v13390_v60 }
 0xe7a   : > { %v8205_v18 = vpop.f32.mrb[0].mxu0  ;;  %v8788_v12 = vsel %vm1603_vm3, %v18520_v37, %v13391_v63 }
 0xe7b   : > { %v13442_v14 = vpack.i.bf16 %v8205_v18, %v8157_v46  ;;  %v13026_v35 = vpop.f32.mrb[1].mxu0  ;;  %v13394_v46 = vpop.permute.xlu1 %13393 }
 0xe7c   : > { %v8208_v38 = vpop.f32.mrb[2].mxu0  ;;  %v13395_v55 = vunpack.i.l.bf16 %v13394_v46 }
 0xe7d   : > { %v13027_v23 = vpop.f32.mrb[3].mxu0  ;;  %13458 = vrot.lane.b32.xlu0 %v13457_v27, %s14360_s30  ;;  %13443 = vrot.lane.b32.xlu1 %v13442_v14, %s14358_s0 }
 0xe7e   : > { %v8253_v7 = vpop.f32.mrb[252].mxu1 }
 0xe7f   : > { %v13032_v52 = vpop.f32.mrb[253].mxu1 }
 0xe80   : > { %v8256_v13 = vpop.f32.mrb[254].mxu1  ;;  %v13404_v52 = vpop.permute.xlu1 %13403 }
 0xe81   : > { %13453 = vrot.lane.b32.xlu1 %v18513_v57, %s14362_s16  ;;  %v13033_v45 = vpop.f32.mrb[255].mxu1  ;;  %v13396_v13 = vunpack.i.h.bf16 %v13394_v46  ;;  %v13406_v57 = vunpack.i.h.bf16 %v13404_v52 }
 0xe82   : > { %v8301_v29 = vpop.f32.mrb[4].mxu0  ;;  %v13405_v45 = vunpack.i.l.bf16 %v13404_v52  ;;  %v18529_v52 = vld [vmem:[#allocation87_spill] sm:$0xff] }
 0xe83   : > { %v13467_v4 = vpack.i.bf16 %v8301_v29, %v8253_v7  ;;  %v13038_v21 = vpop.f32.mrb[5].mxu0 }
 0xe84   : > { %v8304_v6 = vpop.f32.mrb[6].mxu0 }
 0xe85   : > { %13463 = vrot.lane.b32.xlu1 %v13462_v2, %s14360_s30  ;;  %13468 = vrot.lane.b32.xlu0 %v13467_v4, %s14358_s0  ;;  %v13039_v51 = vpop.f32.mrb[7].mxu0  ;;  %v18518_v2 = vld [vmem:[#allocation108_spill] sm:$0xff]  ;;  %v18522_v4 = vld [vmem:[#allocation45_spill] sm:$0xff] }
 0xe86   : > { %v8349_v53 = vpop.f32.mrb[0].mxu1  ;;  %v18519_v33 = vpack.i.bf16 %v18517_v36, %v18518_v2  ;;  %v8790_v21 = vsel %vm1603_vm3, %v18522_v4, %v13396_v13  ;;  %v18523_v6 = vld [vmem:[#allocation44_spill] sm:$0xff] }
 0xe87   : > { %v13044_v27 = vpop.f32.mrb[1].mxu1  ;;  %v8789_v51 = vsel %vm1603_vm3, %v18523_v6, %v13395_v55 }
 0xe88   : > { %v8352_v10 = vpop.f32.mrb[2].mxu1 }
 0xe89   : > { %v13045_v61 = vpop.f32.mrb[3].mxu1  ;;  %13478 = vrot.lane.b32.xlu0 %v18516_v50, %s14362_s16  ;;  %v8806_v10 = vsel %vm8803_vm6, %v8789_v51, %v13405_v45 }
 0xe8a   : > { %v8397_v3 = vpop.f32.mrb[8].mxu0  ;;  %v8807_v61 = vsel %vm8803_vm6, %v8790_v21, %v13406_v57 }
 0xe8b   : > { %v13472_v28 = vpack.i.bf16 %v8397_v3, %v8349_v53  ;;  %v13050_v0 = vpop.f32.mrb[9].mxu0 }
 0xe8c   : > { %v8400_v16 = vpop.f32.mrb[10].mxu0 }
 0xe8d   : > { %13488 = vrot.lane.b32.xlu0 %v13487_v9, %s14360_s30  ;;  %13473 = vrot.lane.b32.xlu1 %v13472_v28, %s14358_s0  ;;  %v13051_v47 = vpop.f32.mrb[11].mxu0 }
 0xe91   : > { %13483 = vrot.lane.b32.xlu1 %v18519_v33, %s14362_s16  ;;  %v18524_v33 = vld [vmem:[#allocation83_spill] sm:$0xff] }
 0xe95   : > { %13493 = vrot.lane.b32.xlu1 %v13492_v1, %s14360_s30  ;;  %v13399_v1 = vpop.permute.xlu0 %13398  ;;  %s9043_s30 = scalar_lea.vmem [#allocation14], %s18293_s21 }
 0xe96   : > { %v13401_v26 = vunpack.i.h.bf16 %v13399_v1  ;;  %v13400_v8 = vunpack.i.l.bf16 %v13399_v1 }
 0xe98   : > { %v8804_v14 = vsel %vm8803_vm6, %v8787_v42, %v13400_v8  ;;  %v8805_v35 = vsel %vm8803_vm6, %v8788_v12, %v13401_v26 }
 0xebb   : > { %v8445_v59 = vpop.f32.mrb[4].mxu1 }
 0xebc   : > { %v13056_v22 = vpop.f32.mrb[5].mxu1 }
 0xebd   : > { %v8448_v11 = vpop.f32.mrb[6].mxu1  ;;  %v8493_v30 = vpop.f32.mrb[12].mxu0  ;;  %v18525_v22 = vld [vmem:[#allocation50_spill] sm:$0xff] }
 0xebe   : > { %v13497_v43 = vpack.i.bf16 %v8493_v30, %v8445_v59  ;;  %v13057_v49 = vpop.f32.mrb[7].mxu1  ;;  %v13062_v40 = vpop.f32.mrb[13].mxu0 }
 0xebf   : > { %v8496_v9 = vpop.f32.mrb[14].mxu0 }
 0xec0   : > { %13498 = vrot.lane.b32.xlu0 %v13497_v43, %s14358_s0  ;;  %v13063_v56 = vpop.f32.mrb[15].mxu0 }
 0xec6   : > { %v8541_v25 = vpop.f32.mrb[8].mxu1 }
 0xec7   : > { %v13068_v62 = vpop.f32.mrb[9].mxu1 }
 0xec8   : > { %v8544_v5 = vpop.f32.mrb[10].mxu1 }
 0xec9   : > { %v13069_v31 = vpop.f32.mrb[11].mxu1 }
 0xecd   : > { %v8589_v48 = vpop.f32.mrb[16].mxu0 }
 0xece   : > { %v13502_v58 = vpack.i.bf16 %v8589_v48, %v8541_v25  ;;  %v13074_v17 = vpop.f32.mrb[17].mxu0 }
 0xecf   : > { %v8592_v19 = vpop.f32.mrb[18].mxu0 }
 0xed0   : > { %v13075_v20 = vpop.f32.mrb[19].mxu0  ;;  %13503 = vrot.lane.b32.xlu1 %v13502_v58, %s14358_s0  ;;  %v18526_v19 = vld [vmem:[#allocation85_spill] sm:$0xff] }
 0xed1   : > { %v18527_v20 = vld [vmem:[#allocation84_spill] sm:$0xff] }
 0xed5   : > { %v13409_v24 = vpop.permute.xlu0 %13408 }
 0xed6   : > { %v13411_v39 = vunpack.i.h.bf16 %v13409_v24  ;;  %v13410_v18 = vunpack.i.l.bf16 %v13409_v24 }
 0xed8   : > { %v8821_v38 = vsel %vm8820_vm7, %v8804_v14, %v13410_v18  ;;  %v8822_v23 = vsel %vm8820_vm7, %v8805_v35, %v13411_v39 }
 0xed9   : > { %v8837_v7 = vpack.c.bf16 %v8822_v23, %v8821_v38  ;;  %v13419_v32 = vpop.permute.xlu0 %13418  ;;  %v18528_v23 = vld [vmem:[#allocation86_spill] sm:$0xff] }
 0xeda   : > { %v13421_v28 = vunpack.i.h.bf16 %v13419_v32  ;;  %v13420_v0 = vunpack.i.l.bf16 %v13419_v32 }
 0xedb   : > { %13084 = vmatprep.mubr.msk.bf16.mxu1 %vm810_vm1, %v8837_v7 }
 0xedc   : > { %v8792_v59 = vsel %vm1603_vm3, %v18524_v33, %v13421_v28  ;;  %v8791_v11 = vsel %vm1603_vm3, %v18525_v22, %v13420_v0 }
 0xedd   : > { %v13429_v41 = vpop.permute.xlu0 %13428 }
 0xede   : > { %v13431_v47 = vunpack.i.h.bf16 %v13429_v41  ;;  %v13430_v36 = vunpack.i.l.bf16 %v13429_v41  ;;  %v18530_v41 = vld [vmem:[#allocation88_spill] sm:$0xff] }
 0xedf   : > { %v13414_v29 = vpop.permute.xlu1 %13413 }
 0xee0   : > { %v13416_v53 = vunpack.i.h.bf16 %v13414_v29  ;;  %v13415_v27 = vunpack.i.l.bf16 %v13414_v29  ;;  %v8808_v49 = vsel %vm8803_vm6, %v8791_v11, %v13430_v36  ;;  %v8809_v40 = vsel %vm8803_vm6, %v8792_v59, %v13431_v47 }
 0xee2   : > { %v8824_v44 = vsel %vm8820_vm7, %v8807_v61, %v13416_v53  ;;  %v8823_v50 = vsel %vm8820_vm7, %v8806_v10, %v13415_v27 }
 0xee3   : > { %v8838_v3 = vpack.c.bf16 %v8824_v44, %v8823_v50  ;;  %v13424_v16 = vpop.permute.xlu1 %13423  ;;  %v18531_v50 = vld [vmem:[#allocation89_spill] sm:$0xff] }
 0xee4   : > { %v13426_v5 = vunpack.i.h.bf16 %v13424_v16  ;;  %v13425_v31 = vunpack.i.l.bf16 %v13424_v16 }
 0xee5   : > { %13085 = vmatmul.mubr.msk.bf16.vlgmr.msra.gmra.mrb[12].mxu1 %vm810_vm1, %v8838_v3 }
 0xee6   : > { %v8794_v1 = vsel %vm1603_vm3, %v18526_v19, %v13426_v5  ;;  %v8793_v63 = vsel %vm1603_vm3, %v18527_v20, %v13425_v31 }
 0xee7   : > { %v13439_v2 = vpop.permute.xlu0 %13438  ;;  %v13434_v9 = vpop.permute.xlu1 %13433 }
 0xee8   : > { %v13441_v30 = vunpack.i.h.bf16 %v13439_v2  ;;  %v13440_v43 = vunpack.i.l.bf16 %v13439_v2  ;;  %v13436_v48 = vunpack.i.h.bf16 %v13434_v9  ;;  %v13435_v58 = vunpack.i.l.bf16 %v13434_v9  ;;  %v18532_v9 = vld [vmem:[#allocation90_spill] sm:$0xff] }
 0xeea   : > { %v8825_v56 = vsel %vm8820_vm7, %v8808_v49, %v13440_v43  ;;  %v8826_v25 = vsel %vm8820_vm7, %v8809_v40, %v13441_v30  ;;  %v8810_v8 = vsel %vm8803_vm6, %v8793_v63, %v13435_v58  ;;  %v8811_v46 = vsel %vm8803_vm6, %v8794_v1, %v13436_v48 }
 0xeeb   : > { %v8839_v62 = vpack.c.bf16 %v8826_v25, %v8825_v56  ;;  %v13449_v15 = vpop.permute.xlu0 %13448  ;;  %v18533_v25 = vld [vmem:[#allocation91_spill] sm:$0xff] }
 0xeec   : > { %v13451_v42 = vunpack.i.h.bf16 %v13449_v15  ;;  %v13450_v39 = vunpack.i.l.bf16 %v13449_v15 }
 0xeed   : > { %13088 = vmatprep.mubr.msk.bf16.mxu1 %vm810_vm1, %v8839_v62 }
 0xeee   : > { %v8796_v7 = vsel %vm1603_vm3, %v18528_v23, %v13451_v42  ;;  %v8795_v13 = vsel %vm1603_vm3, %v18529_v52, %v13450_v39  ;;  %v17485_v52 = vld [vmem:[%s9017_s19] ss:$0 sm:$0xff] }
 0xeef   : > { %v13444_v17 = vpop.permute.xlu1 %13443  ;;  %v13459_v12 = vpop.permute.xlu0 %13458 }
 0xef0   : > { %v13446_v60 = vunpack.i.h.bf16 %v13444_v17  ;;  %v13445_v26 = vunpack.i.l.bf16 %v13444_v17  ;;  %v13461_v14 = vunpack.i.h.bf16 %v13459_v12  ;;  %v13460_v35 = vunpack.i.l.bf16 %v13459_v12  ;;  %v18535_v12 = vld [vmem:[#allocation92_spill] sm:$0xff] }
 0xef2   : > { %v8828_v24 = vsel %vm8820_vm7, %v8811_v46, %v13446_v60  ;;  %v8827_v37 = vsel %vm8820_vm7, %v8810_v8, %v13445_v26  ;;  %v8812_v57 = vsel %vm8803_vm6, %v8795_v13, %v13460_v35  ;;  %v8813_v45 = vsel %vm8803_vm6, %v8796_v7, %v13461_v14 }
 0xef3   : > { %v8840_v34 = vpack.c.bf16 %v8828_v24, %v8827_v37  ;;  %v13454_v18 = vpop.permute.xlu1 %13453  ;;  %v18534_v24 = vld [vmem:[#allocation93_spill] sm:$0xff] }
 0xef4   : > { %v13456_v51 = vunpack.i.h.bf16 %v13454_v18  ;;  %v13455_v53 = vunpack.i.l.bf16 %v13454_v18 }
 0xef5   : > { %13089 = vmatmul.mubr.msk.bf16.gmra.mrb[16].mxu1 %vm810_vm1, %v8840_v34 }
 0xef6   : > { %v8798_v44 = vsel %vm1603_vm3, %v18530_v41, %v13456_v51  ;;  %v8797_v3 = vsel %vm1603_vm3, %v18531_v50, %v13455_v53 }
 0xef7   : > { %v13469_v38 = vpop.permute.xlu0 %13468  ;;  %v13464_v29 = vpop.permute.xlu1 %13463 }
 0xef8   : > { %v13471_v55 = vunpack.i.h.bf16 %v13469_v38  ;;  %v13470_v32 = vunpack.i.l.bf16 %v13469_v38  ;;  %v13466_v27 = vunpack.i.h.bf16 %v13464_v29  ;;  %v13465_v10 = vunpack.i.l.bf16 %v13464_v29 }
 0xefa   : > { %v8829_v4 = vsel %vm8820_vm7, %v8812_v57, %v13470_v32  ;;  %v8830_v21 = vsel %vm8820_vm7, %v8813_v45, %v13471_v55  ;;  %v8814_v16 = vsel %vm8803_vm6, %v8797_v3, %v13465_v10  ;;  %v8815_v47 = vsel %vm8803_vm6, %v8798_v44, %v13466_v27  ;;  %v13873_v55 = vld [vmem:[#allocation2 + $0x10] sm:$0xff]  ;;  %v13874_v57 = vld [vmem:[#allocation2] sm:$0xff]  ;;  %v13876_v27 = vld [vmem:[#allocation2 + $0x18] sm:$0xff] }
 0xefb   : > { %v8841_v6 = vpack.c.bf16 %v8830_v21, %v8829_v4  ;;  %v13479_v59 = vpop.permute.xlu0 %13478 }
 0xefc   : > { %v13481_v11 = vunpack.i.h.bf16 %v13479_v59  ;;  %v13480_v30 = vunpack.i.l.bf16 %v13479_v59 }
 0xefd   : > { %13092 = vmatprep.mubr.msk.bf16.mxu1 %vm810_vm1, %v8841_v6  ;;  %v13875_v6 = vld [vmem:[#allocation2 + $0x8] sm:$0xff] }
 0xefe   : > { %v8800_v56 = vsel %vm1603_vm3, %v18532_v9, %v13481_v11  ;;  %v8799_v62 = vsel %vm1603_vm3, %v18533_v25, %v13480_v30  ;;  %v13879_v30 = vld [vmem:[#allocation2 + $0x38] sm:$0xff] }
 0xeff   : > { %v13474_v61 = vpop.permute.xlu1 %13473  ;;  %v13489_v22 = vpop.permute.xlu0 %13488 }
 0xf00   : > { %v13476_v28 = vunpack.i.h.bf16 %v13474_v61  ;;  %v13475_v0 = vunpack.i.l.bf16 %v13474_v61  ;;  %v13491_v43 = vunpack.i.h.bf16 %v13489_v22  ;;  %v13490_v49 = vunpack.i.l.bf16 %v13489_v22 }
 0xf02   : > { %v8832_v36 = vsel %vm8820_vm7, %v8815_v47, %v13476_v28  ;;  %v8831_v2 = vsel %vm8820_vm7, %v8814_v16, %v13475_v0  ;;  %v8816_v15 = vsel %vm8803_vm6, %v8799_v62, %v13490_v49  ;;  %v8817_v48 = vsel %vm8803_vm6, %v8800_v56, %v13491_v43  ;;  %v13877_v47 = vld [vmem:[#allocation2 + $0x30] sm:$0xff]  ;;  %v13880_v49 = vld [vmem:[#allocation2 + $0x28] sm:$0xff] }
 0xf03   : > { %v8842_v33 = vpack.c.bf16 %v8832_v36, %v8831_v2  ;;  %v13484_v1 = vpop.permute.xlu1 %13483  ;;  %v13878_v2 = vld [vmem:[#allocation2 + $0x20] sm:$0xff] }
 0xf04   : > { %v13486_v63 = vunpack.i.h.bf16 %v13484_v1  ;;  %v13485_v60 = vunpack.i.l.bf16 %v13484_v1  ;;  %v13882_v1 = vld [vmem:[#allocation2 + $0x40] sm:$0xff] }
 0xf05   : > { %13093 = vmatmul.mubr.msk.bf16.gmra.mrb[20].mxu1 %vm810_vm1, %v8842_v33 }
 0xf06   : > { %v8802_v37 = vsel %vm1603_vm3, %v18534_v24, %v13486_v63  ;;  %v8801_v34 = vsel %vm1603_vm3, %v18535_v12, %v13485_v60  ;;  %v13884_v24 = vld [vmem:[#allocation2 + $0x48] sm:$0xff] }
 0xf07   : > { %v13494_v20 = vpop.permute.xlu1 %13493 }
 0xf08   : > { %v13496_v26 = vunpack.i.h.bf16 %v13494_v20  ;;  %v13495_v8 = vunpack.i.l.bf16 %v13494_v20 }
 0xf0a   : > { %v8818_v18 = vsel %vm8803_vm6, %v8801_v34, %v13495_v8  ;;  %v8819_v14 = vsel %vm8803_vm6, %v8802_v37, %v13496_v26  ;;  %v13883_v8 = vld [vmem:[#allocation2 + $0x58] sm:$0xff] }
 0xf32   : > { %v13499_v40 = vpop.permute.xlu0 %13498 }
 0xf33   : > { %v13501_v5 = vunpack.i.h.bf16 %v13499_v40  ;;  %v13500_v31 = vunpack.i.l.bf16 %v13499_v40 }
 0xf35   : > { %v8833_v58 = vsel %vm8820_vm7, %v8816_v15, %v13500_v31  ;;  %v8834_v17 = vsel %vm8820_vm7, %v8817_v48, %v13501_v5 }
 0xf36   : > { %v8843_v19 = vpack.c.bf16 %v8834_v17, %v8833_v58  ;;  %v13881_v17 = vld [vmem:[#allocation2 + $0x50] sm:$0xff] }
 0xf38   : > { %13096 = vmatprep.mubr.msk.bf16.mxu1 %vm810_vm1, %v8843_v19 }
 0xf42   : > { %v13504_v46 = vpop.permute.xlu1 %13503 }
 0xf43   : > { %v13506_v42 = vunpack.i.h.bf16 %v13504_v46  ;;  %v13505_v39 = vunpack.i.l.bf16 %v13504_v46 }
 0xf45   : > { %v8836_v35 = vsel %vm8820_vm7, %v8819_v14, %v13506_v42  ;;  %v8835_v38 = vsel %vm8820_vm7, %v8818_v18, %v13505_v39 }
 0xf46   : > { %v8844_v23 = vpack.c.bf16 %v8836_v35, %v8835_v38 }
 0xf48   : > { %13097 = vmatmul.mubr.msk.bf16.gmra.mrb[24].mxu1 %vm810_vm1, %v8844_v23 }
 0xfb8   : > { %v13086_v7 = vpop.f32.mrb[12].mxu1 }
 0xfb9   : > { %v8938_v13 = vpop.f32.mrb[13].mxu1  ;;  %v9003_v32 = vadd.f32 %v13873_v55, %v13086_v7  ;;  %v13885_v7 = vld [vmem:[#allocation2 + $0x70] sm:$0xff]  ;;  %v13886_v55 = vld [vmem:[#allocation2 + $0x60] sm:$0xff] }
 0xfba   : > { %v9001_v45 = vadd.f32 %v13874_v57, %v8938_v13  ;;  %v13087_v29 = vpop.f32.mrb[14].mxu1 }
 0xfbb   : > { %v8941_v4 = vpop.f32.mrb[15].mxu1  ;;  %v17491_v53 = vadd.f32 %v17485_v52, %v9003_v32  ;;  %v9004_v10 = vadd.f32 %v13876_v27, %v13087_v29 }
 0xfbc   : > { %v17488_v21 = vadd.f32 %v17485_v52, %v9001_v45  ;;  %v9002_v51 = vadd.f32 %v13875_v6, %v8941_v4  ;;  %v13887_v4 = vld [vmem:[#allocation2 + $0x78] sm:$0xff] }
 0xfbd   : > { %v17501_v50 = vadd.f32 %v17485_v52, %v9004_v10  ;;  %v9051_v3 = vsel %vm810_vm1, %v17491_v53, 0.0 }
 0xfbe   : > { %v17494_v61 = vadd.f32 %v17485_v52, %v9002_v51  ;;  %v9045_v41 = vsel %vm810_vm1, %v17488_v21, 0.0  ;;  %v13888_v51 = vld [vmem:[#allocation2 + $0x68] sm:$0xff] }
 0xfbf   : > { %9046 = vadd.xlane.f32.xlu0 %v9045_v41  ;;  %v9054_v28 = vsel %vm810_vm1, %v17501_v50, 0.0 }
 0xfc0   : > { %v9048_v44 = vsel %vm810_vm1, %v17494_v61, 0.0 }
 0xfc1   : > { %9049 = vadd.xlane.f32.xlu1 %v9048_v44 }
 0xfc3   : > { %9052 = vadd.xlane.f32.xlu0 %v9051_v3 }
 0xfc7   : > { %9055 = vadd.xlane.f32.xlu0 %v9054_v28 }
 0xfc8   : > { %v13090_v0 = vpop.f32.mrb[16].mxu1 }
 0xfc9   : > { %v8954_v16 = vpop.f32.mrb[17].mxu1  ;;  %v9007_v36 = vadd.f32 %v13877_v47, %v13090_v0 }
 0xfca   : > { %v9005_v33 = vadd.f32 %v13878_v2, %v8954_v16  ;;  %v13091_v59 = vpop.f32.mrb[18].mxu1 }
 0xfcb   : > { %v8957_v22 = vpop.f32.mrb[19].mxu1  ;;  %v9008_v43 = vadd.f32 %v13879_v30, %v13091_v59  ;;  %v17511_v9 = vadd.f32 %v17485_v52, %v9007_v36 }
 0xfcc   : > { %v17508_v11 = vadd.f32 %v17485_v52, %v9005_v33  ;;  %v9006_v40 = vadd.f32 %v13880_v49, %v8957_v22 }
 0xfcd   : > { %v17519_v62 = vadd.f32 %v17485_v52, %v9008_v43  ;;  %v9063_v31 = vsel %vm810_vm1, %v17511_v9, 0.0 }
 0xfce   : > { %v17514_v56 = vadd.f32 %v17485_v52, %v9006_v40  ;;  %v9057_v25 = vsel %vm810_vm1, %v17508_v11, 0.0 }
 0xfcf   : > { %9058 = vadd.xlane.f32.xlu0 %v9057_v25  ;;  %v9066_v15 = vsel %vm810_vm1, %v17519_v62, 0.0 }
 0xfd0   : > { %v9060_v5 = vsel %vm810_vm1, %v17514_v56, 0.0 }
 0xfd1   : > { %9061 = vadd.xlane.f32.xlu1 %v9060_v5 }
 0xfd3   : > { %9064 = vadd.xlane.f32.xlu0 %v9063_v31 }
 0xfd5   : > { %9067 = vadd.xlane.f32.xlu1 %v9066_v15 }
 0xfd8   : > { %v13094_v48 = vpop.f32.mrb[20].mxu1 }
 0xfd9   : > { %v8970_v58 = vpop.f32.mrb[21].mxu1  ;;  %v9011_v19 = vadd.f32 %v13881_v17, %v13094_v48 }
 0xfda   : > { %v9009_v20 = vadd.f32 %v13882_v1, %v8970_v58  ;;  %v13095_v63 = vpop.f32.mrb[22].mxu1 }
 0xfdb   : > { %v8973_v60 = vpop.f32.mrb[23].mxu1  ;;  %v9012_v46 = vadd.f32 %v13883_v8, %v13095_v63  ;;  %v17531_v12 = vadd.f32 %v17485_v52, %v9011_v19 }
 0xfdc   : > { %v17528_v26 = vadd.f32 %v17485_v52, %v9009_v20  ;;  %v9010_v37 = vadd.f32 %v13884_v24, %v8973_v60 }
 0xfdd   : > { %v17539_v39 = vadd.f32 %v17485_v52, %v9012_v46  ;;  %v9075_v14 = vsel %vm810_vm1, %v17531_v12, 0.0 }
 0xfde   : > { %v17534_v34 = vadd.f32 %v17485_v52, %v9010_v37  ;;  %v9069_v42 = vsel %vm810_vm1, %v17528_v26, 0.0 }
 0xfdf   : > { %9070 = vadd.xlane.f32.xlu0 %v9069_v42  ;;  %v9078_v35 = vsel %vm810_vm1, %v17539_v39, 0.0 }
 0xfe0   : > { %v9072_v18 = vsel %vm810_vm1, %v17534_v34, 0.0 }
 0xfe1   : > { %9073 = vadd.xlane.f32.xlu1 %v9072_v18 }
 0xfe3   : > { %9076 = vadd.xlane.f32.xlu0 %v9075_v14 }
 0xfe5   : > { %9079 = vadd.xlane.f32.xlu1 %v9078_v35 }
0x101b   : > { %v13098_v38 = vpop.f32.mrb[24].mxu1 }
0x101c   : > { %v8986_v23 = vpop.f32.mrb[25].mxu1  ;;  %v9015_v13 = vadd.f32 %v13885_v7, %v13098_v38 }
0x101d   : > { %v9013_v32 = vadd.f32 %v13886_v55, %v8986_v23  ;;  %v13099_v57 = vpop.f32.mrb[26].mxu1 }
0x101e   : > { %v8989_v45 = vpop.f32.mrb[27].mxu1  ;;  %v9016_v6 = vadd.f32 %v13887_v4, %v13099_v57  ;;  %v17551_v10 = vadd.f32 %v17485_v52, %v9015_v13 }
0x101f   : > { %v17548_v29 = vadd.f32 %v17485_v52, %v9013_v32  ;;  %v9014_v27 = vadd.f32 %v13888_v51, %v8989_v45 }
0x1020   : > { %v17559_v3 = vadd.f32 %v17485_v52, %v9016_v6  ;;  %v9087_v0 = vsel %vm810_vm1, %v17551_v10, 0.0  ;;  %v13527_v6 = vld [vmem:[%s14986_s27 + $0x4] ss:$8 sps:$4 sm:$0xff]  }
0x1021   : > { %v17554_v41 = vadd.f32 %v17485_v52, %v9014_v27  ;;  %v9081_v44 = vsel %vm810_vm1, %v17548_v29, 0.0  ;;  %v13525_v27 = vld [vmem:[%s14986_s27] ss:$8 sps:$4 sm:$0xff]   ;;  %9392 = vmatprep.subr.bf16.mxu0 %v13527_v6 }
0x1022   : > { %9082 = vadd.xlane.f32.xlu0 %v9081_v44  ;;  %v9090_v16 = vsel %vm810_vm1, %v17559_v3, 0.0  ;;  %9393 = vmatpush1.bf16.msra.mxu0 %v13525_v27 }
0x1023   : > { %v9084_v28 = vsel %vm810_vm1, %v17554_v41, 0.0 }
0x1024   : > { %9085 = vadd.xlane.f32.xlu1 %v9084_v28 }
0x1026   : > { %9088 = vadd.xlane.f32.xlu0 %v9087_v0 }
0x1028   : > { %9091 = vadd.xlane.f32.xlu1 %v9090_v16 }
0x104c   : > { %v9047_v47 = vpop.xlane.xlu0 %9046 }
0x104d   : > { %v9093_v36 = vmul.f32 0.015625, %v9047_v47  ;;  %v13530_v47 = vld [vmem:[%s14986_s27 + $0x14] ss:$8 sps:$4 sm:$0xff]  }
0x104e   : > { %v9050_v2 = vpop.xlane.xlu1 %9049  ;;  %9394 = vmatprep.subr.bf16.mxu0 %v13530_v47 }
0x104f   : > { %v17568_v33 = vsub.f32 %v17488_v21, %v9093_v36  ;;  %v9094_v52 = vmul.f32 0.015625, %v9050_v2  ;;  %v13528_v2 = vld [vmem:[%s14986_s27 + $0x10] ss:$8 sps:$4 sm:$0xff]  }
0x1050   : > { %v9053_v59 = vpop.xlane.xlu0 %9052  ;;  %9395 = vmatpush1.bf16.msra.mxu0 %v13528_v2 }
0x1051   : > { %v17571_v22 = vsub.f32 %v17494_v61, %v9094_v52  ;;  %v9095_v30 = vmul.f32 0.015625, %v9053_v59  ;;  %v9125_v43 = vmul.f32 %v17568_v33, %v17568_v33 }
0x1053   : > { %v17576_v49 = vsub.f32 %v17491_v53, %v9095_v30  ;;  %v9141_v40 = vsel %vm810_vm1, %v9125_v43, 0.0  ;;  %v9126_v25 = vmul.f32 %v17571_v22, %v17571_v22 }
0x1054   : > { %v9056_v5 = vpop.xlane.xlu0 %9055  ;;  %9142 = vadd.xlane.f32.xlu0 %v9141_v40 }
0x1055   : > { %v9096_v31 = vmul.f32 0.015625, %v9056_v5  ;;  %v9144_v15 = vsel %vm810_vm1, %v9126_v25, 0.0  ;;  %v9127_v48 = vmul.f32 %v17576_v49, %v17576_v49 }
0x1056   : > { %9145 = vadd.xlane.f32.xlu1 %v9144_v15  ;;  %v13533_v15 = vld [vmem:[%s14986_s27 + $0x24] ss:$8 sps:$4 sm:$0xff]  }
0x1057   : > { %v17585_v58 = vsub.f32 %v17501_v50, %v9096_v31  ;;  %v9147_v17 = vsel %vm810_vm1, %v9127_v48, 0.0  ;;  %v13531_v48 = vld [vmem:[%s14986_s27 + $0x20] ss:$8 sps:$4 sm:$0xff]   ;;  %9396 = vmatprep.subr.bf16.mxu0 %v13533_v15 }
0x1058   : > { %9148 = vadd.xlane.f32.xlu0 %v9147_v17  ;;  %9397 = vmatpush1.bf16.msra.mxu0 %v13531_v48 }
0x1059   : > { %v9128_v19 = vmul.f32 %v17585_v58, %v17585_v58 }
0x105b   : > { %v9150_v1 = vsel %vm810_vm1, %v9128_v19, 0.0 }
0x105c   : > { %v9059_v20 = vpop.xlane.xlu0 %9058  ;;  %9151 = vadd.xlane.f32.xlu1 %v9150_v1 }
0x105d   : > { %v9097_v63 = vmul.f32 0.015625, %v9059_v20 }
0x105e   : > { %v9062_v60 = vpop.xlane.xlu1 %9061 }
0x105f   : > { %v17592_v8 = vsub.f32 %v17508_v11, %v9097_v63  ;;  %v9098_v46 = vmul.f32 0.015625, %v9062_v60  ;;  %v13536_v60 = vld [vmem:[%s14986_s27 + $0x34] ss:$8 sps:$4 sm:$0xff]  }
0x1060   : > { %v9065_v24 = vpop.xlane.xlu0 %9064  ;;  %9398 = vmatprep.subr.bf16.mxu0 %v13536_v60 }
0x1061   : > { %v17595_v37 = vsub.f32 %v17514_v56, %v9098_v46  ;;  %v9099_v42 = vmul.f32 0.015625, %v9065_v24  ;;  %v9129_v18 = vmul.f32 %v17592_v8, %v17592_v8  ;;  %v13534_v46 = vld [vmem:[%s14986_s27 + $0x30] ss:$8 sps:$4 sm:$0xff]   ;;  %s11937_s27 = sshll.u32 %s18293_s21, 7 }
0x1062   : > { %v9068_v14 = vpop.xlane.xlu1 %9067  ;;  %9399 = vmatpush1.bf16.msra.mxu0 %v13534_v46  ;;  %s17675_s0 = scalar_lea.vmem %s18536_s18, %s11937_s27 }
0x1063   : > { %v17600_v35 = vsub.f32 %v17511_v9, %v9099_v42  ;;  %v9100_v38 = vmul.f32 0.015625, %v9068_v14  ;;  %v9153_v23 = vsel %vm810_vm1, %v9129_v18, 0.0  ;;  %v9130_v7 = vmul.f32 %v17595_v37, %v17595_v37  ;;  %v13538_v60 = vld [vmem:[%s17675_s0] sm:$0xff]   ;;  %v13539_v46 = vld [vmem:[%s17675_s0 + $0x48] sm:$0xff]  }
0x1064   : > { %9154 = vadd.xlane.f32.xlu0 %v9153_v23 }
0x1065   : > { %v17606_v13 = vsub.f32 %v17519_v62, %v9100_v38  ;;  %v9156_v55 = vsel %vm810_vm1, %v9130_v7, 0.0  ;;  %v9131_v32 = vmul.f32 %v17600_v35, %v17600_v35 }
0x1066   : > { %9157 = vadd.xlane.f32.xlu1 %v9156_v55 }
0x1067   : > { %v9159_v57 = vsel %vm810_vm1, %v9131_v32, 0.0  ;;  %v9132_v45 = vmul.f32 %v17606_v13, %v17606_v13 }
0x1068   : > { %9160 = vadd.xlane.f32.xlu0 %v9159_v57 }
0x1069   : > { %v9162_v4 = vsel %vm810_vm1, %v9132_v45, 0.0 }
0x106a   : > { %9163 = vadd.xlane.f32.xlu1 %v9162_v4 }
0x106c   : > { %v9071_v51 = vpop.xlane.xlu0 %9070 }
0x106d   : > { %v9101_v44 = vmul.f32 0.015625, %v9071_v51 }
0x106e   : > { %v9074_v28 = vpop.xlane.xlu1 %9073 }
0x106f   : > { %v17618_v0 = vsub.f32 %v17528_v26, %v9101_v44  ;;  %v9102_v16 = vmul.f32 0.015625, %v9074_v28 }
0x1070   : > { %v9077_v36 = vpop.xlane.xlu0 %9076 }
0x1071   : > { %v17623_v52 = vsub.f32 %v17534_v34, %v9102_v16  ;;  %v9103_v59 = vmul.f32 0.015625, %v9077_v36  ;;  %v9133_v30 = vmul.f32 %v17618_v0, %v17618_v0 }
0x1072   : > { %v9080_v43 = vpop.xlane.xlu1 %9079 }
0x1073   : > { %v17628_v40 = vsub.f32 %v17531_v12, %v9103_v59  ;;  %v9104_v25 = vmul.f32 0.015625, %v9080_v43  ;;  %v9165_v5 = vsel %vm810_vm1, %v9133_v30, 0.0  ;;  %v9134_v31 = vmul.f32 %v17623_v52, %v17623_v52 }
0x1074   : > { %9166 = vadd.xlane.f32.xlu0 %v9165_v5 }
0x1075   : > { %v17636_v17 = vsub.f32 %v17539_v39, %v9104_v25  ;;  %v9168_v19 = vsel %vm810_vm1, %v9134_v31, 0.0  ;;  %v9135_v1 = vmul.f32 %v17628_v40, %v17628_v40 }
0x1076   : > { %9169 = vadd.xlane.f32.xlu1 %v9168_v19 }
0x1077   : > { %v9171_v20 = vsel %vm810_vm1, %v9135_v1, 0.0  ;;  %v9136_v63 = vmul.f32 %v17636_v17, %v17636_v17 }
0x1078   : > { %9172 = vadd.xlane.f32.xlu0 %v9171_v20  ;;  %v13537_v20 = vld [vmem:[%s17675_s0 + $0x40] sm:$0xff]  }
0x1079   : > { %v9174_v24 = vsel %vm810_vm1, %v9136_v63, 0.0  ;;  %12207 = vmatprep.subr.bf16.mxu1 %v13537_v20 }
0x107a   : > { %9175 = vadd.xlane.f32.xlu1 %v9174_v24  ;;  %12208 = vmatpush3.bf16.msra.mxu1 %v13538_v60  ;;  %v13546_v60 = vld [vmem:[%s17675_s0 + $0x20] sm:$0xff]  }
0x107b   : > { %12209 = vmatprep.subr.bf16.mxu1 %v13539_v46 }
0x10af   : > { %v9083_v42 = vpop.xlane.xlu0 %9082 }
0x10b0   : > { %v9105_v18 = vmul.f32 0.015625, %v9083_v42  ;;  %v13540_v42 = vld [vmem:[%s17675_s0 + $0x8] sm:$0xff]  }
0x10b1   : > { %v9086_v14 = vpop.xlane.xlu1 %9085  ;;  %12210 = vmatpush3.bf16.msra.mxu1 %v13540_v42  ;;  %v13547_v42 = vld [vmem:[%s17675_s0 + $0x68] sm:$0xff]  }
0x10b2   : > { %v17648_v38 = vsub.f32 %v17548_v29, %v9105_v18  ;;  %v9106_v23 = vmul.f32 0.015625, %v9086_v14  ;;  %v13541_v18 = vld [vmem:[%s17675_s0 + $0x50] sm:$0xff]   ;;  %v17683_v14 = vld [vmem:[%s9041_s23] ss:$0 sm:$0xff] }
0x10b3   : > { %v9089_v7 = vpop.xlane.xlu0 %9088  ;;  %12211 = vmatprep.subr.bf16.mxu1 %v13541_v18 }
0x10b4   : > { %v17651_v55 = vsub.f32 %v17554_v41, %v9106_v23  ;;  %v9107_v32 = vmul.f32 0.015625, %v9089_v7  ;;  %v9137_v57 = vmul.f32 %v17648_v38, %v17648_v38  ;;  %v13542_v7 = vld [vmem:[%s17675_s0 + $0x10] sm:$0xff]  }
0x10b5   : > { %v9092_v45 = vpop.xlane.xlu1 %9091  ;;  %12212 = vmatpush3.bf16.msra.mxu1 %v13542_v7 }
0x10b6   : > { %v17656_v4 = vsub.f32 %v17551_v10, %v9107_v32  ;;  %v9108_v6 = vmul.f32 0.015625, %v9092_v45  ;;  %v9177_v51 = vsel %vm810_vm1, %v9137_v57, 0.0  ;;  %v9138_v27 = vmul.f32 %v17651_v55, %v17651_v55  ;;  %v13543_v45 = vld [vmem:[%s17675_s0 + $0x58] sm:$0xff]  }
0x10b7   : > { %9178 = vadd.xlane.f32.xlu0 %v9177_v51  ;;  %v17689_v51 = vld [vmem:[%s9043_s30] ss:$0 sm:$0xff]  ;;  %12213 = vmatprep.subr.bf16.mxu1 %v13543_v45 }
0x10b8   : > { %v17662_v44 = vsub.f32 %v17559_v3, %v9108_v6  ;;  %v9180_v28 = vsel %vm810_vm1, %v9138_v27, 0.0  ;;  %v9139_v16 = vmul.f32 %v17656_v4, %v17656_v4 }
0x10b9   : > { %9181 = vadd.xlane.f32.xlu1 %v9180_v28 }
0x10ba   : > { %v9183_v47 = vsel %vm810_vm1, %v9139_v16, 0.0  ;;  %v9140_v36 = vmul.f32 %v17662_v44, %v17662_v44 }
0x10bb   : > { %9184 = vadd.xlane.f32.xlu0 %v9183_v47 }
0x10bc   : > { %v9186_v2 = vsel %vm810_vm1, %v9140_v36, 0.0  ;;  %v13544_v36 = vld [vmem:[%s17675_s0 + $0x18] sm:$0xff]  }
0x10bd   : > { %9187 = vadd.xlane.f32.xlu1 %v9186_v2  ;;  %12214 = vmatpush3.bf16.msra.mxu1 %v13544_v36 }
0x10e1   : > { %v9143_v59 = vpop.xlane.xlu0 %9142 }
0x10e2   : > { %v9189_v30 = vmul.f32 0.015625, %v9143_v59 }
0x10e3   : > { %v9146_v43 = vpop.xlane.xlu1 %9145 }
0x10e4   : > { %v9205_v25 = vadd.f32 1e-05, %v9189_v30  ;;  %v9190_v5 = vmul.f32 0.015625, %v9146_v43 }
0x10e5   : > { %v9149_v31 = vpop.xlane.xlu0 %9148 }
0x10e6   : > { %13841 = vrsqrt.f32 %v9205_v25  ;;  %v9206_v15 = vadd.f32 1e-05, %v9190_v5  ;;  %v9191_v48 = vmul.f32 0.015625, %v9149_v31 }
0x10e8   : > { %13843 = vrsqrt.f32 %v9206_v15  ;;  %v9207_v19 = vadd.f32 1e-05, %v9191_v48 }
0x10e9   : > { %v9152_v1 = vpop.xlane.xlu1 %9151 }
0x10ea   : > { %13845 = vrsqrt.f32 %v9207_v19  ;;  %v9192_v63 = vmul.f32 0.015625, %v9152_v1 }
0x10ec   : > { %v9208_v24 = vadd.f32 1e-05, %v9192_v63 }
0x10ee   : > { %13847 = vrsqrt.f32 %v9208_v24 }
0x10f0   : > { %v13842_v23 = vpop.eup %13841 }
0x10f1   : > { %v9237_v32 = vmul.f32 %v13842_v23, %v17568_v33  ;;  %v9155_v57 = vpop.xlane.xlu0 %9154  ;;  %v13545_v33 = vld [vmem:[%s17675_s0 + $0x60] sm:$0xff]  }
0x10f2   : > { %v13844_v6 = vpop.eup %13843  ;;  %v9193_v27 = vmul.f32 0.015625, %v9155_v57  ;;  %12215 = vmatprep.subr.bf16.mxu1 %v13545_v33 }
0x10f3   : > { %v9259_v28 = vmul.f32 %v17683_v14, %v9237_v32  ;;  %v9238_v16 = vmul.f32 %v13844_v6, %v17571_v22  ;;  %v9158_v47 = vpop.xlane.xlu1 %9157  ;;  %12216 = vmatpush3.bf16.msra.mxu1 %v13546_v60 }
0x10f4   : > { %v13846_v2 = vpop.eup %13845  ;;  %v9209_v59 = vadd.f32 1e-05, %v9193_v27  ;;  %v9194_v30 = vmul.f32 0.015625, %v9158_v47  ;;  %12217 = vmatprep.subr.bf16.mxu1 %v13547_v42 }
0x10f5   : > { %v9260_v43 = vmul.f32 %v17683_v14, %v9238_v16  ;;  %v9161_v25 = vpop.xlane.xlu0 %9160  ;;  %v9281_v15 = vadd.f32 %v17689_v51, %v9259_v28  ;;  %v9239_v48 = vmul.f32 %v13846_v2, %v17576_v49 }
0x10f6   : > { %13849 = vrsqrt.f32 %v9209_v59  ;;  %v9210_v5 = vadd.f32 1e-05, %v9194_v30  ;;  %v9195_v31 = vmul.f32 0.015625, %v9161_v25 }
0x10f7   : > { %v9282_v22 = vadd.f32 %v17689_v51, %v9260_v43  ;;  %v9164_v19 = vpop.xlane.xlu1 %9163  ;;  %v9261_v23 = vmul.f32 %v17683_v14, %v9239_v48 }
0x10f8   : > { %v13848_v1 = vpop.eup %13847  ;;  %13851 = vrsqrt.f32 %v9210_v5  ;;  %v9211_v20 = vadd.f32 1e-05, %v9195_v31  ;;  %v9196_v63 = vmul.f32 0.015625, %v9164_v19 }
0x10f9   : > { %v9297_v46 = vpack.c.bf16 %v9282_v22, %v9281_v15  ;;  %v9240_v24 = vmul.f32 %v13848_v1, %v17585_v58  ;;  %v9283_v32 = vadd.f32 %v17689_v51, %v9261_v23 }
0x10fa   : > { %13853 = vrsqrt.f32 %v9211_v20  ;;  %v9212_v18 = vadd.f32 1e-05, %v9196_v63 }
0x10fb   : > { %v9262_v7 = vmul.f32 %v17683_v14, %v9240_v24  ;;  %11831 = vmatmul.mubr.msk.bf16.vlgmr.msra.gmra.mrb[20].mxu0 %vm810_vm1, %v9297_v46 }
0x10fc   : > { %13855 = vrsqrt.f32 %v9212_v18  ;;  %9434 = vmatprep.mubr.bf16.mxu0 %v18501_v54 }
0x10fd   : > { %v9284_v49 = vadd.f32 %v17689_v51, %v9262_v7 }
0x10ff   : > { %v9298_v57 = vpack.c.bf16 %v9284_v49, %v9283_v32 }
0x1100   : > { %v13850_v58 = vpop.eup %13849 }
0x1101   : > { %v9241_v45 = vmul.f32 %v13850_v58, %v17592_v8  ;;  %v9167_v6 = vpop.xlane.xlu0 %9166 }
0x1102   : > { %v13852_v27 = vpop.eup %13851  ;;  %v9197_v28 = vmul.f32 0.015625, %v9167_v6 }
0x1103   : > { %v9263_v16 = vmul.f32 %v17683_v14, %v9241_v45  ;;  %v9242_v47 = vmul.f32 %v13852_v27, %v17595_v37  ;;  %11832 = vmatmul.mubr.msk.bf16.gmra.mrb[24].mxu0 %vm810_vm1, %v9298_v57  ;;  %v9170_v36 = vpop.xlane.xlu1 %9169 }
0x1104   : > { %v13854_v2 = vpop.eup %13853  ;;  %v9213_v59 = vadd.f32 1e-05, %v9197_v28  ;;  %v9198_v30 = vmul.f32 0.015625, %v9170_v36  ;;  %9444 = vmatprep.mubr.bf16.mxu0 %v18501_v54 }
0x1105   : > { %v9264_v33 = vmul.f32 %v17683_v14, %v9242_v47  ;;  %v9173_v43 = vpop.xlane.xlu0 %9172  ;;  %v9285_v31 = vadd.f32 %v17689_v51, %v9263_v16  ;;  %v9243_v37 = vmul.f32 %v13854_v2, %v17600_v35 }
0x1106   : > { %v13856_v25 = vpop.eup %13855  ;;  %13857 = vrsqrt.f32 %v9213_v59  ;;  %v9214_v8 = vadd.f32 1e-05, %v9198_v30  ;;  %v9199_v5 = vmul.f32 0.015625, %v9173_v43 }
0x1107   : > { %v9286_v15 = vadd.f32 %v17689_v51, %v9264_v33  ;;  %v9244_v22 = vmul.f32 %v13856_v25, %v17606_v13  ;;  %v9176_v48 = vpop.xlane.xlu1 %9175  ;;  %v9265_v46 = vmul.f32 %v17683_v14, %v9243_v37 }
0x1108   : > { %13859 = vrsqrt.f32 %v9214_v8  ;;  %v9215_v19 = vadd.f32 1e-05, %v9199_v5  ;;  %v9200_v1 = vmul.f32 0.015625, %v9176_v48  ;;  %v13549_v48 = vld [vmem:[%s17675_s0 + $0x70] sm:$0xff]  }
0x1109   : > { %v9299_v20 = vpack.c.bf16 %v9286_v15, %v9285_v31  ;;  %v9266_v63 = vmul.f32 %v17683_v14, %v9244_v22  ;;  %v9287_v13 = vadd.f32 %v17689_v51, %v9265_v46  ;;  %v13548_v22 = vld [vmem:[%s17675_s0 + $0x28] sm:$0xff]  }
0x110a   : > { %13861 = vrsqrt.f32 %v9215_v19  ;;  %v9216_v60 = vadd.f32 1e-05, %v9200_v1  ;;  %12218 = vmatpush3.bf16.msra.mxu1 %v13548_v22  ;;  %v13550_v19 = vld [vmem:[%s17675_s0 + $0x30] sm:$0xff]  }
0x110b   : > { %11833 = vmatmul.mubr.msk.bf16.gmra.mrb[28].mxu0 %vm810_vm1, %v9299_v20  ;;  %v9288_v35 = vadd.f32 %v17689_v51, %v9266_v63  ;;  %12219 = vmatprep.subr.bf16.mxu1 %v13549_v48 }
0x110c   : > { %13863 = vrsqrt.f32 %v9216_v60  ;;  %9454 = vmatprep.mubr.bf16.mxu0 %v18501_v54  ;;  %v13551_v60 = vld [vmem:[%s17675_s0 + $0x78] sm:$0xff]  }
0x110d   : > { %v9300_v42 = vpack.c.bf16 %v9288_v35, %v9287_v13  ;;  %v13552_v13 = vld [vmem:[%s17675_s0 + $0x38] sm:$0xff]  }
0x110e   : > { %12220 = vmatpush3.bf16.msra.mxu1 %v13550_v19 }
0x110f   : > { %12221 = vmatprep.subr.bf16.mxu1 %v13551_v60 }
0x1110   : > { %v13858_v24 = vpop.eup %13857 }
0x1111   : > { %v9245_v18 = vmul.f32 %v13858_v24, %v17618_v0 }
0x1112   : > { %v13860_v23 = vpop.eup %13859  ;;  %12222 = vmatpush3.bf16.msra.mxu1 %v13552_v13 }
0x1113   : > { %v9267_v7 = vmul.f32 %v17683_v14, %v9245_v18  ;;  %v9246_v49 = vmul.f32 %v13860_v23, %v17623_v52  ;;  %11834 = vmatmul.mubr.msk.bf16.gmra.mrb[32].mxu0 %vm810_vm1, %v9300_v42 }
0x1114   : > { %v13862_v32 = vpop.eup %13861  ;;  %9464 = vmatprep.mubr.bf16.mxu0 %v18501_v54 }
0x1115   : > { %v9268_v58 = vmul.f32 %v17683_v14, %v9246_v49  ;;  %v9289_v45 = vadd.f32 %v17689_v51, %v9267_v7  ;;  %v9247_v27 = vmul.f32 %v13862_v32, %v17628_v40 }
0x1116   : > { %v13864_v57 = vpop.eup %13863 }
0x1117   : > { %v9290_v6 = vadd.f32 %v17689_v51, %v9268_v58  ;;  %v9248_v0 = vmul.f32 %v13864_v57, %v17636_v17  ;;  %v9269_v52 = vmul.f32 %v17683_v14, %v9247_v27 }
0x1119   : > { %v9301_v28 = vpack.c.bf16 %v9290_v6, %v9289_v45  ;;  %v9270_v16 = vmul.f32 %v17683_v14, %v9248_v0  ;;  %v9291_v36 = vadd.f32 %v17689_v51, %v9269_v52  ;;  %v18538_v0 = vld [vmem:[#allocation39_spill] sm:$0xff] }
0x111b   : > { %11835 = vmatmul.mubr.msk.bf16.gmra.mrb[36].mxu0 %vm810_vm1, %v9301_v28  ;;  %v9292_v47 = vadd.f32 %v17689_v51, %v9270_v16  ;;  %v18539_v28 = vsub.s32 1, %v18538_v0 }
0x111c   : > { %9474 = vmatprep.mubr.bf16.mxu0 %v18501_v54 }
0x111d   : > { %v9302_v2 = vpack.c.bf16 %v9292_v47, %v9291_v36 }
0x1123   : > { %11836 = vmatmul.mubr.msk.bf16.gmra.mrb[40].mxu0 %vm810_vm1, %v9302_v2 }
0x1124   : > { %9484 = vmatprep.mubr.bf16.mxu0 %v18501_v54 }
0x1144   : > { %v9179_v40 = vpop.xlane.xlu0 %9178 }
0x1145   : > { %v9201_v17 = vmul.f32 0.015625, %v9179_v40 }
0x1146   : > { %v9182_v59 = vpop.xlane.xlu1 %9181 }
0x1147   : > { %v9217_v30 = vadd.f32 1e-05, %v9201_v17  ;;  %v9202_v33 = vmul.f32 0.015625, %v9182_v59 }
0x1148   : > { %v9185_v43 = vpop.xlane.xlu0 %9184 }
0x1149   : > { %13865 = vrsqrt.f32 %v9217_v30  ;;  %v9218_v25 = vadd.f32 1e-05, %v9202_v33  ;;  %v9203_v8 = vmul.f32 0.015625, %v9185_v43 }
0x114a   : > { %v9188_v5 = vpop.xlane.xlu1 %9187 }
0x114b   : > { %13867 = vrsqrt.f32 %v9218_v25  ;;  %v9219_v31 = vadd.f32 1e-05, %v9203_v8  ;;  %v9204_v15 = vmul.f32 0.015625, %v9188_v5 }
0x114d   : > { %13869 = vrsqrt.f32 %v9219_v31  ;;  %v9220_v37 = vadd.f32 1e-05, %v9204_v15 }
0x114f   : > { %13871 = vrsqrt.f32 %v9220_v37 }
0x1153   : > { %v13866_v1 = vpop.eup %13865 }
0x1154   : > { %v9249_v20 = vmul.f32 %v13866_v1, %v17648_v38 }
0x1155   : > { %v13868_v63 = vpop.eup %13867 }
0x1156   : > { %v9271_v46 = vmul.f32 %v17683_v14, %v9249_v20  ;;  %v9250_v35 = vmul.f32 %v13868_v63, %v17651_v55 }
0x1157   : > { %v13870_v24 = vpop.eup %13869 }
0x1158   : > { %v9272_v42 = vmul.f32 %v17683_v14, %v9250_v35  ;;  %v9293_v23 = vadd.f32 %v17689_v51, %v9271_v46  ;;  %v9251_v38 = vmul.f32 %v13870_v24, %v17656_v4  ;;  %v9316_v4 = vld [vmem:[%s9315_s26] sm:$0x3] }
0x1159   : > { %v13872_v18 = vpop.eup %13871 }
0x115a   : > { %v9294_v7 = vadd.f32 %v17689_v51, %v9272_v42  ;;  %v9252_v49 = vmul.f32 %v13872_v18, %v17662_v44  ;;  %v9273_v55 = vmul.f32 %v17683_v14, %v9251_v38  ;;  %v18537_v44 = vld [vmem:[#allocation40_spill] sm:$0xff] }
0x115b   : > { %v17765_v27 = vrot.slane %v9316_v4, %v18537_v44 }
0x115c   : > { %v9303_v32 = vpack.c.bf16 %v9294_v7, %v9293_v23  ;;  %v9274_v58 = vmul.f32 %v17683_v14, %v9252_v49  ;;  %v9295_v45 = vadd.f32 %v17689_v51, %v9273_v55  ;;  %v17769_v14 = vrot.slane %v9316_v4, %v18539_v28 }
0x115e   : > { %11837 = vmatmul.mubr.msk.bf16.gmra.mrb[44].mxu0 %vm810_vm1, %v9303_v32  ;;  %v9296_v57 = vadd.f32 %v17689_v51, %v9274_v58 }
0x115f   : > { %9494 = vmatprep.mubr.bf16.mxu0 %v18501_v54 }
0x1160   : > { %v9304_v6 = vpack.c.bf16 %v9296_v57, %v9295_v45 }
0x1166   : > { %11838 = vmatmul.mubr.msk.bf16.gmra.mrb[48].mxu0 %vm810_vm1, %v9304_v6 }
0x11ce   : > { %v9426_v16 = vpop.f32.mrb[20].mxu0 }
0x11cf   : > { %v9427_v54 = vadd.f32 %v9426_v16, %v17765_v27  ;;  %v9428_v52 = vpop.f32.mrb[21].mxu0 }
0x11d0   : > { %v9429_v47 = vadd.f32 %v9428_v52, %v17769_v14  ;;  %v9430_v51 = vpop.f32.mrb[22].mxu0 }
0x11d1   : > { %v9431_v36 = vadd.f32 %v9430_v51, %v17765_v27  ;;  %v9432_v2 = vpop.f32.mrb[23].mxu0  ;;  %v9505_v17 = vmax.f32 %v9427_v54, 0.0 }
0x11d2   : > { %v9433_v40 = vadd.f32 %v9432_v2, %v17769_v14  ;;  %v9506_v30 = vmax.f32 %v9429_v47, 0.0 }
0x11d3   : > { %v9507_v59 = vmax.f32 %v9431_v36, 0.0 }
0x11d4   : > { %v9508_v33 = vmax.f32 %v9433_v40, 0.0 }
0x11d5   : > { %v9537_v43 = vpack.c.bf16 %v9507_v59, %v9505_v17 }
0x11d6   : > { %v9538_v25 = vpack.c.bf16 %v9508_v33, %v9506_v30  ;;  %v9436_v8 = vpop.f32.mrb[24].mxu0 }
0x11d7   : > { %v9437_v5 = vadd.f32 %v9436_v8, %v17765_v27  ;;  %v9438_v31 = vpop.f32.mrb[25].mxu0 }
0x11d8   : > { %v9439_v15 = vadd.f32 %v9438_v31, %v17769_v14  ;;  %v9440_v37 = vpop.f32.mrb[26].mxu0  ;;  %9724 = vmatprep.mubr.bf16.mxu1 %v9538_v25 }
0x11d9   : > { %v9441_v22 = vadd.f32 %v9440_v37, %v17765_v27  ;;  %v9442_v48 = vpop.f32.mrb[27].mxu0  ;;  %9725 = vmatmul.mubr.bf16.vlgmr.msra.gmra.mrb[28].mxu1 %v9537_v43  ;;  %v9509_v1 = vmax.f32 %v9437_v5, 0.0 }
0x11da   : > { %v9443_v19 = vadd.f32 %v9442_v48, %v17769_v14  ;;  %v9510_v63 = vmax.f32 %v9439_v15, 0.0 }
0x11db   : > { %v9511_v20 = vmax.f32 %v9441_v22, 0.0 }
0x11dc   : > { %v9512_v60 = vmax.f32 %v9443_v19, 0.0 }
0x11dd   : > { %v9539_v46 = vpack.c.bf16 %v9511_v20, %v9509_v1 }
0x11de   : > { %v9540_v35 = vpack.c.bf16 %v9512_v60, %v9510_v63  ;;  %v9446_v13 = vpop.f32.mrb[28].mxu0 }
0x11df   : > { %v9447_v24 = vadd.f32 %v9446_v13, %v17765_v27  ;;  %v9448_v42 = vpop.f32.mrb[29].mxu0 }
0x11e0   : > { %v9449_v18 = vadd.f32 %v9448_v42, %v17769_v14  ;;  %v9450_v23 = vpop.f32.mrb[30].mxu0  ;;  %9732 = vmatprep.mubr.bf16.mxu1 %v9540_v35 }
0x11e1   : > { %v9451_v7 = vadd.f32 %v9450_v23, %v17765_v27  ;;  %v9452_v38 = vpop.f32.mrb[31].mxu0  ;;  %9733 = vmatmul.mubr.bf16.gmra.mrb[32].mxu1 %v9539_v46  ;;  %v9513_v32 = vmax.f32 %v9447_v24, 0.0 }
0x11e2   : > { %v9453_v49 = vadd.f32 %v9452_v38, %v17769_v14  ;;  %v9514_v55 = vmax.f32 %v9449_v18, 0.0 }
0x11e3   : > { %v9515_v58 = vmax.f32 %v9451_v7, 0.0 }
0x11e4   : > { %v9516_v57 = vmax.f32 %v9453_v49, 0.0 }
0x11e5   : > { %v9541_v45 = vpack.c.bf16 %v9515_v58, %v9513_v32 }
0x11e6   : > { %v9542_v6 = vpack.c.bf16 %v9516_v57, %v9514_v55  ;;  %v9456_v4 = vpop.f32.mrb[32].mxu0 }
0x11e7   : > { %v9457_v44 = vadd.f32 %v9456_v4, %v17765_v27  ;;  %v9458_v0 = vpop.f32.mrb[33].mxu0 }
0x11e8   : > { %v9459_v28 = vadd.f32 %v9458_v0, %v17769_v14  ;;  %v9460_v16 = vpop.f32.mrb[34].mxu0  ;;  %9740 = vmatprep.mubr.bf16.mxu1 %v9542_v6 }
0x11e9   : > { %v9461_v54 = vadd.f32 %v9460_v16, %v17765_v27  ;;  %v9462_v52 = vpop.f32.mrb[35].mxu0  ;;  %9741 = vmatmul.mubr.bf16.gmra.mrb[36].mxu1 %v9541_v45  ;;  %v9517_v51 = vmax.f32 %v9457_v44, 0.0 }
0x11ea   : > { %v9463_v47 = vadd.f32 %v9462_v52, %v17769_v14  ;;  %v9518_v2 = vmax.f32 %v9459_v28, 0.0 }
0x11eb   : > { %v9519_v36 = vmax.f32 %v9461_v54, 0.0 }
0x11ec   : > { %v9520_v40 = vmax.f32 %v9463_v47, 0.0 }
0x11ed   : > { %v9543_v17 = vpack.c.bf16 %v9519_v36, %v9517_v51 }
0x11ee   : > { %v9544_v59 = vpack.c.bf16 %v9520_v40, %v9518_v2  ;;  %v9466_v30 = vpop.f32.mrb[36].mxu0 }
0x11ef   : > { %v9467_v33 = vadd.f32 %v9466_v30, %v17765_v27  ;;  %v9468_v43 = vpop.f32.mrb[37].mxu0 }
0x11f0   : > { %v9469_v25 = vadd.f32 %v9468_v43, %v17769_v14  ;;  %v9470_v8 = vpop.f32.mrb[38].mxu0  ;;  %9748 = vmatprep.mubr.bf16.mxu1 %v9544_v59 }
0x11f1   : > { %v9471_v5 = vadd.f32 %v9470_v8, %v17765_v27  ;;  %v9472_v31 = vpop.f32.mrb[39].mxu0  ;;  %9749 = vmatmul.mubr.bf16.gmra.mrb[40].mxu1 %v9543_v17  ;;  %v9521_v37 = vmax.f32 %v9467_v33, 0.0 }
0x11f2   : > { %v9473_v15 = vadd.f32 %v9472_v31, %v17769_v14  ;;  %v9522_v48 = vmax.f32 %v9469_v25, 0.0 }
0x11f3   : > { %v9523_v22 = vmax.f32 %v9471_v5, 0.0 }
0x11f4   : > { %v9524_v19 = vmax.f32 %v9473_v15, 0.0 }
0x11f5   : > { %v9545_v1 = vpack.c.bf16 %v9523_v22, %v9521_v37 }
0x11f6   : > { %v9546_v20 = vpack.c.bf16 %v9524_v19, %v9522_v48  ;;  %v9476_v63 = vpop.f32.mrb[40].mxu0  ;;  %v17807_v19 = vld [vmem:[%s9588_s20] ss:$0 sm:$0xff] }
0x11f7   : > { %v9477_v60 = vadd.f32 %v9476_v63, %v17765_v27  ;;  %v9478_v46 = vpop.f32.mrb[41].mxu0 }
0x11f8   : > { %v9479_v35 = vadd.f32 %v9478_v46, %v17769_v14  ;;  %v9480_v13 = vpop.f32.mrb[42].mxu0  ;;  %9756 = vmatprep.mubr.bf16.mxu1 %v9546_v20 }
0x11f9   : > { %v9481_v24 = vadd.f32 %v9480_v13, %v17765_v27  ;;  %v9482_v42 = vpop.f32.mrb[43].mxu0  ;;  %9757 = vmatmul.mubr.bf16.gmra.mrb[44].mxu1 %v9545_v1  ;;  %v9525_v23 = vmax.f32 %v9477_v60, 0.0 }
0x11fa   : > { %v9483_v18 = vadd.f32 %v9482_v42, %v17769_v14  ;;  %v9526_v38 = vmax.f32 %v9479_v35, 0.0 }
0x11fb   : > { %v9527_v7 = vmax.f32 %v9481_v24, 0.0 }
0x11fc   : > { %v9528_v49 = vmax.f32 %v9483_v18, 0.0 }
0x11fd   : > { %v9547_v32 = vpack.c.bf16 %v9527_v7, %v9525_v23 }
0x11fe   : > { %v9548_v58 = vpack.c.bf16 %v9528_v49, %v9526_v38 }
0x1200   : > { %9764 = vmatprep.mubr.bf16.mxu1 %v9548_v58 }
0x1201   : > { %9765 = vmatmul.mubr.bf16.gmra.mrb[48].mxu1 %v9547_v32 }
0x1231   : > { %v9486_v55 = vpop.f32.mrb[44].mxu0 }
0x1232   : > { %v9487_v57 = vadd.f32 %v9486_v55, %v17765_v27  ;;  %v9488_v45 = vpop.f32.mrb[45].mxu0 }
0x1233   : > { %v9489_v6 = vadd.f32 %v9488_v45, %v17769_v14  ;;  %v9490_v4 = vpop.f32.mrb[46].mxu0 }
0x1234   : > { %v9491_v44 = vadd.f32 %v9490_v4, %v17765_v27  ;;  %v9492_v0 = vpop.f32.mrb[47].mxu0  ;;  %v9529_v16 = vmax.f32 %v9487_v57, 0.0 }
0x1235   : > { %v9493_v28 = vadd.f32 %v9492_v0, %v17769_v14  ;;  %v9530_v52 = vmax.f32 %v9489_v6, 0.0 }
0x1236   : > { %v9531_v54 = vmax.f32 %v9491_v44, 0.0 }
0x1237   : > { %v9532_v47 = vmax.f32 %v9493_v28, 0.0 }
0x1238   : > { %v9549_v51 = vpack.c.bf16 %v9531_v54, %v9529_v16 }
0x1239   : > { %v9550_v36 = vpack.c.bf16 %v9532_v47, %v9530_v52  ;;  %v9496_v2 = vpop.f32.mrb[48].mxu0 }
0x123a   : > { %v9497_v40 = vadd.f32 %v9496_v2, %v17765_v27  ;;  %v9498_v17 = vpop.f32.mrb[49].mxu0 }
0x123b   : > { %v9499_v59 = vadd.f32 %v9498_v17, %v17769_v14  ;;  %v9500_v30 = vpop.f32.mrb[50].mxu0  ;;  %9772 = vmatprep.mubr.bf16.mxu1 %v9550_v36 }
0x123c   : > { %v9501_v33 = vadd.f32 %v9500_v30, %v17765_v27  ;;  %v9502_v43 = vpop.f32.mrb[51].mxu0  ;;  %9773 = vmatmul.mubr.bf16.gmra.mrb[52].mxu1 %v9549_v51  ;;  %v9533_v8 = vmax.f32 %v9497_v40, 0.0 }
0x123d   : > { %v9503_v25 = vadd.f32 %v9502_v43, %v17769_v14  ;;  %v9534_v31 = vmax.f32 %v9499_v59, 0.0 }
0x123e   : > { %v9535_v5 = vmax.f32 %v9501_v33, 0.0 }
0x123f   : > { %v9536_v15 = vmax.f32 %v9503_v25, 0.0 }
0x1240   : > { %v9551_v37 = vpack.c.bf16 %v9535_v5, %v9533_v8 }
0x1241   : > { %v9552_v22 = vpack.c.bf16 %v9536_v15, %v9534_v31 }
0x1243   : > { %9780 = vmatprep.mubr.bf16.mxu1 %v9552_v22 }
0x1244   : > { %9781 = vmatmul.mubr.bf16.gmra.mrb[56].mxu1 %v9551_v37 }
0x12ac   : > { %v12223_v48 = vpop.f32.mrb[28].mxu1 }
0x12ad   : > { %v12224_v27 = vpop.f32.mrb[29].mxu1 }
0x12ae   : > { %v12225_v1 = vadd.f32 %v12224_v27, %v12223_v48  ;;  %v12226_v20 = vpop.f32.mrb[30].mxu1 }
0x12af   : > { %v12227_v63 = vpop.f32.mrb[31].mxu1 }
0x12b0   : > { %v9727_v14 = vadd.f32 %v12225_v1, %v17807_v19  ;;  %v12228_v60 = vadd.f32 %v12227_v63, %v12226_v20 }
0x12b2   : > { %v17811_v46 = vadd.f32 %v9727_v14, %v17488_v21  ;;  %v9730_v35 = vadd.f32 %v12228_v60, %v17807_v19 }
0x12b4   : > { %9805 = vst.msk [vmem:[#allocation2] sm:$0xff] %vm810_vm1, %v17811_v46  ;;  %v17817_v13 = vadd.f32 %v9730_v35, %v17494_v61  ;;  %v12229_v24 = vpop.f32.mrb[32].mxu1 }
0x12b5   : > { %v12230_v42 = vpop.f32.mrb[33].mxu1 }
0x12b6   : > { %9806 = vst.msk [vmem:[#allocation2 + $0x8] sm:$0xff] %vm810_vm1, %v17817_v13  ;;  %v12231_v18 = vadd.f32 %v12230_v42, %v12229_v24  ;;  %v12232_v23 = vpop.f32.mrb[34].mxu1 }
0x12b7   : > { %v12233_v7 = vpop.f32.mrb[35].mxu1 }
0x12b8   : > { %v9735_v38 = vadd.f32 %v12231_v18, %v17807_v19  ;;  %v12234_v21 = vadd.f32 %v12233_v7, %v12232_v23 }
0x12ba   : > { %v17823_v49 = vadd.f32 %v9735_v38, %v17491_v53  ;;  %v9738_v32 = vadd.f32 %v12234_v21, %v17807_v19 }
0x12bc   : > { %9807 = vst.msk [vmem:[#allocation2 + $0x10] sm:$0xff] %vm810_vm1, %v17823_v49  ;;  %v17829_v61 = vadd.f32 %v9738_v32, %v17501_v50  ;;  %v12235_v58 = vpop.f32.mrb[36].mxu1 }
0x12bd   : > { %v12236_v55 = vpop.f32.mrb[37].mxu1 }
0x12be   : > { %9808 = vst.msk [vmem:[#allocation2 + $0x18] sm:$0xff] %vm810_vm1, %v17829_v61  ;;  %v12237_v57 = vadd.f32 %v12236_v55, %v12235_v58  ;;  %v12238_v45 = vpop.f32.mrb[38].mxu1 }
0x12bf   : > { %v12239_v6 = vpop.f32.mrb[39].mxu1 }
0x12c0   : > { %v9743_v4 = vadd.f32 %v12237_v57, %v17807_v19  ;;  %v12240_v53 = vadd.f32 %v12239_v6, %v12238_v45  ;;  %v17907_v45 = vld [vmem:[%s14822_s17] sm:$0xff] (!%p11858_p13) }
0x12c1   : > { %v9829_v6 = vcombine.high (!%p11858_p13), %v17907_v45, %v17907_v45 }
0x12c2   : > { %v17835_v44 = vadd.f32 %v9743_v4, %v17508_v11  ;;  %v9746_v0 = vadd.f32 %v12240_v53, %v17807_v19 }
0x12c4   : > { %9809 = vst.msk [vmem:[#allocation2 + $0x20] sm:$0xff] %vm810_vm1, %v17835_v44  ;;  %v17841_v50 = vadd.f32 %v9746_v0, %v17514_v56  ;;  %v12241_v28 = vpop.f32.mrb[40].mxu1 }
0x12c5   : > { %v12242_v16 = vpop.f32.mrb[41].mxu1 }
0x12c6   : > { %9810 = vst.msk [vmem:[#allocation2 + $0x28] sm:$0xff] %vm810_vm1, %v17841_v50  ;;  %v12243_v54 = vadd.f32 %v12242_v16, %v12241_v28  ;;  %v12244_v52 = vpop.f32.mrb[42].mxu1  ;;  %v9826_v28 = vld [vmem:[%s14822_s17 + $0x8] sm:$0xff] (!%p11858_p13) }
0x12c7   : > { %v12245_v47 = vpop.f32.mrb[43].mxu1 }
0x12c8   : > { %v9751_v51 = vadd.f32 %v12243_v54, %v17807_v19  ;;  %v12246_v11 = vadd.f32 %v12245_v47, %v12244_v52  ;;  %v9878_v47 = vcombine.high (!%p11858_p13), %v9826_v28, %v9826_v28 }
0x12ca   : > { %v17847_v36 = vadd.f32 %v9751_v51, %v17511_v9  ;;  %v9754_v2 = vadd.f32 %v12246_v11, %v17807_v19 }
0x12cc   : > { %9811 = vst.msk [vmem:[#allocation2 + $0x30] sm:$0xff] %vm810_vm1, %v17847_v36  ;;  %v17853_v56 = vadd.f32 %v9754_v2, %v17519_v62  ;;  %v12247_v40 = vpop.f32.mrb[44].mxu1 }
0x12cd   : > { %v12248_v17 = vpop.f32.mrb[45].mxu1 }
0x12ce   : > { %9812 = vst.msk [vmem:[#allocation2 + $0x38] sm:$0xff] %vm810_vm1, %v17853_v56  ;;  %v12249_v59 = vadd.f32 %v12248_v17, %v12247_v40  ;;  %v12250_v30 = vpop.f32.mrb[46].mxu1 }
0x12cf   : > { %v12251_v33 = vpop.f32.mrb[47].mxu1 }
0x12d0   : > { %v9759_v43 = vadd.f32 %v12249_v59, %v17807_v19  ;;  %v12252_v9 = vadd.f32 %v12251_v33, %v12250_v30  ;;  %v11082_v30 = vsel (!%p11858_p13), %vm2385_vm5, %v9826_v28, 0.0 }
0x12d2   : > { %v17859_v25 = vadd.f32 %v9759_v43, %v17528_v26  ;;  %v9762_v8 = vadd.f32 %v12252_v9, %v17807_v19 }
0x12d4   : > { %9813 = vst.msk [vmem:[#allocation2 + $0x40] sm:$0xff] %vm810_vm1, %v17859_v25  ;;  %v17865_v62 = vadd.f32 %v9762_v8, %v17534_v34  ;;  %v12253_v5 = vpop.f32.mrb[48].mxu1  ;;  %v13891_v8 = vld [vmem:[#allocation18] sm:$0xff] (!%p11858_p13)  }
0x12d5   : > { %v12254_v31 = vpop.f32.mrb[49].mxu1 }
0x12d6   : > { %9814 = vst.msk [vmem:[#allocation2 + $0x48] sm:$0xff] %vm810_vm1, %v17865_v62  ;;  %v12255_v15 = vadd.f32 %v12254_v31, %v12253_v5  ;;  %v12256_v37 = vpop.f32.mrb[50].mxu1  ;;  %v13893_v5 = vld [vmem:[#allocation18 + $0x10] sm:$0xff] (!%p11858_p13)   ;;  %v13894_v31 = vld [vmem:[#allocation18 + $0x18] sm:$0xff] (!%p11858_p13)  }
0x12d7   : > { %v12257_v22 = vpop.f32.mrb[51].mxu1 }
0x12d8   : > { %v9767_v48 = vadd.f32 %v12255_v15, %v17807_v19  ;;  %v12258_v26 = vadd.f32 %v12257_v22, %v12256_v37 }
0x12da   : > { %v17871_v27 = vadd.f32 %v9767_v48, %v17531_v12  ;;  %v9770_v1 = vadd.f32 %v12258_v26, %v17807_v19 }
0x12dc   : > { %9815 = vst.msk [vmem:[#allocation2 + $0x50] sm:$0xff] %vm810_vm1, %v17871_v27  ;;  %v17877_v34 = vadd.f32 %v9770_v1, %v17539_v39 }
0x12de   : > { %9816 = vst.msk [vmem:[#allocation2 + $0x58] sm:$0xff] %vm810_vm1, %v17877_v34 }
0x130f   : > { %v12259_v20 = vpop.f32.mrb[52].mxu1 }
0x1310   : > { %v12260_v63 = vpop.f32.mrb[53].mxu1 }
0x1311   : > { %v12261_v14 = vadd.f32 %v12260_v63, %v12259_v20  ;;  %v12262_v60 = vpop.f32.mrb[54].mxu1 }
0x1312   : > { %v12263_v35 = vpop.f32.mrb[55].mxu1 }
0x1313   : > { %v9775_v24 = vadd.f32 %v12261_v14, %v17807_v19  ;;  %v12264_v12 = vadd.f32 %v12263_v35, %v12262_v60 }
0x1315   : > { %v17883_v42 = vadd.f32 %v9775_v24, %v17548_v29  ;;  %v9778_v18 = vadd.f32 %v12264_v12, %v17807_v19 }
0x1317   : > { %9817 = vst.msk [vmem:[#allocation2 + $0x60] sm:$0xff] %vm810_vm1, %v17883_v42  ;;  %v17889_v39 = vadd.f32 %v9778_v18, %v17554_v41  ;;  %v12265_v23 = vpop.f32.mrb[56].mxu1 }
0x1318   : > { %v12266_v7 = vpop.f32.mrb[57].mxu1 }
0x1319   : > { %9818 = vst.msk [vmem:[#allocation2 + $0x68] sm:$0xff] %vm810_vm1, %v17889_v39  ;;  %v12267_v38 = vadd.f32 %v12266_v7, %v12265_v23  ;;  %v12268_v21 = vpop.f32.mrb[58].mxu1 }
0x131a   : > { %v12269_v32 = vpop.f32.mrb[59].mxu1 }
0x131b   : > { %v9783_v58 = vadd.f32 %v12267_v38, %v17807_v19  ;;  %v12270_v29 = vadd.f32 %v12269_v32, %v12268_v21  ;;  %9824 = sbr.rel (%p11858_p13) target bundleno = 5552 (0x15b0), region = 136 }
0x131d   : > { %v17895_v55 = vadd.f32 %v9783_v58, %v17551_v10  ;;  %v9786_v57 = vadd.f32 %v12270_v29, %v17807_v19  ;;  %v14364_v10 = vmov (!%p11858_p13), 0.0   ;;  %v18541_v19 = vld [vmem:[#allocation56_spill] sm:$0xff] (!%p11858_p13) }
0x131e   : > { %13100 = vmatprep.subr.mxu1 (!%p11858_p13), %v14364_v10  ;;  %13102 = vmatprep.mubr.msk.f32.mxu1 (!%p11858_p13), %vm14365_vm8, %v14364_v10  ;;  %v9843_v0 = vrot.slane (!%p11858_p13), %v9829_v6, %v18541_v19  ;;  %v9885_v54 = vrot.slane (!%p11858_p13), %v9826_v28, %v18541_v19 }
0x131f   : > { %9819 = vst.msk [vmem:[#allocation2 + $0x70] sm:$0xff] %vm810_vm1, %v17895_v55  ;;  %v17901_v41 = vadd.f32 %v9786_v57, %v17559_v3  ;;  %v9836_v3 = vrot.slane (!%p11858_p13), %v17907_v45, %v18541_v19  ;;  %13101 = vmatpush3.msra.mxu1 (!%p11858_p13), %v17811_v46  ;;  %13120 = vmatprep.subr.mxu0 (!%p11858_p13), %v14364_v10 }
0x1320   : > { %13105 = vmatprep.subr.mxu1 (!%p11858_p13), %v14364_v10  ;;  %13121 = vmatpush3.msra.mxu0 (!%p11858_p13), %v17835_v44  ;;  %v9859_v16 = vrot.slane (!%p11858_p13), %v9843_v0, %v18541_v19  ;;  %v9845_v11 = vcombine.high (!%p11858_p13), %v9843_v0, %v9843_v0  ;;  %v9893_v17 = vcombine.high (!%p11858_p13), %v9885_v54, %v9885_v54 }
0x1321   : > { %9820 = vst.msk [vmem:[#allocation2 + $0x78] sm:$0xff] %vm810_vm1, %v17901_v41  ;;  %v9852_v4 = vrot.slane (!%p11858_p13), %v9836_v3, %v18541_v19  ;;  %v9844_v53 = vcombine.high (!%p11858_p13), %v9836_v3, %v9836_v3  ;;  %13122 = vmatprep.mubr.msk.f32.mxu0 (!%p11858_p13), %vm14365_vm8, %v14364_v10  ;;  %13130 = vmatprep.subr.mxu0 (!%p11858_p13), %v14364_v10 }
0x1322   : > { %v9875_v44 = vcombine.high %v9859_v16, %v9859_v16  ;;  %13123 = vmatmul.mubr.msk.f32.vlgmr.msra.gmra.mrb[0].mxu0 %vm2385_vm5, %v9859_v16  ;;  %v9873_v2 = vrot.slane %v9845_v11, %v18541_v19 }
0x1323   : > { %13103 = vmatmul.mubr.msk.f32.vlgmr.msra.gmra.mrb[0].mxu1 %vm2385_vm5, %v9852_v4  ;;  %v9866_v46 = vrot.slane %v9844_v53, %v18541_v19  ;;  %13131 = vmatpush3.msra.mxu0 %v17847_v36  ;;  %v9874_v52 = vcombine.high %v9852_v4, %v9852_v4  ;;  %v9892_v36 = vrot.slane %v9878_v47, %v18541_v19 }
0x1324   : > { %13106 = vmatpush3.msra.mxu1 %v17817_v13  ;;  %13107 = vmatprep.mubr.msk.f32.mxu1 %vm14365_vm8, %v14364_v10  ;;  %v9901_v13 = vrot.slane %v9885_v54, %v18541_v19  ;;  %v9877_v40 = vcombine.high %v9873_v2, %v9873_v2 }
0x1325   : > { %13110 = vmatprep.subr.mxu1 %v14364_v10  ;;  %13132 = vmatprep.mubr.msk.f32.mxu0 %vm14365_vm8, %v14364_v10  ;;  %v9876_v51 = vcombine.high %v9866_v46, %v9866_v46  ;;  %v9894_v43 = vcombine.high %v9892_v36, %v9892_v36 }
0x1326   : > { %13140 = vmatprep.subr.mxu0 %v14364_v10  ;;  %13133 = vmatmul.mubr.msk.f32.vlgmr.msra.gmra.mrb[2].mxu0 %vm2385_vm5, %v9875_v44 }
0x1327   : > { %13108 = vmatmul.mubr.msk.f32.vlgmr.msra.gmra.mrb[2].mxu1 %vm2385_vm5, %v9866_v46  ;;  %13141 = vmatpush3.msra.mxu0 %v17859_v25  ;;  %v9922_v9 = vrot.slane %v9894_v43, %v18541_v19 }
0x1328   : > { %13111 = vmatpush3.msra.mxu1 %v17823_v49  ;;  %13112 = vmatprep.mubr.msk.f32.mxu1 %vm14365_vm8, %v14364_v10  ;;  %v9923_v49 = vcombine.high %v9901_v13, %v9901_v13 }
0x1329   : > { %13115 = vmatprep.subr.mxu1 %v14364_v10  ;;  %13142 = vmatprep.mubr.msk.f32.mxu0 %vm14365_vm8, %v14364_v10  ;;  %v9926_v25 = vcombine.high %v9922_v9, %v9922_v9 }
0x132a   : > { %13150 = vmatprep.subr.mxu0 %v14364_v10  ;;  %13143 = vmatmul.mubr.msk.f32.vlgmr.msra.gmra.mrb[4].mxu0 %vm2385_vm5, %v9901_v13 }
0x132b   : > { %13113 = vmatmul.mubr.msk.f32.vlgmr.msra.gmra.mrb[4].mxu1 %vm2385_vm5, %v9874_v52  ;;  %13151 = vmatpush3.msra.mxu0 %v17871_v27 }
0x132c   : > { %13116 = vmatpush3.msra.mxu1 %v17829_v61  ;;  %13117 = vmatprep.mubr.msk.f32.mxu1 %vm14365_vm8, %v14364_v10  ;;  %v9908_v61 = vrot.slane %v9892_v36, %v18541_v19 }
0x132d   : > { %13125 = vmatprep.subr.mxu1 %v14364_v10  ;;  %13152 = vmatprep.mubr.msk.f32.mxu0 %vm14365_vm8, %v14364_v10 }
0x132e   : > { %13160 = vmatprep.subr.mxu0 %v14364_v10  ;;  %13153 = vmatmul.mubr.msk.f32.vlgmr.msra.gmra.mrb[6].mxu0 %vm2385_vm5, %v9923_v49  ;;  %v9924_v59 = vcombine.high %v9908_v61, %v9908_v61 }
0x132f   : > { %13118 = vmatmul.mubr.msk.f32.vlgmr.msra.gmra.mrb[6].mxu1 %vm2385_vm5, %v9876_v51  ;;  %13161 = vmatpush3.msra.mxu0 %v17883_v42 }
0x1330   : > { %13126 = vmatpush3.msra.mxu1 %v17841_v50  ;;  %13127 = vmatprep.mubr.msk.f32.mxu1 %vm14365_vm8, %v14364_v10  ;;  %v11079_v50 = vsel %vm2385_vm5, %v17907_v45, 0.0 }
0x1331   : > { %13135 = vmatprep.subr.mxu1 %v14364_v10  ;;  %13162 = vmatprep.mubr.msk.f32.mxu0 %vm14365_vm8, %v14364_v10 }
0x1332   : > { %13170 = vmatprep.subr.mxu0 %v14364_v10  ;;  %13163 = vmatmul.mubr.msk.f32.vlgmr.msra.gmra.mrb[8].mxu0 %vm2385_vm5, %v9908_v61 }
0x1333   : > { %13128 = vmatmul.mubr.msk.f32.vlgmr.msra.gmra.mrb[8].mxu1 %vm2385_vm5, %v9873_v2  ;;  %13171 = vmatpush3.msra.mxu0 %v17895_v55 }
0x1334   : > { %13136 = vmatpush3.msra.mxu1 %v17853_v56  ;;  %13137 = vmatprep.mubr.msk.f32.mxu1 %vm14365_vm8, %v14364_v10  ;;  %v9915_v56 = vrot.slane %v9893_v17, %v18541_v19 }
0x1335   : > { %13145 = vmatprep.subr.mxu1 %v14364_v10  ;;  %13172 = vmatprep.mubr.msk.f32.mxu0 %vm14365_vm8, %v14364_v10 }
0x1336   : > { %11080 = vadd.xlane.f32.xlu0 %v11079_v50  ;;  %13173 = vmatmul.mubr.msk.f32.vlgmr.msra.gmra.mrb[10].mxu0 %vm2385_vm5, %v9924_v59  ;;  %v9925_v33 = vcombine.high %v9915_v56, %v9915_v56 }
0x1337   : > { %13138 = vmatmul.mubr.msk.f32.vlgmr.msra.gmra.mrb[10].mxu1 %vm2385_vm5, %v9877_v40  ;;  %13180 = vmatprep.subr.bf16.mxu0 %v14364_v10 }
0x1338   : > { %13146 = vmatpush3.msra.mxu1 %v17865_v62  ;;  %13147 = vmatprep.mubr.msk.f32.mxu1 %vm14365_vm8, %v14364_v10  ;;  %v13892_v62 = vld [vmem:[#allocation18 + $0x8] sm:$0xff]  }
0x1339   : > { %13155 = vmatprep.subr.mxu1 %v14364_v10  ;;  %13188 = vmatprep.mubr.msk.bf16.mxu0 %vm14365_vm8, %v14364_v10 }
0x133a   : > { %11083 = vadd.xlane.f32.xlu0 %v11082_v30  ;;  %13181 = vmatpush3.bf16.msra.mxu0 %v13891_v8 }
0x133b   : > { %13148 = vmatmul.mubr.msk.f32.vlgmr.msra.gmra.mrb[12].mxu1 %vm2385_vm5, %v9915_v56  ;;  %13182 = vmatprep.subr.bf16.mxu0 %v14364_v10 }
0x133c   : > { %13156 = vmatpush3.msra.mxu1 %v17877_v34  ;;  %13157 = vmatprep.mubr.msk.f32.mxu1 %vm14365_vm8, %v14364_v10 }
0x133d   : > { %13165 = vmatprep.subr.mxu1 %v14364_v10 }
0x133e   : > { %13183 = vmatpush3.bf16.msra.mxu0 %v13892_v62 }
0x133f   : > { %13158 = vmatmul.mubr.msk.f32.vlgmr.msra.gmra.mrb[14].mxu1 %vm2385_vm5, %v9925_v33  ;;  %13184 = vmatprep.subr.bf16.mxu0 %v14364_v10 }
0x1340   : > { %13166 = vmatpush3.msra.mxu1 %v17889_v39  ;;  %13167 = vmatprep.mubr.msk.f32.mxu1 %vm14365_vm8, %v14364_v10 }
0x1341   : > { %13175 = vmatprep.subr.mxu1 %v14364_v10 }
0x1342   : > { %13185 = vmatpush3.bf16.msra.mxu0 %v13893_v5 }
0x1343   : > { %13168 = vmatmul.mubr.msk.f32.vlgmr.msra.gmra.mrb[16].mxu1 %vm2385_vm5, %v9922_v9  ;;  %13186 = vmatprep.subr.bf16.mxu0 %v14364_v10 }
0x1344   : > { %13176 = vmatpush3.msra.mxu1 %v17901_v41  ;;  %13177 = vmatprep.mubr.msk.f32.mxu1 %vm14365_vm8, %v14364_v10 }
0x1346   : > { %13187 = vmatpush3.bf16.msra.mxu0 %v13894_v31 }
0x1347   : > { %13178 = vmatmul.mubr.msk.f32.vlgmr.msra.gmra.mrb[18].mxu1 %vm2385_vm5, %v9926_v25 }
0x13c3   : > { %v11081_v15 = vpop.xlane.xlu0 %11080 }
0x13c4   : > { %v11085_v37 = vmax.f32 %v11081_v15, 1.0 }
0x13c6   : > { %v11089_v22 = vrot.slane %v11085_v37, 1  ;;  %v11092_v48 = vrot.slane %v11085_v37, 4  ;;  %13895 = vrcp.f32 %v11085_v37  ;;  %v11090_v26 = vrot.slane %v11085_v37, 2 }
0x13c7   : > { %v11094_v27 = vrot.slane %v11085_v37, 6  ;;  %v11084_v1 = vpop.xlane.xlu0 %11083  ;;  %v11091_v34 = vrot.slane %v11085_v37, 3  ;;  %v11093_v60 = vrot.slane %v11085_v37, 5  ;;  %v11095_v38 = vrot.slane %v11085_v37, 7 }
0x13c8   : > { %13897 = vrcp.f32 %v11089_v22  ;;  %v18014_v20 = vmax.f32 %v11084_v1, 1.0 }
0x13c9   : > { %13899 = vrcp.f32 %v11092_v48 }
0x13ca   : > { %13901 = vrcp.f32 %v11090_v26  ;;  %v11097_v24 = vrot.slane %v18014_v20, 2  ;;  %v11099_v58 = vrot.slane %v18014_v20, 4  ;;  %v11096_v6 = vrot.slane %v18014_v20, 1 }
0x13cb   : > { %13903 = vrcp.f32 %v11094_v27  ;;  %v11101_v51 = vrot.slane %v18014_v20, 6  ;;  %v11098_v49 = vrot.slane %v18014_v20, 3  ;;  %v11100_v15 = vrot.slane %v18014_v20, 5 }
0x13cc   : > { %13905 = vrcp.f32 %v11091_v34 }
0x13cd   : > { %13907 = vrcp.f32 %v11093_v60 }
0x13ce   : > { %13909 = vrcp.f32 %v11097_v24  ;;  %v11102_v24 = vrot.slane %v18014_v20, 7 }
0x13cf   : > { %13911 = vrcp.f32 %v11095_v38 }
0x13d0   : > { %v13896_v63 = vpop.eup %13895  ;;  %13913 = vrcp.f32 %v11099_v58 }
0x13d1   : > { %13915 = vrcp.f32 %v18014_v20 }
0x13d2   : > { %v13898_v12 = vpop.eup %13897  ;;  %13917 = vrcp.f32 %v11096_v6 }
0x13d3   : > { %v13900_v18 = vpop.eup %13899  ;;  %13919 = vrcp.f32 %v11101_v51 }
0x13d4   : > { %v13902_v29 = vpop.eup %13901  ;;  %13921 = vrcp.f32 %v11098_v49 }
0x13d5   : > { %v13904_v41 = vpop.eup %13903  ;;  %13923 = vrcp.f32 %v11100_v15 }
0x13d6   : > { %v13906_v28 = vpop.eup %13905  ;;  %13925 = vrcp.f32 %v11102_v24 }
0x13d7   : > { %v13908_v17 = vpop.eup %13907 }
0x13d8   : > { %v13910_v30 = vpop.eup %13909 }
0x13d9   : > { %v13912_v37 = vpop.eup %13911 }
0x13da   : > { %v13914_v1 = vpop.eup %13913 }
0x13db   : > { %v13916_v60 = vpop.eup %13915 }
0x13f5   : > { %v10283_v42 = vpop.f32.mrb[0].mxu0 }
0x13f6   : > { %v9995_v14 = vpop.f32.mrb[0].mxu1  ;;  %v13124_v23 = vpop.f32.mrb[1].mxu0  ;;  %v11128_v55 = vmul.f32 %v13900_v18, %v10283_v42 }
0x13f7   : > { %v13104_v35 = vpop.f32.mrb[1].mxu1  ;;  %v11120_v39 = vmul.f32 %v13896_v63, %v9995_v14  ;;  %v13918_v23 = vpop.eup %13917 }
0x13f8   : > { %v11155_v46 = vpack.c.bf16 %v11128_v55, %v11128_v55  ;;  %v13920_v20 = vpop.eup %13919 }
0x13f9   : > { %v10427_v57 = vpop.f32.mrb[2].mxu0  ;;  %v11151_v45 = vpack.c.bf16 %v11120_v39, %v11120_v39 }
0x13fa   : > { %v10067_v7 = vpop.f32.mrb[2].mxu1  ;;  %v13134_v19 = vpop.f32.mrb[3].mxu0  ;;  %v11132_v16 = vmul.f32 %v13904_v41, %v10427_v57  ;;  %v11202_v50 = vunpack.c.l.b16 %v11155_v46 }
0x13fb   : > { %v11122_v21 = vmul.f32 %v13898_v12, %v10067_v7  ;;  %v13109_v32 = vpop.f32.mrb[3].mxu1  ;;  %v11198_v54 = vunpack.c.l.b16 %v11151_v45 }
0x13fc   : > { %v11157_v59 = vpack.c.bf16 %v11132_v16, %v11132_v16  ;;  %v11223_v22 = vrot.slane %v11202_v50, 4 }
0x13fd   : > { %v11152_v10 = vpack.c.bf16 %v11122_v21, %v11122_v21  ;;  %v10571_v44 = vpop.f32.mrb[4].mxu0 }
0x13fe   : > { %v10139_v3 = vpop.f32.mrb[4].mxu1  ;;  %v13144_v47 = vpop.f32.mrb[5].mxu0  ;;  %v11204_v48 = vunpack.c.l.b16 %v11157_v59  ;;  %v11136_v57 = vmul.f32 %v13916_v60, %v10571_v44 }
0x13ff   : > { %v11199_v4 = vunpack.c.l.b16 %v11152_v10  ;;  %v11124_v53 = vmul.f32 %v13902_v29, %v10139_v3  ;;  %v13114_v0 = vpop.f32.mrb[5].mxu1 }
0x1400   : > { %v11229_v38 = vrot.slane %v11204_v48, 2  ;;  %v11159_v16 = vpack.c.bf16 %v11136_v57, %v11136_v57 }
0x1401   : > { %v11214_v52 = vrot.slane %v11199_v4, 7  ;;  %v11153_v13 = vpack.c.bf16 %v11124_v53, %v11124_v53  ;;  %v10715_v56 = vpop.f32.mrb[6].mxu0  ;;  %v13922_v4 = vpop.eup %13921 }
0x1402   : > { %v10211_v11 = vpop.f32.mrb[6].mxu1  ;;  %v13154_v9 = vpop.f32.mrb[7].mxu0  ;;  %v11140_v26 = vmul.f32 %v13910_v30, %v10715_v56 }
0x1403   : > { %v11216_v36 = vsel %vm11215_vm9, %v11214_v52, %v11198_v54  ;;  %v11200_v2 = vunpack.c.l.b16 %v11153_v13  ;;  %v11126_v61 = vmul.f32 %v13906_v28, %v10211_v11  ;;  %v13119_v40 = vpop.f32.mrb[7].mxu1 }
0x1404   : > { %v11161_v21 = vpack.c.bf16 %v11140_v26, %v11140_v26 }
0x1405   : > { %v11217_v33 = vrot.slane %v11200_v2, 6  ;;  %v11154_v43 = vpack.c.bf16 %v11126_v61, %v11126_v61  ;;  %v10859_v27 = vpop.f32.mrb[8].mxu0  ;;  %v13924_v2 = vpop.eup %13923  ;;  %v11206_v61 = vunpack.c.l.b16 %v11159_v16 }
0x1406   : > { %v10355_v25 = vpop.f32.mrb[8].mxu1  ;;  %v13164_v14 = vpop.f32.mrb[9].mxu0  ;;  %v11144_v32 = vmul.f32 %v13914_v1, %v10859_v27  ;;  %v11208_v0 = vunpack.c.l.b16 %v11161_v21 }
0x1407   : > { %v11219_v8 = vsel %vm11218_vm10, %v11217_v33, %v11216_v36  ;;  %v11201_v62 = vunpack.c.l.b16 %v11154_v43  ;;  %v11130_v5 = vmul.f32 %v13908_v17, %v10355_v25  ;;  %v13129_v31 = vpop.f32.mrb[9].mxu1 }
0x1408   : > { %v11163_v28 = vpack.c.bf16 %v11144_v32, %v11144_v32  ;;  %v11237_v49 = vrot.slane %v11208_v0, 6 }
0x1409   : > { %v11220_v34 = vrot.slane %v11201_v62, 5  ;;  %v11156_v63 = vpack.c.bf16 %v11130_v5, %v11130_v5  ;;  %v11003_v58 = vpop.f32.mrb[10].mxu0  ;;  %v13926_v5 = vpop.eup %13925 }
0x140a   : > { %v10499_v35 = vpop.f32.mrb[10].mxu1  ;;  %v13174_v41 = vpop.f32.mrb[11].mxu0  ;;  %v11148_v44 = vmul.f32 %v13920_v20, %v11003_v58  ;;  %v11210_v36 = vunpack.c.l.b16 %v11163_v28 }
0x140b   : > { %v11222_v12 = vsel %vm11221_vm11, %v11220_v34, %v11219_v8  ;;  %v11203_v42 = vunpack.c.l.b16 %v11156_v63  ;;  %v11134_v18 = vmul.f32 %v13912_v37, %v10499_v35  ;;  %v13139_v39 = vpop.f32.mrb[11].mxu1 }
0x140c   : > { %v11225_v7 = vsel %vm11224_vm12, %v11223_v22, %v11222_v12  ;;  %v11165_v50 = vpack.c.bf16 %v11148_v44, %v11148_v44  ;;  %v11241_v25 = vrot.slane %v11210_v36, 4 }
0x140d   : > { %v11226_v29 = vrot.slane %v11203_v42, 3  ;;  %v11158_v55 = vpack.c.bf16 %v11134_v18, %v11134_v18  ;;  %v11875_v18 = vld [vmem:[%s18542_s14] ss:$0 sm:$0xff] }
0x140e   : > { %v10643_v45 = vpop.f32.mrb[12].mxu1  ;;  %v11212_v31 = vunpack.c.l.b16 %v11165_v50 }
0x140f   : > { %v11228_v10 = vsel %vm11227_vm13, %v11226_v29, %v11225_v7  ;;  %v11205_v19 = vunpack.c.l.b16 %v11158_v55  ;;  %v11138_v3 = vmul.f32 %v13918_v23, %v10643_v45  ;;  %v13149_v6 = vpop.f32.mrb[13].mxu1 }
0x1410   : > { %v11231_v53 = vsel %vm11230_vm14, %v11229_v38, %v11228_v10  ;;  %v11245_v63 = vrot.slane %v11212_v31, 2 }
0x1411   : > { %v11232_v46 = vrot.slane %v11205_v19, 1  ;;  %v11160_v54 = vpack.c.bf16 %v11138_v3, %v11138_v3 }
0x1412   : > { %v10787_v52 = vpop.f32.mrb[14].mxu1 }
0x1413   : > { %v11234_v13 = vsel %vm11233_vm15, %v11232_v46, %v11231_v53  ;;  %v11207_v47 = vunpack.c.l.b16 %v11160_v54  ;;  %v11142_v51 = vmul.f32 %v13922_v4, %v10787_v52  ;;  %v13159_v11 = vpop.f32.mrb[15].mxu1 }
0x1415   : > { %v11235_v40 = vrot.slane %v11207_v47, 7  ;;  %v11162_v17 = vpack.c.bf16 %v11142_v51, %v11142_v51 }
0x1416   : > { %v10931_v59 = vpop.f32.mrb[16].mxu1 }
0x1417   : > { %v11236_v56 = vsel %vm11215_vm9, %v11235_v40, %v11206_v61  ;;  %v11209_v30 = vunpack.c.l.b16 %v11162_v17  ;;  %v11146_v33 = vmul.f32 %v13924_v2, %v10931_v59  ;;  %v13169_v43 = vpop.f32.mrb[17].mxu1 }
0x1418   : > { %v11238_v9 = vsel %vm11218_vm10, %v11237_v49, %v11236_v56 }
0x1419   : > { %v11239_v8 = vrot.slane %v11209_v30, 5  ;;  %v11164_v62 = vpack.c.bf16 %v11146_v33, %v11146_v33 }
0x141a   : > { %v11075_v15 = vpop.f32.mrb[18].mxu1 }
0x141b   : > { %v11240_v37 = vsel %vm11221_vm11, %v11239_v8, %v11238_v9  ;;  %v11211_v22 = vunpack.c.l.b16 %v11164_v62  ;;  %v11150_v48 = vmul.f32 %v13926_v5, %v11075_v15  ;;  %v13179_v26 = vpop.f32.mrb[19].mxu1 }
0x141c   : > { %v11242_v27 = vsel %vm11224_vm12, %v11241_v25, %v11240_v37 }
0x141d   : > { %v11243_v1 = vrot.slane %v11211_v22, 3  ;;  %v11166_v34 = vpack.c.bf16 %v11150_v48, %v11150_v48 }
0x141f   : > { %v11244_v14 = vsel %vm11227_vm13, %v11243_v1, %v11242_v27  ;;  %v11213_v60 = vunpack.c.l.b16 %v11166_v34 }
0x1420   : > { %v11246_v35 = vsel %vm11230_vm14, %v11245_v63, %v11244_v14 }
0x1421   : > { %v11247_v24 = vrot.slane %v11213_v60, 1 }
0x1423   : > { %v11248_v12 = vsel %vm11233_vm15, %v11247_v24, %v11246_v35 }
0x1424   : > { %v11249_v42 = vpack.c.b16 %v11248_v12, %v11234_v13 }
0x1426   : > { %13189 = vmatmul.mubr.msk.bf16.vlgmr.msra.gmra.mrb[12].mxu0 %vm810_vm1, %v11249_v42 }
0x14f9   : > { %v11311_v39 = vpop.f32.mrb[12].mxu0 }
0x14fa   : > { %v11312_v23 = vadd.f32 %v11875_v18, %v11311_v39  ;;  %v13190_v7 = vpop.f32.mrb[13].mxu0 }
0x14fb   : > { %v11314_v38 = vpop.f32.mrb[14].mxu0 }
0x14fc   : > { %v11315_v21 = vadd.f32 %v11875_v18, %v11314_v38  ;;  %v13191_v32 = vpop.f32.mrb[15].mxu0  ;;  %v11318_v58 = vmul.f32 %v11312_v23, %v11312_v23 }
0x14fe   : > { %v11320_v29 = vsel %vm810_vm1, %v11318_v58, 0.0  ;;  %v11319_v55 = vmul.f32 %v11315_v21, %v11315_v21 }
0x14ff   : > { %11321 = vadd.xlane.f32.xlu1 %v11320_v29 }
0x1500   : > { %v11323_v57 = vsel %vm810_vm1, %v11319_v55, 0.0 }
0x1503   : > { %11324 = vadd.xlane.f32.xlu1 %v11323_v57 }
0x158c   : > { %v11322_v41 = vpop.xlane.xlu1 %11321 }
0x158d   : > { %13927 = vrsqrt.f32 %v11322_v41  ;;  %vm11328_vm0 = vcmp.eq.f32.partialorder %v11322_v41, inf  ;;  %v11331_v19 = vand.u32 2147483648, %v11322_v41  ;;  %vm11330_vm2 = vcmp.eq.f32.partialorder %v11322_v41, 0.0 }
0x1590   : > { %v11325_v45 = vpop.xlane.xlu1 %11324 }
0x1591   : > { %13929 = vrsqrt.f32 %v11325_v45  ;;  %vm11335_vm3 = vcmp.eq.f32.partialorder %v11325_v45, inf  ;;  %v11338_v28 = vand.u32 2147483648, %v11325_v45  ;;  %vm11337_vm4 = vcmp.eq.f32.partialorder %v11325_v45, 0.0 }
0x1597   : > { %v13928_v20 = vpop.eup %13927 }
0x1598   : > { %v11327_v10 = vmul.f32 %v13928_v20, %v11322_v41 }
0x159a   : > { %v11329_v3 = vsel %vm11328_vm0, %v11322_v41, %v11327_v10 }
0x159b   : > { %v13930_v6 = vpop.eup %13929  ;;  %v11332_v4 = vsel %vm11330_vm2, %v11331_v19, %v11329_v3 }
0x159c   : > { %v11340_v53 = vmax.f32 %v11332_v4, 1e-12  ;;  %v11334_v0 = vmul.f32 %v13930_v6, %v11325_v45 }
0x159e   : > { %13931 = vrcp.f32 %v11340_v53  ;;  %v11336_v46 = vsel %vm11335_vm3, %v11325_v45, %v11334_v0 }
0x159f   : > { %v11339_v16 = vsel %vm11337_vm4, %v11338_v28, %v11336_v46 }
0x15a0   : > { %v11341_v54 = vmax.f32 %v11339_v16, 1e-12 }
0x15a2   : > { %13933 = vrcp.f32 %v11341_v54 }
0x15a8   : > { %v13932_v52 = vpop.eup %13931 }
0x15a9   : > { %v11343_v44 = vmul.f32 %v13932_v52, %v11312_v23 }
0x15ab   : > { %11346 = vst.msk [vmem:[%s14824_s13] sm:$0xff] %vm810_vm1, %v11343_v44 }
0x15ac   : > { %v13934_v13 = vpop.eup %13933 }
0x15ad   : > { %v11345_v47 = vmul.f32 %v13934_v13, %v11315_v21 }
0x15af   : > { %11347 = vst.msk [vmem:[%s14824_s13 + $0x8] sm:$0xff] %vm810_vm1, %v11345_v47 }
0x15b0 PF: > { %s18543_s19 = sld [smem:[#allocation35_spill]]  ;;  %s11938_s27 = sshll.u32 %s14321_s28, 8 }
0x15b1   : > { %s18544_s18 = sld [smem:[#allocation121_spill]]  ;;  %s11362_s23 = sshll.u32 %s14824_s13, 4  ;;  %s18055_s23 = int_to_ptr.vmem [resolvable:$true] %s11362_s23 }
0x15b2   : > { %s18059_s30 = scalar_lea.sflag [#allocation5], %s730_s29  ;;  %s14215_s26 = scalar_lea.vmem %s18055_s23, 256 }
0x15b3   : > { %p14216_p1 = scmp.ne.s32.totalorder %s18055_s23, %s14215_s26  ;;  %s14366_s28 = smov [#allocation20]  }
0x15b4   : > { %s14219_s24 = sshll.u32 %s14366_s28, 4  ;;  %s14220_s24 = int_to_ptr.vmem [resolvable:$false] %s14219_s24 }
0x15b5   : > { %s14221_s16 = scalar_lea.vmem %s14220_s24, 512  ;;  %p14222_p7 = scmp.lt.s32.totalorder %s18055_s23, %s14220_s24 }
0x15b6   : > { %p18545_p4 = scmp.ne.s32.totalorder %s18543_s19, 0  ;;  %p14223_p8 = scmp.lt.s32.totalorder %s14221_s16, %s14215_s26 }
0x15b7   : > { %s18052_s0 = scalar_lea.hbm %s18544_s18, %s11938_s27 }
0x15b8   : > { %p14217_p5 = pnand %p14216_p1, %p18545_p4  ;;  %p14224_p11 = por %p14223_p8, %p14222_p7 }
0x15ba   : > { %p14218_p6 = pneg %p14217_p5 }
0x15bc   : > { %p14225_p12 = pnand %p14224_p11, %p14218_p6 }
0x15be   : > { %14228 = shalt.err (!%p14225_p12)
}
0x15bf   : > { %s14229_s29 = scalar_lea.hbm %s18052_s0, 256  ;;  %s14233_s20 = scalar_lea.hbm %s18544_s18, 512 }
0x15c0   : > { %p14230_p3 = scmp.ne.s32.totalorder %s18052_s0, %s14229_s29  ;;  %p14234_p9 = scmp.lt.u32.totalorder %s18052_s0, %s18544_s18 }
0x15c1   : > { %p14235_p10 = scmp.lt.u32.totalorder %s14233_s20, %s14229_s29  ;;  %p14237_p1 = scmp.lt.u32.totalorder %s14229_s29, %s18052_s0 }
0x15c2   : > { %p14231_p2 = pnand %p14230_p3, %p18545_p4 }
0x15c3   : > { %p14236_p13 = por %p14235_p10, %p14234_p9 }
0x15c4   : > { %p14232_p0 = pneg %p14231_p2 }
0x15c5   : > { %p14238_p5 = por %p14237_p1, %p14236_p13 }
0x15c7   : > { %p14239_p6 = pnand %p14238_p5, %p14232_p0 }
0x15c9   : > { %14242 = shalt.err (!%p14239_p6)
}
0x15ca   : > { %s14367_s14 = smov 128   ;;  %s14368_s27 = smov 8  }
0x15cb   : > { %13232 = dma.vmem_to_hbm [thread:$0]  (%p18545_p4), %s18055_s23, 256, %s18052_s0, %s18059_s30, %s14367_s14, %s14367_s14, %s14368_s27  }
0x15cc PF: > { %s18546_s22 = sld [smem:[#allocation33_spill]]  ;;  %s18547_s1 = sld [smem:[#allocation28_spill]] }
0x15cd   : > { %s18548_s26 = sld [smem:[#allocation37_spill]] }
0x15d2   : > { %p13289_p7 = scmp.ge.s32.totalorder %s18546_s22, 2  ;;  %s11377_s28 = sand.u32 1, %s18547_s1  }
0x15d3   : > { %p18549_p8 = scmp.ne.s32.totalorder %s18548_s26, 0  ;;  %s11378_s24 = scalar_lea.sflag [#allocation5], %s11377_s28 }
0x15d5   : > { %p13266_p11 = pnand %p13289_p7, %p18549_p8 }
0x15d7   : > { %14300 = dma.done.wait (!%p13266_p11), %s11378_s24, 256  }
0x15d8   : > { %14302 = vsyncadd (!%p13266_p11), %s11378_s24, 4294967040  ;;  %s36_s30 = sadd.s32 1, %s18546_s22   ;;  %s18550_s16 = sld [smem:[#allocation29_spill]] }
0x15d9   : > { %p33_p12 = scmp.ge.s32.totalorder %s36_s30, 6   ;;  %s18551_s26 = sld [smem:[#allocation38_spill]] }
0x15da   : > { %s18552_s27 = sld [smem:[#allocation31_spill]]  ;;  %s18553_s28 = sld [smem:[#allocation32_spill]] }
0x15db   : > { %s18554_s29 = sld [smem:[#allocation34_spill]]  ;;  %s18555_s0 = sld [smem:[#allocation36_spill]] }
0x15dc   : > { %s18556_s24 = smov %s14309_s25  ;;  %35 = sbr.rel (!%p33_p12) target bundleno = 19 (0x13), region = 190 }
0x15de   : > { %s18557_s25 = smov %s18550_s16 }
0x15e3   :  { %11383 = vsyncpa [#allocation4], 1 }
0x15e4   :  { %11385 = vsyncpa [#allocation4 + $0x1], 1 }
0x15e5   :  { %11386 = vsyncpa [#allocation7], 1 }
0x15e6   :  { %11387 = vsyncpa [#allocation10], 1 }
0x15e7   :  { %11388 = vsyncpa [#allocation13], 1 }
0x15e8   :  { %11389 = vsyncpa [#allocation16], 1 }
0x15e9   :  { %11390 = vsyncpa [#allocation19], 1 }
0x15ea   :  { %11391 = vsyncpa [#allocation5], 1 }
0x15eb   :  { %11393 = vsyncpa [#allocation5 + $0x1], 1 }

</bundles_post_ra>
